<compile_context>
chip_gen: v5e
topology: v5e:2x2
jax: 0.10.0
libtpu: 0.0.40
codegen_flags: <defaults>
</compile_context>

<pallas_src>
import functools

import jax
import jax.numpy as jnp
from jax.experimental import pallas as pl
from jax.experimental.pallas import tpu as pltpu

INPUT_MEAN = [0.2788, 0.2657, 0.2629]
INPUT_STD = [0.2064, 0.1944, 0.2252]

_MAX_TILE_M = 512                  # largest M tile (bf16 operands) -> ~7.5 MiB worst case
_VMEM_LIMIT = 32 * 1024 * 1024     # explicit scoped-VMEM budget, safe on v5e/v6e/v7x


def _round_up(x, m):
    return (x + m - 1) // m * m


# ----------------------------- Pallas kernels ------------------------------

def _mm_affine_kernel(lhs_ref, rhs_ref, scale_ref, bias_ref, o_ref, *, relu):
    # lhs: (tile_m, K) bf16, rhs: (K, N) bf16, scale/bias: (1, N) f32 -> o: (tile_m, N)
    acc = jnp.dot(lhs_ref[...], rhs_ref[...], preferred_element_type=jnp.float32)
    y = acc * scale_ref[...] + bias_ref[...]
    if relu:
        y = jnp.maximum(y, 0.0)
    o_ref[...] = y.astype(o_ref.dtype)


def _pool_head_kernel(x_ref, w_ref, b_ref, o_ref, *, inv_hw):
    # x block: (1, HW, C); w: (C, N); b: (1, N) -> o block: (1, 1, N)
    pooled = jnp.sum(x_ref[0].astype(jnp.float32), axis=0, keepdims=True) * inv_hw
    o_ref[0] = jnp.dot(pooled, w_ref[...], preferred_element_type=jnp.float32) + b_ref[...]


# ------------------------------ Pallas wrappers -----------------------------

def matmul_affine(lhs, rhs, scale, bias, *, relu, out_dtype=jnp.bfloat16):
    """(M, K) @ (K, N) with fused per-column scale/bias (+ReLU).

    bf16 MXU operands, fp32 accumulate/epilogue. M is always tiled (padded to a
    multiple of the tile) so VMEM use is bounded regardless of the image size.
    """
    M, K = lhs.shape
    _, N = rhs.shape
    lhs = lhs.astype(jnp.bfloat16)
    rhs = rhs.astype(jnp.bfloat16)
    scale = scale.reshape(1, N).astype(jnp.float32)
    bias = bias.reshape(1, N).astype(jnp.float32)

    m_pad = _round_up(M, 8)
    tile_m = min(_MAX_TILE_M, m_pad)
    m_pad = _round_up(m_pad, tile_m)
    if m_pad != M:
        lhs = jnp.pad(lhs, ((0, m_pad - M), (0, 0)))

    out_bytes = m_pad * N * jnp.dtype(out_dtype).itemsize
    cost = pl.CostEstimate(
        flops=2 * m_pad * K * N,
        transcendentals=0,
        bytes_accessed=lhs.size * 2 + rhs.size * 2 + out_bytes,
    )

    out = pl.pallas_call(
        functools.partial(_mm_affine_kernel, relu=relu),
        out_shape=jax.ShapeDtypeStruct((m_pad, N), out_dtype),
        grid=(m_pad // tile_m,),
        in_specs=[
            pl.BlockSpec((tile_m, K), lambda i: (i, 0)),
            # rhs/scale/bias are grid-invariant (index_map -> (0, 0)); Pallas skips
            # re-fetching unchanged blocks, so they stay resident after step 0.
            pl.BlockSpec((K, N), lambda i: (0, 0)),
            pl.BlockSpec((1, N), lambda i: (0, 0)),
            pl.BlockSpec((1, N), lambda i: (0, 0)),
        ],
        out_specs=pl.BlockSpec((tile_m, N), lambda i: (i, 0)),
        compiler_params=pltpu.CompilerParams(
            dimension_semantics=("parallel",),        # v7x: 2 TCs split the M tiles
            vmem_limit_bytes=_VMEM_LIMIT,
        ),
        cost_estimate=cost,
    )(lhs, rhs, scale, bias)
    return out[:M] if m_pad != M else out


def pool_then_head(x, w_head, b_head):
    """Global average pool (B,H,W,C)->(B,C) fused with the linear 1x1 head -> (B, N).

    Exact swap of pool/head order: the head has no nonlinearity, so
    mean(x @ W + b) == mean(x) @ W + b.  Pool input is lane-dense (C channels);
    the lane-sparse N=6 matmul now runs on B rows instead of B*H*W rows.
    """
    B, H, W, C = x.shape
    N = w_head.shape[-1]
    HW = H * W
    x2 = x.reshape(B, HW, C)
    w2 = w_head.reshape(C, N).astype(jnp.float32)
    b2 = b_head.reshape(1, N).astype(jnp.float32)
    out = pl.pallas_call(
        functools.partial(_pool_head_kernel, inv_hw=1.0 / HW),
        out_shape=jax.ShapeDtypeStruct((B, 1, N), jnp.float32),
        grid=(B,),
        in_specs=[
            pl.BlockSpec((1, HW, C), lambda b: (b, 0, 0)),
            pl.BlockSpec((C, N), lambda b: (0, 0)),
            pl.BlockSpec((1, N), lambda b: (0, 0)),
        ],
        out_specs=pl.BlockSpec((1, 1, N), lambda b: (b, 0, 0)),
        compiler_params=pltpu.CompilerParams(
            dimension_semantics=("parallel",),
            vmem_limit_bytes=_VMEM_LIMIT,
        ),
    )(x2, w2, b2)
    return out.reshape(B, N)


# ------------------------------ conv glue (JAX) -----------------------------

def conv2d(x, w, eff_scale, eff_bias, *, stride, padding, relu, out_dtype=jnp.bfloat16):
    """x: (B,H,W,Cin) NHWC; w: (KH,KW,Cin,Cout) HWIO. Matmul runs in Pallas."""
    B, H, W, Cin = x.shape
    KH, KW, _, Cout = w.shape
    if padding:
        x = jnp.pad(x, ((0, 0), (padding, padding), (padding, padding), (0, 0)))
    OH = (H + 2 * padding - KH) // stride + 1
    OW = (W + 2 * padding - KW) // stride + 1
    # TODO(synk): im2col is still materialized in HBM (in bf16); fully fusing the
    # tap gather into the matmul needs element-indexed BlockSpecs / manual DMA.
    cols = []
    for kh in range(KH):
        for kw in range(KW):
            cols.append(
                jax.lax.slice(
                    x,
                    (0, kh, kw, 0),
                    (B, kh + (OH - 1) * stride + 1, kw + (OW - 1) * stride + 1, Cin),
                    (1, stride, stride, 1),
                )
            )
    lhs = jnp.concatenate(cols, axis=-1).reshape(B * OH * OW, KH * KW * Cin)
    rhs = w.reshape(KH * KW * Cin, Cout)
    out = matmul_affine(lhs, rhs, eff_scale, eff_bias, relu=relu, out_dtype=out_dtype)
    return out.reshape(B, OH, OW, Cout)


def conv_transpose2d_s1(x, w_t, bias, *, relu):
    """ConvTranspose2d(k=3, stride=1, padding=1) == direct 3x3 conv, flipped kernel."""
    Cin, Cout, KH, KW = w_t.shape
    w_conv = jnp.transpose(w_t[:, :, ::-1, ::-1], (2, 3, 0, 1))      # HWIO, flipped
    ones = jnp.ones((Cout,), jnp.float32)
    return conv2d(x, w_conv, ones, bias, stride=1, padding=KH - 1 - 1, relu=relu)


def conv_transpose2d_s2(x, w_t, bias, *, relu):
    """ConvTranspose2d(k=3, stride=2, padding=1) via exact sub-pixel decomposition.

    Output (B, 2H-1, 2W-1, Cout).  Each output-parity phase only ever reads real
    input pixels, so no zero-dilated input is built (~4x fewer MACs / smaller LHS).
    """
    B, H, W, Cin = x.shape
    Cout = w_t.shape[1]
    wf = jnp.transpose(w_t[:, :, ::-1, ::-1], (2, 3, 0, 1))          # (3,3,Cin,Cout)
    ones = jnp.ones((Cout,), jnp.float32)

    def phase(wsub):
        return conv2d(x, wsub, ones, bias, stride=1, padding=0, relu=relu)

    p00 = phase(wf[1:2, 1:2])     # even rows / even cols: (B, H,   W,   Cout)
    p01 = phase(wf[1:2, 0::2])    # even rows / odd  cols: (B, H,   W-1, Cout)
    p10 = phase(wf[0::2, 1:2])    # odd  rows / even cols: (B, H-1, W,   Cout)
    p11 = phase(wf[0::2, 0::2])   # odd  rows / odd  cols: (B, H-1, W-1, Cout)

    # interleave the four phases into (B, 2H-1, 2W-1, Cout) using pad/stack/reshape only
    p01 = jnp.pad(p01, ((0, 0), (0, 0), (0, 1), (0, 0)))
    p11 = jnp.pad(p11, ((0, 0), (0, 0), (0, 1), (0, 0)))
    even = jnp.stack([p00, p01], axis=3).reshape(B, H, 2 * W, Cout)[:, :, : 2 * W - 1]
    odd = jnp.stack([p10, p11], axis=3).reshape(B, H - 1, 2 * W, Cout)[:, :, : 2 * W - 1]
    odd = jnp.pad(odd, ((0, 0), (0, 1), (0, 0), (0, 0)))
    y = jnp.stack([even, odd], axis=2).reshape(B, 2 * H, 2 * W - 1, Cout)[:, : 2 * H - 1]
    return y


# ------------------------------ parameters ---------------------------------

def init_params(key, n_wpts=3, in_c=3, feats=(32, 64, 128)):
    kit = iter(jax.random.split(key, 128))

    def conv_w(cin, cout, k):
        fan = k * k * cin
        w = jax.random.normal(next(kit), (k, k, cin, cout), jnp.float32) * (2.0 / fan) ** 0.5
        b = 0.01 * jax.random.normal(next(kit), (cout,), jnp.float32)
        return w, b

    def bn_fold(conv_bias, c):
        # eval-mode BatchNorm2d folded to per-channel scale/bias
        gamma = 1.0 + 0.1 * jax.random.normal(next(kit), (c,), jnp.float32)
        beta = 0.1 * jax.random.normal(next(kit), (c,), jnp.float32)
        rmean = 0.1 * jax.random.normal(next(kit), (c,), jnp.float32)
        rvar = 1.0 + 0.1 * jnp.abs(jax.random.normal(next(kit), (c,), jnp.float32))
        s = gamma * jax.lax.rsqrt(rvar + 1e-5)
        return s, (conv_bias - rmean) * s + beta

    params = {
        "input_mean": jnp.array(INPUT_MEAN, jnp.float32),
        "input_std": jnp.array(INPUT_STD, jnp.float32),
    }

    w0, b0 = conv_w(in_c, feats[0], 3)
    params["enc0"] = (w0, b0)

    enc_blocks = []
    for f in feats:
        blk = {}
        for name, (ci, co) in (("c1", (f, 2 * f)), ("c2", (2 * f, 2 * f))):
            w, b = conv_w(ci, co, 3)
            s, eb = bn_fold(b, co)
            blk[name] = (w, s, eb)
        enc_blocks.append(blk)
    params["enc_blocks"] = enc_blocks

    dec_blocks = []
    for f in reversed(feats):
        blk = {}
        for name, (ci, co) in (("c1", (2 * f, f)), ("c2", (f, f))):
            fan = 9 * ci
            wt = jax.random.normal(next(kit), (ci, co, 3, 3), jnp.float32) * (2.0 / fan) ** 0.5
            b = 0.01 * jax.random.normal(next(kit), (co,), jnp.float32)
            blk[name] = (wt, b)
        dec_blocks.append(blk)
    params["dec_blocks"] = dec_blocks

    wh, bh = conv_w(feats[0], n_wpts * 2, 1)
    params["head"] = (wh, bh)
    return params


# -------------------------------- forward -----------------------------------

def cnn_planner_forward(image, params):
    """image: (B, 3, H, W) NCHW float32 in [0,1] -> waypoints (B, n_wpts, 2)."""
    x = jnp.transpose(image, (0, 2, 3, 1)).astype(jnp.float32)       # NCHW -> NHWC

    # Normalization folded into the stem conv: mean subtract (fuses into the
    # pad/im2col) + 1/std folded into enc0's input-channel weights.  Exact:
    # subtracting before zero padding keeps the padded border at 0 like the
    # reference (which pads the normalized input with zeros).
    mean = params["input_mean"].reshape(1, 1, 1, -1)
    inv_std = (1.0 / params["input_std"]).reshape(1, 1, -1, 1)
    x = (x - mean).astype(jnp.bfloat16)

    w0, b0 = params["enc0"]
    w0 = w0 * inv_std                                               # fold 1/std per Cin
    x = conv2d(x, w0, jnp.ones((w0.shape[-1],), jnp.float32), b0,
               stride=1, padding=1, relu=False)

    # encoder blocks: stride-2 conv + stride-1 conv, each with folded BN + ReLU
    # (Dropout2d is eval-mode identity)
    for blk in params["enc_blocks"]:
        w, s, b = blk["c1"]
        x = conv2d(x, w, s, b, stride=2, padding=1, relu=True)
        w, s, b = blk["c2"]
        x = conv2d(x, w, s, b, stride=1, padding=1, relu=True)

    # decoder blocks: stride-2 convT (sub-pixel) + stride-1 convT, ReLU each
    for blk in params["dec_blocks"]:
        wt, b = blk["c1"]
        x = conv_transpose2d_s2(x, wt, b, relu=True)
        wt, b = blk["c2"]
        x = conv_transpose2d_s1(x, wt, b, relu=True)

    # global average pool, then the (linear) 1x1 head, fused in one Pallas kernel
    wh, bh = params["head"]
    pooled = pool_then_head(x, wh, bh)                              # (B, n_wpts*2) f32
    return pooled.reshape(pooled.shape[0], -1, 2)


# --------------------------------- main --------------------------------------

if __name__ == "__main__":
    key = jax.random.PRNGKey(0)
    pkey, xkey = jax.random.split(key)
    params = init_params(pkey, n_wpts=3, in_c=3, feats=(32, 64, 128))

    # small shapes consistent with the module: batch=2, 3 channels, 16x16 image
    image = jax.random.uniform(xkey, (2, 3, 16, 16), jnp.float32)

    fwd = jax.jit(cnn_planner_forward)
    out = jax.block_until_ready(fwd(image, params))

    assert out.shape == (2, 3, 2), out.shape
    assert bool(jnp.all(jnp.isfinite(out)))
    print("KERNEL_OK")
</pallas_src>

<mosaic_0001>
module attributes {stable_mosaic.version = 11 : i64} {
  func.func @_mm_affine_kernel(%arg0: i32, %arg1: memref<512x27xbf16, #tpu.memory_space<vmem>>, %arg2: memref<27x32xbf16, #tpu.memory_space<vmem>>, %arg3: memref<1x32xf32, #tpu.memory_space<vmem>>, %arg4: memref<1x32xf32, #tpu.memory_space<vmem>>, %arg5: memref<512x32xbf16, #tpu.memory_space<vmem>>) attributes {dimension_semantics = [#tpu.dimension_semantics<parallel>], iteration_bounds = array<i64: 1>, scalar_prefetch = 0 : i64, scratch_operands = 0 : i64, tpu.core_type = #tpu.core_type<tc>, window_params = [{transform_indices = @transform_0, window_bounds = array<i64: 512, 27>}, {pipeline_mode = #tpu.pipeline_mode<synchronous>, transform_indices = @transform_1, window_bounds = array<i64: 27, 32>}, {pipeline_mode = #tpu.pipeline_mode<synchronous>, transform_indices = @transform_2, window_bounds = array<i64: 1, 32>}, {pipeline_mode = #tpu.pipeline_mode<synchronous>, transform_indices = @transform_3, window_bounds = array<i64: 1, 32>}, {transform_indices = @transform_4, window_bounds = array<i64: 512, 32>}]} {
    %c0 = arith.constant 0 : index
    %c0_0 = arith.constant 0 : index
    %0 = vector.load %arg1[%c0, %c0_0] : memref<512x27xbf16, #tpu.memory_space<vmem>>, vector<512x27xbf16>
    %c0_1 = arith.constant 0 : index
    %c0_2 = arith.constant 0 : index
    %1 = vector.load %arg2[%c0_1, %c0_2] : memref<27x32xbf16, #tpu.memory_space<vmem>>, vector<27x32xbf16>
    %cst = arith.constant dense<0.000000e+00> : vector<512x32xf32>
    %2 = tpu.matmul %0, %1, %cst {dimension_numbers = #tpu.dot_dimension_numbers<[1], [0], [0], [1], [0, 0, 1, 1], [], []>} : vector<512x27xbf16>, vector<27x32xbf16>, vector<512x32xf32> -> vector<512x32xf32>
    %c0_3 = arith.constant 0 : index
    %c0_4 = arith.constant 0 : index
    %3 = vector.load %arg3[%c0_3, %c0_4] : memref<1x32xf32, #tpu.memory_space<vmem>>, vector<1x32xf32>
    %4 = vector.broadcast %3 : vector<1x32xf32> to vector<512x32xf32>
    %5 = arith.mulf %2, %4 : vector<512x32xf32>
    %c0_5 = arith.constant 0 : index
    %c0_6 = arith.constant 0 : index
    %6 = vector.load %arg4[%c0_5, %c0_6] : memref<1x32xf32, #tpu.memory_space<vmem>>, vector<1x32xf32>
    %7 = vector.broadcast %6 : vector<1x32xf32> to vector<512x32xf32>
    %8 = arith.addf %5, %7 : vector<512x32xf32>
    %9 = arith.truncf %8 : vector<512x32xf32> to vector<512x32xbf16>
    %c0_7 = arith.constant 0 : index
    %c0_8 = arith.constant 0 : index
    %10 = vector.load %arg5[%c0_7, %c0_8] : memref<512x32xbf16, #tpu.memory_space<vmem>>, vector<512x32xbf16>
    tpu.vector_store %arg5[%c0_7, %c0_8], %9 {strides = array<i32>} : memref<512x32xbf16, #tpu.memory_space<vmem>>, vector<512x32xbf16>,
    return
  }
  func.func @transform_0(%arg0: i32) -> (i32, i32) {
    %c0_i32 = arith.constant 0 : i32
    %c0_i32_0 = arith.constant 0 : i32
    return %arg0, %c0_i32 : i32, i32
  }
  func.func @transform_1(%arg0: i32) -> (i32, i32) {
    %c0_i32 = arith.constant 0 : i32
    %c0_i32_0 = arith.constant 0 : i32
    %c0_i32_1 = arith.constant 0 : i32
    return %c0_i32, %c0_i32_0 : i32, i32
  }
  func.func @transform_2(%arg0: i32) -> (i32, i32) {
    %c0_i32 = arith.constant 0 : i32
    %c0_i32_0 = arith.constant 0 : i32
    %c0_i32_1 = arith.constant 0 : i32
    return %c0_i32, %c0_i32_0 : i32, i32
  }
  func.func @transform_3(%arg0: i32) -> (i32, i32) {
    %c0_i32 = arith.constant 0 : i32
    %c0_i32_0 = arith.constant 0 : i32
    %c0_i32_1 = arith.constant 0 : i32
    return %c0_i32, %c0_i32_0 : i32, i32
  }
  func.func @transform_4(%arg0: i32) -> (i32, i32) {
    %c0_i32 = arith.constant 0 : i32
    %c0_i32_0 = arith.constant 0 : i32
    return %arg0, %c0_i32 : i32, i32
  }
}

module attributes {stable_mosaic.version = 11 : i64} {
  func.func @_mm_affine_kernel(%arg0: i32, %arg1: memref<128x288xbf16, #tpu.memory_space<vmem>>, %arg2: memref<288x64xbf16, #tpu.memory_space<vmem>>, %arg3: memref<1x64xf32, #tpu.memory_space<vmem>>, %arg4: memref<1x64xf32, #tpu.memory_space<vmem>>, %arg5: memref<128x64xbf16, #tpu.memory_space<vmem>>) attributes {dimension_semantics = [#tpu.dimension_semantics<parallel>], iteration_bounds = array<i64: 1>, scalar_prefetch = 0 : i64, scratch_operands = 0 : i64, tpu.core_type = #tpu.core_type<tc>, window_params = [{transform_indices = @transform_0, window_bounds = array<i64: 128, 288>}, {pipeline_mode = #tpu.pipeline_mode<synchronous>, transform_indices = @transform_1, window_bounds = array<i64: 288, 64>}, {pipeline_mode = #tpu.pipeline_mode<synchronous>, transform_indices = @transform_2, window_bounds = array<i64: 1, 64>}, {pipeline_mode = #tpu.pipeline_mode<synchronous>, transform_indices = @transform_3, window_bounds = array<i64: 1, 64>}, {transform_indices = @transform_4, window_bounds = array<i64: 128, 64>}]} {
    %c0 = arith.constant 0 : index
    %c0_0 = arith.constant 0 : index
    %0 = vector.load %arg1[%c0, %c0_0] : memref<128x288xbf16, #tpu.memory_space<vmem>>, vector<128x288xbf16>
    %c0_1 = arith.constant 0 : index
    %c0_2 = arith.constant 0 : index
    %1 = vector.load %arg2[%c0_1, %c0_2] : memref<288x64xbf16, #tpu.memory_space<vmem>>, vector<288x64xbf16>
    %cst = arith.constant dense<0.000000e+00> : vector<128x64xf32>
    %2 = tpu.matmul %0, %1, %cst {dimension_numbers = #tpu.dot_dimension_numbers<[1], [0], [0], [1], [0, 0, 1, 1], [], []>} : vector<128x288xbf16>, vector<288x64xbf16>, vector<128x64xf32> -> vector<128x64xf32>
    %c0_3 = arith.constant 0 : index
    %c0_4 = arith.constant 0 : index
    %3 = vector.load %arg3[%c0_3, %c0_4] : memref<1x64xf32, #tpu.memory_space<vmem>>, vector<1x64xf32>
    %4 = vector.broadcast %3 : vector<1x64xf32> to vector<128x64xf32>
    %5 = arith.mulf %2, %4 : vector<128x64xf32>
    %c0_5 = arith.constant 0 : index
    %c0_6 = arith.constant 0 : index
    %6 = vector.load %arg4[%c0_5, %c0_6] : memref<1x64xf32, #tpu.memory_space<vmem>>, vector<1x64xf32>
    %7 = vector.broadcast %6 : vector<1x64xf32> to vector<128x64xf32>
    %8 = arith.addf %5, %7 : vector<128x64xf32>
    %cst_7 = arith.constant 0.000000e+00 : f32
    %9 = vector.broadcast %cst_7 : f32 to vector<128x64xf32>
    %10 = arith.maximumf %8, %9 : vector<128x64xf32>
    %11 = arith.truncf %10 : vector<128x64xf32> to vector<128x64xbf16>
    %c0_8 = arith.constant 0 : index
    %c0_9 = arith.constant 0 : index
    %12 = vector.load %arg5[%c0_8, %c0_9] : memref<128x64xbf16, #tpu.memory_space<vmem>>, vector<128x64xbf16>
    tpu.vector_store %arg5[%c0_8, %c0_9], %11 {strides = array<i32>} : memref<128x64xbf16, #tpu.memory_space<vmem>>, vector<128x64xbf16>,
    return
  }
  func.func @transform_0(%arg0: i32) -> (i32, i32) {
    %c0_i32 = arith.constant 0 : i32
    %c0_i32_0 = arith.constant 0 : i32
    return %arg0, %c0_i32 : i32, i32
  }
  func.func @transform_1(%arg0: i32) -> (i32, i32) {
    %c0_i32 = arith.constant 0 : i32
    %c0_i32_0 = arith.constant 0 : i32
    %c0_i32_1 = arith.constant 0 : i32
    return %c0_i32, %c0_i32_0 : i32, i32
  }
  func.func @transform_2(%arg0: i32) -> (i32, i32) {
    %c0_i32 = arith.constant 0 : i32
    %c0_i32_0 = arith.constant 0 : i32
    %c0_i32_1 = arith.constant 0 : i32
    return %c0_i32, %c0_i32_0 : i32, i32
  }
  func.func @transform_3(%arg0: i32) -> (i32, i32) {
    %c0_i32 = arith.constant 0 : i32
    %c0_i32_0 = arith.constant 0 : i32
    %c0_i32_1 = arith.constant 0 : i32
    return %c0_i32, %c0_i32_0 : i32, i32
  }
  func.func @transform_4(%arg0: i32) -> (i32, i32) {
    %c0_i32 = arith.constant 0 : i32
    %c0_i32_0 = arith.constant 0 : i32
    return %arg0, %c0_i32 : i32, i32
  }
}

module attributes {stable_mosaic.version = 11 : i64} {
  func.func @_mm_affine_kernel(%arg0: i32, %arg1: memref<128x576xbf16, #tpu.memory_space<vmem>>, %arg2: memref<576x64xbf16, #tpu.memory_space<vmem>>, %arg3: memref<1x64xf32, #tpu.memory_space<vmem>>, %arg4: memref<1x64xf32, #tpu.memory_space<vmem>>, %arg5: memref<128x64xbf16, #tpu.memory_space<vmem>>) attributes {dimension_semantics = [#tpu.dimension_semantics<parallel>], iteration_bounds = array<i64: 1>, scalar_prefetch = 0 : i64, scratch_operands = 0 : i64, tpu.core_type = #tpu.core_type<tc>, window_params = [{transform_indices = @transform_0, window_bounds = array<i64: 128, 576>}, {pipeline_mode = #tpu.pipeline_mode<synchronous>, transform_indices = @transform_1, window_bounds = array<i64: 576, 64>}, {pipeline_mode = #tpu.pipeline_mode<synchronous>, transform_indices = @transform_2, window_bounds = array<i64: 1, 64>}, {pipeline_mode = #tpu.pipeline_mode<synchronous>, transform_indices = @transform_3, window_bounds = array<i64: 1, 64>}, {transform_indices = @transform_4, window_bounds = array<i64: 128, 64>}]} {
    %c0 = arith.constant 0 : index
    %c0_0 = arith.constant 0 : index
    %0 = vector.load %arg1[%c0, %c0_0] : memref<128x576xbf16, #tpu.memory_space<vmem>>, vector<128x576xbf16>
    %c0_1 = arith.constant 0 : index
    %c0_2 = arith.constant 0 : index
    %1 = vector.load %arg2[%c0_1, %c0_2] : memref<576x64xbf16, #tpu.memory_space<vmem>>, vector<576x64xbf16>
    %cst = arith.constant dense<0.000000e+00> : vector<128x64xf32>
    %2 = tpu.matmul %0, %1, %cst {dimension_numbers = #tpu.dot_dimension_numbers<[1], [0], [0], [1], [0, 0, 1, 1], [], []>} : vector<128x576xbf16>, vector<576x64xbf16>, vector<128x64xf32> -> vector<128x64xf32>
    %c0_3 = arith.constant 0 : index
    %c0_4 = arith.constant 0 : index
    %3 = vector.load %arg3[%c0_3, %c0_4] : memref<1x64xf32, #tpu.memory_space<vmem>>, vector<1x64xf32>
    %4 = vector.broadcast %3 : vector<1x64xf32> to vector<128x64xf32>
    %5 = arith.mulf %2, %4 : vector<128x64xf32>
    %c0_5 = arith.constant 0 : index
    %c0_6 = arith.constant 0 : index
    %6 = vector.load %arg4[%c0_5, %c0_6] : memref<1x64xf32, #tpu.memory_space<vmem>>, vector<1x64xf32>
    %7 = vector.broadcast %6 : vector<1x64xf32> to vector<128x64xf32>
    %8 = arith.addf %5, %7 : vector<128x64xf32>
    %cst_7 = arith.constant 0.000000e+00 : f32
    %9 = vector.broadcast %cst_7 : f32 to vector<128x64xf32>
    %10 = arith.maximumf %8, %9 : vector<128x64xf32>
    %11 = arith.truncf %10 : vector<128x64xf32> to vector<128x64xbf16>
    %c0_8 = arith.constant 0 : index
    %c0_9 = arith.constant 0 : index
    %12 = vector.load %arg5[%c0_8, %c0_9] : memref<128x64xbf16, #tpu.memory_space<vmem>>, vector<128x64xbf16>
    tpu.vector_store %arg5[%c0_8, %c0_9], %11 {strides = array<i32>} : memref<128x64xbf16, #tpu.memory_space<vmem>>, vector<128x64xbf16>,
    return
  }
  func.func @transform_0(%arg0: i32) -> (i32, i32) {
    %c0_i32 = arith.constant 0 : i32
    %c0_i32_0 = arith.constant 0 : i32
    return %arg0, %c0_i32 : i32, i32
  }
  func.func @transform_1(%arg0: i32) -> (i32, i32) {
    %c0_i32 = arith.constant 0 : i32
    %c0_i32_0 = arith.constant 0 : i32
    %c0_i32_1 = arith.constant 0 : i32
    return %c0_i32, %c0_i32_0 : i32, i32
  }
  func.func @transform_2(%arg0: i32) -> (i32, i32) {
    %c0_i32 = arith.constant 0 : i32
    %c0_i32_0 = arith.constant 0 : i32
    %c0_i32_1 = arith.constant 0 : i32
    return %c0_i32, %c0_i32_0 : i32, i32
  }
  func.func @transform_3(%arg0: i32) -> (i32, i32) {
    %c0_i32 = arith.constant 0 : i32
    %c0_i32_0 = arith.constant 0 : i32
    %c0_i32_1 = arith.constant 0 : i32
    return %c0_i32, %c0_i32_0 : i32, i32
  }
  func.func @transform_4(%arg0: i32) -> (i32, i32) {
    %c0_i32 = arith.constant 0 : i32
    %c0_i32_0 = arith.constant 0 : i32
    return %arg0, %c0_i32 : i32, i32
  }
}

module attributes {stable_mosaic.version = 11 : i64} {
  func.func @_mm_affine_kernel(%arg0: i32, %arg1: memref<32x1152xbf16, #tpu.memory_space<vmem>>, %arg2: memref<1152x128xbf16, #tpu.memory_space<vmem>>, %arg3: memref<1x128xf32, #tpu.memory_space<vmem>>, %arg4: memref<1x128xf32, #tpu.memory_space<vmem>>, %arg5: memref<32x128xbf16, #tpu.memory_space<vmem>>) attributes {dimension_semantics = [#tpu.dimension_semantics<parallel>], iteration_bounds = array<i64: 1>, scalar_prefetch = 0 : i64, scratch_operands = 0 : i64, tpu.core_type = #tpu.core_type<tc>, window_params = [{transform_indices = @transform_0, window_bounds = array<i64: 32, 1152>}, {pipeline_mode = #tpu.pipeline_mode<synchronous>, transform_indices = @transform_1, window_bounds = array<i64: 1152, 128>}, {pipeline_mode = #tpu.pipeline_mode<synchronous>, transform_indices = @transform_2, window_bounds = array<i64: 1, 128>}, {pipeline_mode = #tpu.pipeline_mode<synchronous>, transform_indices = @transform_3, window_bounds = array<i64: 1, 128>}, {transform_indices = @transform_4, window_bounds = array<i64: 32, 128>}]} {
    %c0 = arith.constant 0 : index
    %c0_0 = arith.constant 0 : index
    %0 = vector.load %arg1[%c0, %c0_0] : memref<32x1152xbf16, #tpu.memory_space<vmem>>, vector<32x1152xbf16>
    %c0_1 = arith.constant 0 : index
    %c0_2 = arith.constant 0 : index
    %1 = vector.load %arg2[%c0_1, %c0_2] : memref<1152x128xbf16, #tpu.memory_space<vmem>>, vector<1152x128xbf16>
    %cst = arith.constant dense<0.000000e+00> : vector<32x128xf32>
    %2 = tpu.matmul %0, %1, %cst {dimension_numbers = #tpu.dot_dimension_numbers<[1], [0], [0], [1], [0, 0, 1, 1], [], []>} : vector<32x1152xbf16>, vector<1152x128xbf16>, vector<32x128xf32> -> vector<32x128xf32>
    %c0_3 = arith.constant 0 : index
    %c0_4 = arith.constant 0 : index
    %3 = vector.load %arg3[%c0_3, %c0_4] : memref<1x128xf32, #tpu.memory_space<vmem>>, vector<1x128xf32>
    %4 = vector.broadcast %3 : vector<1x128xf32> to vector<32x128xf32>
    %5 = arith.mulf %2, %4 : vector<32x128xf32>
    %c0_5 = arith.constant 0 : index
    %c0_6 = arith.constant 0 : index
    %6 = vector.load %arg4[%c0_5, %c0_6] : memref<1x128xf32, #tpu.memory_space<vmem>>, vector<1x128xf32>
    %7 = vector.broadcast %6 : vector<1x128xf32> to vector<32x128xf32>
    %8 = arith.addf %5, %7 : vector<32x128xf32>
    %cst_7 = arith.constant 0.000000e+00 : f32
    %9 = vector.broadcast %cst_7 : f32 to vector<32x128xf32>
    %10 = arith.maximumf %8, %9 : vector<32x128xf32>
    %11 = arith.truncf %10 : vector<32x128xf32> to vector<32x128xbf16>
    %c0_8 = arith.constant 0 : index
    %c0_9 = arith.constant 0 : index
    %12 = vector.load %arg5[%c0_8, %c0_9] : memref<32x128xbf16, #tpu.memory_space<vmem>>, vector<32x128xbf16>
    tpu.vector_store %arg5[%c0_8, %c0_9], %11 {strides = array<i32>} : memref<32x128xbf16, #tpu.memory_space<vmem>>, vector<32x128xbf16>,
    return
  }
  func.func @transform_0(%arg0: i32) -> (i32, i32) {
    %c0_i32 = arith.constant 0 : i32
    %c0_i32_0 = arith.constant 0 : i32
    return %arg0, %c0_i32 : i32, i32
  }
  func.func @transform_1(%arg0: i32) -> (i32, i32) {
    %c0_i32 = arith.constant 0 : i32
    %c0_i32_0 = arith.constant 0 : i32
    %c0_i32_1 = arith.constant 0 : i32
    return %c0_i32, %c0_i32_0 : i32, i32
  }
  func.func @transform_2(%arg0: i32) -> (i32, i32) {
    %c0_i32 = arith.constant 0 : i32
    %c0_i32_0 = arith.constant 0 : i32
    %c0_i32_1 = arith.constant 0 : i32
    return %c0_i32, %c0_i32_0 : i32, i32
  }
  func.func @transform_3(%arg0: i32) -> (i32, i32) {
    %c0_i32 = arith.constant 0 : i32
    %c0_i32_0 = arith.constant 0 : i32
    %c0_i32_1 = arith.constant 0 : i32
    return %c0_i32, %c0_i32_0 : i32, i32
  }
  func.func @transform_4(%arg0: i32) -> (i32, i32) {
    %c0_i32 = arith.constant 0 : i32
    %c0_i32_0 = arith.constant 0 : i32
    return %arg0, %c0_i32 : i32, i32
  }
}

module attributes {stable_mosaic.version = 11 : i64} {
  func.func @_mm_affine_kernel(%arg0: i32, %arg1: memref<32x576xbf16, #tpu.memory_space<vmem>>, %arg2: memref<576x128xbf16, #tpu.memory_space<vmem>>, %arg3: memref<1x128xf32, #tpu.memory_space<vmem>>, %arg4: memref<1x128xf32, #tpu.memory_space<vmem>>, %arg5: memref<32x128xbf16, #tpu.memory_space<vmem>>) attributes {dimension_semantics = [#tpu.dimension_semantics<parallel>], iteration_bounds = array<i64: 1>, scalar_prefetch = 0 : i64, scratch_operands = 0 : i64, tpu.core_type = #tpu.core_type<tc>, window_params = [{transform_indices = @transform_0, window_bounds = array<i64: 32, 576>}, {pipeline_mode = #tpu.pipeline_mode<synchronous>, transform_indices = @transform_1, window_bounds = array<i64: 576, 128>}, {pipeline_mode = #tpu.pipeline_mode<synchronous>, transform_indices = @transform_2, window_bounds = array<i64: 1, 128>}, {pipeline_mode = #tpu.pipeline_mode<synchronous>, transform_indices = @transform_3, window_bounds = array<i64: 1, 128>}, {transform_indices = @transform_4, window_bounds = array<i64: 32, 128>}]} {
    %c0 = arith.constant 0 : index
    %c0_0 = arith.constant 0 : index
    %0 = vector.load %arg1[%c0, %c0_0] : memref<32x576xbf16, #tpu.memory_space<vmem>>, vector<32x576xbf16>
    %c0_1 = arith.constant 0 : index
    %c0_2 = arith.constant 0 : index
    %1 = vector.load %arg2[%c0_1, %c0_2] : memref<576x128xbf16, #tpu.memory_space<vmem>>, vector<576x128xbf16>
    %cst = arith.constant dense<0.000000e+00> : vector<32x128xf32>
    %2 = tpu.matmul %0, %1, %cst {dimension_numbers = #tpu.dot_dimension_numbers<[1], [0], [0], [1], [0, 0, 1, 1], [], []>} : vector<32x576xbf16>, vector<576x128xbf16>, vector<32x128xf32> -> vector<32x128xf32>
    %c0_3 = arith.constant 0 : index
    %c0_4 = arith.constant 0 : index
    %3 = vector.load %arg3[%c0_3, %c0_4] : memref<1x128xf32, #tpu.memory_space<vmem>>, vector<1x128xf32>
    %4 = vector.broadcast %3 : vector<1x128xf32> to vector<32x128xf32>
    %5 = arith.mulf %2, %4 : vector<32x128xf32>
    %c0_5 = arith.constant 0 : index
    %c0_6 = arith.constant 0 : index
    %6 = vector.load %arg4[%c0_5, %c0_6] : memref<1x128xf32, #tpu.memory_space<vmem>>, vector<1x128xf32>
    %7 = vector.broadcast %6 : vector<1x128xf32> to vector<32x128xf32>
    %8 = arith.addf %5, %7 : vector<32x128xf32>
    %cst_7 = arith.constant 0.000000e+00 : f32
    %9 = vector.broadcast %cst_7 : f32 to vector<32x128xf32>
    %10 = arith.maximumf %8, %9 : vector<32x128xf32>
    %11 = arith.truncf %10 : vector<32x128xf32> to vector<32x128xbf16>
    %c0_8 = arith.constant 0 : index
    %c0_9 = arith.constant 0 : index
    %12 = vector.load %arg5[%c0_8, %c0_9] : memref<32x128xbf16, #tpu.memory_space<vmem>>, vector<32x128xbf16>
    tpu.vector_store %arg5[%c0_8, %c0_9], %11 {strides = array<i32>} : memref<32x128xbf16, #tpu.memory_space<vmem>>, vector<32x128xbf16>,
    return
  }
  func.func @transform_0(%arg0: i32) -> (i32, i32) {
    %c0_i32 = arith.constant 0 : i32
    %c0_i32_0 = arith.constant 0 : i32
    return %arg0, %c0_i32 : i32, i32
  }
  func.func @transform_1(%arg0: i32) -> (i32, i32) {
    %c0_i32 = arith.constant 0 : i32
    %c0_i32_0 = arith.constant 0 : i32
    %c0_i32_1 = arith.constant 0 : i32
    return %c0_i32, %c0_i32_0 : i32, i32
  }
  func.func @transform_2(%arg0: i32) -> (i32, i32) {
    %c0_i32 = arith.constant 0 : i32
    %c0_i32_0 = arith.constant 0 : i32
    %c0_i32_1 = arith.constant 0 : i32
    return %c0_i32, %c0_i32_0 : i32, i32
  }
  func.func @transform_3(%arg0: i32) -> (i32, i32) {
    %c0_i32 = arith.constant 0 : i32
    %c0_i32_0 = arith.constant 0 : i32
    %c0_i32_1 = arith.constant 0 : i32
    return %c0_i32, %c0_i32_0 : i32, i32
  }
  func.func @transform_4(%arg0: i32) -> (i32, i32) {
    %c0_i32 = arith.constant 0 : i32
    %c0_i32_0 = arith.constant 0 : i32
    return %arg0, %c0_i32 : i32, i32
  }
}

module attributes {stable_mosaic.version = 11 : i64} {
  func.func @_mm_affine_kernel(%arg0: i32, %arg1: memref<8x1152xbf16, #tpu.memory_space<vmem>>, %arg2: memref<1152x256xbf16, #tpu.memory_space<vmem>>, %arg3: memref<1x256xf32, #tpu.memory_space<vmem>>, %arg4: memref<1x256xf32, #tpu.memory_space<vmem>>, %arg5: memref<8x256xbf16, #tpu.memory_space<vmem>>) attributes {dimension_semantics = [#tpu.dimension_semantics<parallel>], iteration_bounds = array<i64: 1>, scalar_prefetch = 0 : i64, scratch_operands = 0 : i64, tpu.core_type = #tpu.core_type<tc>, window_params = [{transform_indices = @transform_0, window_bounds = array<i64: 8, 1152>}, {pipeline_mode = #tpu.pipeline_mode<synchronous>, transform_indices = @transform_1, window_bounds = array<i64: 1152, 256>}, {pipeline_mode = #tpu.pipeline_mode<synchronous>, transform_indices = @transform_2, window_bounds = array<i64: 1, 256>}, {pipeline_mode = #tpu.pipeline_mode<synchronous>, transform_indices = @transform_3, window_bounds = array<i64: 1, 256>}, {transform_indices = @transform_4, window_bounds = array<i64: 8, 256>}]} {
    %c0 = arith.constant 0 : index
    %c0_0 = arith.constant 0 : index
    %0 = vector.load %arg1[%c0, %c0_0] : memref<8x1152xbf16, #tpu.memory_space<vmem>>, vector<8x1152xbf16>
    %c0_1 = arith.constant 0 : index
    %c0_2 = arith.constant 0 : index
    %1 = vector.load %arg2[%c0_1, %c0_2] : memref<1152x256xbf16, #tpu.memory_space<vmem>>, vector<1152x256xbf16>
    %cst = arith.constant dense<0.000000e+00> : vector<8x256xf32>
    %2 = tpu.matmul %0, %1, %cst {dimension_numbers = #tpu.dot_dimension_numbers<[1], [0], [0], [1], [0, 0, 1, 1], [], []>} : vector<8x1152xbf16>, vector<1152x256xbf16>, vector<8x256xf32> -> vector<8x256xf32>
    %c0_3 = arith.constant 0 : index
    %c0_4 = arith.constant 0 : index
    %3 = vector.load %arg3[%c0_3, %c0_4] : memref<1x256xf32, #tpu.memory_space<vmem>>, vector<1x256xf32>
    %4 = vector.broadcast %3 : vector<1x256xf32> to vector<8x256xf32>
    %5 = arith.mulf %2, %4 : vector<8x256xf32>
    %c0_5 = arith.constant 0 : index
    %c0_6 = arith.constant 0 : index
    %6 = vector.load %arg4[%c0_5, %c0_6] : memref<1x256xf32, #tpu.memory_space<vmem>>, vector<1x256xf32>
    %7 = vector.broadcast %6 : vector<1x256xf32> to vector<8x256xf32>
    %8 = arith.addf %5, %7 : vector<8x256xf32>
    %cst_7 = arith.constant 0.000000e+00 : f32
    %9 = vector.broadcast %cst_7 : f32 to vector<8x256xf32>
    %10 = arith.maximumf %8, %9 : vector<8x256xf32>
    %11 = arith.truncf %10 : vector<8x256xf32> to vector<8x256xbf16>
    %c0_8 = arith.constant 0 : index
    %c0_9 = arith.constant 0 : index
    %12 = vector.load %arg5[%c0_8, %c0_9] : memref<8x256xbf16, #tpu.memory_space<vmem>>, vector<8x256xbf16>
    tpu.vector_store %arg5[%c0_8, %c0_9], %11 {strides = array<i32>} : memref<8x256xbf16, #tpu.memory_space<vmem>>, vector<8x256xbf16>,
    return
  }
  func.func @transform_0(%arg0: i32) -> (i32, i32) {
    %c0_i32 = arith.constant 0 : i32
    %c0_i32_0 = arith.constant 0 : i32
    return %arg0, %c0_i32 : i32, i32
  }
  func.func @transform_1(%arg0: i32) -> (i32, i32) {
    %c0_i32 = arith.constant 0 : i32
    %c0_i32_0 = arith.constant 0 : i32
    %c0_i32_1 = arith.constant 0 : i32
    return %c0_i32, %c0_i32_0 : i32, i32
  }
  func.func @transform_2(%arg0: i32) -> (i32, i32) {
    %c0_i32 = arith.constant 0 : i32
    %c0_i32_0 = arith.constant 0 : i32
    %c0_i32_1 = arith.constant 0 : i32
    return %c0_i32, %c0_i32_0 : i32, i32
  }
  func.func @transform_3(%arg0: i32) -> (i32, i32) {
    %c0_i32 = arith.constant 0 : i32
    %c0_i32_0 = arith.constant 0 : i32
    %c0_i32_1 = arith.constant 0 : i32
    return %c0_i32, %c0_i32_0 : i32, i32
  }
  func.func @transform_4(%arg0: i32) -> (i32, i32) {
    %c0_i32 = arith.constant 0 : i32
    %c0_i32_0 = arith.constant 0 : i32
    return %arg0, %c0_i32 : i32, i32
  }
}

module attributes {stable_mosaic.version = 11 : i64} {
  func.func @_mm_affine_kernel(%arg0: i32, %arg1: memref<8x2304xbf16, #tpu.memory_space<vmem>>, %arg2: memref<2304x256xbf16, #tpu.memory_space<vmem>>, %arg3: memref<1x256xf32, #tpu.memory_space<vmem>>, %arg4: memref<1x256xf32, #tpu.memory_space<vmem>>, %arg5: memref<8x256xbf16, #tpu.memory_space<vmem>>) attributes {dimension_semantics = [#tpu.dimension_semantics<parallel>], iteration_bounds = array<i64: 1>, scalar_prefetch = 0 : i64, scratch_operands = 0 : i64, tpu.core_type = #tpu.core_type<tc>, window_params = [{transform_indices = @transform_0, window_bounds = array<i64: 8, 2304>}, {pipeline_mode = #tpu.pipeline_mode<synchronous>, transform_indices = @transform_1, window_bounds = array<i64: 2304, 256>}, {pipeline_mode = #tpu.pipeline_mode<synchronous>, transform_indices = @transform_2, window_bounds = array<i64: 1, 256>}, {pipeline_mode = #tpu.pipeline_mode<synchronous>, transform_indices = @transform_3, window_bounds = array<i64: 1, 256>}, {transform_indices = @transform_4, window_bounds = array<i64: 8, 256>}]} {
    %c0 = arith.constant 0 : index
    %c0_0 = arith.constant 0 : index
    %0 = vector.load %arg1[%c0, %c0_0] : memref<8x2304xbf16, #tpu.memory_space<vmem>>, vector<8x2304xbf16>
    %c0_1 = arith.constant 0 : index
    %c0_2 = arith.constant 0 : index
    %1 = vector.load %arg2[%c0_1, %c0_2] : memref<2304x256xbf16, #tpu.memory_space<vmem>>, vector<2304x256xbf16>
    %cst = arith.constant dense<0.000000e+00> : vector<8x256xf32>
    %2 = tpu.matmul %0, %1, %cst {dimension_numbers = #tpu.dot_dimension_numbers<[1], [0], [0], [1], [0, 0, 1, 1], [], []>} : vector<8x2304xbf16>, vector<2304x256xbf16>, vector<8x256xf32> -> vector<8x256xf32>
    %c0_3 = arith.constant 0 : index
    %c0_4 = arith.constant 0 : index
    %3 = vector.load %arg3[%c0_3, %c0_4] : memref<1x256xf32, #tpu.memory_space<vmem>>, vector<1x256xf32>
    %4 = vector.broadcast %3 : vector<1x256xf32> to vector<8x256xf32>
    %5 = arith.mulf %2, %4 : vector<8x256xf32>
    %c0_5 = arith.constant 0 : index
    %c0_6 = arith.constant 0 : index
    %6 = vector.load %arg4[%c0_5, %c0_6] : memref<1x256xf32, #tpu.memory_space<vmem>>, vector<1x256xf32>
    %7 = vector.broadcast %6 : vector<1x256xf32> to vector<8x256xf32>
    %8 = arith.addf %5, %7 : vector<8x256xf32>
    %cst_7 = arith.constant 0.000000e+00 : f32
    %9 = vector.broadcast %cst_7 : f32 to vector<8x256xf32>
    %10 = arith.maximumf %8, %9 : vector<8x256xf32>
    %11 = arith.truncf %10 : vector<8x256xf32> to vector<8x256xbf16>
    %c0_8 = arith.constant 0 : index
    %c0_9 = arith.constant 0 : index
    %12 = vector.load %arg5[%c0_8, %c0_9] : memref<8x256xbf16, #tpu.memory_space<vmem>>, vector<8x256xbf16>
    tpu.vector_store %arg5[%c0_8, %c0_9], %11 {strides = array<i32>} : memref<8x256xbf16, #tpu.memory_space<vmem>>, vector<8x256xbf16>,
    return
  }
  func.func @transform_0(%arg0: i32) -> (i32, i32) {
    %c0_i32 = arith.constant 0 : i32
    %c0_i32_0 = arith.constant 0 : i32
    return %arg0, %c0_i32 : i32, i32
  }
  func.func @transform_1(%arg0: i32) -> (i32, i32) {
    %c0_i32 = arith.constant 0 : i32
    %c0_i32_0 = arith.constant 0 : i32
    %c0_i32_1 = arith.constant 0 : i32
    return %c0_i32, %c0_i32_0 : i32, i32
  }
  func.func @transform_2(%arg0: i32) -> (i32, i32) {
    %c0_i32 = arith.constant 0 : i32
    %c0_i32_0 = arith.constant 0 : i32
    %c0_i32_1 = arith.constant 0 : i32
    return %c0_i32, %c0_i32_0 : i32, i32
  }
  func.func @transform_3(%arg0: i32) -> (i32, i32) {
    %c0_i32 = arith.constant 0 : i32
    %c0_i32_0 = arith.constant 0 : i32
    %c0_i32_1 = arith.constant 0 : i32
    return %c0_i32, %c0_i32_0 : i32, i32
  }
  func.func @transform_4(%arg0: i32) -> (i32, i32) {
    %c0_i32 = arith.constant 0 : i32
    %c0_i32_0 = arith.constant 0 : i32
    return %arg0, %c0_i32 : i32, i32
  }
}

module attributes {stable_mosaic.version = 11 : i64} {
  func.func @_mm_affine_kernel(%arg0: i32, %arg1: memref<8x512xbf16, #tpu.memory_space<vmem>>, %arg2: memref<512x128xbf16, #tpu.memory_space<vmem>>, %arg3: memref<1x128xf32, #tpu.memory_space<vmem>>, %arg4: memref<1x128xf32, #tpu.memory_space<vmem>>, %arg5: memref<8x128xbf16, #tpu.memory_space<vmem>>) attributes {dimension_semantics = [#tpu.dimension_semantics<parallel>], iteration_bounds = array<i64: 1>, scalar_prefetch = 0 : i64, scratch_operands = 0 : i64, tpu.core_type = #tpu.core_type<tc>, window_params = [{transform_indices = @transform_0, window_bounds = array<i64: 8, 512>}, {pipeline_mode = #tpu.pipeline_mode<synchronous>, transform_indices = @transform_1, window_bounds = array<i64: 512, 128>}, {pipeline_mode = #tpu.pipeline_mode<synchronous>, transform_indices = @transform_2, window_bounds = array<i64: 1, 128>}, {pipeline_mode = #tpu.pipeline_mode<synchronous>, transform_indices = @transform_3, window_bounds = array<i64: 1, 128>}, {transform_indices = @transform_4, window_bounds = array<i64: 8, 128>}]} {
    %c0 = arith.constant 0 : index
    %c0_0 = arith.constant 0 : index
    %0 = vector.load %arg1[%c0, %c0_0] : memref<8x512xbf16, #tpu.memory_space<vmem>>, vector<8x512xbf16>
    %c0_1 = arith.constant 0 : index
    %c0_2 = arith.constant 0 : index
    %1 = vector.load %arg2[%c0_1, %c0_2] : memref<512x128xbf16, #tpu.memory_space<vmem>>, vector<512x128xbf16>
    %cst = arith.constant dense<0.000000e+00> : vector<8x128xf32>
    %2 = tpu.matmul %0, %1, %cst {dimension_numbers = #tpu.dot_dimension_numbers<[1], [0], [0], [1], [0, 0, 1, 1], [], []>} : vector<8x512xbf16>, vector<512x128xbf16>, vector<8x128xf32> -> vector<8x128xf32>
    %c0_3 = arith.constant 0 : index
    %c0_4 = arith.constant 0 : index
    %3 = vector.load %arg3[%c0_3, %c0_4] : memref<1x128xf32, #tpu.memory_space<vmem>>, vector<1x128xf32>
    %4 = vector.broadcast %3 : vector<1x128xf32> to vector<8x128xf32>
    %5 = arith.mulf %2, %4 : vector<8x128xf32>
    %c0_5 = arith.constant 0 : index
    %c0_6 = arith.constant 0 : index
    %6 = vector.load %arg4[%c0_5, %c0_6] : memref<1x128xf32, #tpu.memory_space<vmem>>, vector<1x128xf32>
    %7 = vector.broadcast %6 : vector<1x128xf32> to vector<8x128xf32>
    %8 = arith.addf %5, %7 : vector<8x128xf32>
    %cst_7 = arith.constant 0.000000e+00 : f32
    %9 = vector.broadcast %cst_7 : f32 to vector<8x128xf32>
    %10 = arith.maximumf %8, %9 : vector<8x128xf32>
    %11 = arith.truncf %10 : vector<8x128xf32> to vector<8x128xbf16>
    %c0_8 = arith.constant 0 : index
    %c0_9 = arith.constant 0 : index
    %12 = vector.load %arg5[%c0_8, %c0_9] : memref<8x128xbf16, #tpu.memory_space<vmem>>, vector<8x128xbf16>
    tpu.vector_store %arg5[%c0_8, %c0_9], %11 {strides = array<i32>} : memref<8x128xbf16, #tpu.memory_space<vmem>>, vector<8x128xbf16>,
    return
  }
  func.func @transform_0(%arg0: i32) -> (i32, i32) {
    %c0_i32 = arith.constant 0 : i32
    %c0_i32_0 = arith.constant 0 : i32
    return %arg0, %c0_i32 : i32, i32
  }
  func.func @transform_1(%arg0: i32) -> (i32, i32) {
    %c0_i32 = arith.constant 0 : i32
    %c0_i32_0 = arith.constant 0 : i32
    %c0_i32_1 = arith.constant 0 : i32
    return %c0_i32, %c0_i32_0 : i32, i32
  }
  func.func @transform_2(%arg0: i32) -> (i32, i32) {
    %c0_i32 = arith.constant 0 : i32
    %c0_i32_0 = arith.constant 0 : i32
    %c0_i32_1 = arith.constant 0 : i32
    return %c0_i32, %c0_i32_0 : i32, i32
  }
  func.func @transform_3(%arg0: i32) -> (i32, i32) {
    %c0_i32 = arith.constant 0 : i32
    %c0_i32_0 = arith.constant 0 : i32
    %c0_i32_1 = arith.constant 0 : i32
    return %c0_i32, %c0_i32_0 : i32, i32
  }
  func.func @transform_4(%arg0: i32) -> (i32, i32) {
    %c0_i32 = arith.constant 0 : i32
    %c0_i32_0 = arith.constant 0 : i32
    return %arg0, %c0_i32 : i32, i32
  }
}

module attributes {stable_mosaic.version = 11 : i64} {
  func.func @_mm_affine_kernel(%arg0: i32, %arg1: memref<8x256xbf16, #tpu.memory_space<vmem>>, %arg2: memref<256x128xbf16, #tpu.memory_space<vmem>>, %arg3: memref<1x128xf32, #tpu.memory_space<vmem>>, %arg4: memref<1x128xf32, #tpu.memory_space<vmem>>, %arg5: memref<8x128xbf16, #tpu.memory_space<vmem>>) attributes {dimension_semantics = [#tpu.dimension_semantics<parallel>], iteration_bounds = array<i64: 1>, scalar_prefetch = 0 : i64, scratch_operands = 0 : i64, tpu.core_type = #tpu.core_type<tc>, window_params = [{transform_indices = @transform_0, window_bounds = array<i64: 8, 256>}, {pipeline_mode = #tpu.pipeline_mode<synchronous>, transform_indices = @transform_1, window_bounds = array<i64: 256, 128>}, {pipeline_mode = #tpu.pipeline_mode<synchronous>, transform_indices = @transform_2, window_bounds = array<i64: 1, 128>}, {pipeline_mode = #tpu.pipeline_mode<synchronous>, transform_indices = @transform_3, window_bounds = array<i64: 1, 128>}, {transform_indices = @transform_4, window_bounds = array<i64: 8, 128>}]} {
    %c0 = arith.constant 0 : index
    %c0_0 = arith.constant 0 : index
    %0 = vector.load %arg1[%c0, %c0_0] : memref<8x256xbf16, #tpu.memory_space<vmem>>, vector<8x256xbf16>
    %c0_1 = arith.constant 0 : index
    %c0_2 = arith.constant 0 : index
    %1 = vector.load %arg2[%c0_1, %c0_2] : memref<256x128xbf16, #tpu.memory_space<vmem>>, vector<256x128xbf16>
    %cst = arith.constant dense<0.000000e+00> : vector<8x128xf32>
    %2 = tpu.matmul %0, %1, %cst {dimension_numbers = #tpu.dot_dimension_numbers<[1], [0], [0], [1], [0, 0, 1, 1], [], []>} : vector<8x256xbf16>, vector<256x128xbf16>, vector<8x128xf32> -> vector<8x128xf32>
    %c0_3 = arith.constant 0 : index
    %c0_4 = arith.constant 0 : index
    %3 = vector.load %arg3[%c0_3, %c0_4] : memref<1x128xf32, #tpu.memory_space<vmem>>, vector<1x128xf32>
    %4 = vector.broadcast %3 : vector<1x128xf32> to vector<8x128xf32>
    %5 = arith.mulf %2, %4 : vector<8x128xf32>
    %c0_5 = arith.constant 0 : index
    %c0_6 = arith.constant 0 : index
    %6 = vector.load %arg4[%c0_5, %c0_6] : memref<1x128xf32, #tpu.memory_space<vmem>>, vector<1x128xf32>
    %7 = vector.broadcast %6 : vector<1x128xf32> to vector<8x128xf32>
    %8 = arith.addf %5, %7 : vector<8x128xf32>
    %cst_7 = arith.constant 0.000000e+00 : f32
    %9 = vector.broadcast %cst_7 : f32 to vector<8x128xf32>
    %10 = arith.maximumf %8, %9 : vector<8x128xf32>
    %11 = arith.truncf %10 : vector<8x128xf32> to vector<8x128xbf16>
    %c0_8 = arith.constant 0 : index
    %c0_9 = arith.constant 0 : index
    %12 = vector.load %arg5[%c0_8, %c0_9] : memref<8x128xbf16, #tpu.memory_space<vmem>>, vector<8x128xbf16>
    tpu.vector_store %arg5[%c0_8, %c0_9], %11 {strides = array<i32>} : memref<8x128xbf16, #tpu.memory_space<vmem>>, vector<8x128xbf16>,
    return
  }
  func.func @transform_0(%arg0: i32) -> (i32, i32) {
    %c0_i32 = arith.constant 0 : i32
    %c0_i32_0 = arith.constant 0 : i32
    return %arg0, %c0_i32 : i32, i32
  }
  func.func @transform_1(%arg0: i32) -> (i32, i32) {
    %c0_i32 = arith.constant 0 : i32
    %c0_i32_0 = arith.constant 0 : i32
    %c0_i32_1 = arith.constant 0 : i32
    return %c0_i32, %c0_i32_0 : i32, i32
  }
  func.func @transform_2(%arg0: i32) -> (i32, i32) {
    %c0_i32 = arith.constant 0 : i32
    %c0_i32_0 = arith.constant 0 : i32
    %c0_i32_1 = arith.constant 0 : i32
    return %c0_i32, %c0_i32_0 : i32, i32
  }
  func.func @transform_3(%arg0: i32) -> (i32, i32) {
    %c0_i32 = arith.constant 0 : i32
    %c0_i32_0 = arith.constant 0 : i32
    %c0_i32_1 = arith.constant 0 : i32
    return %c0_i32, %c0_i32_0 : i32, i32
  }
  func.func @transform_4(%arg0: i32) -> (i32, i32) {
    %c0_i32 = arith.constant 0 : i32
    %c0_i32_0 = arith.constant 0 : i32
    return %arg0, %c0_i32 : i32, i32
  }
}

module attributes {stable_mosaic.version = 11 : i64} {
  func.func @_mm_affine_kernel(%arg0: i32, %arg1: memref<8x1024xbf16, #tpu.memory_space<vmem>>, %arg2: memref<1024x128xbf16, #tpu.memory_space<vmem>>, %arg3: memref<1x128xf32, #tpu.memory_space<vmem>>, %arg4: memref<1x128xf32, #tpu.memory_space<vmem>>, %arg5: memref<8x128xbf16, #tpu.memory_space<vmem>>) attributes {dimension_semantics = [#tpu.dimension_semantics<parallel>], iteration_bounds = array<i64: 1>, scalar_prefetch = 0 : i64, scratch_operands = 0 : i64, tpu.core_type = #tpu.core_type<tc>, window_params = [{transform_indices = @transform_0, window_bounds = array<i64: 8, 1024>}, {pipeline_mode = #tpu.pipeline_mode<synchronous>, transform_indices = @transform_1, window_bounds = array<i64: 1024, 128>}, {pipeline_mode = #tpu.pipeline_mode<synchronous>, transform_indices = @transform_2, window_bounds = array<i64: 1, 128>}, {pipeline_mode = #tpu.pipeline_mode<synchronous>, transform_indices = @transform_3, window_bounds = array<i64: 1, 128>}, {transform_indices = @transform_4, window_bounds = array<i64: 8, 128>}]} {
    %c0 = arith.constant 0 : index
    %c0_0 = arith.constant 0 : index
    %0 = vector.load %arg1[%c0, %c0_0] : memref<8x1024xbf16, #tpu.memory_space<vmem>>, vector<8x1024xbf16>
    %c0_1 = arith.constant 0 : index
    %c0_2 = arith.constant 0 : index
    %1 = vector.load %arg2[%c0_1, %c0_2] : memref<1024x128xbf16, #tpu.memory_space<vmem>>, vector<1024x128xbf16>
    %cst = arith.constant dense<0.000000e+00> : vector<8x128xf32>
    %2 = tpu.matmul %0, %1, %cst {dimension_numbers = #tpu.dot_dimension_numbers<[1], [0], [0], [1], [0, 0, 1, 1], [], []>} : vector<8x1024xbf16>, vector<1024x128xbf16>, vector<8x128xf32> -> vector<8x128xf32>
    %c0_3 = arith.constant 0 : index
    %c0_4 = arith.constant 0 : index
    %3 = vector.load %arg3[%c0_3, %c0_4] : memref<1x128xf32, #tpu.memory_space<vmem>>, vector<1x128xf32>
    %4 = vector.broadcast %3 : vector<1x128xf32> to vector<8x128xf32>
    %5 = arith.mulf %2, %4 : vector<8x128xf32>
    %c0_5 = arith.constant 0 : index
    %c0_6 = arith.constant 0 : index
    %6 = vector.load %arg4[%c0_5, %c0_6] : memref<1x128xf32, #tpu.memory_space<vmem>>, vector<1x128xf32>
    %7 = vector.broadcast %6 : vector<1x128xf32> to vector<8x128xf32>
    %8 = arith.addf %5, %7 : vector<8x128xf32>
    %cst_7 = arith.constant 0.000000e+00 : f32
    %9 = vector.broadcast %cst_7 : f32 to vector<8x128xf32>
    %10 = arith.maximumf %8, %9 : vector<8x128xf32>
    %11 = arith.truncf %10 : vector<8x128xf32> to vector<8x128xbf16>
    %c0_8 = arith.constant 0 : index
    %c0_9 = arith.constant 0 : index
    %12 = vector.load %arg5[%c0_8, %c0_9] : memref<8x128xbf16, #tpu.memory_space<vmem>>, vector<8x128xbf16>
    tpu.vector_store %arg5[%c0_8, %c0_9], %11 {strides = array<i32>} : memref<8x128xbf16, #tpu.memory_space<vmem>>, vector<8x128xbf16>,
    return
  }
  func.func @transform_0(%arg0: i32) -> (i32, i32) {
    %c0_i32 = arith.constant 0 : i32
    %c0_i32_0 = arith.constant 0 : i32
    return %arg0, %c0_i32 : i32, i32
  }
  func.func @transform_1(%arg0: i32) -> (i32, i32) {
    %c0_i32 = arith.constant 0 : i32
    %c0_i32_0 = arith.constant 0 : i32
    %c0_i32_1 = arith.constant 0 : i32
    return %c0_i32, %c0_i32_0 : i32, i32
  }
  func.func @transform_2(%arg0: i32) -> (i32, i32) {
    %c0_i32 = arith.constant 0 : i32
    %c0_i32_0 = arith.constant 0 : i32
    %c0_i32_1 = arith.constant 0 : i32
    return %c0_i32, %c0_i32_0 : i32, i32
  }
  func.func @transform_3(%arg0: i32) -> (i32, i32) {
    %c0_i32 = arith.constant 0 : i32
    %c0_i32_0 = arith.constant 0 : i32
    %c0_i32_1 = arith.constant 0 : i32
    return %c0_i32, %c0_i32_0 : i32, i32
  }
  func.func @transform_4(%arg0: i32) -> (i32, i32) {
    %c0_i32 = arith.constant 0 : i32
    %c0_i32_0 = arith.constant 0 : i32
    return %arg0, %c0_i32 : i32, i32
  }
}

module attributes {stable_mosaic.version = 11 : i64} {
  func.func @_mm_affine_kernel(%arg0: i32, %arg1: memref<24x1152xbf16, #tpu.memory_space<vmem>>, %arg2: memref<1152x128xbf16, #tpu.memory_space<vmem>>, %arg3: memref<1x128xf32, #tpu.memory_space<vmem>>, %arg4: memref<1x128xf32, #tpu.memory_space<vmem>>, %arg5: memref<24x128xbf16, #tpu.memory_space<vmem>>) attributes {dimension_semantics = [#tpu.dimension_semantics<parallel>], iteration_bounds = array<i64: 1>, scalar_prefetch = 0 : i64, scratch_operands = 0 : i64, tpu.core_type = #tpu.core_type<tc>, window_params = [{transform_indices = @transform_0, window_bounds = array<i64: 24, 1152>}, {pipeline_mode = #tpu.pipeline_mode<synchronous>, transform_indices = @transform_1, window_bounds = array<i64: 1152, 128>}, {pipeline_mode = #tpu.pipeline_mode<synchronous>, transform_indices = @transform_2, window_bounds = array<i64: 1, 128>}, {pipeline_mode = #tpu.pipeline_mode<synchronous>, transform_indices = @transform_3, window_bounds = array<i64: 1, 128>}, {transform_indices = @transform_4, window_bounds = array<i64: 24, 128>}]} {
    %c0 = arith.constant 0 : index
    %c0_0 = arith.constant 0 : index
    %0 = vector.load %arg1[%c0, %c0_0] : memref<24x1152xbf16, #tpu.memory_space<vmem>>, vector<24x1152xbf16>
    %c0_1 = arith.constant 0 : index
    %c0_2 = arith.constant 0 : index
    %1 = vector.load %arg2[%c0_1, %c0_2] : memref<1152x128xbf16, #tpu.memory_space<vmem>>, vector<1152x128xbf16>
    %cst = arith.constant dense<0.000000e+00> : vector<24x128xf32>
    %2 = tpu.matmul %0, %1, %cst {dimension_numbers = #tpu.dot_dimension_numbers<[1], [0], [0], [1], [0, 0, 1, 1], [], []>} : vector<24x1152xbf16>, vector<1152x128xbf16>, vector<24x128xf32> -> vector<24x128xf32>
    %c0_3 = arith.constant 0 : index
    %c0_4 = arith.constant 0 : index
    %3 = vector.load %arg3[%c0_3, %c0_4] : memref<1x128xf32, #tpu.memory_space<vmem>>, vector<1x128xf32>
    %4 = vector.broadcast %3 : vector<1x128xf32> to vector<24x128xf32>
    %5 = arith.mulf %2, %4 : vector<24x128xf32>
    %c0_5 = arith.constant 0 : index
    %c0_6 = arith.constant 0 : index
    %6 = vector.load %arg4[%c0_5, %c0_6] : memref<1x128xf32, #tpu.memory_space<vmem>>, vector<1x128xf32>
    %7 = vector.broadcast %6 : vector<1x128xf32> to vector<24x128xf32>
    %8 = arith.addf %5, %7 : vector<24x128xf32>
    %cst_7 = arith.constant 0.000000e+00 : f32
    %9 = vector.broadcast %cst_7 : f32 to vector<24x128xf32>
    %10 = arith.maximumf %8, %9 : vector<24x128xf32>
    %11 = arith.truncf %10 : vector<24x128xf32> to vector<24x128xbf16>
    %c0_8 = arith.constant 0 : index
    %c0_9 = arith.constant 0 : index
    %12 = vector.load %arg5[%c0_8, %c0_9] : memref<24x128xbf16, #tpu.memory_space<vmem>>, vector<24x128xbf16>
    tpu.vector_store %arg5[%c0_8, %c0_9], %11 {strides = array<i32>} : memref<24x128xbf16, #tpu.memory_space<vmem>>, vector<24x128xbf16>,
    return
  }
  func.func @transform_0(%arg0: i32) -> (i32, i32) {
    %c0_i32 = arith.constant 0 : i32
    %c0_i32_0 = arith.constant 0 : i32
    return %arg0, %c0_i32 : i32, i32
  }
  func.func @transform_1(%arg0: i32) -> (i32, i32) {
    %c0_i32 = arith.constant 0 : i32
    %c0_i32_0 = arith.constant 0 : i32
    %c0_i32_1 = arith.constant 0 : i32
    return %c0_i32, %c0_i32_0 : i32, i32
  }
  func.func @transform_2(%arg0: i32) -> (i32, i32) {
    %c0_i32 = arith.constant 0 : i32
    %c0_i32_0 = arith.constant 0 : i32
    %c0_i32_1 = arith.constant 0 : i32
    return %c0_i32, %c0_i32_0 : i32, i32
  }
  func.func @transform_3(%arg0: i32) -> (i32, i32) {
    %c0_i32 = arith.constant 0 : i32
    %c0_i32_0 = arith.constant 0 : i32
    %c0_i32_1 = arith.constant 0 : i32
    return %c0_i32, %c0_i32_0 : i32, i32
  }
  func.func @transform_4(%arg0: i32) -> (i32, i32) {
    %c0_i32 = arith.constant 0 : i32
    %c0_i32_0 = arith.constant 0 : i32
    return %arg0, %c0_i32 : i32, i32
  }
}

module attributes {stable_mosaic.version = 11 : i64} {
  func.func @_mm_affine_kernel(%arg0: i32, %arg1: memref<16x256xbf16, #tpu.memory_space<vmem>>, %arg2: memref<256x64xbf16, #tpu.memory_space<vmem>>, %arg3: memref<1x64xf32, #tpu.memory_space<vmem>>, %arg4: memref<1x64xf32, #tpu.memory_space<vmem>>, %arg5: memref<16x64xbf16, #tpu.memory_space<vmem>>) attributes {dimension_semantics = [#tpu.dimension_semantics<parallel>], iteration_bounds = array<i64: 1>, scalar_prefetch = 0 : i64, scratch_operands = 0 : i64, tpu.core_type = #tpu.core_type<tc>, window_params = [{transform_indices = @transform_0, window_bounds = array<i64: 16, 256>}, {pipeline_mode = #tpu.pipeline_mode<synchronous>, transform_indices = @transform_1, window_bounds = array<i64: 256, 64>}, {pipeline_mode = #tpu.pipeline_mode<synchronous>, transform_indices = @transform_2, window_bounds = array<i64: 1, 64>}, {pipeline_mode = #tpu.pipeline_mode<synchronous>, transform_indices = @transform_3, window_bounds = array<i64: 1, 64>}, {transform_indices = @transform_4, window_bounds = array<i64: 16, 64>}]} {
    %c0 = arith.constant 0 : index
    %c0_0 = arith.constant 0 : index
    %0 = vector.load %arg1[%c0, %c0_0] : memref<16x256xbf16, #tpu.memory_space<vmem>>, vector<16x256xbf16>
    %c0_1 = arith.constant 0 : index
    %c0_2 = arith.constant 0 : index
    %1 = vector.load %arg2[%c0_1, %c0_2] : memref<256x64xbf16, #tpu.memory_space<vmem>>, vector<256x64xbf16>
    %cst = arith.constant dense<0.000000e+00> : vector<16x64xf32>
    %2 = tpu.matmul %0, %1, %cst {dimension_numbers = #tpu.dot_dimension_numbers<[1], [0], [0], [1], [0, 0, 1, 1], [], []>} : vector<16x256xbf16>, vector<256x64xbf16>, vector<16x64xf32> -> vector<16x64xf32>
    %c0_3 = arith.constant 0 : index
    %c0_4 = arith.constant 0 : index
    %3 = vector.load %arg3[%c0_3, %c0_4] : memref<1x64xf32, #tpu.memory_space<vmem>>, vector<1x64xf32>
    %4 = vector.broadcast %3 : vector<1x64xf32> to vector<16x64xf32>
    %5 = arith.mulf %2, %4 : vector<16x64xf32>
    %c0_5 = arith.constant 0 : index
    %c0_6 = arith.constant 0 : index
    %6 = vector.load %arg4[%c0_5, %c0_6] : memref<1x64xf32, #tpu.memory_space<vmem>>, vector<1x64xf32>
    %7 = vector.broadcast %6 : vector<1x64xf32> to vector<16x64xf32>
    %8 = arith.addf %5, %7 : vector<16x64xf32>
    %cst_7 = arith.constant 0.000000e+00 : f32
    %9 = vector.broadcast %cst_7 : f32 to vector<16x64xf32>
    %10 = arith.maximumf %8, %9 : vector<16x64xf32>
    %11 = arith.truncf %10 : vector<16x64xf32> to vector<16x64xbf16>
    %c0_8 = arith.constant 0 : index
    %c0_9 = arith.constant 0 : index
    %12 = vector.load %arg5[%c0_8, %c0_9] : memref<16x64xbf16, #tpu.memory_space<vmem>>, vector<16x64xbf16>
    tpu.vector_store %arg5[%c0_8, %c0_9], %11 {strides = array<i32>} : memref<16x64xbf16, #tpu.memory_space<vmem>>, vector<16x64xbf16>,
    return
  }
  func.func @transform_0(%arg0: i32) -> (i32, i32) {
    %c0_i32 = arith.constant 0 : i32
    %c0_i32_0 = arith.constant 0 : i32
    return %arg0, %c0_i32 : i32, i32
  }
  func.func @transform_1(%arg0: i32) -> (i32, i32) {
    %c0_i32 = arith.constant 0 : i32
    %c0_i32_0 = arith.constant 0 : i32
    %c0_i32_1 = arith.constant 0 : i32
    return %c0_i32, %c0_i32_0 : i32, i32
  }
  func.func @transform_2(%arg0: i32) -> (i32, i32) {
    %c0_i32 = arith.constant 0 : i32
    %c0_i32_0 = arith.constant 0 : i32
    %c0_i32_1 = arith.constant 0 : i32
    return %c0_i32, %c0_i32_0 : i32, i32
  }
  func.func @transform_3(%arg0: i32) -> (i32, i32) {
    %c0_i32 = arith.constant 0 : i32
    %c0_i32_0 = arith.constant 0 : i32
    %c0_i32_1 = arith.constant 0 : i32
    return %c0_i32, %c0_i32_0 : i32, i32
  }
  func.func @transform_4(%arg0: i32) -> (i32, i32) {
    %c0_i32 = arith.constant 0 : i32
    %c0_i32_0 = arith.constant 0 : i32
    return %arg0, %c0_i32 : i32, i32
  }
}

module attributes {stable_mosaic.version = 11 : i64} {
  func.func @_mm_affine_kernel(%arg0: i32, %arg1: memref<24x128xbf16, #tpu.memory_space<vmem>>, %arg2: memref<128x64xbf16, #tpu.memory_space<vmem>>, %arg3: memref<1x64xf32, #tpu.memory_space<vmem>>, %arg4: memref<1x64xf32, #tpu.memory_space<vmem>>, %arg5: memref<24x64xbf16, #tpu.memory_space<vmem>>) attributes {dimension_semantics = [#tpu.dimension_semantics<parallel>], iteration_bounds = array<i64: 1>, scalar_prefetch = 0 : i64, scratch_operands = 0 : i64, tpu.core_type = #tpu.core_type<tc>, window_params = [{transform_indices = @transform_0, window_bounds = array<i64: 24, 128>}, {pipeline_mode = #tpu.pipeline_mode<synchronous>, transform_indices = @transform_1, window_bounds = array<i64: 128, 64>}, {pipeline_mode = #tpu.pipeline_mode<synchronous>, transform_indices = @transform_2, window_bounds = array<i64: 1, 64>}, {pipeline_mode = #tpu.pipeline_mode<synchronous>, transform_indices = @transform_3, window_bounds = array<i64: 1, 64>}, {transform_indices = @transform_4, window_bounds = array<i64: 24, 64>}]} {
    %c0 = arith.constant 0 : index
    %c0_0 = arith.constant 0 : index
    %0 = vector.load %arg1[%c0, %c0_0] : memref<24x128xbf16, #tpu.memory_space<vmem>>, vector<24x128xbf16>
    %c0_1 = arith.constant 0 : index
    %c0_2 = arith.constant 0 : index
    %1 = vector.load %arg2[%c0_1, %c0_2] : memref<128x64xbf16, #tpu.memory_space<vmem>>, vector<128x64xbf16>
    %cst = arith.constant dense<0.000000e+00> : vector<24x64xf32>
    %2 = tpu.matmul %0, %1, %cst {dimension_numbers = #tpu.dot_dimension_numbers<[1], [0], [0], [1], [0, 0, 1, 1], [], []>} : vector<24x128xbf16>, vector<128x64xbf16>, vector<24x64xf32> -> vector<24x64xf32>
    %c0_3 = arith.constant 0 : index
    %c0_4 = arith.constant 0 : index
    %3 = vector.load %arg3[%c0_3, %c0_4] : memref<1x64xf32, #tpu.memory_space<vmem>>, vector<1x64xf32>
    %4 = vector.broadcast %3 : vector<1x64xf32> to vector<24x64xf32>
    %5 = arith.mulf %2, %4 : vector<24x64xf32>
    %c0_5 = arith.constant 0 : index
    %c0_6 = arith.constant 0 : index
    %6 = vector.load %arg4[%c0_5, %c0_6] : memref<1x64xf32, #tpu.memory_space<vmem>>, vector<1x64xf32>
    %7 = vector.broadcast %6 : vector<1x64xf32> to vector<24x64xf32>
    %8 = arith.addf %5, %7 : vector<24x64xf32>
    %cst_7 = arith.constant 0.000000e+00 : f32
    %9 = vector.broadcast %cst_7 : f32 to vector<24x64xf32>
    %10 = arith.maximumf %8, %9 : vector<24x64xf32>
    %11 = arith.truncf %10 : vector<24x64xf32> to vector<24x64xbf16>
    %c0_8 = arith.constant 0 : index
    %c0_9 = arith.constant 0 : index
    %12 = vector.load %arg5[%c0_8, %c0_9] : memref<24x64xbf16, #tpu.memory_space<vmem>>, vector<24x64xbf16>
    tpu.vector_store %arg5[%c0_8, %c0_9], %11 {strides = array<i32>} : memref<24x64xbf16, #tpu.memory_space<vmem>>, vector<24x64xbf16>,
    return
  }
  func.func @transform_0(%arg0: i32) -> (i32, i32) {
    %c0_i32 = arith.constant 0 : i32
    %c0_i32_0 = arith.constant 0 : i32
    return %arg0, %c0_i32 : i32, i32
  }
  func.func @transform_1(%arg0: i32) -> (i32, i32) {
    %c0_i32 = arith.constant 0 : i32
    %c0_i32_0 = arith.constant 0 : i32
    %c0_i32_1 = arith.constant 0 : i32
    return %c0_i32, %c0_i32_0 : i32, i32
  }
  func.func @transform_2(%arg0: i32) -> (i32, i32) {
    %c0_i32 = arith.constant 0 : i32
    %c0_i32_0 = arith.constant 0 : i32
    %c0_i32_1 = arith.constant 0 : i32
    return %c0_i32, %c0_i32_0 : i32, i32
  }
  func.func @transform_3(%arg0: i32) -> (i32, i32) {
    %c0_i32 = arith.constant 0 : i32
    %c0_i32_0 = arith.constant 0 : i32
    %c0_i32_1 = arith.constant 0 : i32
    return %c0_i32, %c0_i32_0 : i32, i32
  }
  func.func @transform_4(%arg0: i32) -> (i32, i32) {
    %c0_i32 = arith.constant 0 : i32
    %c0_i32_0 = arith.constant 0 : i32
    return %arg0, %c0_i32 : i32, i32
  }
}

module attributes {stable_mosaic.version = 11 : i64} {
  func.func @_mm_affine_kernel(%arg0: i32, %arg1: memref<8x512xbf16, #tpu.memory_space<vmem>>, %arg2: memref<512x64xbf16, #tpu.memory_space<vmem>>, %arg3: memref<1x64xf32, #tpu.memory_space<vmem>>, %arg4: memref<1x64xf32, #tpu.memory_space<vmem>>, %arg5: memref<8x64xbf16, #tpu.memory_space<vmem>>) attributes {dimension_semantics = [#tpu.dimension_semantics<parallel>], iteration_bounds = array<i64: 1>, scalar_prefetch = 0 : i64, scratch_operands = 0 : i64, tpu.core_type = #tpu.core_type<tc>, window_params = [{transform_indices = @transform_0, window_bounds = array<i64: 8, 512>}, {pipeline_mode = #tpu.pipeline_mode<synchronous>, transform_indices = @transform_1, window_bounds = array<i64: 512, 64>}, {pipeline_mode = #tpu.pipeline_mode<synchronous>, transform_indices = @transform_2, window_bounds = array<i64: 1, 64>}, {pipeline_mode = #tpu.pipeline_mode<synchronous>, transform_indices = @transform_3, window_bounds = array<i64: 1, 64>}, {transform_indices = @transform_4, window_bounds = array<i64: 8, 64>}]} {
    %c0 = arith.constant 0 : index
    %c0_0 = arith.constant 0 : index
    %0 = vector.load %arg1[%c0, %c0_0] : memref<8x512xbf16, #tpu.memory_space<vmem>>, vector<8x512xbf16>
    %c0_1 = arith.constant 0 : index
    %c0_2 = arith.constant 0 : index
    %1 = vector.load %arg2[%c0_1, %c0_2] : memref<512x64xbf16, #tpu.memory_space<vmem>>, vector<512x64xbf16>
    %cst = arith.constant dense<0.000000e+00> : vector<8x64xf32>
    %2 = tpu.matmul %0, %1, %cst {dimension_numbers = #tpu.dot_dimension_numbers<[1], [0], [0], [1], [0, 0, 1, 1], [], []>} : vector<8x512xbf16>, vector<512x64xbf16>, vector<8x64xf32> -> vector<8x64xf32>
    %c0_3 = arith.constant 0 : index
    %c0_4 = arith.constant 0 : index
    %3 = vector.load %arg3[%c0_3, %c0_4] : memref<1x64xf32, #tpu.memory_space<vmem>>, vector<1x64xf32>
    %4 = vector.broadcast %3 : vector<1x64xf32> to vector<8x64xf32>
    %5 = arith.mulf %2, %4 : vector<8x64xf32>
    %c0_5 = arith.constant 0 : index
    %c0_6 = arith.constant 0 : index
    %6 = vector.load %arg4[%c0_5, %c0_6] : memref<1x64xf32, #tpu.memory_space<vmem>>, vector<1x64xf32>
    %7 = vector.broadcast %6 : vector<1x64xf32> to vector<8x64xf32>
    %8 = arith.addf %5, %7 : vector<8x64xf32>
    %cst_7 = arith.constant 0.000000e+00 : f32
    %9 = vector.broadcast %cst_7 : f32 to vector<8x64xf32>
    %10 = arith.maximumf %8, %9 : vector<8x64xf32>
    %11 = arith.truncf %10 : vector<8x64xf32> to vector<8x64xbf16>
    %c0_8 = arith.constant 0 : index
    %c0_9 = arith.constant 0 : index
    %12 = vector.load %arg5[%c0_8, %c0_9] : memref<8x64xbf16, #tpu.memory_space<vmem>>, vector<8x64xbf16>
    tpu.vector_store %arg5[%c0_8, %c0_9], %11 {strides = array<i32>} : memref<8x64xbf16, #tpu.memory_space<vmem>>, vector<8x64xbf16>,
    return
  }
  func.func @transform_0(%arg0: i32) -> (i32, i32) {
    %c0_i32 = arith.constant 0 : i32
    %c0_i32_0 = arith.constant 0 : i32
    return %arg0, %c0_i32 : i32, i32
  }
  func.func @transform_1(%arg0: i32) -> (i32, i32) {
    %c0_i32 = arith.constant 0 : i32
    %c0_i32_0 = arith.constant 0 : i32
    %c0_i32_1 = arith.constant 0 : i32
    return %c0_i32, %c0_i32_0 : i32, i32
  }
  func.func @transform_2(%arg0: i32) -> (i32, i32) {
    %c0_i32 = arith.constant 0 : i32
    %c0_i32_0 = arith.constant 0 : i32
    %c0_i32_1 = arith.constant 0 : i32
    return %c0_i32, %c0_i32_0 : i32, i32
  }
  func.func @transform_3(%arg0: i32) -> (i32, i32) {
    %c0_i32 = arith.constant 0 : i32
    %c0_i32_0 = arith.constant 0 : i32
    %c0_i32_1 = arith.constant 0 : i32
    return %c0_i32, %c0_i32_0 : i32, i32
  }
  func.func @transform_4(%arg0: i32) -> (i32, i32) {
    %c0_i32 = arith.constant 0 : i32
    %c0_i32_0 = arith.constant 0 : i32
    return %arg0, %c0_i32 : i32, i32
  }
}

module attributes {stable_mosaic.version = 11 : i64} {
  func.func @_mm_affine_kernel(%arg0: i32, %arg1: memref<56x576xbf16, #tpu.memory_space<vmem>>, %arg2: memref<576x64xbf16, #tpu.memory_space<vmem>>, %arg3: memref<1x64xf32, #tpu.memory_space<vmem>>, %arg4: memref<1x64xf32, #tpu.memory_space<vmem>>, %arg5: memref<56x64xbf16, #tpu.memory_space<vmem>>) attributes {dimension_semantics = [#tpu.dimension_semantics<parallel>], iteration_bounds = array<i64: 1>, scalar_prefetch = 0 : i64, scratch_operands = 0 : i64, tpu.core_type = #tpu.core_type<tc>, window_params = [{transform_indices = @transform_0, window_bounds = array<i64: 56, 576>}, {pipeline_mode = #tpu.pipeline_mode<synchronous>, transform_indices = @transform_1, window_bounds = array<i64: 576, 64>}, {pipeline_mode = #tpu.pipeline_mode<synchronous>, transform_indices = @transform_2, window_bounds = array<i64: 1, 64>}, {pipeline_mode = #tpu.pipeline_mode<synchronous>, transform_indices = @transform_3, window_bounds = array<i64: 1, 64>}, {transform_indices = @transform_4, window_bounds = array<i64: 56, 64>}]} {
    %c0 = arith.constant 0 : index
    %c0_0 = arith.constant 0 : index
    %0 = vector.load %arg1[%c0, %c0_0] : memref<56x576xbf16, #tpu.memory_space<vmem>>, vector<56x576xbf16>
    %c0_1 = arith.constant 0 : index
    %c0_2 = arith.constant 0 : index
    %1 = vector.load %arg2[%c0_1, %c0_2] : memref<576x64xbf16, #tpu.memory_space<vmem>>, vector<576x64xbf16>
    %cst = arith.constant dense<0.000000e+00> : vector<56x64xf32>
    %2 = tpu.matmul %0, %1, %cst {dimension_numbers = #tpu.dot_dimension_numbers<[1], [0], [0], [1], [0, 0, 1, 1], [], []>} : vector<56x576xbf16>, vector<576x64xbf16>, vector<56x64xf32> -> vector<56x64xf32>
    %c0_3 = arith.constant 0 : index
    %c0_4 = arith.constant 0 : index
    %3 = vector.load %arg3[%c0_3, %c0_4] : memref<1x64xf32, #tpu.memory_space<vmem>>, vector<1x64xf32>
    %4 = vector.broadcast %3 : vector<1x64xf32> to vector<56x64xf32>
    %5 = arith.mulf %2, %4 : vector<56x64xf32>
    %c0_5 = arith.constant 0 : index
    %c0_6 = arith.constant 0 : index
    %6 = vector.load %arg4[%c0_5, %c0_6] : memref<1x64xf32, #tpu.memory_space<vmem>>, vector<1x64xf32>
    %7 = vector.broadcast %6 : vector<1x64xf32> to vector<56x64xf32>
    %8 = arith.addf %5, %7 : vector<56x64xf32>
    %cst_7 = arith.constant 0.000000e+00 : f32
    %9 = vector.broadcast %cst_7 : f32 to vector<56x64xf32>
    %10 = arith.maximumf %8, %9 : vector<56x64xf32>
    %11 = arith.truncf %10 : vector<56x64xf32> to vector<56x64xbf16>
    %c0_8 = arith.constant 0 : index
    %c0_9 = arith.constant 0 : index
    %12 = vector.load %arg5[%c0_8, %c0_9] : memref<56x64xbf16, #tpu.memory_space<vmem>>, vector<56x64xbf16>
    tpu.vector_store %arg5[%c0_8, %c0_9], %11 {strides = array<i32>} : memref<56x64xbf16, #tpu.memory_space<vmem>>, vector<56x64xbf16>,
    return
  }
  func.func @transform_0(%arg0: i32) -> (i32, i32) {
    %c0_i32 = arith.constant 0 : i32
    %c0_i32_0 = arith.constant 0 : i32
    return %arg0, %c0_i32 : i32, i32
  }
  func.func @transform_1(%arg0: i32) -> (i32, i32) {
    %c0_i32 = arith.constant 0 : i32
    %c0_i32_0 = arith.constant 0 : i32
    %c0_i32_1 = arith.constant 0 : i32
    return %c0_i32, %c0_i32_0 : i32, i32
  }
  func.func @transform_2(%arg0: i32) -> (i32, i32) {
    %c0_i32 = arith.constant 0 : i32
    %c0_i32_0 = arith.constant 0 : i32
    %c0_i32_1 = arith.constant 0 : i32
    return %c0_i32, %c0_i32_0 : i32, i32
  }
  func.func @transform_3(%arg0: i32) -> (i32, i32) {
    %c0_i32 = arith.constant 0 : i32
    %c0_i32_0 = arith.constant 0 : i32
    %c0_i32_1 = arith.constant 0 : i32
    return %c0_i32, %c0_i32_0 : i32, i32
  }
  func.func @transform_4(%arg0: i32) -> (i32, i32) {
    %c0_i32 = arith.constant 0 : i32
    %c0_i32_0 = arith.constant 0 : i32
    return %arg0, %c0_i32 : i32, i32
  }
}

module attributes {stable_mosaic.version = 11 : i64} {
  func.func @_mm_affine_kernel(%arg0: i32, %arg1: memref<40x128xbf16, #tpu.memory_space<vmem>>, %arg2: memref<128x32xbf16, #tpu.memory_space<vmem>>, %arg3: memref<1x32xf32, #tpu.memory_space<vmem>>, %arg4: memref<1x32xf32, #tpu.memory_space<vmem>>, %arg5: memref<40x32xbf16, #tpu.memory_space<vmem>>) attributes {dimension_semantics = [#tpu.dimension_semantics<parallel>], iteration_bounds = array<i64: 1>, scalar_prefetch = 0 : i64, scratch_operands = 0 : i64, tpu.core_type = #tpu.core_type<tc>, window_params = [{transform_indices = @transform_0, window_bounds = array<i64: 40, 128>}, {pipeline_mode = #tpu.pipeline_mode<synchronous>, transform_indices = @transform_1, window_bounds = array<i64: 128, 32>}, {pipeline_mode = #tpu.pipeline_mode<synchronous>, transform_indices = @transform_2, window_bounds = array<i64: 1, 32>}, {pipeline_mode = #tpu.pipeline_mode<synchronous>, transform_indices = @transform_3, window_bounds = array<i64: 1, 32>}, {transform_indices = @transform_4, window_bounds = array<i64: 40, 32>}]} {
    %c0 = arith.constant 0 : index
    %c0_0 = arith.constant 0 : index
    %0 = vector.load %arg1[%c0, %c0_0] : memref<40x128xbf16, #tpu.memory_space<vmem>>, vector<40x128xbf16>
    %c0_1 = arith.constant 0 : index
    %c0_2 = arith.constant 0 : index
    %1 = vector.load %arg2[%c0_1, %c0_2] : memref<128x32xbf16, #tpu.memory_space<vmem>>, vector<128x32xbf16>
    %cst = arith.constant dense<0.000000e+00> : vector<40x32xf32>
    %2 = tpu.matmul %0, %1, %cst {dimension_numbers = #tpu.dot_dimension_numbers<[1], [0], [0], [1], [0, 0, 1, 1], [], []>} : vector<40x128xbf16>, vector<128x32xbf16>, vector<40x32xf32> -> vector<40x32xf32>
    %c0_3 = arith.constant 0 : index
    %c0_4 = arith.constant 0 : index
    %3 = vector.load %arg3[%c0_3, %c0_4] : memref<1x32xf32, #tpu.memory_space<vmem>>, vector<1x32xf32>
    %4 = vector.broadcast %3 : vector<1x32xf32> to vector<40x32xf32>
    %5 = arith.mulf %2, %4 : vector<40x32xf32>
    %c0_5 = arith.constant 0 : index
    %c0_6 = arith.constant 0 : index
    %6 = vector.load %arg4[%c0_5, %c0_6] : memref<1x32xf32, #tpu.memory_space<vmem>>, vector<1x32xf32>
    %7 = vector.broadcast %6 : vector<1x32xf32> to vector<40x32xf32>
    %8 = arith.addf %5, %7 : vector<40x32xf32>
    %cst_7 = arith.constant 0.000000e+00 : f32
    %9 = vector.broadcast %cst_7 : f32 to vector<40x32xf32>
    %10 = arith.maximumf %8, %9 : vector<40x32xf32>
    %11 = arith.truncf %10 : vector<40x32xf32> to vector<40x32xbf16>
    %c0_8 = arith.constant 0 : index
    %c0_9 = arith.constant 0 : index
    %12 = vector.load %arg5[%c0_8, %c0_9] : memref<40x32xbf16, #tpu.memory_space<vmem>>, vector<40x32xbf16>
    tpu.vector_store %arg5[%c0_8, %c0_9], %11 {strides = array<i32>} : memref<40x32xbf16, #tpu.memory_space<vmem>>, vector<40x32xbf16>,
    return
  }
  func.func @transform_0(%arg0: i32) -> (i32, i32) {
    %c0_i32 = arith.constant 0 : i32
    %c0_i32_0 = arith.constant 0 : i32
    return %arg0, %c0_i32 : i32, i32
  }
  func.func @transform_1(%arg0: i32) -> (i32, i32) {
    %c0_i32 = arith.constant 0 : i32
    %c0_i32_0 = arith.constant 0 : i32
    %c0_i32_1 = arith.constant 0 : i32
    return %c0_i32, %c0_i32_0 : i32, i32
  }
  func.func @transform_2(%arg0: i32) -> (i32, i32) {
    %c0_i32 = arith.constant 0 : i32
    %c0_i32_0 = arith.constant 0 : i32
    %c0_i32_1 = arith.constant 0 : i32
    return %c0_i32, %c0_i32_0 : i32, i32
  }
  func.func @transform_3(%arg0: i32) -> (i32, i32) {
    %c0_i32 = arith.constant 0 : i32
    %c0_i32_0 = arith.constant 0 : i32
    %c0_i32_1 = arith.constant 0 : i32
    return %c0_i32, %c0_i32_0 : i32, i32
  }
  func.func @transform_4(%arg0: i32) -> (i32, i32) {
    %c0_i32 = arith.constant 0 : i32
    %c0_i32_0 = arith.constant 0 : i32
    return %arg0, %c0_i32 : i32, i32
  }
}

module attributes {stable_mosaic.version = 11 : i64} {
  func.func @_mm_affine_kernel(%arg0: i32, %arg1: memref<56x64xbf16, #tpu.memory_space<vmem>>, %arg2: memref<64x32xbf16, #tpu.memory_space<vmem>>, %arg3: memref<1x32xf32, #tpu.memory_space<vmem>>, %arg4: memref<1x32xf32, #tpu.memory_space<vmem>>, %arg5: memref<56x32xbf16, #tpu.memory_space<vmem>>) attributes {dimension_semantics = [#tpu.dimension_semantics<parallel>], iteration_bounds = array<i64: 1>, scalar_prefetch = 0 : i64, scratch_operands = 0 : i64, tpu.core_type = #tpu.core_type<tc>, window_params = [{transform_indices = @transform_0, window_bounds = array<i64: 56, 64>}, {pipeline_mode = #tpu.pipeline_mode<synchronous>, transform_indices = @transform_1, window_bounds = array<i64: 64, 32>}, {pipeline_mode = #tpu.pipeline_mode<synchronous>, transform_indices = @transform_2, window_bounds = array<i64: 1, 32>}, {pipeline_mode = #tpu.pipeline_mode<synchronous>, transform_indices = @transform_3, window_bounds = array<i64: 1, 32>}, {transform_indices = @transform_4, window_bounds = array<i64: 56, 32>}]} {
    %c0 = arith.constant 0 : index
    %c0_0 = arith.constant 0 : index
    %0 = vector.load %arg1[%c0, %c0_0] : memref<56x64xbf16, #tpu.memory_space<vmem>>, vector<56x64xbf16>
    %c0_1 = arith.constant 0 : index
    %c0_2 = arith.constant 0 : index
    %1 = vector.load %arg2[%c0_1, %c0_2] : memref<64x32xbf16, #tpu.memory_space<vmem>>, vector<64x32xbf16>
    %cst = arith.constant dense<0.000000e+00> : vector<56x32xf32>
    %2 = tpu.matmul %0, %1, %cst {dimension_numbers = #tpu.dot_dimension_numbers<[1], [0], [0], [1], [0, 0, 1, 1], [], []>} : vector<56x64xbf16>, vector<64x32xbf16>, vector<56x32xf32> -> vector<56x32xf32>
    %c0_3 = arith.constant 0 : index
    %c0_4 = arith.constant 0 : index
    %3 = vector.load %arg3[%c0_3, %c0_4] : memref<1x32xf32, #tpu.memory_space<vmem>>, vector<1x32xf32>
    %4 = vector.broadcast %3 : vector<1x32xf32> to vector<56x32xf32>
    %5 = arith.mulf %2, %4 : vector<56x32xf32>
    %c0_5 = arith.constant 0 : index
    %c0_6 = arith.constant 0 : index
    %6 = vector.load %arg4[%c0_5, %c0_6] : memref<1x32xf32, #tpu.memory_space<vmem>>, vector<1x32xf32>
    %7 = vector.broadcast %6 : vector<1x32xf32> to vector<56x32xf32>
    %8 = arith.addf %5, %7 : vector<56x32xf32>
    %cst_7 = arith.constant 0.000000e+00 : f32
    %9 = vector.broadcast %cst_7 : f32 to vector<56x32xf32>
    %10 = arith.maximumf %8, %9 : vector<56x32xf32>
    %11 = arith.truncf %10 : vector<56x32xf32> to vector<56x32xbf16>
    %c0_8 = arith.constant 0 : index
    %c0_9 = arith.constant 0 : index
    %12 = vector.load %arg5[%c0_8, %c0_9] : memref<56x32xbf16, #tpu.memory_space<vmem>>, vector<56x32xbf16>
    tpu.vector_store %arg5[%c0_8, %c0_9], %11 {strides = array<i32>} : memref<56x32xbf16, #tpu.memory_space<vmem>>, vector<56x32xbf16>,
    return
  }
  func.func @transform_0(%arg0: i32) -> (i32, i32) {
    %c0_i32 = arith.constant 0 : i32
    %c0_i32_0 = arith.constant 0 : i32
    return %arg0, %c0_i32 : i32, i32
  }
  func.func @transform_1(%arg0: i32) -> (i32, i32) {
    %c0_i32 = arith.constant 0 : i32
    %c0_i32_0 = arith.constant 0 : i32
    %c0_i32_1 = arith.constant 0 : i32
    return %c0_i32, %c0_i32_0 : i32, i32
  }
  func.func @transform_2(%arg0: i32) -> (i32, i32) {
    %c0_i32 = arith.constant 0 : i32
    %c0_i32_0 = arith.constant 0 : i32
    %c0_i32_1 = arith.constant 0 : i32
    return %c0_i32, %c0_i32_0 : i32, i32
  }
  func.func @transform_3(%arg0: i32) -> (i32, i32) {
    %c0_i32 = arith.constant 0 : i32
    %c0_i32_0 = arith.constant 0 : i32
    %c0_i32_1 = arith.constant 0 : i32
    return %c0_i32, %c0_i32_0 : i32, i32
  }
  func.func @transform_4(%arg0: i32) -> (i32, i32) {
    %c0_i32 = arith.constant 0 : i32
    %c0_i32_0 = arith.constant 0 : i32
    return %arg0, %c0_i32 : i32, i32
  }
}

module attributes {stable_mosaic.version = 11 : i64} {
  func.func @_mm_affine_kernel(%arg0: i32, %arg1: memref<32x256xbf16, #tpu.memory_space<vmem>>, %arg2: memref<256x32xbf16, #tpu.memory_space<vmem>>, %arg3: memref<1x32xf32, #tpu.memory_space<vmem>>, %arg4: memref<1x32xf32, #tpu.memory_space<vmem>>, %arg5: memref<32x32xbf16, #tpu.memory_space<vmem>>) attributes {dimension_semantics = [#tpu.dimension_semantics<parallel>], iteration_bounds = array<i64: 1>, scalar_prefetch = 0 : i64, scratch_operands = 0 : i64, tpu.core_type = #tpu.core_type<tc>, window_params = [{transform_indices = @transform_0, window_bounds = array<i64: 32, 256>}, {pipeline_mode = #tpu.pipeline_mode<synchronous>, transform_indices = @transform_1, window_bounds = array<i64: 256, 32>}, {pipeline_mode = #tpu.pipeline_mode<synchronous>, transform_indices = @transform_2, window_bounds = array<i64: 1, 32>}, {pipeline_mode = #tpu.pipeline_mode<synchronous>, transform_indices = @transform_3, window_bounds = array<i64: 1, 32>}, {transform_indices = @transform_4, window_bounds = array<i64: 32, 32>}]} {
    %c0 = arith.constant 0 : index
    %c0_0 = arith.constant 0 : index
    %0 = vector.load %arg1[%c0, %c0_0] : memref<32x256xbf16, #tpu.memory_space<vmem>>, vector<32x256xbf16>
    %c0_1 = arith.constant 0 : index
    %c0_2 = arith.constant 0 : index
    %1 = vector.load %arg2[%c0_1, %c0_2] : memref<256x32xbf16, #tpu.memory_space<vmem>>, vector<256x32xbf16>
    %cst = arith.constant dense<0.000000e+00> : vector<32x32xf32>
    %2 = tpu.matmul %0, %1, %cst {dimension_numbers = #tpu.dot_dimension_numbers<[1], [0], [0], [1], [0, 0, 1, 1], [], []>} : vector<32x256xbf16>, vector<256x32xbf16>, vector<32x32xf32> -> vector<32x32xf32>
    %c0_3 = arith.constant 0 : index
    %c0_4 = arith.constant 0 : index
    %3 = vector.load %arg3[%c0_3, %c0_4] : memref<1x32xf32, #tpu.memory_space<vmem>>, vector<1x32xf32>
    %4 = vector.broadcast %3 : vector<1x32xf32> to vector<32x32xf32>
    %5 = arith.mulf %2, %4 : vector<32x32xf32>
    %c0_5 = arith.constant 0 : index
    %c0_6 = arith.constant 0 : index
    %6 = vector.load %arg4[%c0_5, %c0_6] : memref<1x32xf32, #tpu.memory_space<vmem>>, vector<1x32xf32>
    %7 = vector.broadcast %6 : vector<1x32xf32> to vector<32x32xf32>
    %8 = arith.addf %5, %7 : vector<32x32xf32>
    %cst_7 = arith.constant 0.000000e+00 : f32
    %9 = vector.broadcast %cst_7 : f32 to vector<32x32xf32>
    %10 = arith.maximumf %8, %9 : vector<32x32xf32>
    %11 = arith.truncf %10 : vector<32x32xf32> to vector<32x32xbf16>
    %c0_8 = arith.constant 0 : index
    %c0_9 = arith.constant 0 : index
    %12 = vector.load %arg5[%c0_8, %c0_9] : memref<32x32xbf16, #tpu.memory_space<vmem>>, vector<32x32xbf16>
    tpu.vector_store %arg5[%c0_8, %c0_9], %11 {strides = array<i32>} : memref<32x32xbf16, #tpu.memory_space<vmem>>, vector<32x32xbf16>,
    return
  }
  func.func @transform_0(%arg0: i32) -> (i32, i32) {
    %c0_i32 = arith.constant 0 : i32
    %c0_i32_0 = arith.constant 0 : i32
    return %arg0, %c0_i32 : i32, i32
  }
  func.func @transform_1(%arg0: i32) -> (i32, i32) {
    %c0_i32 = arith.constant 0 : i32
    %c0_i32_0 = arith.constant 0 : i32
    %c0_i32_1 = arith.constant 0 : i32
    return %c0_i32, %c0_i32_0 : i32, i32
  }
  func.func @transform_2(%arg0: i32) -> (i32, i32) {
    %c0_i32 = arith.constant 0 : i32
    %c0_i32_0 = arith.constant 0 : i32
    %c0_i32_1 = arith.constant 0 : i32
    return %c0_i32, %c0_i32_0 : i32, i32
  }
  func.func @transform_3(%arg0: i32) -> (i32, i32) {
    %c0_i32 = arith.constant 0 : i32
    %c0_i32_0 = arith.constant 0 : i32
    %c0_i32_1 = arith.constant 0 : i32
    return %c0_i32, %c0_i32_0 : i32, i32
  }
  func.func @transform_4(%arg0: i32) -> (i32, i32) {
    %c0_i32 = arith.constant 0 : i32
    %c0_i32_0 = arith.constant 0 : i32
    return %arg0, %c0_i32 : i32, i32
  }
}

module attributes {stable_mosaic.version = 11 : i64} {
  func.func @_mm_affine_kernel(%arg0: i32, %arg1: memref<168x288xbf16, #tpu.memory_space<vmem>>, %arg2: memref<288x32xbf16, #tpu.memory_space<vmem>>, %arg3: memref<1x32xf32, #tpu.memory_space<vmem>>, %arg4: memref<1x32xf32, #tpu.memory_space<vmem>>, %arg5: memref<168x32xbf16, #tpu.memory_space<vmem>>) attributes {dimension_semantics = [#tpu.dimension_semantics<parallel>], iteration_bounds = array<i64: 1>, scalar_prefetch = 0 : i64, scratch_operands = 0 : i64, tpu.core_type = #tpu.core_type<tc>, window_params = [{transform_indices = @transform_0, window_bounds = array<i64: 168, 288>}, {pipeline_mode = #tpu.pipeline_mode<synchronous>, transform_indices = @transform_1, window_bounds = array<i64: 288, 32>}, {pipeline_mode = #tpu.pipeline_mode<synchronous>, transform_indices = @transform_2, window_bounds = array<i64: 1, 32>}, {pipeline_mode = #tpu.pipeline_mode<synchronous>, transform_indices = @transform_3, window_bounds = array<i64: 1, 32>}, {transform_indices = @transform_4, window_bounds = array<i64: 168, 32>}]} {
    %c0 = arith.constant 0 : index
    %c0_0 = arith.constant 0 : index
    %0 = vector.load %arg1[%c0, %c0_0] : memref<168x288xbf16, #tpu.memory_space<vmem>>, vector<168x288xbf16>
    %c0_1 = arith.constant 0 : index
    %c0_2 = arith.constant 0 : index
    %1 = vector.load %arg2[%c0_1, %c0_2] : memref<288x32xbf16, #tpu.memory_space<vmem>>, vector<288x32xbf16>
    %cst = arith.constant dense<0.000000e+00> : vector<168x32xf32>
    %2 = tpu.matmul %0, %1, %cst {dimension_numbers = #tpu.dot_dimension_numbers<[1], [0], [0], [1], [0, 0, 1, 1], [], []>} : vector<168x288xbf16>, vector<288x32xbf16>, vector<168x32xf32> -> vector<168x32xf32>
    %c0_3 = arith.constant 0 : index
    %c0_4 = arith.constant 0 : index
    %3 = vector.load %arg3[%c0_3, %c0_4] : memref<1x32xf32, #tpu.memory_space<vmem>>, vector<1x32xf32>
    %4 = vector.broadcast %3 : vector<1x32xf32> to vector<168x32xf32>
    %5 = arith.mulf %2, %4 : vector<168x32xf32>
    %c0_5 = arith.constant 0 : index
    %c0_6 = arith.constant 0 : index
    %6 = vector.load %arg4[%c0_5, %c0_6] : memref<1x32xf32, #tpu.memory_space<vmem>>, vector<1x32xf32>
    %7 = vector.broadcast %6 : vector<1x32xf32> to vector<168x32xf32>
    %8 = arith.addf %5, %7 : vector<168x32xf32>
    %cst_7 = arith.constant 0.000000e+00 : f32
    %9 = vector.broadcast %cst_7 : f32 to vector<168x32xf32>
    %10 = arith.maximumf %8, %9 : vector<168x32xf32>
    %11 = arith.truncf %10 : vector<168x32xf32> to vector<168x32xbf16>
    %c0_8 = arith.constant 0 : index
    %c0_9 = arith.constant 0 : index
    %12 = vector.load %arg5[%c0_8, %c0_9] : memref<168x32xbf16, #tpu.memory_space<vmem>>, vector<168x32xbf16>
    tpu.vector_store %arg5[%c0_8, %c0_9], %11 {strides = array<i32>} : memref<168x32xbf16, #tpu.memory_space<vmem>>, vector<168x32xbf16>,
    return
  }
  func.func @transform_0(%arg0: i32) -> (i32, i32) {
    %c0_i32 = arith.constant 0 : i32
    %c0_i32_0 = arith.constant 0 : i32
    return %arg0, %c0_i32 : i32, i32
  }
  func.func @transform_1(%arg0: i32) -> (i32, i32) {
    %c0_i32 = arith.constant 0 : i32
    %c0_i32_0 = arith.constant 0 : i32
    %c0_i32_1 = arith.constant 0 : i32
    return %c0_i32, %c0_i32_0 : i32, i32
  }
  func.func @transform_2(%arg0: i32) -> (i32, i32) {
    %c0_i32 = arith.constant 0 : i32
    %c0_i32_0 = arith.constant 0 : i32
    %c0_i32_1 = arith.constant 0 : i32
    return %c0_i32, %c0_i32_0 : i32, i32
  }
  func.func @transform_3(%arg0: i32) -> (i32, i32) {
    %c0_i32 = arith.constant 0 : i32
    %c0_i32_0 = arith.constant 0 : i32
    %c0_i32_1 = arith.constant 0 : i32
    return %c0_i32, %c0_i32_0 : i32, i32
  }
  func.func @transform_4(%arg0: i32) -> (i32, i32) {
    %c0_i32 = arith.constant 0 : i32
    %c0_i32_0 = arith.constant 0 : i32
    return %arg0, %c0_i32 : i32, i32
  }
}

module attributes {stable_mosaic.version = 11 : i64} {
  func.func @_pool_head_kernel(%arg0: i32, %arg1: memref<1x81x32xbf16, #tpu.memory_space<vmem>>, %arg2: memref<32x6xf32, #tpu.memory_space<vmem>>, %arg3: memref<1x6xf32, #tpu.memory_space<vmem>>, %arg4: memref<1x1x6xf32, #tpu.memory_space<vmem>>) attributes {dimension_semantics = [#tpu.dimension_semantics<parallel>], iteration_bounds = array<i64: 2>, scalar_prefetch = 0 : i64, scratch_operands = 0 : i64, tpu.core_type = #tpu.core_type<tc>, window_params = [{transform_indices = @transform_0, window_bounds = array<i64: 1, 81, 32>}, {pipeline_mode = #tpu.pipeline_mode<synchronous>, transform_indices = @transform_1, window_bounds = array<i64: 32, 6>}, {pipeline_mode = #tpu.pipeline_mode<synchronous>, transform_indices = @transform_2, window_bounds = array<i64: 1, 6>}, {transform_indices = @transform_3, window_bounds = array<i64: 1, 1, 6>}]} {
    %c0 = arith.constant 0 : index
    %c0_0 = arith.constant 0 : index
    %c0_1 = arith.constant 0 : index
    %0 = vector.load %arg1[%c0, %c0_0, %c0_1] : memref<1x81x32xbf16, #tpu.memory_space<vmem>>, vector<1x81x32xbf16>
    %1 = vector.shape_cast %0 : vector<1x81x32xbf16> to vector<81x32xbf16>
    %2 = arith.extf %1 : vector<81x32xbf16> to vector<81x32xf32>
    %cst = arith.constant dense<0.000000e+00> : vector<32xf32>
    %3 = vector.multi_reduction <add>, %2, %cst [0] : vector<81x32xf32> to vector<32xf32>
    %4 = vector.shape_cast %3 : vector<32xf32> to vector<1x32xf32>
    %cst_2 = arith.constant 0.0123456791 : f32
    %5 = vector.broadcast %cst_2 : f32 to vector<1x32xf32>
    %6 = arith.mulf %4, %5 : vector<1x32xf32>
    %c0_3 = arith.constant 0 : index
    %c0_4 = arith.constant 0 : index
    %7 = vector.load %arg2[%c0_3, %c0_4] : memref<32x6xf32, #tpu.memory_space<vmem>>, vector<32x6xf32>
    %cst_5 = arith.constant dense<0.000000e+00> : vector<1x6xf32>
    %8 = tpu.matmul %6, %7, %cst_5 {dimension_numbers = #tpu.dot_dimension_numbers<[1], [0], [0], [1], [0, 0, 1, 1], [], []>} : vector<1x32xf32>, vector<32x6xf32>, vector<1x6xf32> -> vector<1x6xf32>
    %c0_6 = arith.constant 0 : index
    %c0_7 = arith.constant 0 : index
    %9 = vector.load %arg3[%c0_6, %c0_7] : memref<1x6xf32, #tpu.memory_space<vmem>>, vector<1x6xf32>
    %10 = arith.addf %8, %9 : vector<1x6xf32>
    %c0_8 = arith.constant 0 : index
    %c0_9 = arith.constant 0 : index
    %c0_10 = arith.constant 0 : index
    %11 = vector.load %arg4[%c0_8, %c0_9, %c0_10] : memref<1x1x6xf32, #tpu.memory_space<vmem>>, vector<1x1x6xf32>
    %12 = vector.shape_cast %11 : vector<1x1x6xf32> to vector<1x6xf32>
    %13 = vector.shape_cast %10 : vector<1x6xf32> to vector<1x1x6xf32>
    tpu.vector_store %arg4[%c0_8, %c0_9, %c0_10], %13 {strides = array<i32>} : memref<1x1x6xf32, #tpu.memory_space<vmem>>, vector<1x1x6xf32>,
    return
  }
  func.func @transform_0(%arg0: i32) -> (i32, i32, i32) {
    %c0_i32 = arith.constant 0 : i32
    %c0_i32_0 = arith.constant 0 : i32
    %c0_i32_1 = arith.constant 0 : i32
    return %arg0, %c0_i32, %c0_i32_0 : i32, i32, i32
  }
  func.func @transform_1(%arg0: i32) -> (i32, i32) {
    %c0_i32 = arith.constant 0 : i32
    %c0_i32_0 = arith.constant 0 : i32
    %c0_i32_1 = arith.constant 0 : i32
    return %c0_i32, %c0_i32_0 : i32, i32
  }
  func.func @transform_2(%arg0: i32) -> (i32, i32) {
    %c0_i32 = arith.constant 0 : i32
    %c0_i32_0 = arith.constant 0 : i32
    %c0_i32_1 = arith.constant 0 : i32
    return %c0_i32, %c0_i32_0 : i32, i32
  }
  func.func @transform_3(%arg0: i32) -> (i32, i32, i32) {
    %c0_i32 = arith.constant 0 : i32
    %c0_i32_0 = arith.constant 0 : i32
    %c0_i32_1 = arith.constant 0 : i32
    return %arg0, %c0_i32, %c0_i32_0 : i32, i32, i32
  }
}

</mosaic_0001>

<bundles_post_ra>
// kernel: cnn_planner_forward.24
= control target key start
LH: loop header
LB: loop body
LE: loop exit
PB: predicated region body
PF: predicated region fallthrough
CT: control target
= control target key end

     0   :  { %vm314_vm0 = vcmask 261120   ;;  %vm558_vm1 = vcmask 519168   ;;  %s1172_s1 = inlined_call_operand.vmem [shape: bf16[288,64], index: 1, kind: input, shape index: {}]   ;;  %s1173_s0 = inlined_call_operand.vmem [shape: bf16[128,288], index: 0, kind: input, shape index: {}]   ;;  %s1174_s2 = inlined_call_operand.vmem [shape: f32[1,64], index: 2, kind: input, shape index: {}]   ;;  %s1175_s3 = inlined_call_operand.vmem [shape: f32[1,64], index: 3, kind: input, shape index: {}]   ;;  %s1176_s4 = inlined_call_operand.vmem [shape: bf16[128,64], index: 4, kind: output, shape index: {}]  }
   0x1   :  { %v786_v0 = vld [vmem:[%s1172_s1 + $0x38] sm:$0xff]  ;;  %v796_v2 = vld [vmem:[%s1172_s1 + $0x88] sm:$0xff]  ;;  %v785_v3 = vld [vmem:[%s1172_s1 + $0x30] sm:$0xff] }
   0x2   :  { %v846_v1 = vld [vmem:[%s1172_s1 + $0x78] sm:$0xff]  ;;  %339 = vmatpush.bf16.msra.mxu0 %v786_v0  ;;  %797 = vmatpush.bf16.msra.mxu3 %v786_v0  ;;  %v857_v4 = vld [vmem:[%s1172_s1 + $0x70] sm:$0xff]  ;;  %v795_v5 = vld [vmem:[%s1172_s1 + $0x80] sm:$0xff] }
   0x3   :  { %388 = vmatpush.bf16.msra.mxu1 %v846_v1  ;;  %443 = vmatpush.bf16.msra.mxu2 %v796_v2  ;;  %v589_v6 = vld [vmem:[%s1173_s0 + $0x8] sm:$0xf]  ;;  %v757_v7 = vld [vmem:[%s1173_s0 + $0x10] sm:$0xf0]  ;;  %v783_v11 = vld [vmem:[%s1172_s1 + $0x20] sm:$0xff] }
   0x4   :  { %v590_v8 = vor.u32 %v757_v7, %v589_v6  ;;  %v784_v9 = vld [vmem:[%s1172_s1 + $0x28] sm:$0xff]  ;;  %v791_v12 = vld [vmem:[%s1172_s1 + $0x60] sm:$0xff]  ;;  %v782_v13 = vld [vmem:[%s1172_s1 + $0x18] sm:$0xff] }
   0x5   :  { %v792_v10 = vld [vmem:[%s1172_s1 + $0x68] sm:$0xff]  ;;  %v790_v14 = vld [vmem:[%s1172_s1 + $0x58] sm:$0xff]  ;;  %v781_v15 = vld [vmem:[%s1172_s1 + $0x10] sm:$0xff] }
   0x6   :  { %340 = vmatpush.bf16.msra.mxu0 %v785_v3  ;;  %798 = vmatpush.bf16.msra.mxu3 %v785_v3  ;;  %v789_v16 = vld [vmem:[%s1172_s1 + $0x50] sm:$0xff]  ;;  %v601_v17 = vld [vmem:[%s1173_s0 + $0x20] sm:$0xf]  ;;  %v760_v18 = vld [vmem:[%s1173_s0 + $0x28] sm:$0xf0] }
   0x7   :  { %389 = vmatpush.bf16.msra.mxu1 %v857_v4  ;;  %444 = vmatpush.bf16.msra.mxu2 %v795_v5  ;;  %v602_v19 = vor.u32 %v760_v18, %v601_v17  ;;  %v780_v20 = vld [vmem:[%s1172_s1 + $0x8] sm:$0xff]  ;;  %v779_v22 = vld [vmem:[%s1172_s1] sm:$0xff]  ;;  %v653_v26 = vld [vmem:[%s1173_s0 + $0x90] sm:$0xf] }
   0x8   :  { %v788_v21 = vld [vmem:[%s1172_s1 + $0x48] sm:$0xff]  ;;  %v787_v23 = vld [vmem:[%s1172_s1 + $0x40] sm:$0xff]  ;;  %v774_v27 = vld [vmem:[%s1173_s0 + $0x98] sm:$0xf0] }
   0x9   :  { %v581_v24 = vld [vmem:[%s1173_s0] sm:$0xf]  ;;  %v756_v25 = vld [vmem:[%s1173_s0 + $0x8] sm:$0xf0]  ;;  %v755_v28 = vld [vmem:[%s1173_s0 + $0x4] sm:$0xf]  ;;  %v654_v31 = vor.u32 %v774_v27, %v653_v26 }
   0xa   :  { %747 = vmatmul.msk.bf16.vlgmr.msra.gmra.mxu2 %vm314_vm0, %v590_v8  ;;  %341 = vmatpush.bf16.msra.mxu0 %v784_v9  ;;  %v583_v29 = vld [vmem:[%s1173_s0 + $0xc] sm:$0xf0]  ;;  %v582_v30 = vor.u32 %v756_v25, %v581_v24  ;;  %v613_v33 = vld [vmem:[%s1173_s0 + $0x38] sm:$0xf]  ;;  %v763_v34 = vld [vmem:[%s1173_s0 + $0x40] sm:$0xf0] }
   0xb   :  { %799 = vmatpush.bf16.msra.mxu3 %v784_v9  ;;  %390 = vmatpush.bf16.msra.mxu1 %v792_v10  ;;  %v586_v32 = vor.u32 %v755_v28, %v583_v29  ;;  %v614_v35 = vor.u32 %v763_v34, %v613_v33  ;;  %v593_v36 = vld [vmem:[%s1173_s0 + $0x18] sm:$0xf]  ;;  %v759_v37 = vld [vmem:[%s1173_s0 + $0x20] sm:$0xf0]  ;;  %v665_v38 = vld [vmem:[%s1173_s0 + $0xa8] sm:$0xf] }
   0xc   :  { %v777_v39 = vld [vmem:[%s1173_s0 + $0xb0] sm:$0xf0]  ;;  %v758_v40 = vld [vmem:[%s1173_s0 + $0x1c] sm:$0xf]  ;;  %v595_v41 = vld [vmem:[%s1173_s0 + $0x24] sm:$0xf0]  ;;  %v594_v42 = vor.u32 %v759_v37, %v593_v36 }
   0xd   :  { %v666_v43 = vor.u32 %v777_v39, %v665_v38  ;;  %v598_v44 = vor.u32 %v758_v40, %v595_v41  ;;  %v625_v45 = vld [vmem:[%s1173_s0 + $0x50] sm:$0xf]  ;;  %v766_v46 = vld [vmem:[%s1173_s0 + $0x58] sm:$0xf0]  ;;  %v761_v50 = vld [vmem:[%s1173_s0 + $0x34] sm:$0xf] }
   0xe   :  { %342 = vmatpush.bf16.msra.mxu0 %v783_v11  ;;  %v626_v47 = vor.u32 %v766_v46, %v625_v45  ;;  %v605_v48 = vld [vmem:[%s1173_s0 + $0x30] sm:$0xf]  ;;  %v762_v49 = vld [vmem:[%s1173_s0 + $0x38] sm:$0xf0]  ;;  %v607_v51 = vld [vmem:[%s1173_s0 + $0x3c] sm:$0xf0] }
   0xf   :  { %800 = vmatpush.bf16.msra.mxu3 %v783_v11  ;;  %391 = vmatpush.bf16.msra.mxu1 %v791_v12  ;;  %v773_v52 = vld [vmem:[%s1173_s0 + $0x94] sm:$0xf]  ;;  %v655_v53 = vld [vmem:[%s1173_s0 + $0x9c] sm:$0xf0]  ;;  %v606_v54 = vor.u32 %v762_v49, %v605_v48  ;;  %v610_v55 = vor.u32 %v761_v50, %v607_v51  ;;  %v637_v57 = vld [vmem:[%s1173_s0 + $0x68] sm:$0xf] }
  0x10   :  { %v658_v56 = vor.u32 %v773_v52, %v655_v53  ;;  %v769_v58 = vld [vmem:[%s1173_s0 + $0x70] sm:$0xf0]  ;;  %v617_v60 = vld [vmem:[%s1173_s0 + $0x48] sm:$0xf]  ;;  %v764_v62 = vld [vmem:[%s1173_s0 + $0x4c] sm:$0xf] }
  0x11   :  { %v638_v59 = vor.u32 %v769_v58, %v637_v57  ;;  %v765_v61 = vld [vmem:[%s1173_s0 + $0x50] sm:$0xf0]  ;;  %v619_v63 = vld [vmem:[%s1173_s0 + $0x54] sm:$0xf0]  ;;  %v776_v0 = vld [vmem:[%s1173_s0 + $0xac] sm:$0xf] }
  0x12   :  { %343 = vmatpush.bf16.msra.mxu0 %v782_v13  ;;  %v618_v2 = vor.u32 %v765_v61, %v617_v60  ;;  %v622_v3 = vor.u32 %v764_v62, %v619_v63  ;;  %v649_v5 = vld [vmem:[%s1173_s0 + $0x80] sm:$0xf]  ;;  %v772_v6 = vld [vmem:[%s1173_s0 + $0x88] sm:$0xf0]  ;;  %v631_v11 = vld [vmem:[%s1173_s0 + $0x6c] sm:$0xf0] }
  0x13   :  { %801 = vmatpush.bf16.msra.mxu3 %v782_v13  ;;  %392 = vmatpush.bf16.msra.mxu1 %v790_v14  ;;  %v650_v7 = vor.u32 %v772_v6, %v649_v5  ;;  %v629_v8 = vld [vmem:[%s1173_s0 + $0x60] sm:$0xf]  ;;  %v768_v9 = vld [vmem:[%s1173_s0 + $0x68] sm:$0xf0]  ;;  %v641_v17 = vld [vmem:[%s1173_s0 + $0x78] sm:$0xf] }
  0x14   :  { %v771_v18 = vld [vmem:[%s1173_s0 + $0x80] sm:$0xf0]  ;;  %v778_v24 = vld [vmem:[%s1173_s0 + $0xb8] sm:$0xf0]  ;;  %v1062_v34 = vld [vmem:[%s1175_s3] ss:$0 sm:$0xff] }
  0x16   :  { %344 = vmatpush.bf16.msra.mxu0 %v781_v15 }
  0x17   :  { %802 = vmatpush.bf16.msra.mxu3 %v781_v15  ;;  %393 = vmatpush.bf16.msra.mxu1 %v789_v16  ;;  %v775_v15 = vld [vmem:[%s1173_s0 + $0xa0] sm:$0xf0] }
  0x1a   :  { %748 = vmatmul.msk.bf16.gmra.mxu2 %vm314_vm0, %v602_v19  ;;  %345 = vmatpush.bf16.msra.mxu0 %v780_v20  ;;  %v770_v19 = vld [vmem:[%s1173_s0 + $0x7c] sm:$0xf] }
  0x1b   :  { %803 = vmatpush.bf16.msra.mxu3 %v780_v20  ;;  %394 = vmatpush.bf16.msra.mxu1 %v788_v21  ;;  %v643_v20 = vld [vmem:[%s1173_s0 + $0x84] sm:$0xf0] }
  0x1e   :  { %346 = vmatpush.bf16.msra.mxu0 %v779_v22 }
  0x1f   :  { %804 = vmatpush.bf16.msra.mxu3 %v779_v22  ;;  %395 = vmatpush.bf16.msra.mxu1 %v787_v23  ;;  %v646_v22 = vor.u32 %v770_v19, %v643_v20 }
  0x21   :  { %347 = vmatmul.bf16.vlgmr.msra.gmra.mxu0 %v582_v30 }
  0x22   :  { %377 = vmatmul.bf16.vlgmr.msra.gmra.mxu3 %v654_v31  ;;  %396 = vmatmul.bf16.vlgmr.msra.gmra.mxu1 %v586_v32  ;;  %v1057_v32 = vld [vmem:[%s1174_s2] ss:$0 sm:$0xff] }
  0x23   :  { %805 = vmatpush.bf16.msrb.mxu3 %v846_v1  ;;  %v667_v1 = vld [vmem:[%s1173_s0 + $0xb4] sm:$0xf0] }
  0x27   :  { %806 = vmatpush.bf16.msrb.mxu3 %v857_v4  ;;  %v670_v4 = vor.u32 %v776_v0, %v667_v1 }
  0x2a   :  { %749 = vmatmul.msk.bf16.gmra.mxu2 %vm314_vm0, %v614_v35 }
  0x2b   :  { %807 = vmatpush.bf16.msrb.mxu3 %v792_v10  ;;  %v767_v10 = vld [vmem:[%s1173_s0 + $0x64] sm:$0xf] }
  0x2c   :  { %v634_v13 = vor.u32 %v767_v10, %v631_v11 }
  0x2f   :  { %808 = vmatpush.bf16.msrb.mxu3 %v791_v12  ;;  %v630_v12 = vor.u32 %v768_v9, %v629_v8 }
  0x31   :  { %352 = vmatmul.bf16.gmra.mxu0 %v594_v42 }
  0x32   :  { %382 = vmatmul.bf16.gmra.mxu3 %v666_v43  ;;  %401 = vmatmul.bf16.gmra.mxu1 %v598_v44 }
  0x33   :  { %809 = vmatpush.bf16.msrb.mxu3 %v790_v14  ;;  %v661_v14 = vld [vmem:[%s1173_s0 + $0x98] sm:$0xf] }
  0x37   :  { %810 = vmatpush.bf16.msrb.mxu3 %v789_v16  ;;  %v662_v16 = vor.u32 %v775_v15, %v661_v14 }
  0x3a   :  { %750 = vmatmul.msk.bf16.gmra.mxu2 %vm314_vm0, %v626_v47 }
  0x3b   :  { %811 = vmatpush.bf16.msrb.mxu3 %v788_v21  ;;  %v642_v21 = vor.u32 %v771_v18, %v641_v17 }
  0x3f   :  { %812 = vmatpush.bf16.msrb.mxu3 %v787_v23  ;;  %v673_v23 = vld [vmem:[%s1173_s0 + $0xb0] sm:$0xf] }
  0x40   :  { %v674_v25 = vor.u32 %v778_v24, %v673_v23 }
  0x41   :  { %357 = vmatmul.bf16.gmra.mxu0 %v606_v54 }
  0x42   :  { %406 = vmatmul.bf16.gmra.mxu1 %v610_v55  ;;  %426 = vmatmul.bf16.vlgmr.msrb.gmra.mxu3 %v658_v56 }
  0x4a   :  { %751 = vmatmul.msk.bf16.gmra.mxu2 %vm314_vm0, %v638_v59 }
  0x51   :  { %362 = vmatmul.bf16.gmra.mxu0 %v618_v2 }
  0x52   :  { %411 = vmatmul.bf16.gmra.mxu1 %v622_v3  ;;  %431 = vmatmul.bf16.gmra.mxu3 %v670_v4 }
  0x5a   :  { %752 = vmatmul.msk.bf16.gmra.mxu2 %vm314_vm0, %v650_v7 }
  0x61   :  { %367 = vmatmul.bf16.gmra.mxu0 %v630_v12 }
  0x62   :  { %416 = vmatmul.bf16.gmra.mxu1 %v634_v13 }
  0x6a   :  { %753 = vmatmul.msk.bf16.gmra.mxu2 %vm314_vm0, %v662_v16 }
  0x71   :  { %372 = vmatmul.bf16.gmra.mxu0 %v642_v21 }
  0x72   :  { %421 = vmatmul.bf16.gmra.mxu1 %v646_v22 }
  0x7a   :  { %754 = vmatmul.msk.bf16.gmra.mxu2 %vm314_vm0, %v674_v25 }
  0x8d   :  { %v446_v26 = vpop.f32.mrf.mxu2 }
  0x95   :  { %v448_v27 = vpop.f32.mrf.mxu2 }
  0x9d   :  { %v451_v28 = vpop.f32.mrf.mxu2 }
  0x9e   :  { %v348_v29 = vpop.f32.mrf.mxu0 }
  0x9f   :  { %v397_v30 = vpop.f32.mrf.mxu1 }
  0xa0   :  { %v398_v31 = vadd.f32 %v397_v30, %v348_v29 }
  0xa2   :  { %v447_v33 = vadd.f32 %v446_v26, %v398_v31 }
  0xa4   :  { %v490_v35 = vmul.f32 %v1057_v32, %v447_v33 }
  0xa5   :  { %v453_v36 = vpop.f32.mrf.mxu2  ;;  %v1078_v62 = vpop.f32.mrf.mxu3 }
  0xa6   :  { %v510_v37 = vadd.f32 %v1062_v34, %v490_v35  ;;  %v350_v38 = vpop.f32.mrf.mxu0 }
  0xa7   :  { %v399_v39 = vpop.f32.mrf.mxu1 }
  0xa8   :  { %v526_v40 = vmax.f32 %v510_v37, 0.0  ;;  %v400_v41 = vadd.f32 %v399_v39, %v350_v38 }
  0xaa   :  { %v542_v42 = vpack.c.bf16 %v526_v40, %v526_v40  ;;  %v449_v43 = vadd.f32 %v448_v27, %v400_v41 }
  0xac   :  { %559 = vst.msk [vmem:[%s1176_s4] sm:$0xf] %vm558_vm1, %v542_v42  ;;  %v491_v44 = vmul.f32 %v1057_v32, %v449_v43 }
  0xad   :  { %v456_v45 = vpop.f32.mrf.mxu2  ;;  %v1091_v9 = vpop.f32.mrf.mxu3 }
  0xae   :  { %v511_v46 = vadd.f32 %v1062_v34, %v491_v44  ;;  %v353_v47 = vpop.f32.mrf.mxu0 }
  0xaf   :  { %v402_v48 = vpop.f32.mrf.mxu1 }
  0xb0   :  { %v527_v49 = vmax.f32 %v511_v46, 0.0  ;;  %v403_v50 = vadd.f32 %v402_v48, %v353_v47 }
  0xb2   :  { %v543_v51 = vpack.c.bf16 %v527_v49, %v527_v49  ;;  %v452_v52 = vadd.f32 %v451_v28, %v403_v50 }
  0xb4   :  { %560 = vst.msk [vmem:[%s1176_s4 + $0x4] sm:$0xf] %vm558_vm1, %v543_v51  ;;  %v492_v53 = vmul.f32 %v1057_v32, %v452_v52 }
  0xb5   :  { %v458_v54 = vpop.f32.mrf.mxu2  ;;  %v1100_v22 = vpop.f32.mrf.mxu3 }
  0xb6   :  { %v512_v55 = vadd.f32 %v1062_v34, %v492_v53  ;;  %v355_v56 = vpop.f32.mrf.mxu0 }
  0xb7   :  { %v404_v57 = vpop.f32.mrf.mxu1 }
  0xb8   :  { %v528_v58 = vmax.f32 %v512_v55, 0.0  ;;  %v405_v59 = vadd.f32 %v404_v57, %v355_v56 }
  0xba   :  { %v544_v60 = vpack.c.bf16 %v528_v58, %v528_v58  ;;  %v454_v61 = vadd.f32 %v453_v36, %v405_v59 }
  0xbc   :  { %561 = vst.msk [vmem:[%s1176_s4 + $0x8] sm:$0xf] %vm558_vm1, %v544_v60  ;;  %v493_v63 = vmul.f32 %v1057_v32, %v454_v61 }
  0xbd   :  { %v461_v0 = vpop.f32.mrf.mxu2  ;;  %v1108_v37 = vpop.f32.mrf.mxu3 }
  0xbe   :  { %v513_v1 = vadd.f32 %v1062_v34, %v493_v63  ;;  %v358_v2 = vpop.f32.mrf.mxu0 }
  0xbf   :  { %v407_v3 = vpop.f32.mrf.mxu1 }
  0xc0   :  { %v529_v4 = vmax.f32 %v513_v1, 0.0  ;;  %v408_v5 = vadd.f32 %v407_v3, %v358_v2 }
  0xc2   :  { %v545_v6 = vpack.c.bf16 %v529_v4, %v529_v4  ;;  %v457_v7 = vadd.f32 %v456_v45, %v408_v5 }
  0xc4   :  { %562 = vst.msk [vmem:[%s1176_s4 + $0xc] sm:$0xf] %vm558_vm1, %v545_v6  ;;  %v494_v8 = vmul.f32 %v1057_v32, %v457_v7 }
  0xc5   :  { %v463_v10 = vpop.f32.mrf.mxu2  ;;  %v427_v49 = vpop.f32.mrf.mxu3 }
  0xc6   :  { %v514_v11 = vadd.f32 %v1062_v34, %v494_v8  ;;  %v360_v12 = vpop.f32.mrf.mxu0  ;;  %v428_v59 = vadd.f32 %v427_v49, %v1078_v62 }
  0xc7   :  { %v409_v13 = vpop.f32.mrf.mxu1 }
  0xc8   :  { %v530_v14 = vmax.f32 %v514_v11, 0.0  ;;  %v410_v15 = vadd.f32 %v409_v13, %v360_v12 }
  0xca   :  { %v546_v16 = vpack.c.bf16 %v530_v14, %v530_v14  ;;  %v459_v17 = vadd.f32 %v458_v54, %v410_v15 }
  0xcc   :  { %563 = vst.msk [vmem:[%s1176_s4 + $0x10] sm:$0xf] %vm558_vm1, %v546_v16  ;;  %v495_v18 = vmul.f32 %v1057_v32, %v459_v17 }
  0xcd   :  { %v466_v19 = vpop.f32.mrf.mxu2  ;;  %v429_v61 = vpop.f32.mrf.mxu3 }
  0xce   :  { %v515_v20 = vadd.f32 %v1062_v34, %v495_v18  ;;  %v363_v21 = vpop.f32.mrf.mxu0 }
  0xcf   :  { %v412_v23 = vpop.f32.mrf.mxu1 }
  0xd0   :  { %v531_v24 = vmax.f32 %v515_v20, 0.0  ;;  %v413_v25 = vadd.f32 %v412_v23, %v363_v21 }
  0xd2   :  { %v547_v26 = vpack.c.bf16 %v531_v24, %v531_v24  ;;  %v462_v27 = vadd.f32 %v461_v0, %v413_v25 }
  0xd4   :  { %564 = vst.msk [vmem:[%s1176_s4 + $0x14] sm:$0xf] %vm558_vm1, %v547_v26  ;;  %v496_v28 = vmul.f32 %v1057_v32, %v462_v27 }
  0xd5   :  { %v468_v29 = vpop.f32.mrf.mxu2  ;;  %v432_v18 = vpop.f32.mrf.mxu3 }
  0xd6   :  { %v516_v30 = vadd.f32 %v1062_v34, %v496_v28  ;;  %v365_v31 = vpop.f32.mrf.mxu0  ;;  %v433_v26 = vadd.f32 %v432_v18, %v1100_v22 }
  0xd7   :  { %v414_v33 = vpop.f32.mrf.mxu1 }
  0xd8   :  { %v532_v35 = vmax.f32 %v516_v30, 0.0  ;;  %v415_v36 = vadd.f32 %v414_v33, %v365_v31 }
  0xda   :  { %v548_v38 = vpack.c.bf16 %v532_v35, %v532_v35  ;;  %v464_v39 = vadd.f32 %v463_v10, %v415_v36  ;;  %v430_v10 = vadd.f32 %v429_v61, %v1091_v9 }
  0xdc   :  { %565 = vst.msk [vmem:[%s1176_s4 + $0x18] sm:$0xf] %vm558_vm1, %v548_v38  ;;  %v497_v40 = vmul.f32 %v1057_v32, %v464_v39 }
  0xdd   :  { %v471_v41 = vpop.f32.mrf.mxu2  ;;  %v434_v36 = vpop.f32.mrf.mxu3 }
  0xde   :  { %v517_v42 = vadd.f32 %v1062_v34, %v497_v40  ;;  %v368_v43 = vpop.f32.mrf.mxu0  ;;  %v435_v40 = vadd.f32 %v434_v36, %v1108_v37 }
  0xdf   :  { %v417_v44 = vpop.f32.mrf.mxu1 }
  0xe0   :  { %v533_v45 = vmax.f32 %v517_v42, 0.0  ;;  %v418_v46 = vadd.f32 %v417_v44, %v368_v43 }
  0xe2   :  { %v549_v47 = vpack.c.bf16 %v533_v45, %v533_v45  ;;  %v467_v48 = vadd.f32 %v466_v19, %v418_v46 }
  0xe4   :  { %566 = vst.msk [vmem:[%s1176_s4 + $0x1c] sm:$0xf] %vm558_vm1, %v549_v47  ;;  %v498_v50 = vmul.f32 %v1057_v32, %v467_v48 }
  0xe5   :  { %v473_v51 = vpop.f32.mrf.mxu2 }
  0xe6   :  { %v518_v52 = vadd.f32 %v1062_v34, %v498_v50  ;;  %v370_v53 = vpop.f32.mrf.mxu0 }
  0xe7   :  { %v419_v54 = vpop.f32.mrf.mxu1 }
  0xe8   :  { %v534_v55 = vmax.f32 %v518_v52, 0.0  ;;  %v420_v56 = vadd.f32 %v419_v54, %v370_v53 }
  0xea   :  { %v550_v57 = vpack.c.bf16 %v534_v55, %v534_v55  ;;  %v469_v58 = vadd.f32 %v468_v29, %v420_v56 }
  0xec   :  { %567 = vst.msk [vmem:[%s1176_s4 + $0x20] sm:$0xf] %vm558_vm1, %v550_v57  ;;  %v499_v60 = vmul.f32 %v1057_v32, %v469_v58 }
  0xed   :  { %v476_v63 = vpop.f32.mrf.mxu2 }
  0xee   :  { %v519_v0 = vadd.f32 %v1062_v34, %v499_v60  ;;  %v477_v1 = vadd.f32 %v476_v63, %v428_v59  ;;  %v373_v2 = vpop.f32.mrf.mxu0 }
  0xef   :  { %v422_v3 = vpop.f32.mrf.mxu1 }
  0xf0   :  { %v535_v4 = vmax.f32 %v519_v0, 0.0  ;;  %v502_v5 = vmul.f32 %v1057_v32, %v477_v1  ;;  %v423_v6 = vadd.f32 %v422_v3, %v373_v2 }
  0xf2   :  { %v551_v7 = vpack.c.bf16 %v535_v4, %v535_v4  ;;  %v522_v62 = vadd.f32 %v1062_v34, %v502_v5  ;;  %v472_v8 = vadd.f32 %v471_v41, %v423_v6 }
  0xf4   :  { %568 = vst.msk [vmem:[%s1176_s4 + $0x24] sm:$0xf] %vm558_vm1, %v551_v7  ;;  %v538_v11 = vmax.f32 %v522_v62, 0.0  ;;  %v500_v12 = vmul.f32 %v1057_v32, %v472_v8 }
  0xf5   :  { %v478_v13 = vpop.f32.mrf.mxu2 }
  0xf6   :  { %v554_v14 = vpack.c.bf16 %v538_v11, %v538_v11  ;;  %v520_v15 = vadd.f32 %v1062_v34, %v500_v12  ;;  %v479_v16 = vadd.f32 %v478_v13, %v430_v10  ;;  %v375_v17 = vpop.f32.mrf.mxu0 }
  0xf7   :  { %v424_v19 = vpop.f32.mrf.mxu1 }
  0xf8   :  { %571 = vst.msk [vmem:[%s1176_s4 + $0x30] sm:$0xf] %vm558_vm1, %v554_v14  ;;  %v536_v9 = vmax.f32 %v520_v15, 0.0  ;;  %v503_v20 = vmul.f32 %v1057_v32, %v479_v16  ;;  %v425_v21 = vadd.f32 %v424_v19, %v375_v17 }
  0xfa   :  { %v552_v23 = vpack.c.bf16 %v536_v9, %v536_v9  ;;  %v523_v24 = vadd.f32 %v1062_v34, %v503_v20  ;;  %v474_v25 = vadd.f32 %v473_v51, %v425_v21 }
  0xfc   :  { %569 = vst.msk [vmem:[%s1176_s4 + $0x28] sm:$0xf] %vm558_vm1, %v552_v23  ;;  %v539_v27 = vmax.f32 %v523_v24, 0.0  ;;  %v501_v28 = vmul.f32 %v1057_v32, %v474_v25 }
  0xfd   :  { %v481_v29 = vpop.f32.mrf.mxu2 }
  0xfe   :  { %v555_v30 = vpack.c.bf16 %v539_v27, %v539_v27  ;;  %v521_v31 = vadd.f32 %v1062_v34, %v501_v28  ;;  %v482_v33 = vadd.f32 %v481_v29, %v433_v26 }
 0x100   :  { %572 = vst.msk [vmem:[%s1176_s4 + $0x34] sm:$0xf] %vm558_vm1, %v555_v30  ;;  %v537_v35 = vmax.f32 %v521_v31, 0.0  ;;  %v504_v22 = vmul.f32 %v1057_v32, %v482_v33 }
 0x102   :  { %v553_v38 = vpack.c.bf16 %v537_v35, %v537_v35  ;;  %v524_v39 = vadd.f32 %v1062_v34, %v504_v22 }
 0x104   :  { %570 = vst.msk [vmem:[%s1176_s4 + $0x2c] sm:$0xf] %vm558_vm1, %v553_v38  ;;  %v540_v41 = vmax.f32 %v524_v39, 0.0 }
 0x105   :  { %v483_v42 = vpop.f32.mrf.mxu2 }
 0x106   :  { %v556_v43 = vpack.c.bf16 %v540_v41, %v540_v41  ;;  %v484_v44 = vadd.f32 %v483_v42, %v435_v40 }
 0x108   :  { %573 = vst.msk [vmem:[%s1176_s4 + $0x38] sm:$0xf] %vm558_vm1, %v556_v43  ;;  %v505_v45 = vmul.f32 %v1057_v32, %v484_v44 }
 0x10a   :  { %v525_v46 = vadd.f32 %v1062_v34, %v505_v45 }
 0x10c   :  { %v541_v47 = vmax.f32 %v525_v46, 0.0 }
 0x10e   :  { %v557_v37 = vpack.c.bf16 %v541_v47, %v541_v47 }
 0x110   :  { %574 = vst.msk [vmem:[%s1176_s4 + $0x3c] sm:$0xf] %vm558_vm1, %v557_v37 }

// kernel: cnn_planner_forward.23
= control target key start
LH: loop header
LB: loop body
LE: loop exit
PB: predicated region body
PF: predicated region fallthrough
CT: control target
= control target key end

     0   :  { %9 = vsyncpa [#allocation3], 0  ;;  %s1052_s18 = smov [#allocation2]   ;;  %s1610_s0 = inlined_call_operand.vmem [shape: bf16[512,27], index: 0, kind: input, shape index: {}]   ;;  %s1611_s1 = inlined_call_operand.vmem [shape: bf16[27,32], index: 1, kind: input, shape index: {}]   ;;  %s1612_s2 = inlined_call_operand.vmem [shape: f32[1,32], index: 2, kind: input, shape index: {}]   ;;  %s1613_s3 = inlined_call_operand.hbm [shape: f32[1,32], index: 3, kind: input, shape index: {}]   ;;  %s1614_s4 = inlined_call_operand.vmem [shape: bf16[512,32], index: 4, kind: output, shape index: {}]  }
   0x1   :  { %s21_s17 = sshll.u32 %s1613_s3, 4  ;;  %s23_s19 = sshll.u32 %s1052_s18, 4  ;;  %s22_s17 = int_to_ptr.hbm [resolvable:$true] %s21_s17  ;;  %s24_s19 = int_to_ptr.vmem [resolvable:$true] %s23_s19 }
   0x2   :  { %26 = dma.hbm_to_vmem [thread:$0]  %s22_s17, 16, %s24_s19, [#allocation3]  }
   0x3   :  { %1050 = dma.done.wait [#allocation3], 16  }
   0x4   :  { %1051 = vsyncadd [#allocation3], 4294967280  ;;  %vm368_vm0 = vcmask 1044480   ;;  %vm369_vm1 = vcmask 1045504   ;;  %v1053_v0 = vmov 65535   ;;  %v1014_v7 = vld [vmem:[%s1611_s1] sm:$0xff] }
   0x5   :  { %v370_v1 = vsel %vm368_vm0, 4294967295, %v1053_v0  ;;  %v948_v2 = vld [vmem:[%s1611_s1 + $0x8] sm:$0xf]  ;;  %v1015_v3 = vld [vmem:[%s1611_s1 + $0x8] sm:$0x30]  ;;  %v982_v8 = vld [vmem:[%s1610_s0] sm:$0xff] }
   0x6   :  { %v371_v4 = vsel %vm369_vm1, %v370_v1, 0  ;;  %v949_v5 = vor.u32 %v1015_v3, %v948_v2  ;;  %v990_v9 = vld [vmem:[%s1610_s0 + $0x40] sm:$0xff]  ;;  %vm271_vm2 = vcmask 220160   ;;  %v983_v12 = vld [vmem:[%s1610_s0 + $0x8] sm:$0xff]  ;;  %v984_v16 = vld [vmem:[%s1610_s0 + $0x10] sm:$0xff]  ;;  %vm744_vm3 = vcmask 257024  }
   0x7   :  { %v998_v10 = vld [vmem:[%s1610_s0 + $0x80] sm:$0xff]  ;;  %v991_v13 = vld [vmem:[%s1610_s0 + $0x48] sm:$0xff]  ;;  %v992_v17 = vld [vmem:[%s1610_s0 + $0x50] sm:$0xff] }
   0x8   :  { %v373_v6 = vand.u32 %v949_v5, %v371_v4  ;;  %v1006_v11 = vld [vmem:[%s1610_s0 + $0xc0] sm:$0xff]  ;;  %v999_v14 = vld [vmem:[%s1610_s0 + $0x88] sm:$0xff]  ;;  %v1000_v18 = vld [vmem:[%s1610_s0 + $0x90] sm:$0xff] }
   0x9   :  { %v1007_v15 = vld [vmem:[%s1610_s0 + $0xc8] sm:$0xff]  ;;  %v1008_v19 = vld [vmem:[%s1610_s0 + $0xd0] sm:$0xff]  ;;  %v985_v20 = vld [vmem:[%s1610_s0 + $0x18] sm:$0xff] }
   0xa   :  { %381 = vmatpush.bf16.msra.mxu0 %v373_v6  ;;  %1016 = vmatpush.bf16.msra.mxu1 %v373_v6  ;;  %v993_v21 = vld [vmem:[%s1610_s0 + $0x58] sm:$0xff]  ;;  %v986_v24 = vld [vmem:[%s1610_s0 + $0x20] sm:$0xff]  ;;  %v987_v28 = vld [vmem:[%s1610_s0 + $0x28] sm:$0xff] }
   0xb   :  { %1017 = vmatpush.bf16.msra.mxu2 %v373_v6  ;;  %1018 = vmatpush.bf16.msra.mxu3 %v373_v6  ;;  %v1001_v22 = vld [vmem:[%s1610_s0 + $0x98] sm:$0xff]  ;;  %v994_v25 = vld [vmem:[%s1610_s0 + $0x60] sm:$0xff]  ;;  %v995_v29 = vld [vmem:[%s1610_s0 + $0x68] sm:$0xff] }
   0xc   :  { %v1009_v23 = vld [vmem:[%s1610_s0 + $0xd8] sm:$0xff]  ;;  %v1002_v26 = vld [vmem:[%s1610_s0 + $0xa0] sm:$0xff]  ;;  %v1003_v30 = vld [vmem:[%s1610_s0 + $0xa8] sm:$0xff] }
   0xd   :  { %v1010_v27 = vld [vmem:[%s1610_s0 + $0xe0] sm:$0xff]  ;;  %v1011_v31 = vld [vmem:[%s1610_s0 + $0xe8] sm:$0xff]  ;;  %v988_v32 = vld [vmem:[%s1610_s0 + $0x30] sm:$0xff] }
   0xe   :  { %382 = vmatpush.bf16.msra.mxu0 %v1014_v7  ;;  %1019 = vmatpush.bf16.msra.mxu1 %v1014_v7  ;;  %v996_v33 = vld [vmem:[%s1610_s0 + $0x70] sm:$0xff]  ;;  %v989_v36 = vld [vmem:[%s1610_s0 + $0x38] sm:$0xff]  ;;  %v1222_v40 = vld [vmem:[%s1612_s2] ss:$0 sm:$0xff] }
   0xf   :  { %1020 = vmatpush.bf16.msra.mxu2 %v1014_v7  ;;  %1021 = vmatpush.bf16.msra.mxu3 %v1014_v7  ;;  %v1004_v34 = vld [vmem:[%s1610_s0 + $0xb0] sm:$0xff]  ;;  %v997_v37 = vld [vmem:[%s1610_s0 + $0x78] sm:$0xff]  ;;  %v1224_v41 = vld [vmem:[#allocation2] ss:$0 sm:$0xff] }
  0x10   :  { %v1012_v35 = vld [vmem:[%s1610_s0 + $0xf0] sm:$0xff]  ;;  %v1005_v38 = vld [vmem:[%s1610_s0 + $0xb8] sm:$0xff] }
  0x11   :  { %950 = vmatmul.msk.bf16.vlgmr.msra.gmra.mxu0 %vm271_vm2, %v982_v8  ;;  %958 = vmatmul.msk.bf16.vlgmr.msra.gmra.mxu1 %vm271_vm2, %v990_v9  ;;  %v1013_v39 = vld [vmem:[%s1610_s0 + $0xf8] sm:$0xff] }
  0x12   :  { %966 = vmatmul.msk.bf16.vlgmr.msra.gmra.mxu2 %vm271_vm2, %v998_v10  ;;  %974 = vmatmul.msk.bf16.vlgmr.msra.gmra.mxu3 %vm271_vm2, %v1006_v11 }
  0x21   :  { %951 = vmatmul.msk.bf16.gmra.mxu0 %vm271_vm2, %v983_v12  ;;  %959 = vmatmul.msk.bf16.gmra.mxu1 %vm271_vm2, %v991_v13 }
  0x22   :  { %967 = vmatmul.msk.bf16.gmra.mxu2 %vm271_vm2, %v999_v14  ;;  %975 = vmatmul.msk.bf16.gmra.mxu3 %vm271_vm2, %v1007_v15 }
  0x31   :  { %952 = vmatmul.msk.bf16.gmra.mxu0 %vm271_vm2, %v984_v16  ;;  %960 = vmatmul.msk.bf16.gmra.mxu1 %vm271_vm2, %v992_v17 }
  0x32   :  { %968 = vmatmul.msk.bf16.gmra.mxu2 %vm271_vm2, %v1000_v18  ;;  %976 = vmatmul.msk.bf16.gmra.mxu3 %vm271_vm2, %v1008_v19 }
  0x41   :  { %953 = vmatmul.msk.bf16.gmra.mxu0 %vm271_vm2, %v985_v20  ;;  %961 = vmatmul.msk.bf16.gmra.mxu1 %vm271_vm2, %v993_v21 }
  0x42   :  { %969 = vmatmul.msk.bf16.gmra.mxu2 %vm271_vm2, %v1001_v22  ;;  %977 = vmatmul.msk.bf16.gmra.mxu3 %vm271_vm2, %v1009_v23 }
  0x51   :  { %954 = vmatmul.msk.bf16.gmra.mxu0 %vm271_vm2, %v986_v24  ;;  %962 = vmatmul.msk.bf16.gmra.mxu1 %vm271_vm2, %v994_v25 }
  0x52   :  { %970 = vmatmul.msk.bf16.gmra.mxu2 %vm271_vm2, %v1002_v26  ;;  %978 = vmatmul.msk.bf16.gmra.mxu3 %vm271_vm2, %v1010_v27 }
  0x61   :  { %955 = vmatmul.msk.bf16.gmra.mxu0 %vm271_vm2, %v987_v28  ;;  %963 = vmatmul.msk.bf16.gmra.mxu1 %vm271_vm2, %v995_v29 }
  0x62   :  { %971 = vmatmul.msk.bf16.gmra.mxu2 %vm271_vm2, %v1003_v30  ;;  %979 = vmatmul.msk.bf16.gmra.mxu3 %vm271_vm2, %v1011_v31 }
  0x71   :  { %956 = vmatmul.msk.bf16.gmra.mxu0 %vm271_vm2, %v988_v32  ;;  %964 = vmatmul.msk.bf16.gmra.mxu1 %vm271_vm2, %v996_v33 }
  0x72   :  { %972 = vmatmul.msk.bf16.gmra.mxu2 %vm271_vm2, %v1004_v34  ;;  %980 = vmatmul.msk.bf16.gmra.mxu3 %vm271_vm2, %v1012_v35 }
  0x81   :  { %957 = vmatmul.msk.bf16.gmra.mxu0 %vm271_vm2, %v989_v36  ;;  %965 = vmatmul.msk.bf16.gmra.mxu1 %vm271_vm2, %v997_v37 }
  0x82   :  { %973 = vmatmul.msk.bf16.gmra.mxu2 %vm271_vm2, %v1005_v38  ;;  %981 = vmatmul.msk.bf16.gmra.mxu3 %vm271_vm2, %v1013_v39 }
  0x8e   :  { %v384_v42 = vpop.f32.mrf.mxu0  ;;  %v424_v43 = vpop.f32.mrf.mxu1 }
  0x8f   :  { %v548_v44 = vmul.f32 %v1222_v40, %v384_v42  ;;  %v564_v45 = vmul.f32 %v1222_v40, %v424_v43 }
  0x91   :  { %v616_v46 = vadd.f32 %v1224_v41, %v548_v44  ;;  %v632_v47 = vadd.f32 %v1224_v41, %v564_v45 }
  0x93   :  { %v680_v48 = vpack.c.bf16 %v616_v46, %v616_v46  ;;  %v696_v49 = vpack.c.bf16 %v632_v47, %v632_v47 }
  0x95   :  { %745 = vst.msk [vmem:[%s1614_s4] sm:$0xf] %vm744_vm3, %v680_v48  ;;  %v464_v50 = vpop.f32.mrf.mxu2  ;;  %v504_v51 = vpop.f32.mrf.mxu3 }
  0x96   :  { %761 = vst.msk [vmem:[%s1614_s4 + $0x40] sm:$0xf] %vm744_vm3, %v696_v49  ;;  %v580_v52 = vmul.f32 %v1222_v40, %v464_v50  ;;  %v596_v53 = vmul.f32 %v1222_v40, %v504_v51  ;;  %v386_v54 = vpop.f32.mrf.mxu0  ;;  %v426_v55 = vpop.f32.mrf.mxu1 }
  0x97   :  { %v549_v56 = vmul.f32 %v1222_v40, %v386_v54  ;;  %v565_v57 = vmul.f32 %v1222_v40, %v426_v55 }
  0x98   :  { %v648_v58 = vadd.f32 %v1224_v41, %v580_v52  ;;  %v664_v59 = vadd.f32 %v1224_v41, %v596_v53 }
  0x99   :  { %v617_v60 = vadd.f32 %v1224_v41, %v549_v56  ;;  %v633_v61 = vadd.f32 %v1224_v41, %v565_v57 }
  0x9a   :  { %v712_v62 = vpack.c.bf16 %v648_v58, %v648_v58  ;;  %v728_v63 = vpack.c.bf16 %v664_v59, %v664_v59 }
  0x9b   :  { %v681_v0 = vpack.c.bf16 %v617_v60, %v617_v60  ;;  %v697_v1 = vpack.c.bf16 %v633_v61, %v633_v61 }
  0x9c   :  { %777 = vst.msk [vmem:[%s1614_s4 + $0x80] sm:$0xf] %vm744_vm3, %v712_v62 }
  0x9d   :  { %793 = vst.msk [vmem:[%s1614_s4 + $0xc0] sm:$0xf] %vm744_vm3, %v728_v63  ;;  %v466_v2 = vpop.f32.mrf.mxu2  ;;  %v506_v3 = vpop.f32.mrf.mxu3 }
  0x9e   :  { %746 = vst.msk [vmem:[%s1614_s4 + $0x4] sm:$0xf] %vm744_vm3, %v681_v0  ;;  %v581_v4 = vmul.f32 %v1222_v40, %v466_v2  ;;  %v597_v5 = vmul.f32 %v1222_v40, %v506_v3  ;;  %v389_v6 = vpop.f32.mrf.mxu0  ;;  %v429_v7 = vpop.f32.mrf.mxu1 }
  0x9f   :  { %762 = vst.msk [vmem:[%s1614_s4 + $0x44] sm:$0xf] %vm744_vm3, %v697_v1  ;;  %v550_v8 = vmul.f32 %v1222_v40, %v389_v6  ;;  %v566_v9 = vmul.f32 %v1222_v40, %v429_v7 }
  0xa0   :  { %v649_v10 = vadd.f32 %v1224_v41, %v581_v4  ;;  %v665_v11 = vadd.f32 %v1224_v41, %v597_v5 }
  0xa1   :  { %v618_v12 = vadd.f32 %v1224_v41, %v550_v8  ;;  %v634_v13 = vadd.f32 %v1224_v41, %v566_v9 }
  0xa2   :  { %v713_v14 = vpack.c.bf16 %v649_v10, %v649_v10  ;;  %v729_v15 = vpack.c.bf16 %v665_v11, %v665_v11 }
  0xa3   :  { %v682_v16 = vpack.c.bf16 %v618_v12, %v618_v12  ;;  %v698_v17 = vpack.c.bf16 %v634_v13, %v634_v13 }
  0xa4   :  { %778 = vst.msk [vmem:[%s1614_s4 + $0x84] sm:$0xf] %vm744_vm3, %v713_v14 }
  0xa5   :  { %794 = vst.msk [vmem:[%s1614_s4 + $0xc4] sm:$0xf] %vm744_vm3, %v729_v15  ;;  %v469_v18 = vpop.f32.mrf.mxu2  ;;  %v509_v19 = vpop.f32.mrf.mxu3 }
  0xa6   :  { %747 = vst.msk [vmem:[%s1614_s4 + $0x8] sm:$0xf] %vm744_vm3, %v682_v16  ;;  %v582_v20 = vmul.f32 %v1222_v40, %v469_v18  ;;  %v598_v21 = vmul.f32 %v1222_v40, %v509_v19  ;;  %v391_v22 = vpop.f32.mrf.mxu0  ;;  %v431_v23 = vpop.f32.mrf.mxu1 }
  0xa7   :  { %763 = vst.msk [vmem:[%s1614_s4 + $0x48] sm:$0xf] %vm744_vm3, %v698_v17  ;;  %v551_v24 = vmul.f32 %v1222_v40, %v391_v22  ;;  %v567_v25 = vmul.f32 %v1222_v40, %v431_v23 }
  0xa8   :  { %v650_v26 = vadd.f32 %v1224_v41, %v582_v20  ;;  %v666_v27 = vadd.f32 %v1224_v41, %v598_v21 }
  0xa9   :  { %v619_v28 = vadd.f32 %v1224_v41, %v551_v24  ;;  %v635_v29 = vadd.f32 %v1224_v41, %v567_v25 }
  0xaa   :  { %v714_v30 = vpack.c.bf16 %v650_v26, %v650_v26  ;;  %v730_v31 = vpack.c.bf16 %v666_v27, %v666_v27 }
  0xab   :  { %v683_v32 = vpack.c.bf16 %v619_v28, %v619_v28  ;;  %v699_v33 = vpack.c.bf16 %v635_v29, %v635_v29 }
  0xac   :  { %779 = vst.msk [vmem:[%s1614_s4 + $0x88] sm:$0xf] %vm744_vm3, %v714_v30 }
  0xad   :  { %795 = vst.msk [vmem:[%s1614_s4 + $0xc8] sm:$0xf] %vm744_vm3, %v730_v31  ;;  %v471_v34 = vpop.f32.mrf.mxu2  ;;  %v511_v35 = vpop.f32.mrf.mxu3 }
  0xae   :  { %748 = vst.msk [vmem:[%s1614_s4 + $0xc] sm:$0xf] %vm744_vm3, %v683_v32  ;;  %v583_v36 = vmul.f32 %v1222_v40, %v471_v34  ;;  %v599_v37 = vmul.f32 %v1222_v40, %v511_v35  ;;  %v394_v38 = vpop.f32.mrf.mxu0  ;;  %v434_v39 = vpop.f32.mrf.mxu1 }
  0xaf   :  { %764 = vst.msk [vmem:[%s1614_s4 + $0x4c] sm:$0xf] %vm744_vm3, %v699_v33  ;;  %v552_v42 = vmul.f32 %v1222_v40, %v394_v38  ;;  %v568_v43 = vmul.f32 %v1222_v40, %v434_v39 }
  0xb0   :  { %v651_v44 = vadd.f32 %v1224_v41, %v583_v36  ;;  %v667_v45 = vadd.f32 %v1224_v41, %v599_v37 }
  0xb1   :  { %v620_v46 = vadd.f32 %v1224_v41, %v552_v42  ;;  %v636_v47 = vadd.f32 %v1224_v41, %v568_v43 }
  0xb2   :  { %v715_v48 = vpack.c.bf16 %v651_v44, %v651_v44  ;;  %v731_v49 = vpack.c.bf16 %v667_v45, %v667_v45 }
  0xb3   :  { %v684_v50 = vpack.c.bf16 %v620_v46, %v620_v46  ;;  %v700_v51 = vpack.c.bf16 %v636_v47, %v636_v47 }
  0xb4   :  { %780 = vst.msk [vmem:[%s1614_s4 + $0x8c] sm:$0xf] %vm744_vm3, %v715_v48 }
  0xb5   :  { %796 = vst.msk [vmem:[%s1614_s4 + $0xcc] sm:$0xf] %vm744_vm3, %v731_v49  ;;  %v474_v52 = vpop.f32.mrf.mxu2  ;;  %v514_v53 = vpop.f32.mrf.mxu3 }
  0xb6   :  { %749 = vst.msk [vmem:[%s1614_s4 + $0x10] sm:$0xf] %vm744_vm3, %v684_v50  ;;  %v584_v54 = vmul.f32 %v1222_v40, %v474_v52  ;;  %v600_v55 = vmul.f32 %v1222_v40, %v514_v53  ;;  %v396_v56 = vpop.f32.mrf.mxu0  ;;  %v436_v57 = vpop.f32.mrf.mxu1 }
  0xb7   :  { %765 = vst.msk [vmem:[%s1614_s4 + $0x50] sm:$0xf] %vm744_vm3, %v700_v51  ;;  %v553_v58 = vmul.f32 %v1222_v40, %v396_v56  ;;  %v569_v59 = vmul.f32 %v1222_v40, %v436_v57 }
  0xb8   :  { %v652_v60 = vadd.f32 %v1224_v41, %v584_v54  ;;  %v668_v61 = vadd.f32 %v1224_v41, %v600_v55 }
  0xb9   :  { %v621_v62 = vadd.f32 %v1224_v41, %v553_v58  ;;  %v637_v63 = vadd.f32 %v1224_v41, %v569_v59 }
  0xba   :  { %v716_v0 = vpack.c.bf16 %v652_v60, %v652_v60  ;;  %v732_v1 = vpack.c.bf16 %v668_v61, %v668_v61 }
  0xbb   :  { %v685_v2 = vpack.c.bf16 %v621_v62, %v621_v62  ;;  %v701_v3 = vpack.c.bf16 %v637_v63, %v637_v63 }
  0xbc   :  { %781 = vst.msk [vmem:[%s1614_s4 + $0x90] sm:$0xf] %vm744_vm3, %v716_v0 }
  0xbd   :  { %797 = vst.msk [vmem:[%s1614_s4 + $0xd0] sm:$0xf] %vm744_vm3, %v732_v1  ;;  %v476_v4 = vpop.f32.mrf.mxu2  ;;  %v516_v5 = vpop.f32.mrf.mxu3 }
  0xbe   :  { %750 = vst.msk [vmem:[%s1614_s4 + $0x14] sm:$0xf] %vm744_vm3, %v685_v2  ;;  %v585_v6 = vmul.f32 %v1222_v40, %v476_v4  ;;  %v601_v7 = vmul.f32 %v1222_v40, %v516_v5  ;;  %v399_v8 = vpop.f32.mrf.mxu0  ;;  %v439_v9 = vpop.f32.mrf.mxu1 }
  0xbf   :  { %766 = vst.msk [vmem:[%s1614_s4 + $0x54] sm:$0xf] %vm744_vm3, %v701_v3  ;;  %v554_v10 = vmul.f32 %v1222_v40, %v399_v8  ;;  %v570_v11 = vmul.f32 %v1222_v40, %v439_v9 }
  0xc0   :  { %v653_v12 = vadd.f32 %v1224_v41, %v585_v6  ;;  %v669_v13 = vadd.f32 %v1224_v41, %v601_v7 }
  0xc1   :  { %v622_v14 = vadd.f32 %v1224_v41, %v554_v10  ;;  %v638_v15 = vadd.f32 %v1224_v41, %v570_v11 }
  0xc2   :  { %v717_v16 = vpack.c.bf16 %v653_v12, %v653_v12  ;;  %v733_v17 = vpack.c.bf16 %v669_v13, %v669_v13 }
  0xc3   :  { %v686_v18 = vpack.c.bf16 %v622_v14, %v622_v14  ;;  %v702_v19 = vpack.c.bf16 %v638_v15, %v638_v15 }
  0xc4   :  { %782 = vst.msk [vmem:[%s1614_s4 + $0x94] sm:$0xf] %vm744_vm3, %v717_v16 }
  0xc5   :  { %798 = vst.msk [vmem:[%s1614_s4 + $0xd4] sm:$0xf] %vm744_vm3, %v733_v17  ;;  %v479_v20 = vpop.f32.mrf.mxu2  ;;  %v519_v21 = vpop.f32.mrf.mxu3 }
  0xc6   :  { %751 = vst.msk [vmem:[%s1614_s4 + $0x18] sm:$0xf] %vm744_vm3, %v686_v18  ;;  %v586_v22 = vmul.f32 %v1222_v40, %v479_v20  ;;  %v602_v23 = vmul.f32 %v1222_v40, %v519_v21  ;;  %v401_v24 = vpop.f32.mrf.mxu0  ;;  %v441_v25 = vpop.f32.mrf.mxu1 }
  0xc7   :  { %767 = vst.msk [vmem:[%s1614_s4 + $0x58] sm:$0xf] %vm744_vm3, %v702_v19  ;;  %v555_v26 = vmul.f32 %v1222_v40, %v401_v24  ;;  %v571_v27 = vmul.f32 %v1222_v40, %v441_v25 }
  0xc8   :  { %v654_v28 = vadd.f32 %v1224_v41, %v586_v22  ;;  %v670_v29 = vadd.f32 %v1224_v41, %v602_v23 }
  0xc9   :  { %v623_v30 = vadd.f32 %v1224_v41, %v555_v26  ;;  %v639_v31 = vadd.f32 %v1224_v41, %v571_v27 }
  0xca   :  { %v718_v32 = vpack.c.bf16 %v654_v28, %v654_v28  ;;  %v734_v33 = vpack.c.bf16 %v670_v29, %v670_v29 }
  0xcb   :  { %v687_v34 = vpack.c.bf16 %v623_v30, %v623_v30  ;;  %v703_v35 = vpack.c.bf16 %v639_v31, %v639_v31 }
  0xcc   :  { %783 = vst.msk [vmem:[%s1614_s4 + $0x98] sm:$0xf] %vm744_vm3, %v718_v32 }
  0xcd   :  { %799 = vst.msk [vmem:[%s1614_s4 + $0xd8] sm:$0xf] %vm744_vm3, %v734_v33  ;;  %v481_v36 = vpop.f32.mrf.mxu2  ;;  %v521_v37 = vpop.f32.mrf.mxu3 }
  0xce   :  { %752 = vst.msk [vmem:[%s1614_s4 + $0x1c] sm:$0xf] %vm744_vm3, %v687_v34  ;;  %v587_v38 = vmul.f32 %v1222_v40, %v481_v36  ;;  %v603_v39 = vmul.f32 %v1222_v40, %v521_v37  ;;  %v404_v42 = vpop.f32.mrf.mxu0  ;;  %v444_v43 = vpop.f32.mrf.mxu1 }
  0xcf   :  { %768 = vst.msk [vmem:[%s1614_s4 + $0x5c] sm:$0xf] %vm744_vm3, %v703_v35  ;;  %v556_v44 = vmul.f32 %v1222_v40, %v404_v42  ;;  %v572_v45 = vmul.f32 %v1222_v40, %v444_v43 }
  0xd0   :  { %v655_v46 = vadd.f32 %v1224_v41, %v587_v38  ;;  %v671_v47 = vadd.f32 %v1224_v41, %v603_v39 }
  0xd1   :  { %v624_v48 = vadd.f32 %v1224_v41, %v556_v44  ;;  %v640_v49 = vadd.f32 %v1224_v41, %v572_v45 }
  0xd2   :  { %v719_v50 = vpack.c.bf16 %v655_v46, %v655_v46  ;;  %v735_v51 = vpack.c.bf16 %v671_v47, %v671_v47 }
  0xd3   :  { %v688_v52 = vpack.c.bf16 %v624_v48, %v624_v48  ;;  %v704_v53 = vpack.c.bf16 %v640_v49, %v640_v49 }
  0xd4   :  { %784 = vst.msk [vmem:[%s1614_s4 + $0x9c] sm:$0xf] %vm744_vm3, %v719_v50 }
  0xd5   :  { %800 = vst.msk [vmem:[%s1614_s4 + $0xdc] sm:$0xf] %vm744_vm3, %v735_v51  ;;  %v484_v54 = vpop.f32.mrf.mxu2  ;;  %v524_v55 = vpop.f32.mrf.mxu3 }
  0xd6   :  { %753 = vst.msk [vmem:[%s1614_s4 + $0x20] sm:$0xf] %vm744_vm3, %v688_v52  ;;  %v588_v56 = vmul.f32 %v1222_v40, %v484_v54  ;;  %v604_v57 = vmul.f32 %v1222_v40, %v524_v55  ;;  %v406_v58 = vpop.f32.mrf.mxu0  ;;  %v446_v59 = vpop.f32.mrf.mxu1 }
  0xd7   :  { %769 = vst.msk [vmem:[%s1614_s4 + $0x60] sm:$0xf] %vm744_vm3, %v704_v53  ;;  %v557_v60 = vmul.f32 %v1222_v40, %v406_v58  ;;  %v573_v61 = vmul.f32 %v1222_v40, %v446_v59 }
  0xd8   :  { %v656_v62 = vadd.f32 %v1224_v41, %v588_v56  ;;  %v672_v63 = vadd.f32 %v1224_v41, %v604_v57 }
  0xd9   :  { %v625_v0 = vadd.f32 %v1224_v41, %v557_v60  ;;  %v641_v1 = vadd.f32 %v1224_v41, %v573_v61 }
  0xda   :  { %v720_v2 = vpack.c.bf16 %v656_v62, %v656_v62  ;;  %v736_v3 = vpack.c.bf16 %v672_v63, %v672_v63 }
  0xdb   :  { %v689_v4 = vpack.c.bf16 %v625_v0, %v625_v0  ;;  %v705_v5 = vpack.c.bf16 %v641_v1, %v641_v1 }
  0xdc   :  { %785 = vst.msk [vmem:[%s1614_s4 + $0xa0] sm:$0xf] %vm744_vm3, %v720_v2 }
  0xdd   :  { %801 = vst.msk [vmem:[%s1614_s4 + $0xe0] sm:$0xf] %vm744_vm3, %v736_v3  ;;  %v486_v6 = vpop.f32.mrf.mxu2  ;;  %v526_v7 = vpop.f32.mrf.mxu3 }
  0xde   :  { %754 = vst.msk [vmem:[%s1614_s4 + $0x24] sm:$0xf] %vm744_vm3, %v689_v4  ;;  %v589_v8 = vmul.f32 %v1222_v40, %v486_v6  ;;  %v605_v9 = vmul.f32 %v1222_v40, %v526_v7  ;;  %v409_v10 = vpop.f32.mrf.mxu0  ;;  %v449_v11 = vpop.f32.mrf.mxu1 }
  0xdf   :  { %770 = vst.msk [vmem:[%s1614_s4 + $0x64] sm:$0xf] %vm744_vm3, %v705_v5  ;;  %v558_v12 = vmul.f32 %v1222_v40, %v409_v10  ;;  %v574_v13 = vmul.f32 %v1222_v40, %v449_v11 }
  0xe0   :  { %v657_v14 = vadd.f32 %v1224_v41, %v589_v8  ;;  %v673_v15 = vadd.f32 %v1224_v41, %v605_v9 }
  0xe1   :  { %v626_v16 = vadd.f32 %v1224_v41, %v558_v12  ;;  %v642_v17 = vadd.f32 %v1224_v41, %v574_v13 }
  0xe2   :  { %v721_v18 = vpack.c.bf16 %v657_v14, %v657_v14  ;;  %v737_v19 = vpack.c.bf16 %v673_v15, %v673_v15 }
  0xe3   :  { %v690_v20 = vpack.c.bf16 %v626_v16, %v626_v16  ;;  %v706_v21 = vpack.c.bf16 %v642_v17, %v642_v17 }
  0xe4   :  { %786 = vst.msk [vmem:[%s1614_s4 + $0xa4] sm:$0xf] %vm744_vm3, %v721_v18 }
  0xe5   :  { %802 = vst.msk [vmem:[%s1614_s4 + $0xe4] sm:$0xf] %vm744_vm3, %v737_v19  ;;  %v489_v22 = vpop.f32.mrf.mxu2  ;;  %v529_v23 = vpop.f32.mrf.mxu3 }
  0xe6   :  { %755 = vst.msk [vmem:[%s1614_s4 + $0x28] sm:$0xf] %vm744_vm3, %v690_v20  ;;  %v590_v24 = vmul.f32 %v1222_v40, %v489_v22  ;;  %v606_v25 = vmul.f32 %v1222_v40, %v529_v23  ;;  %v411_v26 = vpop.f32.mrf.mxu0  ;;  %v451_v27 = vpop.f32.mrf.mxu1 }
  0xe7   :  { %771 = vst.msk [vmem:[%s1614_s4 + $0x68] sm:$0xf] %vm744_vm3, %v706_v21  ;;  %v559_v28 = vmul.f32 %v1222_v40, %v411_v26  ;;  %v575_v29 = vmul.f32 %v1222_v40, %v451_v27 }
  0xe8   :  { %v658_v30 = vadd.f32 %v1224_v41, %v590_v24  ;;  %v674_v31 = vadd.f32 %v1224_v41, %v606_v25 }
  0xe9   :  { %v627_v32 = vadd.f32 %v1224_v41, %v559_v28  ;;  %v643_v33 = vadd.f32 %v1224_v41, %v575_v29 }
  0xea   :  { %v722_v34 = vpack.c.bf16 %v658_v30, %v658_v30  ;;  %v738_v35 = vpack.c.bf16 %v674_v31, %v674_v31 }
  0xeb   :  { %v691_v36 = vpack.c.bf16 %v627_v32, %v627_v32  ;;  %v707_v37 = vpack.c.bf16 %v643_v33, %v643_v33 }
  0xec   :  { %787 = vst.msk [vmem:[%s1614_s4 + $0xa8] sm:$0xf] %vm744_vm3, %v722_v34 }
  0xed   :  { %803 = vst.msk [vmem:[%s1614_s4 + $0xe8] sm:$0xf] %vm744_vm3, %v738_v35  ;;  %v491_v38 = vpop.f32.mrf.mxu2  ;;  %v531_v39 = vpop.f32.mrf.mxu3 }
  0xee   :  { %756 = vst.msk [vmem:[%s1614_s4 + $0x2c] sm:$0xf] %vm744_vm3, %v691_v36  ;;  %v591_v42 = vmul.f32 %v1222_v40, %v491_v38  ;;  %v607_v43 = vmul.f32 %v1222_v40, %v531_v39  ;;  %v414_v44 = vpop.f32.mrf.mxu0  ;;  %v454_v45 = vpop.f32.mrf.mxu1 }
  0xef   :  { %772 = vst.msk [vmem:[%s1614_s4 + $0x6c] sm:$0xf] %vm744_vm3, %v707_v37  ;;  %v560_v46 = vmul.f32 %v1222_v40, %v414_v44  ;;  %v576_v47 = vmul.f32 %v1222_v40, %v454_v45 }
  0xf0   :  { %v659_v48 = vadd.f32 %v1224_v41, %v591_v42  ;;  %v675_v49 = vadd.f32 %v1224_v41, %v607_v43 }
  0xf1   :  { %v628_v50 = vadd.f32 %v1224_v41, %v560_v46  ;;  %v644_v51 = vadd.f32 %v1224_v41, %v576_v47 }
  0xf2   :  { %v723_v52 = vpack.c.bf16 %v659_v48, %v659_v48  ;;  %v739_v53 = vpack.c.bf16 %v675_v49, %v675_v49 }
  0xf3   :  { %v692_v54 = vpack.c.bf16 %v628_v50, %v628_v50  ;;  %v708_v55 = vpack.c.bf16 %v644_v51, %v644_v51 }
  0xf4   :  { %788 = vst.msk [vmem:[%s1614_s4 + $0xac] sm:$0xf] %vm744_vm3, %v723_v52 }
  0xf5   :  { %804 = vst.msk [vmem:[%s1614_s4 + $0xec] sm:$0xf] %vm744_vm3, %v739_v53  ;;  %v494_v56 = vpop.f32.mrf.mxu2  ;;  %v534_v57 = vpop.f32.mrf.mxu3 }
  0xf6   :  { %757 = vst.msk [vmem:[%s1614_s4 + $0x30] sm:$0xf] %vm744_vm3, %v692_v54  ;;  %v592_v58 = vmul.f32 %v1222_v40, %v494_v56  ;;  %v608_v59 = vmul.f32 %v1222_v40, %v534_v57  ;;  %v416_v60 = vpop.f32.mrf.mxu0  ;;  %v456_v61 = vpop.f32.mrf.mxu1 }
  0xf7   :  { %773 = vst.msk [vmem:[%s1614_s4 + $0x70] sm:$0xf] %vm744_vm3, %v708_v55  ;;  %v561_v62 = vmul.f32 %v1222_v40, %v416_v60  ;;  %v577_v63 = vmul.f32 %v1222_v40, %v456_v61 }
  0xf8   :  { %v660_v0 = vadd.f32 %v1224_v41, %v592_v58  ;;  %v676_v1 = vadd.f32 %v1224_v41, %v608_v59 }
  0xf9   :  { %v629_v2 = vadd.f32 %v1224_v41, %v561_v62  ;;  %v645_v3 = vadd.f32 %v1224_v41, %v577_v63 }
  0xfa   :  { %v724_v4 = vpack.c.bf16 %v660_v0, %v660_v0  ;;  %v740_v5 = vpack.c.bf16 %v676_v1, %v676_v1 }
  0xfb   :  { %v693_v6 = vpack.c.bf16 %v629_v2, %v629_v2  ;;  %v709_v7 = vpack.c.bf16 %v645_v3, %v645_v3 }
  0xfc   :  { %789 = vst.msk [vmem:[%s1614_s4 + $0xb0] sm:$0xf] %vm744_vm3, %v724_v4 }
  0xfd   :  { %805 = vst.msk [vmem:[%s1614_s4 + $0xf0] sm:$0xf] %vm744_vm3, %v740_v5  ;;  %v496_v8 = vpop.f32.mrf.mxu2  ;;  %v536_v9 = vpop.f32.mrf.mxu3 }
  0xfe   :  { %758 = vst.msk [vmem:[%s1614_s4 + $0x34] sm:$0xf] %vm744_vm3, %v693_v6  ;;  %v593_v10 = vmul.f32 %v1222_v40, %v496_v8  ;;  %v609_v11 = vmul.f32 %v1222_v40, %v536_v9  ;;  %v419_v12 = vpop.f32.mrf.mxu0  ;;  %v459_v13 = vpop.f32.mrf.mxu1 }
  0xff   :  { %774 = vst.msk [vmem:[%s1614_s4 + $0x74] sm:$0xf] %vm744_vm3, %v709_v7  ;;  %v562_v14 = vmul.f32 %v1222_v40, %v419_v12  ;;  %v578_v15 = vmul.f32 %v1222_v40, %v459_v13 }
 0x100   :  { %v661_v16 = vadd.f32 %v1224_v41, %v593_v10  ;;  %v677_v17 = vadd.f32 %v1224_v41, %v609_v11 }
 0x101   :  { %v630_v18 = vadd.f32 %v1224_v41, %v562_v14  ;;  %v646_v19 = vadd.f32 %v1224_v41, %v578_v15 }
 0x102   :  { %v725_v20 = vpack.c.bf16 %v661_v16, %v661_v16  ;;  %v741_v21 = vpack.c.bf16 %v677_v17, %v677_v17 }
 0x103   :  { %v694_v22 = vpack.c.bf16 %v630_v18, %v630_v18  ;;  %v710_v23 = vpack.c.bf16 %v646_v19, %v646_v19 }
 0x104   :  { %790 = vst.msk [vmem:[%s1614_s4 + $0xb4] sm:$0xf] %vm744_vm3, %v725_v20 }
 0x105   :  { %806 = vst.msk [vmem:[%s1614_s4 + $0xf4] sm:$0xf] %vm744_vm3, %v741_v21  ;;  %v499_v24 = vpop.f32.mrf.mxu2  ;;  %v539_v25 = vpop.f32.mrf.mxu3 }
 0x106   :  { %759 = vst.msk [vmem:[%s1614_s4 + $0x38] sm:$0xf] %vm744_vm3, %v694_v22  ;;  %v594_v26 = vmul.f32 %v1222_v40, %v499_v24  ;;  %v610_v27 = vmul.f32 %v1222_v40, %v539_v25  ;;  %v421_v28 = vpop.f32.mrf.mxu0  ;;  %v461_v29 = vpop.f32.mrf.mxu1 }
 0x107   :  { %775 = vst.msk [vmem:[%s1614_s4 + $0x78] sm:$0xf] %vm744_vm3, %v710_v23  ;;  %v563_v30 = vmul.f32 %v1222_v40, %v421_v28  ;;  %v579_v31 = vmul.f32 %v1222_v40, %v461_v29 }
 0x108   :  { %v662_v32 = vadd.f32 %v1224_v41, %v594_v26  ;;  %v678_v33 = vadd.f32 %v1224_v41, %v610_v27 }
 0x109   :  { %v631_v34 = vadd.f32 %v1224_v41, %v563_v30  ;;  %v647_v35 = vadd.f32 %v1224_v41, %v579_v31 }
 0x10a   :  { %v726_v36 = vpack.c.bf16 %v662_v32, %v662_v32  ;;  %v742_v37 = vpack.c.bf16 %v678_v33, %v678_v33 }
 0x10b   :  { %v695_v38 = vpack.c.bf16 %v631_v34, %v631_v34  ;;  %v711_v39 = vpack.c.bf16 %v647_v35, %v647_v35 }
 0x10c   :  { %791 = vst.msk [vmem:[%s1614_s4 + $0xb8] sm:$0xf] %vm744_vm3, %v726_v36 }
 0x10d   :  { %807 = vst.msk [vmem:[%s1614_s4 + $0xf8] sm:$0xf] %vm744_vm3, %v742_v37  ;;  %v501_v42 = vpop.f32.mrf.mxu2  ;;  %v541_v43 = vpop.f32.mrf.mxu3 }
 0x10e   :  { %760 = vst.msk [vmem:[%s1614_s4 + $0x3c] sm:$0xf] %vm744_vm3, %v695_v38  ;;  %v595_v44 = vmul.f32 %v1222_v40, %v501_v42  ;;  %v611_v45 = vmul.f32 %v1222_v40, %v541_v43 }
 0x10f   :  { %776 = vst.msk [vmem:[%s1614_s4 + $0x7c] sm:$0xf] %vm744_vm3, %v711_v39 }
 0x110   :  { %v663_v46 = vadd.f32 %v1224_v41, %v595_v44  ;;  %v679_v47 = vadd.f32 %v1224_v41, %v611_v45 }
 0x112   :  { %v727_v48 = vpack.c.bf16 %v663_v46, %v663_v46  ;;  %v743_v49 = vpack.c.bf16 %v679_v47, %v679_v47 }
 0x114   :  { %792 = vst.msk [vmem:[%s1614_s4 + $0xbc] sm:$0xf] %vm744_vm3, %v727_v48 }
 0x115   :  { %808 = vst.msk [vmem:[%s1614_s4 + $0xfc] sm:$0xf] %vm744_vm3, %v743_v49 }
 0x116   :  { %813 = vsyncpa [#allocation3], 1 }

// kernel: cnn_planner_forward.25
= control target key start
LH: loop header
LB: loop body
LE: loop exit
PB: predicated region body
PF: predicated region fallthrough
CT: control target
= control target key end

     0   :  { %vm554_vm0 = vcmask 523264   ;;  %vm896_vm1 = vcmask 519168   ;;  %s1854_s1 = inlined_call_operand.vmem [shape: bf16[576,64], index: 1, kind: input, shape index: {}]   ;;  %s1855_s0 = inlined_call_operand.vmem [shape: bf16[128,576], index: 0, kind: input, shape index: {}]   ;;  %s1856_s2 = inlined_call_operand.vmem [shape: f32[1,64], index: 2, kind: input, shape index: {}]   ;;  %s1857_s3 = inlined_call_operand.vmem [shape: f32[1,64], index: 3, kind: input, shape index: {}]   ;;  %s1858_s4 = inlined_call_operand.vmem [shape: bf16[128,64], index: 4, kind: output, shape index: {}]  }
   0x1   :  { %v1276_v0 = vld [vmem:[%s1854_s1 + $0x38] sm:$0xff]  ;;  %v1275_v1 = vld [vmem:[%s1854_s1 + $0x30] sm:$0xff]  ;;  %v1274_v2 = vld [vmem:[%s1854_s1 + $0x28] sm:$0xff] }
   0x2   :  { %1305 = vmatpush.bf16.msra.mxu1 %v1276_v0  ;;  %1306 = vmatpush.bf16.msra.mxu2 %v1276_v0  ;;  %v1273_v3 = vld [vmem:[%s1854_s1 + $0x20] sm:$0xff]  ;;  %v1272_v4 = vld [vmem:[%s1854_s1 + $0x18] sm:$0xff]  ;;  %v1271_v5 = vld [vmem:[%s1854_s1 + $0x10] sm:$0xff] }
   0x3   :  { %1307 = vmatpush.bf16.msra.mxu3 %v1276_v0  ;;  %579 = vmatpush.bf16.msra.mxu0 %v1276_v0  ;;  %v1270_v6 = vld [vmem:[%s1854_s1 + $0x8] sm:$0xff]  ;;  %v1269_v7 = vld [vmem:[%s1854_s1] sm:$0xff]  ;;  %v959_v8 = vld [vmem:[%s1855_s0 + $0x50] sm:$0xf] }
   0x4   :  { %v1241_v9 = vld [vmem:[%s1855_s0 + $0x60] sm:$0xf0]  ;;  %v999_v10 = vld [vmem:[%s1855_s0 + $0xa0] sm:$0xf]  ;;  %v1251_v11 = vld [vmem:[%s1855_s0 + $0xb0] sm:$0xf0] }
   0x5   :  { %v1039_v12 = vld [vmem:[%s1855_s0 + $0xf0] sm:$0xf]  ;;  %v1261_v13 = vld [vmem:[%s1855_s0 + $0x100] sm:$0xf0]  ;;  %v919_v14 = vld [vmem:[%s1855_s0] sm:$0xf]  ;;  %v960_v18 = vor.u32 %v1241_v9, %v959_v8  ;;  %v1000_v19 = vor.u32 %v1251_v11, %v999_v10 }
   0x6   :  { %1308 = vmatpush.bf16.msra.mxu1 %v1275_v1  ;;  %1309 = vmatpush.bf16.msra.mxu2 %v1275_v1  ;;  %v1231_v15 = vld [vmem:[%s1855_s0 + $0x10] sm:$0xf0]  ;;  %v1292_v16 = vld [vmem:[%s1854_s1 + $0xb8] sm:$0xff]  ;;  %v1040_v20 = vor.u32 %v1261_v13, %v1039_v12  ;;  %v1290_v28 = vld [vmem:[%s1854_s1 + $0xa8] sm:$0xff] }
   0x7   :  { %1310 = vmatpush.bf16.msra.mxu3 %v1275_v1  ;;  %580 = vmatpush.bf16.msra.mxu0 %v1275_v1  ;;  %v1284_v17 = vld [vmem:[%s1854_s1 + $0x78] sm:$0xff]  ;;  %v920_v21 = vor.u32 %v1231_v15, %v919_v14  ;;  %v1291_v24 = vld [vmem:[%s1854_s1 + $0xb0] sm:$0xff]  ;;  %v1282_v29 = vld [vmem:[%s1854_s1 + $0x68] sm:$0xff] }
   0x8   :  { %v1300_v22 = vld [vmem:[%s1854_s1 + $0xf8] sm:$0xff]  ;;  %v1283_v25 = vld [vmem:[%s1854_s1 + $0x70] sm:$0xff]  ;;  %v1298_v30 = vld [vmem:[%s1854_s1 + $0xe8] sm:$0xff] }
   0x9   :  { %v1304_v23 = vld [vmem:[%s1854_s1 + $0x118] sm:$0xff]  ;;  %v1299_v26 = vld [vmem:[%s1854_s1 + $0xf0] sm:$0xff]  ;;  %v1302_v31 = vld [vmem:[%s1854_s1 + $0x108] sm:$0xff] }
   0xa   :  { %1311 = vmatpush.bf16.msra.mxu1 %v1274_v2  ;;  %1312 = vmatpush.bf16.msra.mxu2 %v1274_v2  ;;  %v1303_v27 = vld [vmem:[%s1854_s1 + $0x110] sm:$0xff]  ;;  %v1289_v32 = vld [vmem:[%s1854_s1 + $0xa0] sm:$0xff]  ;;  %v979_v35 = vld [vmem:[%s1855_s0 + $0x78] sm:$0xf] }
   0xb   :  { %1313 = vmatpush.bf16.msra.mxu3 %v1274_v2  ;;  %581 = vmatpush.bf16.msra.mxu0 %v1274_v2  ;;  %v1281_v33 = vld [vmem:[%s1854_s1 + $0x60] sm:$0xff]  ;;  %v1246_v36 = vld [vmem:[%s1855_s0 + $0x88] sm:$0xf0]  ;;  %v1019_v37 = vld [vmem:[%s1855_s0 + $0xc8] sm:$0xf] }
   0xc   :  { %v1297_v34 = vld [vmem:[%s1854_s1 + $0xe0] sm:$0xff]  ;;  %v1256_v38 = vld [vmem:[%s1855_s0 + $0xd8] sm:$0xf0]  ;;  %v1059_v39 = vld [vmem:[%s1855_s0 + $0x118] sm:$0xf]  ;;  %v980_v46 = vor.u32 %v1246_v36, %v979_v35 }
   0xd   :  { %v1266_v40 = vld [vmem:[%s1855_s0 + $0x128] sm:$0xf0]  ;;  %v939_v41 = vld [vmem:[%s1855_s0 + $0x28] sm:$0xf]  ;;  %v1236_v42 = vld [vmem:[%s1855_s0 + $0x38] sm:$0xf0]  ;;  %v1020_v47 = vor.u32 %v1256_v38, %v1019_v37 }
   0xe   :  { %1314 = vmatpush.bf16.msra.mxu1 %v1273_v3  ;;  %1315 = vmatpush.bf16.msra.mxu2 %v1273_v3  ;;  %v1301_v43 = vld [vmem:[%s1854_s1 + $0x100] sm:$0xff]  ;;  %v1288_v44 = vld [vmem:[%s1854_s1 + $0x98] sm:$0xff]  ;;  %v1060_v48 = vor.u32 %v1266_v40, %v1059_v39  ;;  %v940_v49 = vor.u32 %v1236_v42, %v939_v41  ;;  %v1287_v51 = vld [vmem:[%s1854_s1 + $0x90] sm:$0xff] }
   0xf   :  { %1316 = vmatpush.bf16.msra.mxu3 %v1273_v3  ;;  %582 = vmatpush.bf16.msra.mxu0 %v1273_v3  ;;  %v1280_v45 = vld [vmem:[%s1854_s1 + $0x58] sm:$0xff]  ;;  %v1279_v52 = vld [vmem:[%s1854_s1 + $0x50] sm:$0xff]  ;;  %v1286_v54 = vld [vmem:[%s1854_s1 + $0x88] sm:$0xff] }
  0x10   :  { %v1296_v50 = vld [vmem:[%s1854_s1 + $0xd8] sm:$0xff]  ;;  %v1295_v53 = vld [vmem:[%s1854_s1 + $0xd0] sm:$0xff]  ;;  %v1278_v55 = vld [vmem:[%s1854_s1 + $0x48] sm:$0xff] }
  0x11   :  { %v1294_v56 = vld [vmem:[%s1854_s1 + $0xc8] sm:$0xff]  ;;  %v1285_v57 = vld [vmem:[%s1854_s1 + $0x80] sm:$0xff]  ;;  %v921_v61 = vld [vmem:[%s1855_s0 + $0x14] sm:$0xf0] }
  0x12   :  { %1317 = vmatpush.bf16.msra.mxu1 %v1272_v4  ;;  %1318 = vmatpush.bf16.msra.mxu2 %v1272_v4  ;;  %v1277_v58 = vld [vmem:[%s1854_s1 + $0x40] sm:$0xff]  ;;  %v927_v62 = vld [vmem:[%s1855_s0 + $0x8] sm:$0xf]  ;;  %v1232_v63 = vld [vmem:[%s1855_s0 + $0x18] sm:$0xf0] }
  0x13   :  { %1319 = vmatpush.bf16.msra.mxu3 %v1272_v4  ;;  %583 = vmatpush.bf16.msra.mxu0 %v1272_v4  ;;  %v1293_v59 = vld [vmem:[%s1854_s1 + $0xc0] sm:$0xff]  ;;  %v1230_v0 = vld [vmem:[%s1855_s0 + $0xc] sm:$0xf]  ;;  %v935_v2 = vld [vmem:[%s1855_s0 + $0x10] sm:$0xf] }
  0x14   :  { %v1229_v60 = vld [vmem:[%s1855_s0 + $0x4] sm:$0xf]  ;;  %v929_v1 = vld [vmem:[%s1855_s0 + $0x1c] sm:$0xf0]  ;;  %v1234_v8 = vld [vmem:[%s1855_s0 + $0x2c] sm:$0xf] }
  0x15   :  { %v1233_v3 = vld [vmem:[%s1855_s0 + $0x20] sm:$0xf0]  ;;  %v924_v4 = vor.u32 %v1229_v60, %v921_v61  ;;  %v941_v9 = vld [vmem:[%s1855_s0 + $0x3c] sm:$0xf0]  ;;  %v947_v10 = vld [vmem:[%s1855_s0 + $0x30] sm:$0xf] }
  0x16   :  { %1320 = vmatpush.bf16.msra.mxu1 %v1271_v5  ;;  %1321 = vmatpush.bf16.msra.mxu2 %v1271_v5  ;;  %v1237_v11 = vld [vmem:[%s1855_s0 + $0x40] sm:$0xf0]  ;;  %v1235_v12 = vld [vmem:[%s1855_s0 + $0x34] sm:$0xf]  ;;  %v949_v13 = vld [vmem:[%s1855_s0 + $0x44] sm:$0xf0] }
  0x17   :  { %1322 = vmatpush.bf16.msra.mxu3 %v1271_v5  ;;  %584 = vmatpush.bf16.msra.mxu0 %v1271_v5  ;;  %v928_v5 = vor.u32 %v1232_v63, %v927_v62  ;;  %v955_v14 = vld [vmem:[%s1855_s0 + $0x38] sm:$0xf]  ;;  %v1238_v15 = vld [vmem:[%s1855_s0 + $0x48] sm:$0xf0]  ;;  %v1247_v35 = vld [vmem:[%s1855_s0 + $0x90] sm:$0xf0] }
  0x18   :  { %v1245_v36 = vld [vmem:[%s1855_s0 + $0x84] sm:$0xf]  ;;  %v989_v37 = vld [vmem:[%s1855_s0 + $0x94] sm:$0xf0]  ;;  %v995_v38 = vld [vmem:[%s1855_s0 + $0x88] sm:$0xf] }
  0x19   :  { %v1248_v39 = vld [vmem:[%s1855_s0 + $0x98] sm:$0xf0]  ;;  %v992_v42 = vor.u32 %v1245_v36, %v989_v37  ;;  %v1255_v60 = vld [vmem:[%s1855_s0 + $0xd4] sm:$0xf]  ;;  %v1029_v61 = vld [vmem:[%s1855_s0 + $0xe4] sm:$0xf0] }
  0x1a   :  { %1323 = vmatpush.bf16.msra.mxu1 %v1270_v6  ;;  %1324 = vmatpush.bf16.msra.mxu2 %v1270_v6  ;;  %v1035_v62 = vld [vmem:[%s1855_s0 + $0xd8] sm:$0xf]  ;;  %v1258_v63 = vld [vmem:[%s1855_s0 + $0xe8] sm:$0xf0] }
  0x1b   :  { %1325 = vmatpush.bf16.msra.mxu3 %v1270_v6  ;;  %585 = vmatpush.bf16.msra.mxu0 %v1270_v6  ;;  %v932_v6 = vor.u32 %v1230_v0, %v929_v1 }
  0x1e   :  { %1326 = vmatpush.bf16.msra.mxu1 %v1269_v7  ;;  %1327 = vmatpush.bf16.msra.mxu2 %v1269_v7 }
  0x1f   :  { %1328 = vmatpush.bf16.msra.mxu3 %v1269_v7  ;;  %586 = vmatpush.bf16.msra.mxu0 %v1269_v7  ;;  %v936_v7 = vor.u32 %v1233_v3, %v935_v2  ;;  %v1032_v2 = vor.u32 %v1255_v60, %v1029_v61  ;;  %v1036_v3 = vor.u32 %v1258_v63, %v1035_v62 }
  0x21   :  { %597 = vmatmul.bf16.vlgmr.msra.gmra.mxu1 %v960_v18  ;;  %607 = vmatmul.bf16.vlgmr.msra.gmra.mxu2 %v1000_v19  ;;  %v952_v18 = vor.u32 %v1235_v12, %v949_v13  ;;  %v956_v19 = vor.u32 %v1238_v15, %v955_v14 }
  0x22   :  { %677 = vmatpush.bf16.msrb.mxu2 %v1292_v16  ;;  %628 = vmatpush.bf16.msrb.mxu1 %v1284_v17  ;;  %v944_v16 = vor.u32 %v1234_v8, %v941_v9  ;;  %v948_v17 = vor.u32 %v1237_v11, %v947_v10  ;;  %v1260_v8 = vld [vmem:[%s1855_s0 + $0xfc] sm:$0xf]  ;;  %v1049_v9 = vld [vmem:[%s1855_s0 + $0x10c] sm:$0xf0]  ;;  %v1055_v10 = vld [vmem:[%s1855_s0 + $0x100] sm:$0xf] }
  0x23   :  { %617 = vmatmul.bf16.vlgmr.msra.gmra.mxu3 %v1040_v20  ;;  %587 = vmatmul.bf16.vlgmr.msra.gmra.mxu0 %v920_v21  ;;  %v1239_v20 = vld [vmem:[%s1855_s0 + $0x54] sm:$0xf]  ;;  %v961_v21 = vld [vmem:[%s1855_s0 + $0x64] sm:$0xf0]  ;;  %v1052_v15 = vor.u32 %v1260_v8, %v1049_v9 }
  0x24   :  { %726 = vmatpush.bf16.msrb.mxu3 %v1300_v22  ;;  %779 = vmatpush.bf16.msrb.mxu0 %v1304_v23  ;;  %v967_v22 = vld [vmem:[%s1855_s0 + $0x58] sm:$0xf]  ;;  %v1242_v23 = vld [vmem:[%s1855_s0 + $0x68] sm:$0xf0]  ;;  %v1263_v11 = vld [vmem:[%s1855_s0 + $0x110] sm:$0xf0] }
  0x26   :  { %678 = vmatpush.bf16.msrb.mxu2 %v1291_v24  ;;  %629 = vmatpush.bf16.msrb.mxu1 %v1283_v25  ;;  %v1240_v24 = vld [vmem:[%s1855_s0 + $0x5c] sm:$0xf]  ;;  %v969_v25 = vld [vmem:[%s1855_s0 + $0x6c] sm:$0xf0] }
  0x28   :  { %727 = vmatpush.bf16.msrb.mxu3 %v1299_v26  ;;  %780 = vmatpush.bf16.msrb.mxu0 %v1303_v27  ;;  %v975_v26 = vld [vmem:[%s1855_s0 + $0x60] sm:$0xf]  ;;  %v1243_v27 = vld [vmem:[%s1855_s0 + $0x70] sm:$0xf0] }
  0x2a   :  { %679 = vmatpush.bf16.msrb.mxu2 %v1290_v28  ;;  %630 = vmatpush.bf16.msrb.mxu1 %v1282_v29  ;;  %v964_v28 = vor.u32 %v1239_v20, %v961_v21  ;;  %v968_v29 = vor.u32 %v1242_v23, %v967_v22  ;;  %v1264_v22 = vld [vmem:[%s1855_s0 + $0x11c] sm:$0xf]  ;;  %v1061_v23 = vld [vmem:[%s1855_s0 + $0x12c] sm:$0xf0] }
  0x2c   :  { %728 = vmatpush.bf16.msrb.mxu3 %v1298_v30  ;;  %781 = vmatpush.bf16.msrb.mxu0 %v1302_v31  ;;  %v972_v30 = vor.u32 %v1240_v24, %v969_v25  ;;  %v976_v31 = vor.u32 %v1243_v27, %v975_v26  ;;  %v1067_v24 = vld [vmem:[%s1855_s0 + $0x120] sm:$0xf]  ;;  %v1267_v25 = vld [vmem:[%s1855_s0 + $0x130] sm:$0xf0]  ;;  %v1265_v26 = vld [vmem:[%s1855_s0 + $0x124] sm:$0xf] }
  0x2d   :  { %v1069_v27 = vld [vmem:[%s1855_s0 + $0x134] sm:$0xf0] }
  0x2e   :  { %680 = vmatpush.bf16.msrb.mxu2 %v1289_v32  ;;  %631 = vmatpush.bf16.msrb.mxu1 %v1281_v33  ;;  %v1244_v32 = vld [vmem:[%s1855_s0 + $0x7c] sm:$0xf]  ;;  %v981_v33 = vld [vmem:[%s1855_s0 + $0x8c] sm:$0xf0] }
  0x2f   :  { %v984_v40 = vor.u32 %v1244_v32, %v981_v33  ;;  %v1064_v32 = vor.u32 %v1264_v22, %v1061_v23  ;;  %v1068_v33 = vor.u32 %v1267_v25, %v1067_v24 }
  0x30   :  { %729 = vmatpush.bf16.msrb.mxu3 %v1297_v34  ;;  %782 = vmatpush.bf16.msrb.mxu0 %v1301_v43  ;;  %v987_v34 = vld [vmem:[%s1855_s0 + $0x80] sm:$0xf]  ;;  %v996_v43 = vor.u32 %v1248_v39, %v995_v38 }
  0x31   :  { %602 = vmatmul.bf16.gmra.mxu1 %v980_v46  ;;  %612 = vmatmul.bf16.gmra.mxu2 %v1020_v47  ;;  %v988_v41 = vor.u32 %v1247_v35, %v987_v34  ;;  %v1007_v46 = vld [vmem:[%s1855_s0 + $0xa8] sm:$0xf]  ;;  %v1252_v47 = vld [vmem:[%s1855_s0 + $0xb8] sm:$0xf0]  ;;  %v1072_v35 = vor.u32 %v1265_v26, %v1069_v27 }
  0x32   :  { %681 = vmatpush.bf16.msrb.mxu2 %v1288_v44  ;;  %632 = vmatpush.bf16.msrb.mxu1 %v1280_v45  ;;  %v1249_v44 = vld [vmem:[%s1855_s0 + $0xa4] sm:$0xf]  ;;  %v1001_v45 = vld [vmem:[%s1855_s0 + $0xb4] sm:$0xf0] }
  0x33   :  { %622 = vmatmul.bf16.gmra.mxu3 %v1060_v48  ;;  %592 = vmatmul.bf16.gmra.mxu0 %v940_v49  ;;  %v1250_v48 = vld [vmem:[%s1855_s0 + $0xac] sm:$0xf]  ;;  %v1009_v49 = vld [vmem:[%s1855_s0 + $0xbc] sm:$0xf0] }
  0x34   :  { %730 = vmatpush.bf16.msrb.mxu3 %v1296_v50  ;;  %v1015_v50 = vld [vmem:[%s1855_s0 + $0xb0] sm:$0xf] }
  0x36   :  { %682 = vmatpush.bf16.msrb.mxu2 %v1287_v51  ;;  %633 = vmatpush.bf16.msrb.mxu1 %v1279_v52  ;;  %v1253_v51 = vld [vmem:[%s1855_s0 + $0xc0] sm:$0xf0]  ;;  %v1004_v52 = vor.u32 %v1249_v44, %v1001_v45 }
  0x38   :  { %731 = vmatpush.bf16.msrb.mxu3 %v1295_v53  ;;  %v1008_v53 = vor.u32 %v1252_v47, %v1007_v46 }
  0x3a   :  { %683 = vmatpush.bf16.msrb.mxu2 %v1286_v54  ;;  %634 = vmatpush.bf16.msrb.mxu1 %v1278_v55  ;;  %v1012_v54 = vor.u32 %v1250_v48, %v1009_v49  ;;  %v1016_v55 = vor.u32 %v1253_v51, %v1015_v50 }
  0x3c   :  { %732 = vmatpush.bf16.msrb.mxu3 %v1294_v56  ;;  %v1254_v56 = vld [vmem:[%s1855_s0 + $0xcc] sm:$0xf] }
  0x3e   :  { %684 = vmatpush.bf16.msrb.mxu2 %v1285_v57  ;;  %635 = vmatpush.bf16.msrb.mxu1 %v1277_v58  ;;  %v1021_v57 = vld [vmem:[%s1855_s0 + $0xdc] sm:$0xf0]  ;;  %v1027_v58 = vld [vmem:[%s1855_s0 + $0xd0] sm:$0xf] }
  0x3f   :  { %v1024_v0 = vor.u32 %v1254_v56, %v1021_v57 }
  0x40   :  { %733 = vmatpush.bf16.msrb.mxu3 %v1293_v59  ;;  %v1257_v59 = vld [vmem:[%s1855_s0 + $0xe0] sm:$0xf0] }
  0x41   :  { %636 = vmatmul.bf16.vlgmr.msrb.gmra.mxu1 %v924_v4  ;;  %685 = vmatmul.bf16.vlgmr.msrb.gmra.mxu2 %v928_v5  ;;  %v1028_v1 = vor.u32 %v1257_v59, %v1027_v58  ;;  %v1259_v4 = vld [vmem:[%s1855_s0 + $0xf4] sm:$0xf]  ;;  %v1041_v5 = vld [vmem:[%s1855_s0 + $0x104] sm:$0xf0] }
  0x42   :  { %v1044_v12 = vor.u32 %v1259_v4, %v1041_v5 }
  0x43   :  { %734 = vmatmul.bf16.vlgmr.msrb.gmra.mxu3 %v932_v6  ;;  %1221 = vmatmul.msk.bf16.vlgmr.msrb.gmra.mxu0 %vm554_vm0, %v936_v7  ;;  %v1047_v6 = vld [vmem:[%s1855_s0 + $0xf8] sm:$0xf]  ;;  %v1262_v7 = vld [vmem:[%s1855_s0 + $0x108] sm:$0xf0] }
  0x44   :  { %v1048_v13 = vor.u32 %v1262_v7, %v1047_v6 }
  0x51   :  { %641 = vmatmul.bf16.gmra.mxu1 %v944_v16  ;;  %690 = vmatmul.bf16.gmra.mxu2 %v948_v17  ;;  %v1056_v16 = vor.u32 %v1263_v11, %v1055_v10 }
  0x53   :  { %739 = vmatmul.bf16.gmra.mxu3 %v952_v18  ;;  %1222 = vmatmul.msk.bf16.gmra.mxu0 %vm554_vm0, %v956_v19 }
  0x61   :  { %646 = vmatmul.bf16.gmra.mxu1 %v964_v28  ;;  %695 = vmatmul.bf16.gmra.mxu2 %v968_v29  ;;  %v1075_v28 = vld [vmem:[%s1855_s0 + $0x128] sm:$0xf]  ;;  %v1268_v29 = vld [vmem:[%s1855_s0 + $0x138] sm:$0xf0] }
  0x62   :  { %v1076_v36 = vor.u32 %v1268_v29, %v1075_v28 }
  0x63   :  { %744 = vmatmul.bf16.gmra.mxu3 %v972_v30  ;;  %1223 = vmatmul.msk.bf16.gmra.mxu0 %vm554_vm0, %v976_v31 }
  0x71   :  { %651 = vmatmul.bf16.gmra.mxu1 %v984_v40  ;;  %700 = vmatmul.bf16.gmra.mxu2 %v988_v41 }
  0x73   :  { %749 = vmatmul.bf16.gmra.mxu3 %v992_v42  ;;  %1224 = vmatmul.msk.bf16.gmra.mxu0 %vm554_vm0, %v996_v43 }
  0x81   :  { %656 = vmatmul.bf16.gmra.mxu1 %v1004_v52  ;;  %705 = vmatmul.bf16.gmra.mxu2 %v1008_v53  ;;  %v1739_v52 = vld [vmem:[%s1856_s2] ss:$0 sm:$0xff] }
  0x83   :  { %754 = vmatmul.bf16.gmra.mxu3 %v1012_v54  ;;  %1225 = vmatmul.msk.bf16.gmra.mxu0 %vm554_vm0, %v1016_v55  ;;  %v1744_v55 = vld [vmem:[%s1857_s3] ss:$0 sm:$0xff] }
  0x91   :  { %661 = vmatmul.bf16.gmra.mxu1 %v1024_v0  ;;  %710 = vmatmul.bf16.gmra.mxu2 %v1028_v1 }
  0x93   :  { %759 = vmatmul.bf16.gmra.mxu3 %v1032_v2  ;;  %1226 = vmatmul.msk.bf16.gmra.mxu0 %vm554_vm0, %v1036_v3 }
  0x9e   :  { %v1686_v14 = vpop.f32.mrf.mxu1 }
  0xa0   :  { %v588_v17 = vpop.f32.mrf.mxu0 }
  0xa1   :  { %666 = vmatmul.bf16.gmra.mxu1 %v1044_v12  ;;  %715 = vmatmul.bf16.gmra.mxu2 %v1048_v13 }
  0xa3   :  { %764 = vmatmul.bf16.gmra.mxu3 %v1052_v15  ;;  %1227 = vmatmul.msk.bf16.gmra.mxu0 %vm554_vm0, %v1056_v16 }
  0xa4   :  { %v1689_v18 = vpop.f32.mrf.mxu2 }
  0xa6   :  { %v1691_v19 = vpop.f32.mrf.mxu3  ;;  %v1693_v20 = vpop.f32.mrf.mxu1 }
  0xa8   :  { %v590_v21 = vpop.f32.mrf.mxu0 }
  0xac   :  { %v1719_v30 = vpop.f32.mrf.mxu2 }
  0xae   :  { %v1721_v31 = vpop.f32.mrf.mxu3  ;;  %v1723_v34 = vpop.f32.mrf.mxu1 }
  0xb0   :  { %v593_v37 = vpop.f32.mrf.mxu0 }
  0xb1   :  { %671 = vmatmul.bf16.gmra.mxu1 %v1064_v32  ;;  %720 = vmatmul.bf16.gmra.mxu2 %v1068_v33 }
  0xb3   :  { %769 = vmatmul.bf16.gmra.mxu3 %v1072_v35  ;;  %1228 = vmatmul.msk.bf16.gmra.mxu0 %vm554_vm0, %v1076_v36 }
  0xb4   :  { %v1726_v38 = vpop.f32.mrf.mxu2 }
  0xb6   :  { %v1728_v39 = vpop.f32.mrf.mxu3  ;;  %v1730_v40 = vpop.f32.mrf.mxu1 }
  0xb8   :  { %v595_v41 = vpop.f32.mrf.mxu0 }
  0xbc   :  { %v1732_v42 = vpop.f32.mrf.mxu2 }
  0xbe   :  { %v1734_v43 = vpop.f32.mrf.mxu3  ;;  %v637_v44 = vpop.f32.mrf.mxu1 }
  0xbf   :  { %v638_v46 = vadd.f32 %v637_v44, %v588_v17 }
  0xc0   :  { %v784_v45 = vpop.f32.mrf.mxu0 }
  0xc4   :  { %v686_v47 = vpop.f32.mrf.mxu2 }
  0xc5   :  { %v687_v48 = vadd.f32 %v686_v47, %v638_v46 }
  0xc6   :  { %v735_v49 = vpop.f32.mrf.mxu3  ;;  %v639_v50 = vpop.f32.mrf.mxu1 }
  0xc7   :  { %v736_v51 = vadd.f32 %v735_v49, %v687_v48  ;;  %v640_v57 = vadd.f32 %v639_v50, %v590_v21 }
  0xc8   :  { %v786_v53 = vpop.f32.mrf.mxu0 }
  0xc9   :  { %v785_v54 = vadd.f32 %v784_v45, %v736_v51 }
  0xcb   :  { %v828_v56 = vmul.f32 %v1739_v52, %v785_v54 }
  0xcc   :  { %v688_v58 = vpop.f32.mrf.mxu2 }
  0xcd   :  { %v848_v59 = vadd.f32 %v1744_v55, %v828_v56  ;;  %v689_v60 = vadd.f32 %v688_v58, %v640_v57 }
  0xce   :  { %v737_v61 = vpop.f32.mrf.mxu3  ;;  %v642_v62 = vpop.f32.mrf.mxu1 }
  0xcf   :  { %v864_v63 = vmax.f32 %v848_v59, 0.0  ;;  %v738_v0 = vadd.f32 %v737_v61, %v689_v60  ;;  %v643_v5 = vadd.f32 %v642_v62, %v593_v37 }
  0xd0   :  { %v789_v1 = vpop.f32.mrf.mxu0 }
  0xd1   :  { %v880_v2 = vpack.c.bf16 %v864_v63, %v864_v63  ;;  %v787_v3 = vadd.f32 %v786_v53, %v738_v0 }
  0xd3   :  { %897 = vst.msk [vmem:[%s1858_s4] sm:$0xf] %vm896_vm1, %v880_v2  ;;  %v829_v4 = vmul.f32 %v1739_v52, %v787_v3 }
  0xd4   :  { %v691_v6 = vpop.f32.mrf.mxu2 }
  0xd5   :  { %v849_v7 = vadd.f32 %v1744_v55, %v829_v4  ;;  %v692_v8 = vadd.f32 %v691_v6, %v643_v5 }
  0xd6   :  { %v740_v9 = vpop.f32.mrf.mxu3  ;;  %v644_v10 = vpop.f32.mrf.mxu1 }
  0xd7   :  { %v865_v11 = vmax.f32 %v849_v7, 0.0  ;;  %v741_v12 = vadd.f32 %v740_v9, %v692_v8  ;;  %v645_v21 = vadd.f32 %v644_v10, %v595_v41 }
  0xd8   :  { %v791_v13 = vpop.f32.mrf.mxu0 }
  0xd9   :  { %v881_v15 = vpack.c.bf16 %v865_v11, %v865_v11  ;;  %v790_v16 = vadd.f32 %v789_v1, %v741_v12 }
  0xdb   :  { %898 = vst.msk [vmem:[%s1858_s4 + $0x4] sm:$0xf] %vm896_vm1, %v881_v15  ;;  %v830_v17 = vmul.f32 %v1739_v52, %v790_v16 }
  0xdc   :  { %v693_v22 = vpop.f32.mrf.mxu2 }
  0xdd   :  { %v850_v23 = vadd.f32 %v1744_v55, %v830_v17  ;;  %v694_v24 = vadd.f32 %v693_v22, %v645_v21 }
  0xde   :  { %v742_v25 = vpop.f32.mrf.mxu3  ;;  %v647_v26 = vpop.f32.mrf.mxu1 }
  0xdf   :  { %v866_v27 = vmax.f32 %v850_v23, 0.0  ;;  %v743_v28 = vadd.f32 %v742_v25, %v694_v24  ;;  %v648_v36 = vadd.f32 %v647_v26, %v1686_v14 }
  0xe0   :  { %v794_v29 = vpop.f32.mrf.mxu0 }
  0xe1   :  { %v882_v32 = vpack.c.bf16 %v866_v27, %v866_v27  ;;  %v792_v33 = vadd.f32 %v791_v13, %v743_v28 }
  0xe3   :  { %899 = vst.msk [vmem:[%s1858_s4 + $0x8] sm:$0xf] %vm896_vm1, %v882_v32  ;;  %v831_v35 = vmul.f32 %v1739_v52, %v792_v33 }
  0xe4   :  { %v696_v37 = vpop.f32.mrf.mxu2 }
  0xe5   :  { %v851_v41 = vadd.f32 %v1744_v55, %v831_v35  ;;  %v697_v44 = vadd.f32 %v696_v37, %v648_v36 }
  0xe6   :  { %v745_v45 = vpop.f32.mrf.mxu3  ;;  %v649_v46 = vpop.f32.mrf.mxu1 }
  0xe7   :  { %v867_v47 = vmax.f32 %v851_v41, 0.0  ;;  %v746_v48 = vadd.f32 %v745_v45, %v697_v44  ;;  %v650_v14 = vadd.f32 %v649_v46, %v1693_v20 }
  0xe8   :  { %v796_v49 = vpop.f32.mrf.mxu0 }
  0xe9   :  { %v883_v50 = vpack.c.bf16 %v867_v47, %v867_v47  ;;  %v795_v51 = vadd.f32 %v794_v29, %v746_v48 }
  0xeb   :  { %900 = vst.msk [vmem:[%s1858_s4 + $0xc] sm:$0xf] %vm896_vm1, %v883_v50  ;;  %v832_v53 = vmul.f32 %v1739_v52, %v795_v51 }
  0xec   :  { %v698_v54 = vpop.f32.mrf.mxu2 }
  0xed   :  { %v852_v56 = vadd.f32 %v1744_v55, %v832_v53  ;;  %v699_v57 = vadd.f32 %v698_v54, %v650_v14 }
  0xee   :  { %v747_v58 = vpop.f32.mrf.mxu3  ;;  %v652_v59 = vpop.f32.mrf.mxu1 }
  0xef   :  { %v868_v60 = vmax.f32 %v852_v56, 0.0  ;;  %v748_v61 = vadd.f32 %v747_v58, %v699_v57  ;;  %v653_v20 = vadd.f32 %v652_v59, %v1723_v34 }
  0xf0   :  { %v799_v62 = vpop.f32.mrf.mxu0 }
  0xf1   :  { %v884_v63 = vpack.c.bf16 %v868_v60, %v868_v60  ;;  %v797_v0 = vadd.f32 %v796_v49, %v748_v61 }
  0xf3   :  { %901 = vst.msk [vmem:[%s1858_s4 + $0x10] sm:$0xf] %vm896_vm1, %v884_v63  ;;  %v833_v1 = vmul.f32 %v1739_v52, %v797_v0 }
  0xf4   :  { %v701_v2 = vpop.f32.mrf.mxu2 }
  0xf5   :  { %v853_v3 = vadd.f32 %v1744_v55, %v833_v1  ;;  %v702_v4 = vadd.f32 %v701_v2, %v653_v20 }
  0xf6   :  { %v750_v5 = vpop.f32.mrf.mxu3  ;;  %v654_v6 = vpop.f32.mrf.mxu1 }
  0xf7   :  { %v869_v7 = vmax.f32 %v853_v3, 0.0  ;;  %v751_v8 = vadd.f32 %v750_v5, %v702_v4  ;;  %v655_v34 = vadd.f32 %v654_v6, %v1730_v40 }
  0xf8   :  { %v801_v9 = vpop.f32.mrf.mxu0 }
  0xf9   :  { %v885_v10 = vpack.c.bf16 %v869_v7, %v869_v7  ;;  %v800_v11 = vadd.f32 %v799_v62, %v751_v8 }
  0xfb   :  { %902 = vst.msk [vmem:[%s1858_s4 + $0x14] sm:$0xf] %vm896_vm1, %v885_v10  ;;  %v834_v12 = vmul.f32 %v1739_v52, %v800_v11 }
  0xfc   :  { %v703_v13 = vpop.f32.mrf.mxu2 }
  0xfd   :  { %v854_v15 = vadd.f32 %v1744_v55, %v834_v12  ;;  %v704_v16 = vadd.f32 %v703_v13, %v655_v34 }
  0xfe   :  { %v752_v17 = vpop.f32.mrf.mxu3  ;;  %v657_v21 = vpop.f32.mrf.mxu1 }
  0xff   :  { %v870_v22 = vmax.f32 %v854_v15, 0.0  ;;  %v753_v23 = vadd.f32 %v752_v17, %v704_v16  ;;  %v658_v40 = vadd.f32 %v657_v21, %v1689_v18 }
 0x100   :  { %v804_v24 = vpop.f32.mrf.mxu0 }
 0x101   :  { %v886_v25 = vpack.c.bf16 %v870_v22, %v870_v22  ;;  %v802_v26 = vadd.f32 %v801_v9, %v753_v23 }
 0x103   :  { %903 = vst.msk [vmem:[%s1858_s4 + $0x18] sm:$0xf] %vm896_vm1, %v886_v25  ;;  %v835_v27 = vmul.f32 %v1739_v52, %v802_v26 }
 0x104   :  { %v706_v28 = vpop.f32.mrf.mxu2 }
 0x105   :  { %v855_v29 = vadd.f32 %v1744_v55, %v835_v27  ;;  %v707_v32 = vadd.f32 %v706_v28, %v658_v40 }
 0x106   :  { %v755_v33 = vpop.f32.mrf.mxu3  ;;  %v659_v35 = vpop.f32.mrf.mxu1 }
 0x107   :  { %v871_v36 = vmax.f32 %v855_v29, 0.0  ;;  %v756_v37 = vadd.f32 %v755_v33, %v707_v32  ;;  %v660_v18 = vadd.f32 %v659_v35, %v1719_v30 }
 0x108   :  { %v806_v41 = vpop.f32.mrf.mxu0 }
 0x109   :  { %v887_v44 = vpack.c.bf16 %v871_v36, %v871_v36  ;;  %v805_v45 = vadd.f32 %v804_v24, %v756_v37 }
 0x10b   :  { %904 = vst.msk [vmem:[%s1858_s4 + $0x1c] sm:$0xf] %vm896_vm1, %v887_v44  ;;  %v836_v46 = vmul.f32 %v1739_v52, %v805_v45 }
 0x10c   :  { %v708_v47 = vpop.f32.mrf.mxu2 }
 0x10d   :  { %v856_v48 = vadd.f32 %v1744_v55, %v836_v46  ;;  %v709_v49 = vadd.f32 %v708_v47, %v660_v18 }
 0x10e   :  { %v757_v50 = vpop.f32.mrf.mxu3  ;;  %v662_v51 = vpop.f32.mrf.mxu1 }
 0x10f   :  { %v872_v53 = vmax.f32 %v856_v48, 0.0  ;;  %v758_v14 = vadd.f32 %v757_v50, %v709_v49  ;;  %v663_v30 = vadd.f32 %v662_v51, %v1726_v38 }
 0x110   :  { %v809_v54 = vpop.f32.mrf.mxu0 }
 0x111   :  { %v888_v56 = vpack.c.bf16 %v872_v53, %v872_v53  ;;  %v807_v57 = vadd.f32 %v806_v41, %v758_v14 }
 0x113   :  { %905 = vst.msk [vmem:[%s1858_s4 + $0x20] sm:$0xf] %vm896_vm1, %v888_v56  ;;  %v837_v58 = vmul.f32 %v1739_v52, %v807_v57 }
 0x114   :  { %v711_v59 = vpop.f32.mrf.mxu2 }
 0x115   :  { %v857_v60 = vadd.f32 %v1744_v55, %v837_v58  ;;  %v712_v61 = vadd.f32 %v711_v59, %v663_v30 }
 0x116   :  { %v760_v62 = vpop.f32.mrf.mxu3  ;;  %v664_v63 = vpop.f32.mrf.mxu1 }
 0x117   :  { %v873_v0 = vmax.f32 %v857_v60, 0.0  ;;  %v761_v1 = vadd.f32 %v760_v62, %v712_v61  ;;  %v665_v38 = vadd.f32 %v664_v63, %v1732_v42 }
 0x118   :  { %v811_v20 = vpop.f32.mrf.mxu0 }
 0x119   :  { %v889_v2 = vpack.c.bf16 %v873_v0, %v873_v0  ;;  %v810_v3 = vadd.f32 %v809_v54, %v761_v1 }
 0x11b   :  { %906 = vst.msk [vmem:[%s1858_s4 + $0x24] sm:$0xf] %vm896_vm1, %v889_v2  ;;  %v838_v4 = vmul.f32 %v1739_v52, %v810_v3 }
 0x11c   :  { %v713_v5 = vpop.f32.mrf.mxu2 }
 0x11d   :  { %v858_v6 = vadd.f32 %v1744_v55, %v838_v4  ;;  %v714_v7 = vadd.f32 %v713_v5, %v665_v38 }
 0x11e   :  { %v762_v8 = vpop.f32.mrf.mxu3  ;;  %v667_v9 = vpop.f32.mrf.mxu1 }
 0x11f   :  { %v874_v10 = vmax.f32 %v858_v6, 0.0  ;;  %v763_v11 = vadd.f32 %v762_v8, %v714_v7  ;;  %v668_v42 = vadd.f32 %v667_v9, %v1691_v19 }
 0x120   :  { %v814_v13 = vpop.f32.mrf.mxu0 }
 0x121   :  { %v890_v12 = vpack.c.bf16 %v874_v10, %v874_v10  ;;  %v812_v34 = vadd.f32 %v811_v20, %v763_v11 }
 0x123   :  { %907 = vst.msk [vmem:[%s1858_s4 + $0x28] sm:$0xf] %vm896_vm1, %v890_v12  ;;  %v839_v15 = vmul.f32 %v1739_v52, %v812_v34 }
 0x124   :  { %v716_v16 = vpop.f32.mrf.mxu2 }
 0x125   :  { %v859_v17 = vadd.f32 %v1744_v55, %v839_v15  ;;  %v717_v21 = vadd.f32 %v716_v16, %v668_v42 }
 0x126   :  { %v765_v22 = vpop.f32.mrf.mxu3  ;;  %v669_v23 = vpop.f32.mrf.mxu1 }
 0x127   :  { %v875_v24 = vmax.f32 %v859_v17, 0.0  ;;  %v766_v25 = vadd.f32 %v765_v22, %v717_v21  ;;  %v670_v28 = vadd.f32 %v669_v23, %v1721_v31 }
 0x128   :  { %v816_v19 = vpop.f32.mrf.mxu0 }
 0x129   :  { %v891_v26 = vpack.c.bf16 %v875_v24, %v875_v24  ;;  %v815_v27 = vadd.f32 %v814_v13, %v766_v25 }
 0x12b   :  { %908 = vst.msk [vmem:[%s1858_s4 + $0x2c] sm:$0xf] %vm896_vm1, %v891_v26  ;;  %v840_v40 = vmul.f32 %v1739_v52, %v815_v27 }
 0x12c   :  { %v718_v29 = vpop.f32.mrf.mxu2 }
 0x12d   :  { %v860_v32 = vadd.f32 %v1744_v55, %v840_v40  ;;  %v719_v33 = vadd.f32 %v718_v29, %v670_v28 }
 0x12e   :  { %v767_v35 = vpop.f32.mrf.mxu3  ;;  %v672_v36 = vpop.f32.mrf.mxu1 }
 0x12f   :  { %v876_v37 = vmax.f32 %v860_v32, 0.0  ;;  %v768_v41 = vadd.f32 %v767_v35, %v719_v33  ;;  %v673_v31 = vadd.f32 %v672_v36, %v1728_v39 }
 0x130   :  { %v819_v50 = vpop.f32.mrf.mxu0 }
 0x131   :  { %v892_v44 = vpack.c.bf16 %v876_v37, %v876_v37  ;;  %v817_v45 = vadd.f32 %v816_v19, %v768_v41 }
 0x133   :  { %909 = vst.msk [vmem:[%s1858_s4 + $0x30] sm:$0xf] %vm896_vm1, %v892_v44  ;;  %v841_v46 = vmul.f32 %v1739_v52, %v817_v45 }
 0x134   :  { %v721_v18 = vpop.f32.mrf.mxu2 }
 0x135   :  { %v861_v47 = vadd.f32 %v1744_v55, %v841_v46  ;;  %v722_v48 = vadd.f32 %v721_v18, %v673_v31 }
 0x136   :  { %v770_v49 = vpop.f32.mrf.mxu3  ;;  %v674_v14 = vpop.f32.mrf.mxu1 }
 0x137   :  { %v877_v51 = vmax.f32 %v861_v47, 0.0  ;;  %v771_v53 = vadd.f32 %v770_v49, %v722_v48  ;;  %v675_v39 = vadd.f32 %v674_v14, %v1734_v43 }
 0x138   :  { %v821_v63 = vpop.f32.mrf.mxu0 }
 0x139   :  { %v893_v54 = vpack.c.bf16 %v877_v51, %v877_v51  ;;  %v820_v56 = vadd.f32 %v819_v50, %v771_v53 }
 0x13b   :  { %910 = vst.msk [vmem:[%s1858_s4 + $0x34] sm:$0xf] %vm896_vm1, %v893_v54  ;;  %v842_v57 = vmul.f32 %v1739_v52, %v820_v56 }
 0x13c   :  { %v723_v58 = vpop.f32.mrf.mxu2 }
 0x13d   :  { %v862_v30 = vadd.f32 %v1744_v55, %v842_v57  ;;  %v724_v59 = vadd.f32 %v723_v58, %v675_v39 }
 0x13e   :  { %v772_v60 = vpop.f32.mrf.mxu3 }
 0x13f   :  { %v878_v61 = vmax.f32 %v862_v30, 0.0  ;;  %v773_v62 = vadd.f32 %v772_v60, %v724_v59 }
 0x141   :  { %v894_v0 = vpack.c.bf16 %v878_v61, %v878_v61  ;;  %v822_v1 = vadd.f32 %v821_v63, %v773_v62 }
 0x143   :  { %911 = vst.msk [vmem:[%s1858_s4 + $0x38] sm:$0xf] %vm896_vm1, %v894_v0  ;;  %v843_v20 = vmul.f32 %v1739_v52, %v822_v1 }
 0x145   :  { %v863_v2 = vadd.f32 %v1744_v55, %v843_v20 }
 0x147   :  { %v879_v43 = vmax.f32 %v863_v2, 0.0 }
 0x149   :  { %v895_v3 = vpack.c.bf16 %v879_v43, %v879_v43 }
 0x14b   :  { %912 = vst.msk [vmem:[%s1858_s4 + $0x3c] sm:$0xf] %vm896_vm1, %v895_v3 }

// kernel: cnn_planner_forward.26
= control target key start
LH: loop header
LB: loop body
LE: loop exit
PB: predicated region body
PF: predicated region fallthrough
CT: control target
= control target key end

     0   :  { %vm368_vm0 = vcmask 523264   ;;  %s956_s1 = inlined_call_operand.vmem [shape: bf16[576,128], index: 1, kind: input, shape index: {}]   ;;  %s957_s0 = inlined_call_operand.vmem [shape: bf16[32,576], index: 0, kind: input, shape index: {}]   ;;  %s958_s2 = inlined_call_operand.vmem [shape: f32[1,128], index: 2, kind: input, shape index: {}]   ;;  %s959_s3 = inlined_call_operand.vmem [shape: f32[1,128], index: 3, kind: input, shape index: {}]   ;;  %s960_s4 = inlined_call_operand.vmem [shape: bf16[32,128], index: 4, kind: output, shape index: {}]  }
   0x1   :  { %v705_v0 = vld [vmem:[%s956_s1 + $0x38] sm:$0xff]  ;;  %v704_v4 = vld [vmem:[%s956_s1 + $0x30] sm:$0xff]  ;;  %v703_v8 = vld [vmem:[%s956_s1 + $0x28] sm:$0xff] }
   0x2   :  { %v713_v1 = vld [vmem:[%s956_s1 + $0x78] sm:$0xff]  ;;  %375 = vmatpush.bf16.msra.mxu0 %v705_v0  ;;  %v712_v5 = vld [vmem:[%s956_s1 + $0x70] sm:$0xff]  ;;  %v711_v9 = vld [vmem:[%s956_s1 + $0x68] sm:$0xff] }
   0x3   :  { %v721_v2 = vld [vmem:[%s956_s1 + $0xb8] sm:$0xff]  ;;  %394 = vmatpush.bf16.msra.mxu1 %v713_v1  ;;  %v720_v6 = vld [vmem:[%s956_s1 + $0xb0] sm:$0xff]  ;;  %v719_v10 = vld [vmem:[%s956_s1 + $0xa8] sm:$0xff] }
   0x4   :  { %v729_v3 = vld [vmem:[%s956_s1 + $0xf8] sm:$0xff]  ;;  %413 = vmatpush.bf16.msra.mxu2 %v721_v2  ;;  %v728_v7 = vld [vmem:[%s956_s1 + $0xf0] sm:$0xff]  ;;  %v727_v11 = vld [vmem:[%s956_s1 + $0xe8] sm:$0xff] }
   0x5   :  { %432 = vmatpush.bf16.msra.mxu3 %v729_v3  ;;  %v702_v12 = vld [vmem:[%s956_s1 + $0x20] sm:$0xff]  ;;  %v701_v16 = vld [vmem:[%s956_s1 + $0x18] sm:$0xff]  ;;  %v700_v20 = vld [vmem:[%s956_s1 + $0x10] sm:$0xff] }
   0x6   :  { %376 = vmatpush.bf16.msra.mxu0 %v704_v4  ;;  %v710_v13 = vld [vmem:[%s956_s1 + $0x60] sm:$0xff]  ;;  %v709_v17 = vld [vmem:[%s956_s1 + $0x58] sm:$0xff]  ;;  %v708_v21 = vld [vmem:[%s956_s1 + $0x50] sm:$0xff] }
   0x7   :  { %395 = vmatpush.bf16.msra.mxu1 %v712_v5  ;;  %v718_v14 = vld [vmem:[%s956_s1 + $0xa0] sm:$0xff]  ;;  %v717_v18 = vld [vmem:[%s956_s1 + $0x98] sm:$0xff]  ;;  %v716_v22 = vld [vmem:[%s956_s1 + $0x90] sm:$0xff] }
   0x8   :  { %414 = vmatpush.bf16.msra.mxu2 %v720_v6  ;;  %v726_v15 = vld [vmem:[%s956_s1 + $0xe0] sm:$0xff]  ;;  %v725_v19 = vld [vmem:[%s956_s1 + $0xd8] sm:$0xff]  ;;  %v724_v23 = vld [vmem:[%s956_s1 + $0xd0] sm:$0xff] }
   0x9   :  { %433 = vmatpush.bf16.msra.mxu3 %v728_v7  ;;  %v699_v24 = vld [vmem:[%s956_s1 + $0x8] sm:$0xff]  ;;  %v698_v28 = vld [vmem:[%s956_s1] sm:$0xff]  ;;  %v690_v33 = vld [vmem:[%s957_s0 + $0x10] sm:$0xf0] }
   0xa   :  { %377 = vmatpush.bf16.msra.mxu0 %v703_v8  ;;  %v707_v25 = vld [vmem:[%s956_s1 + $0x48] sm:$0xff]  ;;  %v706_v29 = vld [vmem:[%s956_s1 + $0x40] sm:$0xff]  ;;  %v506_v35 = vld [vmem:[%s957_s0 + $0x14] sm:$0xf0] }
   0xb   :  { %396 = vmatpush.bf16.msra.mxu1 %v711_v9  ;;  %v715_v26 = vld [vmem:[%s956_s1 + $0x88] sm:$0xff]  ;;  %v714_v30 = vld [vmem:[%s956_s1 + $0x80] sm:$0xff]  ;;  %v691_v37 = vld [vmem:[%s957_s0 + $0x18] sm:$0xf0] }
   0xc   :  { %415 = vmatpush.bf16.msra.mxu2 %v719_v10  ;;  %v723_v27 = vld [vmem:[%s956_s1 + $0xc8] sm:$0xff]  ;;  %v722_v31 = vld [vmem:[%s956_s1 + $0xc0] sm:$0xff]  ;;  %v733_v40 = vld [vmem:[%s956_s1 + $0x118] sm:$0xff] }
   0xd   :  { %434 = vmatpush.bf16.msra.mxu3 %v727_v11  ;;  %v504_v32 = vld [vmem:[%s957_s0] sm:$0xf]  ;;  %v688_v34 = vld [vmem:[%s957_s0 + $0x4] sm:$0xf]  ;;  %v512_v36 = vld [vmem:[%s957_s0 + $0x8] sm:$0xf] }
   0xe   :  { %378 = vmatpush.bf16.msra.mxu0 %v702_v12  ;;  %v689_v38 = vld [vmem:[%s957_s0 + $0xc] sm:$0xf]  ;;  %v514_v39 = vld [vmem:[%s957_s0 + $0x1c] sm:$0xf0]  ;;  %v505_v41 = vor.u32 %v690_v33, %v504_v32  ;;  %v509_v42 = vor.u32 %v688_v34, %v506_v35  ;;  %v513_v43 = vor.u32 %v691_v37, %v512_v36  ;;  %v732_v45 = vld [vmem:[%s956_s1 + $0x110] sm:$0xff] }
   0xf   :  { %397 = vmatpush.bf16.msra.mxu1 %v710_v13  ;;  %v517_v44 = vor.u32 %v689_v38, %v514_v39  ;;  %v731_v46 = vld [vmem:[%s956_s1 + $0x108] sm:$0xff]  ;;  %v730_v47 = vld [vmem:[%s956_s1 + $0x100] sm:$0xff]  ;;  %v695_v49 = vld [vmem:[%s957_s0 + $0x38] sm:$0xf0] }
  0x10   :  { %416 = vmatpush.bf16.msra.mxu2 %v718_v14  ;;  %v524_v48 = vld [vmem:[%s957_s0 + $0x28] sm:$0xf]  ;;  %v693_v50 = vld [vmem:[%s957_s0 + $0x2c] sm:$0xf]  ;;  %v526_v51 = vld [vmem:[%s957_s0 + $0x3c] sm:$0xf0] }
  0x11   :  { %435 = vmatpush.bf16.msra.mxu3 %v726_v15  ;;  %v532_v52 = vld [vmem:[%s957_s0 + $0x30] sm:$0xf]  ;;  %v696_v53 = vld [vmem:[%s957_s0 + $0x40] sm:$0xf0]  ;;  %v694_v54 = vld [vmem:[%s957_s0 + $0x34] sm:$0xf]  ;;  %v525_v56 = vor.u32 %v695_v49, %v524_v48  ;;  %v529_v57 = vor.u32 %v693_v50, %v526_v51 }
  0x12   :  { %379 = vmatpush.bf16.msra.mxu0 %v701_v16  ;;  %v534_v55 = vld [vmem:[%s957_s0 + $0x44] sm:$0xf0]  ;;  %v533_v58 = vor.u32 %v696_v53, %v532_v52  ;;  %v520_v60 = vld [vmem:[%s957_s0 + $0x10] sm:$0xf]  ;;  %v692_v61 = vld [vmem:[%s957_s0 + $0x20] sm:$0xf0] }
  0x13   :  { %398 = vmatpush.bf16.msra.mxu1 %v709_v17  ;;  %v537_v59 = vor.u32 %v694_v54, %v534_v55  ;;  %v540_v62 = vld [vmem:[%s957_s0 + $0x38] sm:$0xf]  ;;  %v697_v63 = vld [vmem:[%s957_s0 + $0x48] sm:$0xf0]  ;;  %v521_v0 = vor.u32 %v692_v61, %v520_v60  ;;  %v750_v36 = vld [vmem:[%s959_s3] ss:$0 sm:$0xff] }
  0x14   :  { %417 = vmatpush.bf16.msra.mxu2 %v717_v18  ;;  %v541_v1 = vor.u32 %v697_v63, %v540_v62 }
  0x15   :  { %436 = vmatpush.bf16.msra.mxu3 %v725_v19 }
  0x16   :  { %380 = vmatpush.bf16.msra.mxu0 %v700_v20 }
  0x17   :  { %399 = vmatpush.bf16.msra.mxu1 %v708_v21 }
  0x18   :  { %418 = vmatpush.bf16.msra.mxu2 %v716_v22 }
  0x19   :  { %437 = vmatpush.bf16.msra.mxu3 %v724_v23 }
  0x1a   :  { %381 = vmatpush.bf16.msra.mxu0 %v699_v24 }
  0x1b   :  { %400 = vmatpush.bf16.msra.mxu1 %v707_v25 }
  0x1c   :  { %419 = vmatpush.bf16.msra.mxu2 %v715_v26 }
  0x1d   :  { %438 = vmatpush.bf16.msra.mxu3 %v723_v27 }
  0x1e   :  { %382 = vmatpush.bf16.msra.mxu0 %v698_v28 }
  0x1f   :  { %401 = vmatpush.bf16.msra.mxu1 %v706_v29 }
  0x20   :  { %420 = vmatpush.bf16.msra.mxu2 %v714_v30  ;;  %v749_v30 = vld [vmem:[%s958_s2] ss:$0 sm:$0xff] }
  0x21   :  { %439 = vmatpush.bf16.msra.mxu3 %v722_v31  ;;  %383 = vmatmul.bf16.vlgmr.msra.gmra.mxu0 %v505_v41 }
  0x22   :  { %455 = vmatpush.bf16.msrb.mxu0 %v733_v40  ;;  %402 = vmatmul.bf16.vlgmr.msra.gmra.mxu1 %v509_v42 }
  0x23   :  { %745 = vmatpush.bf16.msrb.mxu1 %v733_v40  ;;  %421 = vmatmul.bf16.vlgmr.msra.gmra.mxu2 %v513_v43 }
  0x24   :  { %440 = vmatmul.bf16.vlgmr.msra.gmra.mxu3 %v517_v44 }
  0x26   :  { %456 = vmatpush.bf16.msrb.mxu0 %v732_v45 }
  0x27   :  { %746 = vmatpush.bf16.msrb.mxu1 %v732_v45 }
  0x2a   :  { %457 = vmatpush.bf16.msrb.mxu0 %v731_v46 }
  0x2b   :  { %747 = vmatpush.bf16.msrb.mxu1 %v731_v46 }
  0x2e   :  { %458 = vmatpush.bf16.msrb.mxu0 %v730_v47 }
  0x2f   :  { %748 = vmatpush.bf16.msrb.mxu1 %v730_v47 }
  0x31   :  { %388 = vmatmul.bf16.gmra.mxu0 %v525_v56 }
  0x32   :  { %407 = vmatmul.bf16.gmra.mxu1 %v529_v57 }
  0x33   :  { %426 = vmatmul.bf16.gmra.mxu2 %v533_v58 }
  0x34   :  { %445 = vmatmul.bf16.gmra.mxu3 %v537_v59 }
  0x41   :  { %686 = vmatmul.msk.bf16.vlgmr.msrb.gmra.mxu0 %vm368_vm0, %v521_v0 }
  0x42   :  { %687 = vmatmul.msk.bf16.vlgmr.msrb.gmra.mxu1 %vm368_vm0, %v541_v1 }
  0x9e   :  { %v384_v2 = vpop.f32.mrf.mxu0 }
  0x9f   :  { %v403_v3 = vpop.f32.mrf.mxu1 }
  0xa0   :  { %v404_v15 = vadd.f32 %v403_v3, %v384_v2 }
  0xa6   :  { %v422_v4 = vpop.f32.mrf.mxu2  ;;  %v386_v6 = vpop.f32.mrf.mxu0 }
  0xa7   :  { %v441_v5 = vpop.f32.mrf.mxu3  ;;  %v405_v7 = vpop.f32.mrf.mxu1  ;;  %v423_v18 = vadd.f32 %v422_v4, %v404_v15 }
  0xa8   :  { %v406_v24 = vadd.f32 %v405_v7, %v386_v6 }
  0xa9   :  { %v442_v23 = vadd.f32 %v441_v5, %v423_v18 }
  0xae   :  { %v424_v8 = vpop.f32.mrf.mxu2  ;;  %v389_v9 = vpop.f32.mrf.mxu0 }
  0xaf   :  { %v408_v10 = vpop.f32.mrf.mxu1  ;;  %v443_v11 = vpop.f32.mrf.mxu3  ;;  %v425_v27 = vadd.f32 %v424_v8, %v406_v24 }
  0xb0   :  { %v409_v16 = vadd.f32 %v408_v10, %v389_v9 }
  0xb1   :  { %v444_v33 = vadd.f32 %v443_v11, %v425_v27 }
  0xb6   :  { %v427_v12 = vpop.f32.mrf.mxu2  ;;  %v391_v13 = vpop.f32.mrf.mxu0 }
  0xb7   :  { %v410_v14 = vpop.f32.mrf.mxu1  ;;  %v446_v17 = vpop.f32.mrf.mxu3  ;;  %v428_v19 = vadd.f32 %v427_v12, %v409_v16 }
  0xb8   :  { %v411_v26 = vadd.f32 %v410_v14, %v391_v13 }
  0xb9   :  { %v447_v25 = vadd.f32 %v446_v17, %v428_v19 }
  0xbe   :  { %v429_v20 = vpop.f32.mrf.mxu2  ;;  %v460_v21 = vpop.f32.mrf.mxu0 }
  0xbf   :  { %v465_v22 = vpop.f32.mrf.mxu1  ;;  %v430_v28 = vadd.f32 %v429_v20, %v411_v26  ;;  %v461_v29 = vadd.f32 %v460_v21, %v442_v23  ;;  %v448_v32 = vpop.f32.mrf.mxu3 }
  0xc0   :  { %v466_v31 = vadd.f32 %v465_v22, %v447_v25 }
  0xc1   :  { %v449_v34 = vadd.f32 %v448_v32, %v430_v28  ;;  %v474_v35 = vmul.f32 %v749_v30, %v461_v29 }
  0xc2   :  { %v476_v37 = vmul.f32 %v749_v30, %v466_v31 }
  0xc3   :  { %v482_v42 = vadd.f32 %v750_v36, %v474_v35 }
  0xc4   :  { %v484_v43 = vadd.f32 %v750_v36, %v476_v37 }
  0xc5   :  { %v486_v48 = vmax.f32 %v482_v42, 0.0 }
  0xc6   :  { %v462_v38 = vpop.f32.mrf.mxu0  ;;  %v488_v49 = vmax.f32 %v484_v43, 0.0 }
  0xc7   :  { %v467_v39 = vpop.f32.mrf.mxu1  ;;  %v463_v40 = vadd.f32 %v462_v38, %v444_v33 }
  0xc8   :  { %v468_v41 = vadd.f32 %v467_v39, %v449_v34 }
  0xc9   :  { %v475_v44 = vmul.f32 %v749_v30, %v463_v40 }
  0xca   :  { %v477_v45 = vmul.f32 %v749_v30, %v468_v41 }
  0xcb   :  { %v483_v46 = vadd.f32 %v750_v36, %v475_v44 }
  0xcc   :  { %v485_v47 = vadd.f32 %v750_v36, %v477_v45 }
  0xcd   :  { %v487_v50 = vmax.f32 %v483_v46, 0.0 }
  0xce   :  { %v489_v51 = vmax.f32 %v485_v47, 0.0 }
  0xcf   :  { %v737_v52 = vpack.c.bf16 %v487_v50, %v486_v48 }
  0xd0   :  { %v742_v53 = vpack.c.bf16 %v489_v51, %v488_v49 }
  0xd1   :  { %738 = vst [vmem:[%s960_s4] sm:$0xff] %v737_v52  }
  0xd2   :  { %744 = vst [vmem:[%s960_s4 + $0x8] sm:$0xff] %v742_v53  }

// kernel: cnn_planner_forward.27
= control target key start
LH: loop header
LB: loop body
LE: loop exit
PB: predicated region body
PF: predicated region fallthrough
CT: control target
= control target key end

     0   :  { %s1740_s1 = inlined_call_operand.vmem [shape: bf16[1152,128], index: 1, kind: input, shape index: {}]   ;;  %s1741_s0 = inlined_call_operand.vmem [shape: bf16[32,1152], index: 0, kind: input, shape index: {}]   ;;  %s1742_s2 = inlined_call_operand.vmem [shape: f32[1,128], index: 2, kind: input, shape index: {}]   ;;  %s1743_s3 = inlined_call_operand.vmem [shape: f32[1,128], index: 3, kind: input, shape index: {}]   ;;  %s1744_s4 = inlined_call_operand.vmem [shape: bf16[32,128], index: 4, kind: output, shape index: {}]  }
   0x1   :  { %v1293_v0 = vld [vmem:[%s1740_s1 + $0x38] sm:$0xff]  ;;  %v1292_v4 = vld [vmem:[%s1740_s1 + $0x30] sm:$0xff]  ;;  %v1291_v8 = vld [vmem:[%s1740_s1 + $0x28] sm:$0xff] }
   0x2   :  { %v1301_v1 = vld [vmem:[%s1740_s1 + $0x78] sm:$0xff]  ;;  %705 = vmatpush.bf16.msra.mxu0 %v1293_v0  ;;  %v1300_v5 = vld [vmem:[%s1740_s1 + $0x70] sm:$0xff]  ;;  %v1299_v9 = vld [vmem:[%s1740_s1 + $0x68] sm:$0xff] }
   0x3   :  { %v1309_v2 = vld [vmem:[%s1740_s1 + $0xb8] sm:$0xff]  ;;  %724 = vmatpush.bf16.msra.mxu1 %v1301_v1  ;;  %v1308_v6 = vld [vmem:[%s1740_s1 + $0xb0] sm:$0xff]  ;;  %v1307_v10 = vld [vmem:[%s1740_s1 + $0xa8] sm:$0xff] }
   0x4   :  { %v1317_v3 = vld [vmem:[%s1740_s1 + $0xf8] sm:$0xff]  ;;  %743 = vmatpush.bf16.msra.mxu2 %v1309_v2  ;;  %v1316_v7 = vld [vmem:[%s1740_s1 + $0xf0] sm:$0xff]  ;;  %v1315_v11 = vld [vmem:[%s1740_s1 + $0xe8] sm:$0xff] }
   0x5   :  { %762 = vmatpush.bf16.msra.mxu3 %v1317_v3  ;;  %v1290_v12 = vld [vmem:[%s1740_s1 + $0x20] sm:$0xff]  ;;  %v1289_v16 = vld [vmem:[%s1740_s1 + $0x18] sm:$0xff]  ;;  %v1288_v20 = vld [vmem:[%s1740_s1 + $0x10] sm:$0xff] }
   0x6   :  { %706 = vmatpush.bf16.msra.mxu0 %v1292_v4  ;;  %v1298_v13 = vld [vmem:[%s1740_s1 + $0x60] sm:$0xff]  ;;  %v1297_v17 = vld [vmem:[%s1740_s1 + $0x58] sm:$0xff]  ;;  %v1296_v21 = vld [vmem:[%s1740_s1 + $0x50] sm:$0xff] }
   0x7   :  { %725 = vmatpush.bf16.msra.mxu1 %v1300_v5  ;;  %v1306_v14 = vld [vmem:[%s1740_s1 + $0xa0] sm:$0xff]  ;;  %v1305_v18 = vld [vmem:[%s1740_s1 + $0x98] sm:$0xff]  ;;  %v1304_v22 = vld [vmem:[%s1740_s1 + $0x90] sm:$0xff] }
   0x8   :  { %744 = vmatpush.bf16.msra.mxu2 %v1308_v6  ;;  %v1314_v15 = vld [vmem:[%s1740_s1 + $0xe0] sm:$0xff]  ;;  %v1313_v19 = vld [vmem:[%s1740_s1 + $0xd8] sm:$0xff]  ;;  %v1312_v23 = vld [vmem:[%s1740_s1 + $0xd0] sm:$0xff] }
   0x9   :  { %763 = vmatpush.bf16.msra.mxu3 %v1316_v7  ;;  %v1287_v24 = vld [vmem:[%s1740_s1 + $0x8] sm:$0xff]  ;;  %v1286_v28 = vld [vmem:[%s1740_s1] sm:$0xff]  ;;  %v920_v39 = vld [vmem:[%s1741_s0 + $0x2c] sm:$0xf0] }
   0xa   :  { %707 = vmatpush.bf16.msra.mxu0 %v1291_v8  ;;  %v1295_v25 = vld [vmem:[%s1740_s1 + $0x48] sm:$0xff]  ;;  %v1294_v29 = vld [vmem:[%s1740_s1 + $0x40] sm:$0xff]  ;;  %v1325_v40 = vld [vmem:[%s1740_s1 + $0x138] sm:$0xff] }
   0xb   :  { %726 = vmatpush.bf16.msra.mxu1 %v1299_v9  ;;  %v1303_v26 = vld [vmem:[%s1740_s1 + $0x88] sm:$0xff]  ;;  %v1302_v30 = vld [vmem:[%s1740_s1 + $0x80] sm:$0xff]  ;;  %v1333_v41 = vld [vmem:[%s1740_s1 + $0x178] sm:$0xff] }
   0xc   :  { %745 = vmatpush.bf16.msra.mxu2 %v1307_v10  ;;  %v1311_v27 = vld [vmem:[%s1740_s1 + $0xc8] sm:$0xff]  ;;  %v1310_v31 = vld [vmem:[%s1740_s1 + $0xc0] sm:$0xff]  ;;  %v1341_v46 = vld [vmem:[%s1740_s1 + $0x1b8] sm:$0xff] }
   0xd   :  { %764 = vmatpush.bf16.msra.mxu3 %v1315_v11  ;;  %v910_v32 = vld [vmem:[%s1741_s0] sm:$0xf]  ;;  %v1272_v33 = vld [vmem:[%s1741_s0 + $0x20] sm:$0xf0]  ;;  %v912_v35 = vld [vmem:[%s1741_s0 + $0x24] sm:$0xf0] }
   0xe   :  { %708 = vmatpush.bf16.msra.mxu0 %v1290_v12  ;;  %v1268_v34 = vld [vmem:[%s1741_s0 + $0x4] sm:$0xf]  ;;  %v918_v36 = vld [vmem:[%s1741_s0 + $0x8] sm:$0xf]  ;;  %v1273_v37 = vld [vmem:[%s1741_s0 + $0x28] sm:$0xf0]  ;;  %v911_v42 = vor.u32 %v1272_v33, %v910_v32 }
   0xf   :  { %727 = vmatpush.bf16.msra.mxu1 %v1298_v13  ;;  %v1269_v38 = vld [vmem:[%s1741_s0 + $0xc] sm:$0xf]  ;;  %v915_v43 = vor.u32 %v1268_v34, %v912_v35  ;;  %v919_v44 = vor.u32 %v1273_v37, %v918_v36  ;;  %v1349_v47 = vld [vmem:[%s1740_s1 + $0x1f8] sm:$0xff]  ;;  %v1324_v48 = vld [vmem:[%s1740_s1 + $0x130] sm:$0xff] }
  0x10   :  { %746 = vmatpush.bf16.msra.mxu2 %v1306_v14  ;;  %v923_v45 = vor.u32 %v1269_v38, %v920_v39  ;;  %v1332_v49 = vld [vmem:[%s1740_s1 + $0x170] sm:$0xff]  ;;  %v1323_v52 = vld [vmem:[%s1740_s1 + $0x128] sm:$0xff]  ;;  %v1322_v56 = vld [vmem:[%s1740_s1 + $0x120] sm:$0xff] }
  0x11   :  { %765 = vmatpush.bf16.msra.mxu3 %v1314_v15  ;;  %v1340_v50 = vld [vmem:[%s1740_s1 + $0x1b0] sm:$0xff]  ;;  %v1331_v53 = vld [vmem:[%s1740_s1 + $0x168] sm:$0xff]  ;;  %v1330_v57 = vld [vmem:[%s1740_s1 + $0x160] sm:$0xff] }
  0x12   :  { %709 = vmatpush.bf16.msra.mxu0 %v1289_v16  ;;  %v1348_v51 = vld [vmem:[%s1740_s1 + $0x1f0] sm:$0xff]  ;;  %v1339_v54 = vld [vmem:[%s1740_s1 + $0x1a8] sm:$0xff]  ;;  %v1338_v58 = vld [vmem:[%s1740_s1 + $0x1a0] sm:$0xff] }
  0x13   :  { %728 = vmatpush.bf16.msra.mxu1 %v1297_v17  ;;  %v1347_v55 = vld [vmem:[%s1740_s1 + $0x1e8] sm:$0xff]  ;;  %v1346_v59 = vld [vmem:[%s1740_s1 + $0x1e0] sm:$0xff]  ;;  %v948_v63 = vld [vmem:[%s1741_s0 + $0x6c] sm:$0xf0] }
  0x14   :  { %747 = vmatpush.bf16.msra.mxu2 %v1305_v18  ;;  %v946_v60 = vld [vmem:[%s1741_s0 + $0x48] sm:$0xf]  ;;  %v1281_v61 = vld [vmem:[%s1741_s0 + $0x68] sm:$0xf0]  ;;  %v954_v0 = vld [vmem:[%s1741_s0 + $0x50] sm:$0xf] }
  0x15   :  { %766 = vmatpush.bf16.msra.mxu3 %v1313_v19  ;;  %v1277_v62 = vld [vmem:[%s1741_s0 + $0x4c] sm:$0xf]  ;;  %v1282_v1 = vld [vmem:[%s1741_s0 + $0x70] sm:$0xf0]  ;;  %v956_v3 = vld [vmem:[%s1741_s0 + $0x74] sm:$0xf0]  ;;  %v947_v6 = vor.u32 %v1281_v61, %v946_v60 }
  0x16   :  { %710 = vmatpush.bf16.msra.mxu0 %v1288_v20  ;;  %v1278_v2 = vld [vmem:[%s1741_s0 + $0x54] sm:$0xf]  ;;  %v1321_v4 = vld [vmem:[%s1740_s1 + $0x118] sm:$0xff]  ;;  %v951_v7 = vor.u32 %v1277_v62, %v948_v63  ;;  %v955_v8 = vor.u32 %v1282_v1, %v954_v0  ;;  %v1319_v16 = vld [vmem:[%s1740_s1 + $0x108] sm:$0xff] }
  0x17   :  { %729 = vmatpush.bf16.msra.mxu1 %v1296_v21  ;;  %v1329_v5 = vld [vmem:[%s1740_s1 + $0x158] sm:$0xff]  ;;  %v959_v9 = vor.u32 %v1278_v2, %v956_v3  ;;  %v1320_v12 = vld [vmem:[%s1740_s1 + $0x110] sm:$0xff]  ;;  %v1327_v17 = vld [vmem:[%s1740_s1 + $0x148] sm:$0xff] }
  0x18   :  { %748 = vmatpush.bf16.msra.mxu2 %v1304_v22  ;;  %v1337_v10 = vld [vmem:[%s1740_s1 + $0x198] sm:$0xff]  ;;  %v1328_v13 = vld [vmem:[%s1740_s1 + $0x150] sm:$0xff]  ;;  %v1335_v18 = vld [vmem:[%s1740_s1 + $0x188] sm:$0xff] }
  0x19   :  { %767 = vmatpush.bf16.msra.mxu3 %v1312_v23  ;;  %v1345_v11 = vld [vmem:[%s1740_s1 + $0x1d8] sm:$0xff]  ;;  %v1336_v14 = vld [vmem:[%s1740_s1 + $0x190] sm:$0xff]  ;;  %v1343_v19 = vld [vmem:[%s1740_s1 + $0x1c8] sm:$0xff] }
  0x1a   :  { %711 = vmatpush.bf16.msra.mxu0 %v1287_v24  ;;  %v1344_v15 = vld [vmem:[%s1740_s1 + $0x1d0] sm:$0xff]  ;;  %v1318_v20 = vld [vmem:[%s1740_s1 + $0x100] sm:$0xff]  ;;  %v1355_v38 = vld [vmem:[%s1740_s1 + $0x228] sm:$0xff] }
  0x1b   :  { %730 = vmatpush.bf16.msra.mxu1 %v1295_v25  ;;  %v1326_v21 = vld [vmem:[%s1740_s1 + $0x140] sm:$0xff]  ;;  %v926_v24 = vld [vmem:[%s1741_s0 + $0x10] sm:$0xf]  ;;  %v1274_v25 = vld [vmem:[%s1741_s0 + $0x30] sm:$0xf0] }
  0x1c   :  { %749 = vmatpush.bf16.msra.mxu2 %v1303_v26  ;;  %v1334_v22 = vld [vmem:[%s1740_s1 + $0x180] sm:$0xff]  ;;  %v1357_v26 = vld [vmem:[%s1740_s1 + $0x238] sm:$0xff]  ;;  %v927_v33 = vor.u32 %v1274_v25, %v926_v24  ;;  %v1356_v37 = vld [vmem:[%s1740_s1 + $0x230] sm:$0xff] }
  0x1d   :  { %768 = vmatpush.bf16.msra.mxu3 %v1311_v27  ;;  %v1342_v23 = vld [vmem:[%s1740_s1 + $0x1c0] sm:$0xff]  ;;  %v1270_v27 = vld [vmem:[%s1741_s0 + $0x14] sm:$0xf] }
  0x1e   :  { %712 = vmatpush.bf16.msra.mxu0 %v1286_v28  ;;  %v928_v28 = vld [vmem:[%s1741_s0 + $0x34] sm:$0xf0]  ;;  %v936_v32 = vld [vmem:[%s1741_s0 + $0x3c] sm:$0xf0] }
  0x1f   :  { %731 = vmatpush.bf16.msra.mxu1 %v1294_v29  ;;  %v934_v29 = vld [vmem:[%s1741_s0 + $0x18] sm:$0xf]  ;;  %v931_v34 = vor.u32 %v1270_v27, %v928_v28  ;;  %v1354_v39 = vld [vmem:[%s1740_s1 + $0x220] sm:$0xff] }
  0x20   :  { %750 = vmatpush.bf16.msra.mxu2 %v1302_v30  ;;  %v1275_v30 = vld [vmem:[%s1741_s0 + $0x38] sm:$0xf0] }
  0x21   :  { %769 = vmatpush.bf16.msra.mxu3 %v1310_v31  ;;  %713 = vmatmul.bf16.vlgmr.msra.gmra.mxu0 %v911_v42  ;;  %v1271_v31 = vld [vmem:[%s1741_s0 + $0x1c] sm:$0xf]  ;;  %v935_v35 = vor.u32 %v1275_v30, %v934_v29 }
  0x22   :  { %781 = vmatpush.bf16.msrb.mxu0 %v1325_v40  ;;  %732 = vmatmul.bf16.vlgmr.msra.gmra.mxu1 %v915_v43  ;;  %v939_v36 = vor.u32 %v1271_v31, %v936_v32  ;;  %v962_v40 = vld [vmem:[%s1741_s0 + $0x58] sm:$0xf]  ;;  %v1279_v42 = vld [vmem:[%s1741_s0 + $0x5c] sm:$0xf]  ;;  %v964_v43 = vld [vmem:[%s1741_s0 + $0x7c] sm:$0xf0] }
  0x23   :  { %800 = vmatpush.bf16.msrb.mxu1 %v1333_v41  ;;  %751 = vmatmul.bf16.vlgmr.msra.gmra.mxu2 %v919_v44  ;;  %v1283_v41 = vld [vmem:[%s1741_s0 + $0x78] sm:$0xf0]  ;;  %v970_v44 = vld [vmem:[%s1741_s0 + $0x60] sm:$0xf] }
  0x24   :  { %770 = vmatmul.bf16.vlgmr.msra.gmra.mxu3 %v923_v45  ;;  %819 = vmatpush.bf16.msrb.mxu2 %v1341_v46  ;;  %v1284_v45 = vld [vmem:[%s1741_s0 + $0x80] sm:$0xf0] }
  0x25   :  { %838 = vmatpush.bf16.msrb.mxu3 %v1349_v47  ;;  %v1280_v46 = vld [vmem:[%s1741_s0 + $0x64] sm:$0xf]  ;;  %v972_v47 = vld [vmem:[%s1741_s0 + $0x84] sm:$0xf0] }
  0x26   :  { %782 = vmatpush.bf16.msrb.mxu0 %v1324_v48  ;;  %v1353_v48 = vld [vmem:[%s1740_s1 + $0x218] sm:$0xff] }
  0x27   :  { %801 = vmatpush.bf16.msrb.mxu1 %v1332_v49  ;;  %v963_v49 = vor.u32 %v1283_v41, %v962_v40 }
  0x28   :  { %820 = vmatpush.bf16.msrb.mxu2 %v1340_v50  ;;  %v967_v50 = vor.u32 %v1279_v42, %v964_v43 }
  0x29   :  { %839 = vmatpush.bf16.msrb.mxu3 %v1348_v51  ;;  %v971_v51 = vor.u32 %v1284_v45, %v970_v44 }
  0x2a   :  { %783 = vmatpush.bf16.msrb.mxu0 %v1323_v52  ;;  %v975_v52 = vor.u32 %v1280_v46, %v972_v47 }
  0x2b   :  { %802 = vmatpush.bf16.msrb.mxu1 %v1331_v53  ;;  %v1352_v53 = vld [vmem:[%s1740_s1 + $0x210] sm:$0xff] }
  0x2c   :  { %821 = vmatpush.bf16.msrb.mxu2 %v1339_v54  ;;  %v1351_v54 = vld [vmem:[%s1740_s1 + $0x208] sm:$0xff] }
  0x2d   :  { %840 = vmatpush.bf16.msrb.mxu3 %v1347_v55  ;;  %v1350_v55 = vld [vmem:[%s1740_s1 + $0x200] sm:$0xff] }
  0x2e   :  { %784 = vmatpush.bf16.msrb.mxu0 %v1322_v56  ;;  %v942_v56 = vld [vmem:[%s1741_s0 + $0x20] sm:$0xf] }
  0x2f   :  { %803 = vmatpush.bf16.msrb.mxu1 %v1330_v57  ;;  %v1276_v57 = vld [vmem:[%s1741_s0 + $0x40] sm:$0xf0] }
  0x30   :  { %822 = vmatpush.bf16.msrb.mxu2 %v1338_v58  ;;  %v978_v58 = vld [vmem:[%s1741_s0 + $0x68] sm:$0xf]  ;;  %v943_v60 = vor.u32 %v1276_v57, %v942_v56 }
  0x31   :  { %841 = vmatpush.bf16.msrb.mxu3 %v1346_v59  ;;  %718 = vmatmul.bf16.gmra.mxu0 %v947_v6  ;;  %v1285_v59 = vld [vmem:[%s1741_s0 + $0x88] sm:$0xf0] }
  0x32   :  { %785 = vmatpush.bf16.msrb.mxu0 %v1321_v4  ;;  %737 = vmatmul.bf16.gmra.mxu1 %v951_v7  ;;  %v979_v61 = vor.u32 %v1285_v59, %v978_v58  ;;  %v1377_v58 = vld [vmem:[%s1742_s2] ss:$0 sm:$0xff] }
  0x33   :  { %804 = vmatpush.bf16.msrb.mxu1 %v1329_v5  ;;  %756 = vmatmul.bf16.gmra.mxu2 %v955_v8 }
  0x34   :  { %775 = vmatmul.bf16.gmra.mxu3 %v959_v9  ;;  %823 = vmatpush.bf16.msrb.mxu2 %v1337_v10 }
  0x35   :  { %842 = vmatpush.bf16.msrb.mxu3 %v1345_v11 }
  0x36   :  { %786 = vmatpush.bf16.msrb.mxu0 %v1320_v12 }
  0x37   :  { %805 = vmatpush.bf16.msrb.mxu1 %v1328_v13 }
  0x38   :  { %824 = vmatpush.bf16.msrb.mxu2 %v1336_v14 }
  0x39   :  { %843 = vmatpush.bf16.msrb.mxu3 %v1344_v15 }
  0x3a   :  { %787 = vmatpush.bf16.msrb.mxu0 %v1319_v16 }
  0x3b   :  { %806 = vmatpush.bf16.msrb.mxu1 %v1327_v17 }
  0x3c   :  { %825 = vmatpush.bf16.msrb.mxu2 %v1335_v18 }
  0x3d   :  { %844 = vmatpush.bf16.msrb.mxu3 %v1343_v19 }
  0x3e   :  { %788 = vmatpush.bf16.msrb.mxu0 %v1318_v20 }
  0x3f   :  { %807 = vmatpush.bf16.msrb.mxu1 %v1326_v21 }
  0x40   :  { %826 = vmatpush.bf16.msrb.mxu2 %v1334_v22 }
  0x41   :  { %845 = vmatpush.bf16.msrb.mxu3 %v1342_v23  ;;  %789 = vmatmul.bf16.vlgmr.msrb.gmra.mxu0 %v927_v33 }
  0x42   :  { %857 = vmatpush.bf16.msra.mxu0 %v1357_v26  ;;  %808 = vmatmul.bf16.vlgmr.msrb.gmra.mxu1 %v931_v34 }
  0x43   :  { %1369 = vmatpush.bf16.msra.mxu1 %v1357_v26  ;;  %827 = vmatmul.bf16.vlgmr.msrb.gmra.mxu2 %v935_v35 }
  0x44   :  { %846 = vmatmul.bf16.vlgmr.msrb.gmra.mxu3 %v939_v36 }
  0x46   :  { %858 = vmatpush.bf16.msra.mxu0 %v1356_v37 }
  0x47   :  { %1370 = vmatpush.bf16.msra.mxu1 %v1356_v37 }
  0x4a   :  { %859 = vmatpush.bf16.msra.mxu0 %v1355_v38 }
  0x4b   :  { %1371 = vmatpush.bf16.msra.mxu1 %v1355_v38 }
  0x4e   :  { %860 = vmatpush.bf16.msra.mxu0 %v1354_v39 }
  0x4f   :  { %1372 = vmatpush.bf16.msra.mxu1 %v1354_v39 }
  0x51   :  { %794 = vmatmul.bf16.gmra.mxu0 %v963_v49 }
  0x52   :  { %861 = vmatpush.bf16.msra.mxu0 %v1353_v48  ;;  %813 = vmatmul.bf16.gmra.mxu1 %v967_v50 }
  0x53   :  { %1373 = vmatpush.bf16.msra.mxu1 %v1353_v48  ;;  %832 = vmatmul.bf16.gmra.mxu2 %v971_v51 }
  0x54   :  { %851 = vmatmul.bf16.gmra.mxu3 %v975_v52 }
  0x56   :  { %862 = vmatpush.bf16.msra.mxu0 %v1352_v53 }
  0x57   :  { %1374 = vmatpush.bf16.msra.mxu1 %v1352_v53 }
  0x5a   :  { %863 = vmatpush.bf16.msra.mxu0 %v1351_v54 }
  0x5b   :  { %1375 = vmatpush.bf16.msra.mxu1 %v1351_v54 }
  0x5e   :  { %864 = vmatpush.bf16.msra.mxu0 %v1350_v55 }
  0x5f   :  { %1376 = vmatpush.bf16.msra.mxu1 %v1350_v55 }
  0x61   :  { %865 = vmatmul.bf16.vlgmr.msra.gmra.mxu0 %v943_v60 }
  0x62   :  { %870 = vmatmul.bf16.vlgmr.msra.gmra.mxu1 %v979_v61 }
  0x9e   :  { %v714_v62 = vpop.f32.mrf.mxu0 }
  0x9f   :  { %v733_v63 = vpop.f32.mrf.mxu1 }
  0xa0   :  { %v734_v20 = vadd.f32 %v733_v63, %v714_v62 }
  0xa6   :  { %v752_v0 = vpop.f32.mrf.mxu2  ;;  %v716_v2 = vpop.f32.mrf.mxu0 }
  0xa7   :  { %v771_v1 = vpop.f32.mrf.mxu3  ;;  %v735_v3 = vpop.f32.mrf.mxu1  ;;  %v753_v25 = vadd.f32 %v752_v0, %v734_v20  ;;  %v1378_v0 = vld [vmem:[%s1743_s3] ss:$0 sm:$0xff] }
  0xa8   :  { %v736_v29 = vadd.f32 %v735_v3, %v716_v2 }
  0xa9   :  { %v772_v28 = vadd.f32 %v771_v1, %v753_v25 }
  0xae   :  { %v754_v4 = vpop.f32.mrf.mxu2  ;;  %v719_v6 = vpop.f32.mrf.mxu0 }
  0xaf   :  { %v773_v5 = vpop.f32.mrf.mxu3  ;;  %v738_v7 = vpop.f32.mrf.mxu1  ;;  %v755_v32 = vadd.f32 %v754_v4, %v736_v29 }
  0xb0   :  { %v739_v21 = vadd.f32 %v738_v7, %v719_v6 }
  0xb1   :  { %v774_v39 = vadd.f32 %v773_v5, %v755_v32 }
  0xb6   :  { %v757_v8 = vpop.f32.mrf.mxu2  ;;  %v721_v10 = vpop.f32.mrf.mxu0 }
  0xb7   :  { %v776_v9 = vpop.f32.mrf.mxu3  ;;  %v740_v11 = vpop.f32.mrf.mxu1  ;;  %v758_v26 = vadd.f32 %v757_v8, %v739_v21 }
  0xb8   :  { %v741_v31 = vadd.f32 %v740_v11, %v721_v10 }
  0xb9   :  { %v777_v30 = vadd.f32 %v776_v9, %v758_v26 }
  0xbe   :  { %v759_v12 = vpop.f32.mrf.mxu2  ;;  %v790_v14 = vpop.f32.mrf.mxu0 }
  0xbf   :  { %v778_v13 = vpop.f32.mrf.mxu3  ;;  %v809_v15 = vpop.f32.mrf.mxu1  ;;  %v760_v33 = vadd.f32 %v759_v12, %v741_v31  ;;  %v791_v34 = vadd.f32 %v790_v14, %v772_v28 }
  0xc1   :  { %v779_v40 = vadd.f32 %v778_v13, %v760_v33  ;;  %v810_v41 = vadd.f32 %v809_v15, %v791_v34 }
  0xc6   :  { %v828_v16 = vpop.f32.mrf.mxu2  ;;  %v792_v18 = vpop.f32.mrf.mxu0 }
  0xc7   :  { %v847_v17 = vpop.f32.mrf.mxu3  ;;  %v811_v19 = vpop.f32.mrf.mxu1  ;;  %v829_v44 = vadd.f32 %v828_v16, %v810_v41  ;;  %v793_v45 = vadd.f32 %v792_v18, %v774_v39 }
  0xc9   :  { %v848_v51 = vadd.f32 %v847_v17, %v829_v44  ;;  %v812_v52 = vadd.f32 %v811_v19, %v793_v45 }
  0xce   :  { %v830_v22 = vpop.f32.mrf.mxu2  ;;  %v795_v23 = vpop.f32.mrf.mxu0 }
  0xcf   :  { %v814_v24 = vpop.f32.mrf.mxu1  ;;  %v849_v27 = vpop.f32.mrf.mxu3  ;;  %v796_v35 = vadd.f32 %v795_v23, %v777_v30  ;;  %v831_v55 = vadd.f32 %v830_v22, %v812_v52 }
  0xd1   :  { %v815_v42 = vadd.f32 %v814_v24, %v796_v35  ;;  %v850_v61 = vadd.f32 %v849_v27, %v831_v55 }
  0xd6   :  { %v833_v36 = vpop.f32.mrf.mxu2  ;;  %v797_v37 = vpop.f32.mrf.mxu0 }
  0xd7   :  { %v816_v38 = vpop.f32.mrf.mxu1  ;;  %v852_v43 = vpop.f32.mrf.mxu3  ;;  %v834_v46 = vadd.f32 %v833_v36, %v815_v42  ;;  %v798_v47 = vadd.f32 %v797_v37, %v779_v40 }
  0xd9   :  { %v853_v53 = vadd.f32 %v852_v43, %v834_v46  ;;  %v817_v54 = vadd.f32 %v816_v38, %v798_v47 }
  0xde   :  { %v835_v48 = vpop.f32.mrf.mxu2  ;;  %v866_v49 = vpop.f32.mrf.mxu0 }
  0xdf   :  { %v871_v50 = vpop.f32.mrf.mxu1  ;;  %v836_v56 = vadd.f32 %v835_v48, %v817_v54  ;;  %v867_v57 = vadd.f32 %v866_v49, %v848_v51  ;;  %v854_v60 = vpop.f32.mrf.mxu3 }
  0xe0   :  { %v872_v59 = vadd.f32 %v871_v50, %v853_v53 }
  0xe1   :  { %v855_v62 = vadd.f32 %v854_v60, %v836_v56  ;;  %v880_v63 = vmul.f32 %v1377_v58, %v867_v57 }
  0xe2   :  { %v882_v1 = vmul.f32 %v1377_v58, %v872_v59 }
  0xe3   :  { %v888_v6 = vadd.f32 %v1378_v0, %v880_v63 }
  0xe4   :  { %v890_v7 = vadd.f32 %v1378_v0, %v882_v1 }
  0xe5   :  { %v892_v12 = vmax.f32 %v888_v6, 0.0 }
  0xe6   :  { %v868_v2 = vpop.f32.mrf.mxu0  ;;  %v894_v13 = vmax.f32 %v890_v7, 0.0 }
  0xe7   :  { %v873_v3 = vpop.f32.mrf.mxu1  ;;  %v869_v4 = vadd.f32 %v868_v2, %v850_v61 }
  0xe8   :  { %v874_v5 = vadd.f32 %v873_v3, %v855_v62 }
  0xe9   :  { %v881_v8 = vmul.f32 %v1377_v58, %v869_v4 }
  0xea   :  { %v883_v9 = vmul.f32 %v1377_v58, %v874_v5 }
  0xeb   :  { %v889_v10 = vadd.f32 %v1378_v0, %v881_v8 }
  0xec   :  { %v891_v11 = vadd.f32 %v1378_v0, %v883_v9 }
  0xed   :  { %v893_v14 = vmax.f32 %v889_v10, 0.0 }
  0xee   :  { %v895_v15 = vmax.f32 %v891_v11, 0.0 }
  0xef   :  { %v1361_v16 = vpack.c.bf16 %v893_v14, %v892_v12 }
  0xf0   :  { %v1366_v17 = vpack.c.bf16 %v895_v15, %v894_v13 }
  0xf1   :  { %1362 = vst [vmem:[%s1744_s4] sm:$0xff] %v1361_v16  }
  0xf2   :  { %1368 = vst [vmem:[%s1744_s4 + $0x8] sm:$0xff] %v1366_v17  }

// kernel: cnn_planner_forward.28
= control target key start
LH: loop header
LB: loop body
LE: loop exit
PB: predicated region body
PF: predicated region fallthrough
CT: control target
= control target key end

     0   :  { %s2845_s1 = inlined_call_operand.vmem [shape: bf16[1152,256], index: 1, kind: input, shape index: {}]   ;;  %s2846_s0 = inlined_call_operand.vmem [shape: bf16[8,1152], index: 0, kind: input, shape index: {}]   ;;  %s2847_s2 = inlined_call_operand.vmem [shape: f32[1,256], index: 2, kind: input, shape index: {}]   ;;  %s2848_s3 = inlined_call_operand.vmem [shape: f32[1,256], index: 3, kind: input, shape index: {}]   ;;  %s2849_s4 = inlined_call_operand.vmem [shape: bf16[8,256], index: 4, kind: output, shape index: {}]  }
   0x1   :  { %v1234_v0 = vld [vmem:[%s2845_s1 + $0x70] sm:$0xf]  ;;  %v1767_v1 = vld [vmem:[%s2845_s1 + $0x74] sm:$0xf0]  ;;  %v1226_v11 = vld [vmem:[%s2845_s1 + $0x60] sm:$0xf] }
   0x2   :  { %v1298_v2 = vld [vmem:[%s2845_s1 + $0xf0] sm:$0xf]  ;;  %v1235_v3 = vor.u32 %v1767_v1, %v1234_v0  ;;  %v1783_v4 = vld [vmem:[%s2845_s1 + $0xf4] sm:$0xf0]  ;;  %v1765_v13 = vld [vmem:[%s2845_s1 + $0x64] sm:$0xf0] }
   0x3   :  { %v1362_v5 = vld [vmem:[%s2845_s1 + $0x170] sm:$0xf]  ;;  %v1799_v6 = vld [vmem:[%s2845_s1 + $0x174] sm:$0xf0]  ;;  %v1299_v7 = vor.u32 %v1783_v4, %v1298_v2  ;;  %v1290_v14 = vld [vmem:[%s2845_s1 + $0xe0] sm:$0xf]  ;;  %v1227_v16 = vor.u32 %v1765_v13, %v1226_v11 }
   0x4   :  { %v1363_v8 = vor.u32 %v1799_v6, %v1362_v5  ;;  %v1426_v9 = vld [vmem:[%s2845_s1 + $0x1f0] sm:$0xf]  ;;  %v1815_v10 = vld [vmem:[%s2845_s1 + $0x1f4] sm:$0xf0]  ;;  %918 = vmatpush.bf16.msra.mxu0 %v1235_v3  ;;  %v1781_v15 = vld [vmem:[%s2845_s1 + $0xe4] sm:$0xf0] }
   0x5   :  { %v1427_v12 = vor.u32 %v1815_v10, %v1426_v9  ;;  %931 = vmatpush.bf16.msra.mxu1 %v1299_v7  ;;  %v1291_v17 = vor.u32 %v1781_v15, %v1290_v14  ;;  %v1354_v18 = vld [vmem:[%s2845_s1 + $0x160] sm:$0xf]  ;;  %v1797_v19 = vld [vmem:[%s2845_s1 + $0x164] sm:$0xf0]  ;;  %v1218_v23 = vld [vmem:[%s2845_s1 + $0x50] sm:$0xf] }
   0x6   :  { %944 = vmatpush.bf16.msra.mxu2 %v1363_v8  ;;  %v1418_v20 = vld [vmem:[%s2845_s1 + $0x1e0] sm:$0xf]  ;;  %v1355_v21 = vor.u32 %v1797_v19, %v1354_v18  ;;  %v1813_v22 = vld [vmem:[%s2845_s1 + $0x1e4] sm:$0xf0]  ;;  %v1763_v24 = vld [vmem:[%s2845_s1 + $0x54] sm:$0xf0] }
   0x7   :  { %957 = vmatpush.bf16.msra.mxu3 %v1427_v12  ;;  %v1419_v25 = vor.u32 %v1813_v22, %v1418_v20  ;;  %v1282_v26 = vld [vmem:[%s2845_s1 + $0xd0] sm:$0xf]  ;;  %v1779_v27 = vld [vmem:[%s2845_s1 + $0xd4] sm:$0xf0]  ;;  %v1219_v29 = vor.u32 %v1763_v24, %v1218_v23  ;;  %v1210_v35 = vld [vmem:[%s2845_s1 + $0x40] sm:$0xf] }
   0x8   :  { %v1346_v28 = vld [vmem:[%s2845_s1 + $0x150] sm:$0xf]  ;;  %919 = vmatpush.bf16.msra.mxu0 %v1227_v16  ;;  %v1795_v30 = vld [vmem:[%s2845_s1 + $0x154] sm:$0xf0]  ;;  %v1283_v33 = vor.u32 %v1779_v27, %v1282_v26  ;;  %v1761_v36 = vld [vmem:[%s2845_s1 + $0x44] sm:$0xf0] }
   0x9   :  { %v1410_v31 = vld [vmem:[%s2845_s1 + $0x1d0] sm:$0xf]  ;;  %v1811_v32 = vld [vmem:[%s2845_s1 + $0x1d4] sm:$0xf0]  ;;  %932 = vmatpush.bf16.msra.mxu1 %v1291_v17  ;;  %v1347_v34 = vor.u32 %v1795_v30, %v1346_v28  ;;  %v1274_v37 = vld [vmem:[%s2845_s1 + $0xc0] sm:$0xf]  ;;  %v1211_v44 = vor.u32 %v1761_v36, %v1210_v35 }
   0xa   :  { %945 = vmatpush.bf16.msra.mxu2 %v1355_v21  ;;  %v1411_v38 = vor.u32 %v1811_v32, %v1410_v31  ;;  %v1777_v39 = vld [vmem:[%s2845_s1 + $0xc4] sm:$0xf0]  ;;  %v1338_v40 = vld [vmem:[%s2845_s1 + $0x140] sm:$0xf]  ;;  %v1202_v47 = vld [vmem:[%s2845_s1 + $0x30] sm:$0xf] }
   0xb   :  { %958 = vmatpush.bf16.msra.mxu3 %v1419_v25  ;;  %v1793_v41 = vld [vmem:[%s2845_s1 + $0x144] sm:$0xf0]  ;;  %v1402_v42 = vld [vmem:[%s2845_s1 + $0x1c0] sm:$0xf]  ;;  %v1275_v45 = vor.u32 %v1777_v39, %v1274_v37  ;;  %v1759_v48 = vld [vmem:[%s2845_s1 + $0x34] sm:$0xf0] }
   0xc   :  { %v1809_v43 = vld [vmem:[%s2845_s1 + $0x1c4] sm:$0xf0]  ;;  %920 = vmatpush.bf16.msra.mxu0 %v1219_v29  ;;  %v1339_v46 = vor.u32 %v1793_v41, %v1338_v40  ;;  %v1266_v49 = vld [vmem:[%s2845_s1 + $0xb0] sm:$0xf]  ;;  %v1775_v51 = vld [vmem:[%s2845_s1 + $0xb4] sm:$0xf0]  ;;  %v1203_v56 = vor.u32 %v1759_v48, %v1202_v47 }
   0xd   :  { %933 = vmatpush.bf16.msra.mxu1 %v1283_v33  ;;  %v1403_v50 = vor.u32 %v1809_v43, %v1402_v42  ;;  %v1330_v52 = vld [vmem:[%s2845_s1 + $0x130] sm:$0xf]  ;;  %v1791_v53 = vld [vmem:[%s2845_s1 + $0x134] sm:$0xf0]  ;;  %v1267_v57 = vor.u32 %v1775_v51, %v1266_v49  ;;  %v1194_v59 = vld [vmem:[%s2845_s1 + $0x20] sm:$0xf] }
   0xe   :  { %946 = vmatpush.bf16.msra.mxu2 %v1347_v34  ;;  %v1394_v54 = vld [vmem:[%s2845_s1 + $0x1b0] sm:$0xf]  ;;  %v1807_v55 = vld [vmem:[%s2845_s1 + $0x1b4] sm:$0xf0]  ;;  %v1331_v58 = vor.u32 %v1791_v53, %v1330_v52  ;;  %v1757_v60 = vld [vmem:[%s2845_s1 + $0x24] sm:$0xf0] }
   0xf   :  { %959 = vmatpush.bf16.msra.mxu3 %v1411_v38  ;;  %v1258_v61 = vld [vmem:[%s2845_s1 + $0xa0] sm:$0xf]  ;;  %v1395_v62 = vor.u32 %v1807_v55, %v1394_v54  ;;  %v1773_v63 = vld [vmem:[%s2845_s1 + $0xa4] sm:$0xf0]  ;;  %v1195_v4 = vor.u32 %v1757_v60, %v1194_v59  ;;  %v1186_v7 = vld [vmem:[%s2845_s1 + $0x10] sm:$0xf] }
  0x10   :  { %921 = vmatpush.bf16.msra.mxu0 %v1211_v44  ;;  %v1322_v0 = vld [vmem:[%s2845_s1 + $0x120] sm:$0xf]  ;;  %v1789_v1 = vld [vmem:[%s2845_s1 + $0x124] sm:$0xf0]  ;;  %v1259_v5 = vor.u32 %v1773_v63, %v1258_v61  ;;  %v1755_v8 = vld [vmem:[%s2845_s1 + $0x14] sm:$0xf0] }
  0x11   :  { %934 = vmatpush.bf16.msra.mxu1 %v1275_v45  ;;  %v1386_v2 = vld [vmem:[%s2845_s1 + $0x1a0] sm:$0xf]  ;;  %v1805_v3 = vld [vmem:[%s2845_s1 + $0x1a4] sm:$0xf0]  ;;  %v1323_v6 = vor.u32 %v1789_v1, %v1322_v0  ;;  %v1250_v9 = vld [vmem:[%s2845_s1 + $0x90] sm:$0xf]  ;;  %v1187_v16 = vor.u32 %v1755_v8, %v1186_v7 }
  0x12   :  { %947 = vmatpush.bf16.msra.mxu2 %v1339_v46  ;;  %v1387_v10 = vor.u32 %v1805_v3, %v1386_v2  ;;  %v1771_v11 = vld [vmem:[%s2845_s1 + $0x94] sm:$0xf0]  ;;  %v1314_v12 = vld [vmem:[%s2845_s1 + $0x110] sm:$0xf]  ;;  %v1178_v17 = vld [vmem:[%s2845_s1] sm:$0xf] }
  0x13   :  { %960 = vmatpush.bf16.msra.mxu3 %v1403_v50  ;;  %v1787_v13 = vld [vmem:[%s2845_s1 + $0x114] sm:$0xf0]  ;;  %v1378_v14 = vld [vmem:[%s2845_s1 + $0x190] sm:$0xf]  ;;  %v1753_v18 = vld [vmem:[%s2845_s1 + $0x4] sm:$0xf0]  ;;  %v1251_v19 = vor.u32 %v1771_v11, %v1250_v9 }
  0x14   :  { %922 = vmatpush.bf16.msra.mxu0 %v1203_v56  ;;  %v1803_v15 = vld [vmem:[%s2845_s1 + $0x194] sm:$0xf0]  ;;  %v1315_v20 = vor.u32 %v1787_v13, %v1314_v12  ;;  %v1242_v21 = vld [vmem:[%s2845_s1 + $0x80] sm:$0xf]  ;;  %v1769_v22 = vld [vmem:[%s2845_s1 + $0x84] sm:$0xf0]  ;;  %v1179_v31 = vor.u32 %v1753_v18, %v1178_v17 }
  0x15   :  { %935 = vmatpush.bf16.msra.mxu1 %v1267_v57  ;;  %v1306_v23 = vld [vmem:[%s2845_s1 + $0x100] sm:$0xf]  ;;  %v1379_v24 = vor.u32 %v1803_v15, %v1378_v14  ;;  %v1785_v25 = vld [vmem:[%s2845_s1 + $0x104] sm:$0xf0]  ;;  %v1490_v26 = vld [vmem:[%s2845_s1 + $0x270] sm:$0xf]  ;;  %v1243_v35 = vor.u32 %v1769_v22, %v1242_v21 }
  0x16   :  { %948 = vmatpush.bf16.msra.mxu2 %v1331_v58  ;;  %v1831_v27 = vld [vmem:[%s2845_s1 + $0x274] sm:$0xf0]  ;;  %v1554_v28 = vld [vmem:[%s2845_s1 + $0x2f0] sm:$0xf]  ;;  %v1370_v33 = vld [vmem:[%s2845_s1 + $0x180] sm:$0xf]  ;;  %v1307_v36 = vor.u32 %v1785_v25, %v1306_v23 }
  0x17   :  { %961 = vmatpush.bf16.msra.mxu3 %v1395_v62  ;;  %v1847_v29 = vld [vmem:[%s2845_s1 + $0x2f4] sm:$0xf0]  ;;  %v1618_v30 = vld [vmem:[%s2845_s1 + $0x370] sm:$0xf]  ;;  %v1801_v34 = vld [vmem:[%s2845_s1 + $0x184] sm:$0xf0]  ;;  %v1491_v39 = vor.u32 %v1831_v27, %v1490_v26 }
  0x18   :  { %923 = vmatpush.bf16.msra.mxu0 %v1195_v4  ;;  %v1863_v32 = vld [vmem:[%s2845_s1 + $0x374] sm:$0xf0]  ;;  %v1682_v37 = vld [vmem:[%s2845_s1 + $0x3f0] sm:$0xf]  ;;  %v1555_v40 = vor.u32 %v1847_v29, %v1554_v28  ;;  %v1482_v41 = vld [vmem:[%s2845_s1 + $0x260] sm:$0xf]  ;;  %v1371_v43 = vor.u32 %v1801_v34, %v1370_v33 }
  0x19   :  { %936 = vmatpush.bf16.msra.mxu1 %v1259_v5  ;;  %v1879_v38 = vld [vmem:[%s2845_s1 + $0x3f4] sm:$0xf0]  ;;  %v1619_v42 = vor.u32 %v1863_v32, %v1618_v30  ;;  %v1829_v44 = vld [vmem:[%s2845_s1 + $0x264] sm:$0xf0]  ;;  %v1546_v45 = vld [vmem:[%s2845_s1 + $0x2e0] sm:$0xf] }
  0x1a   :  { %949 = vmatpush.bf16.msra.mxu2 %v1323_v6  ;;  %v1845_v46 = vld [vmem:[%s2845_s1 + $0x2e4] sm:$0xf0]  ;;  %v1683_v47 = vor.u32 %v1879_v38, %v1682_v37  ;;  %v1610_v48 = vld [vmem:[%s2845_s1 + $0x360] sm:$0xf]  ;;  %v1483_v52 = vor.u32 %v1829_v44, %v1482_v41  ;;  %v1474_v54 = vld [vmem:[%s2845_s1 + $0x250] sm:$0xf] }
  0x1b   :  { %962 = vmatpush.bf16.msra.mxu3 %v1387_v10  ;;  %v1861_v49 = vld [vmem:[%s2845_s1 + $0x364] sm:$0xf0]  ;;  %v1674_v50 = vld [vmem:[%s2845_s1 + $0x3e0] sm:$0xf]  ;;  %v1547_v53 = vor.u32 %v1845_v46, %v1546_v45  ;;  %v1827_v55 = vld [vmem:[%s2845_s1 + $0x254] sm:$0xf0] }
  0x1c   :  { %924 = vmatpush.bf16.msra.mxu0 %v1187_v16  ;;  %v1877_v51 = vld [vmem:[%s2845_s1 + $0x3e4] sm:$0xf0]  ;;  %v1611_v57 = vor.u32 %v1861_v49, %v1610_v48  ;;  %v1538_v58 = vld [vmem:[%s2845_s1 + $0x2d0] sm:$0xf]  ;;  %v1843_v59 = vld [vmem:[%s2845_s1 + $0x2d4] sm:$0xf0]  ;;  %v1475_v4 = vor.u32 %v1827_v55, %v1474_v54 }
  0x1d   :  { %937 = vmatpush.bf16.msra.mxu1 %v1251_v19  ;;  %v18_v56 = vld [vmem:[%s2846_s0 + $0x8] sm:$0xff]  ;;  %v17_v61 = vld [vmem:[%s2846_s0] sm:$0xff]  ;;  %v1675_v63 = vor.u32 %v1877_v51, %v1674_v50  ;;  %v1602_v0 = vld [vmem:[%s2845_s1 + $0x350] sm:$0xf]  ;;  %v1539_v9 = vor.u32 %v1843_v59, %v1538_v58 }
  0x1e   :  { %950 = vmatpush.bf16.msra.mxu2 %v1315_v20  ;;  %v173_v60 = vunpack.c.l.b16 %v18_v56  ;;  %v174_v62 = vunpack.c.h.b16 %v18_v56  ;;  %v1859_v1 = vld [vmem:[%s2845_s1 + $0x354] sm:$0xf0]  ;;  %v171_v2 = vunpack.c.l.b16 %v17_v61  ;;  %v172_v3 = vunpack.c.h.b16 %v17_v61  ;;  %v1666_v5 = vld [vmem:[%s2845_s1 + $0x3d0] sm:$0xf]  ;;  %v1466_v10 = vld [vmem:[%s2845_s1 + $0x240] sm:$0xf] }
  0x1f   :  { %963 = vmatpush.bf16.msra.mxu3 %v1379_v24  ;;  %v1875_v6 = vld [vmem:[%s2845_s1 + $0x3d4] sm:$0xf0]  ;;  %v1603_v13 = vor.u32 %v1859_v1, %v1602_v0  ;;  %v1825_v14 = vld [vmem:[%s2845_s1 + $0x244] sm:$0xf0]  ;;  %v1530_v15 = vld [vmem:[%s2845_s1 + $0x2c0] sm:$0xf] }
  0x20   :  { %925 = vmatpush.bf16.msra.mxu0 %v1179_v31  ;;  %v2191_v7 = vpack.c.b16 %v173_v60, %v173_v60  ;;  %v2193_v8 = vpack.c.b16 %v174_v62, %v174_v62  ;;  %v2198_v11 = vpack.c.b16 %v171_v2, %v171_v2  ;;  %v2200_v12 = vpack.c.b16 %v172_v3, %v172_v3  ;;  %v1841_v16 = vld [vmem:[%s2845_s1 + $0x2c4] sm:$0xf0]  ;;  %v1594_v18 = vld [vmem:[%s2845_s1 + $0x340] sm:$0xf]  ;;  %v1458_v24 = vld [vmem:[%s2845_s1 + $0x230] sm:$0xf] }
  0x21   :  { %938 = vmatpush.bf16.msra.mxu1 %v1243_v35  ;;  %v1667_v17 = vor.u32 %v1875_v6, %v1666_v5  ;;  %v1857_v19 = vld [vmem:[%s2845_s1 + $0x344] sm:$0xf0]  ;;  %v1658_v20 = vld [vmem:[%s2845_s1 + $0x3c0] sm:$0xf]  ;;  %v1467_v22 = vor.u32 %v1825_v14, %v1466_v10  ;;  %v1531_v23 = vor.u32 %v1841_v16, %v1530_v15  ;;  %v1823_v26 = vld [vmem:[%s2845_s1 + $0x234] sm:$0xf0] }
  0x22   :  { %951 = vmatpush.bf16.msra.mxu2 %v1307_v36  ;;  %v1873_v21 = vld [vmem:[%s2845_s1 + $0x3c4] sm:$0xf0]  ;;  %v1595_v25 = vor.u32 %v1857_v19, %v1594_v18  ;;  %v1522_v27 = vld [vmem:[%s2845_s1 + $0x2b0] sm:$0xf]  ;;  %v1839_v28 = vld [vmem:[%s2845_s1 + $0x2b4] sm:$0xf0]  ;;  %v1459_v34 = vor.u32 %v1823_v26, %v1458_v24 }
  0x23   :  { %964 = vmatpush.bf16.msra.mxu3 %v1371_v43  ;;  %926 = vmatmul.bf16.vlgmr.msra.gmra.mxu0 %v2198_v11  ;;  %v1659_v29 = vor.u32 %v1873_v21, %v1658_v20  ;;  %v1586_v30 = vld [vmem:[%s2845_s1 + $0x330] sm:$0xf]  ;;  %v1855_v31 = vld [vmem:[%s2845_s1 + $0x334] sm:$0xf0]  ;;  %v1523_v35 = vor.u32 %v1839_v28, %v1522_v27  ;;  %v1450_v36 = vld [vmem:[%s2845_s1 + $0x220] sm:$0xf] }
  0x24   :  { %970 = vmatpush.bf16.msrb.mxu0 %v1491_v39  ;;  %939 = vmatmul.bf16.vlgmr.msra.gmra.mxu1 %v2200_v12  ;;  %v1650_v32 = vld [vmem:[%s2845_s1 + $0x3b0] sm:$0xf]  ;;  %v1871_v33 = vld [vmem:[%s2845_s1 + $0x3b4] sm:$0xf0]  ;;  %v1587_v37 = vor.u32 %v1855_v31, %v1586_v30  ;;  %v1821_v38 = vld [vmem:[%s2845_s1 + $0x224] sm:$0xf0] }
  0x25   :  { %983 = vmatpush.bf16.msrb.mxu1 %v1555_v40  ;;  %952 = vmatmul.bf16.vlgmr.msra.gmra.mxu2 %v2191_v7  ;;  %v1514_v39 = vld [vmem:[%s2845_s1 + $0x2a0] sm:$0xf]  ;;  %v1837_v40 = vld [vmem:[%s2845_s1 + $0x2a4] sm:$0xf0]  ;;  %v1651_v41 = vor.u32 %v1871_v33, %v1650_v32  ;;  %v1451_v46 = vor.u32 %v1821_v38, %v1450_v36  ;;  %v1442_v48 = vld [vmem:[%s2845_s1 + $0x210] sm:$0xf] }
  0x26   :  { %996 = vmatpush.bf16.msrb.mxu2 %v1619_v42  ;;  %965 = vmatmul.bf16.vlgmr.msra.gmra.mxu3 %v2193_v8  ;;  %v1578_v42 = vld [vmem:[%s2845_s1 + $0x320] sm:$0xf]  ;;  %v1853_v43 = vld [vmem:[%s2845_s1 + $0x324] sm:$0xf0]  ;;  %v1819_v50 = vld [vmem:[%s2845_s1 + $0x214] sm:$0xf0] }
  0x27   :  { %1009 = vmatpush.bf16.msrb.mxu3 %v1683_v47  ;;  %v1642_v44 = vld [vmem:[%s2845_s1 + $0x3a0] sm:$0xf]  ;;  %v1869_v45 = vld [vmem:[%s2845_s1 + $0x3a4] sm:$0xf0]  ;;  %v1515_v47 = vor.u32 %v1837_v40, %v1514_v39  ;;  %v1579_v49 = vor.u32 %v1853_v43, %v1578_v42  ;;  %v1506_v51 = vld [vmem:[%s2845_s1 + $0x290] sm:$0xf]  ;;  %v1443_v60 = vor.u32 %v1819_v50, %v1442_v48 }
  0x28   :  { %971 = vmatpush.bf16.msrb.mxu0 %v1483_v52  ;;  %v1835_v52 = vld [vmem:[%s2845_s1 + $0x294] sm:$0xf0]  ;;  %v1570_v54 = vld [vmem:[%s2845_s1 + $0x310] sm:$0xf]  ;;  %v1434_v58 = vld [vmem:[%s2845_s1 + $0x200] sm:$0xf] }
  0x29   :  { %984 = vmatpush.bf16.msrb.mxu1 %v1547_v53  ;;  %v1643_v53 = vor.u32 %v1869_v45, %v1642_v44  ;;  %v1851_v55 = vld [vmem:[%s2845_s1 + $0x314] sm:$0xf0]  ;;  %v1634_v56 = vld [vmem:[%s2845_s1 + $0x390] sm:$0xf]  ;;  %v1817_v59 = vld [vmem:[%s2845_s1 + $0x204] sm:$0xf0]  ;;  %v1507_v61 = vor.u32 %v1835_v52, %v1506_v51 }
  0x2a   :  { %997 = vmatpush.bf16.msrb.mxu2 %v1611_v57  ;;  %v1867_v57 = vld [vmem:[%s2845_s1 + $0x394] sm:$0xf0]  ;;  %v1498_v62 = vld [vmem:[%s2845_s1 + $0x280] sm:$0xf]  ;;  %v19_v0 = vld [vmem:[%s2846_s0 + $0x10] sm:$0xff]  ;;  %v1571_v1 = vor.u32 %v1851_v55, %v1570_v54 }
  0x2b   :  { %1010 = vmatpush.bf16.msrb.mxu3 %v1675_v63  ;;  %v1833_v63 = vld [vmem:[%s2845_s1 + $0x284] sm:$0xf0]  ;;  %v1562_v2 = vld [vmem:[%s2845_s1 + $0x300] sm:$0xf]  ;;  %v1635_v5 = vor.u32 %v1867_v57, %v1634_v56  ;;  %v1746_v6 = vld [vmem:[%s2845_s1 + $0x470] sm:$0xf]  ;;  %v175_v16 = vunpack.c.l.b16 %v19_v0  ;;  %v176_v26 = vunpack.c.h.b16 %v19_v0 }
  0x2c   :  { %972 = vmatpush.bf16.msrb.mxu0 %v1475_v4  ;;  %v1849_v3 = vld [vmem:[%s2845_s1 + $0x304] sm:$0xf0]  ;;  %v20_v4 = vld [vmem:[%s2846_s0 + $0x18] sm:$0xff]  ;;  %v1766_v10 = vld [vmem:[%s2845_s1 + $0x74] sm:$0xf]  ;;  %v1499_v18 = vor.u32 %v1833_v63, %v1498_v62 }
  0x2d   :  { %985 = vmatpush.bf16.msrb.mxu1 %v1539_v9  ;;  %v1895_v9 = vld [vmem:[%s2845_s1 + $0x474] sm:$0xf0]  ;;  %v1782_v14 = vld [vmem:[%s2845_s1 + $0xf4] sm:$0xf]  ;;  %v1300_v15 = vld [vmem:[%s2845_s1 + $0xf8] sm:$0xf0]  ;;  %v177_v21 = vunpack.c.l.b16 %v20_v4  ;;  %v2371_v36 = vpack.c.b16 %v175_v16, %v175_v16  ;;  %v2381_v43 = vpack.c.b16 %v176_v26, %v176_v26 }
  0x2e   :  { %998 = vmatpush.bf16.msrb.mxu2 %v1603_v13  ;;  %v1236_v13 = vld [vmem:[%s2845_s1 + $0x78] sm:$0xf0]  ;;  %v1626_v19 = vld [vmem:[%s2845_s1 + $0x380] sm:$0xf]  ;;  %v1865_v20 = vld [vmem:[%s2845_s1 + $0x384] sm:$0xf0]  ;;  %v1303_v28 = vor.u32 %v1782_v14, %v1300_v15 }
  0x2f   :  { %1011 = vmatpush.bf16.msrb.mxu3 %v1667_v17  ;;  %v1435_v17 = vor.u32 %v1817_v59, %v1434_v58  ;;  %v1798_v24 = vld [vmem:[%s2845_s1 + $0x174] sm:$0xf]  ;;  %v1239_v27 = vor.u32 %v1766_v10, %v1236_v13  ;;  %v1893_v30 = vld [vmem:[%s2845_s1 + $0x464] sm:$0xf0]  ;;  %v1764_v31 = vld [vmem:[%s2845_s1 + $0x64] sm:$0xf]  ;;  %v1627_v32 = vor.u32 %v1865_v20, %v1626_v19  ;;  %v2373_v39 = vpack.c.b16 %v177_v21, %v177_v21 }
  0x30   :  { %973 = vmatpush.bf16.msrb.mxu0 %v1467_v22  ;;  %v1563_v22 = vor.u32 %v1849_v3, %v1562_v2  ;;  %v1228_v33 = vld [vmem:[%s2845_s1 + $0x68] sm:$0xf0]  ;;  %v1762_v48 = vld [vmem:[%s2845_s1 + $0x54] sm:$0xf]  ;;  %v1220_v50 = vld [vmem:[%s2845_s1 + $0x58] sm:$0xf0] }
  0x31   :  { %986 = vmatpush.bf16.msrb.mxu1 %v1531_v23  ;;  %v1747_v23 = vor.u32 %v1895_v9, %v1746_v6  ;;  %v1356_v42 = vld [vmem:[%s2845_s1 + $0x168] sm:$0xf0]  ;;  %v1231_v44 = vor.u32 %v1764_v31, %v1228_v33  ;;  %v1778_v51 = vld [vmem:[%s2845_s1 + $0xd4] sm:$0xf]  ;;  %v1284_v52 = vld [vmem:[%s2845_s1 + $0xd8] sm:$0xf0]  ;;  %v1223_v57 = vor.u32 %v1762_v48, %v1220_v50 }
  0x32   :  { %999 = vmatpush.bf16.msrb.mxu2 %v1595_v25  ;;  %v1364_v25 = vld [vmem:[%s2845_s1 + $0x178] sm:$0xf0]  ;;  %v1794_v55 = vld [vmem:[%s2845_s1 + $0x154] sm:$0xf]  ;;  %v1287_v58 = vor.u32 %v1778_v51, %v1284_v52  ;;  %v1722_v59 = vld [vmem:[%s2845_s1 + $0x440] sm:$0xf] }
  0x33   :  { %1012 = vmatpush.bf16.msrb.mxu3 %v1659_v29  ;;  %v1738_v29 = vld [vmem:[%s2845_s1 + $0x460] sm:$0xf]  ;;  %v1367_v38 = vor.u32 %v1798_v24, %v1364_v25  ;;  %v1348_v56 = vld [vmem:[%s2845_s1 + $0x158] sm:$0xf0]  ;;  %v1212_v62 = vld [vmem:[%s2845_s1 + $0x48] sm:$0xf0] }
  0x34   :  { %974 = vmatpush.bf16.msrb.mxu0 %v1459_v34  ;;  %v1780_v34 = vld [vmem:[%s2845_s1 + $0xe4] sm:$0xf]  ;;  %v1739_v40 = vor.u32 %v1893_v30, %v1738_v29  ;;  %v1276_v0 = vld [vmem:[%s2845_s1 + $0xc8] sm:$0xf0]  ;;  %v1714_v9 = vld [vmem:[%s2845_s1 + $0x430] sm:$0xf] }
  0x35   :  { %987 = vmatpush.bf16.msrb.mxu1 %v1523_v35  ;;  %v1292_v35 = vld [vmem:[%s2845_s1 + $0xe8] sm:$0xf0]  ;;  %v1776_v63 = vld [vmem:[%s2845_s1 + $0xc4] sm:$0xf]  ;;  %v1887_v10 = vld [vmem:[%s2845_s1 + $0x434] sm:$0xf0] }
  0x36   :  { %1000 = vmatpush.bf16.msrb.mxu2 %v1587_v37  ;;  %v178_v37 = vunpack.c.h.b16 %v20_v4  ;;  %v1295_v45 = vor.u32 %v1780_v34, %v1292_v35  ;;  %v1792_v3 = vld [vmem:[%s2845_s1 + $0x144] sm:$0xf]  ;;  %v1340_v4 = vld [vmem:[%s2845_s1 + $0x148] sm:$0xf0]  ;;  %v1279_v6 = vor.u32 %v1776_v63, %v1276_v0  ;;  %v1758_v13 = vld [vmem:[%s2845_s1 + $0x34] sm:$0xf] }
  0x37   :  { %1013 = vmatpush.bf16.msrb.mxu3 %v1651_v41  ;;  %v1796_v41 = vld [vmem:[%s2845_s1 + $0x164] sm:$0xf]  ;;  %v1204_v14 = vld [vmem:[%s2845_s1 + $0x38] sm:$0xf0]  ;;  %v1774_v15 = vld [vmem:[%s2845_s1 + $0xb4] sm:$0xf] }
  0x38   :  { %975 = vmatpush.bf16.msrb.mxu0 %v1451_v46  ;;  %v1730_v46 = vld [vmem:[%s2845_s1 + $0x450] sm:$0xf]  ;;  %v1268_v16 = vld [vmem:[%s2845_s1 + $0xb8] sm:$0xf0]  ;;  %v1790_v19 = vld [vmem:[%s2845_s1 + $0x134] sm:$0xf]  ;;  %v1207_v21 = vor.u32 %v1758_v13, %v1204_v14 }
  0x39   :  { %988 = vmatpush.bf16.msrb.mxu1 %v1515_v47  ;;  %v1891_v47 = vld [vmem:[%s2845_s1 + $0x454] sm:$0xf0]  ;;  %v1332_v20 = vld [vmem:[%s2845_s1 + $0x138] sm:$0xf0]  ;;  %v1885_v24 = vld [vmem:[%s2845_s1 + $0x424] sm:$0xf0] }
  0x3a   :  { %1001 = vmatpush.bf16.msrb.mxu2 %v1579_v49  ;;  %v2393_v49 = vpack.c.b16 %v178_v37, %v178_v37  ;;  %v1731_v54 = vor.u32 %v1891_v47, %v1730_v46  ;;  %v1756_v25 = vld [vmem:[%s2845_s1 + $0x24] sm:$0xf]  ;;  %v1196_v26 = vld [vmem:[%s2845_s1 + $0x28] sm:$0xf0]  ;;  %v1335_v29 = vor.u32 %v1790_v19, %v1332_v20  ;;  %v1698_v35 = vld [vmem:[%s2845_s1 + $0x410] sm:$0xf] }
  0x3b   :  { %1014 = vmatpush.bf16.msrb.mxu3 %v1643_v53  ;;  %v1359_v53 = vor.u32 %v1796_v41, %v1356_v42  ;;  %v1788_v31 = vld [vmem:[%s2845_s1 + $0x124] sm:$0xf]  ;;  %v1199_v33 = vor.u32 %v1756_v25, %v1196_v26  ;;  %v1883_v37 = vld [vmem:[%s2845_s1 + $0x414] sm:$0xf0]  ;;  %v1770_v41 = vld [vmem:[%s2845_s1 + $0x94] sm:$0xf] }
  0x3c   :  { %976 = vmatpush.bf16.msrb.mxu0 %v1443_v60  ;;  %v1889_v60 = vld [vmem:[%s2845_s1 + $0x444] sm:$0xf0]  ;;  %v1252_v42 = vld [vmem:[%s2845_s1 + $0x98] sm:$0xf0]  ;;  %v1699_v46 = vor.u32 %v1883_v37, %v1698_v35  ;;  %v1690_v48 = vld [vmem:[%s2845_s1 + $0x400] sm:$0xf] }
  0x3d   :  { %989 = vmatpush.bf16.msrb.mxu1 %v1507_v61  ;;  %v1760_v61 = vld [vmem:[%s2845_s1 + $0x44] sm:$0xf]  ;;  %v1723_v2 = vor.u32 %v1889_v60, %v1722_v59  ;;  %v1316_v47 = vld [vmem:[%s2845_s1 + $0x118] sm:$0xf0]  ;;  %v21_v50 = vld [vmem:[%s2846_s0 + $0x20] sm:$0xf]  ;;  %v1255_v52 = vor.u32 %v1770_v41, %v1252_v42 }
  0x3e   :  { %1002 = vmatpush.bf16.msrb.mxu2 %v1571_v1  ;;  %v1351_v1 = vor.u32 %v1794_v55, %v1348_v56  ;;  %v1180_v55 = vld [vmem:[%s2845_s1 + $0x8] sm:$0xf0]  ;;  %v1768_v56 = vld [vmem:[%s2845_s1 + $0x84] sm:$0xf]  ;;  %v1428_v60 = vld [vmem:[%s2845_s1 + $0x1f8] sm:$0xf0]  ;;  %v179_v63 = vunpack.c.l.b16 %v21_v50 }
  0x3f   :  { %1015 = vmatpush.bf16.msrb.mxu3 %v1635_v5  ;;  %v1215_v5 = vor.u32 %v1760_v61, %v1212_v62  ;;  %v1830_v61 = vld [vmem:[%s2845_s1 + $0x274] sm:$0xf]  ;;  %v1492_v62 = vld [vmem:[%s2845_s1 + $0x278] sm:$0xf0]  ;;  %v1828_v19 = vld [vmem:[%s2845_s1 + $0x264] sm:$0xf] }
  0x40   :  { %977 = vmatpush.bf16.msrb.mxu0 %v1435_v17  ;;  %v1343_v17 = vor.u32 %v1792_v3, %v1340_v4  ;;  %v1862_v13 = vld [vmem:[%s2845_s1 + $0x374] sm:$0xf]  ;;  %v1620_v14 = vld [vmem:[%s2845_s1 + $0x378] sm:$0xf0]  ;;  %v1484_v20 = vld [vmem:[%s2845_s1 + $0x268] sm:$0xf0] }
  0x41   :  { %990 = vmatpush.bf16.msrb.mxu1 %v1499_v18  ;;  %v1715_v18 = vor.u32 %v1887_v10, %v1714_v9  ;;  %v1495_v10 = vor.u32 %v1830_v61, %v1492_v62  ;;  %v1487_v26 = vor.u32 %v1828_v19, %v1484_v20  ;;  %v1540_v35 = vld [vmem:[%s2845_s1 + $0x2d8] sm:$0xf0]  ;;  %v1858_v41 = vld [vmem:[%s2845_s1 + $0x354] sm:$0xf] }
  0x42   :  { %1003 = vmatpush.bf16.msrb.mxu2 %v1563_v22  ;;  %v1271_v22 = vor.u32 %v1774_v15, %v1268_v16  ;;  %v1812_v15 = vld [vmem:[%s2845_s1 + $0x1e4] sm:$0xf]  ;;  %v1604_v42 = vld [vmem:[%s2845_s1 + $0x358] sm:$0xf0]  ;;  %v1802_v19 = vld [vmem:[%s2845_s1 + $0x194] sm:$0xf] }
  0x43   :  { %1016 = vmatpush.bf16.msrb.mxu3 %v1627_v32  ;;  %978 = vmatmul.bf16.vlgmr.msrb.gmra.mxu0 %v2371_v36  ;;  %v1324_v32 = vld [vmem:[%s2845_s1 + $0x128] sm:$0xf0]  ;;  %v1607_v50 = vor.u32 %v1858_v41, %v1604_v42  ;;  %v1684_v41 = vld [vmem:[%s2845_s1 + $0x3f8] sm:$0xf0] }
  0x44   :  { %1022 = vmatpush.bf16.msra.mxu0 %v1747_v23  ;;  %991 = vmatmul.bf16.vlgmr.msrb.gmra.mxu1 %v2381_v43  ;;  %v1706_v23 = vld [vmem:[%s2845_s1 + $0x420] sm:$0xf] }
  0x45   :  { %1035 = vmatpush.bf16.msra.mxu1 %v1239_v27  ;;  %1004 = vmatmul.bf16.vlgmr.msrb.gmra.mxu2 %v2373_v39  ;;  %v1772_v27 = vld [vmem:[%s2845_s1 + $0xa4] sm:$0xf]  ;;  %v1707_v30 = vor.u32 %v1885_v24, %v1706_v23  ;;  %v1548_v23 = vld [vmem:[%s2845_s1 + $0x2e8] sm:$0xf0]  ;;  %v1623_v24 = vor.u32 %v1862_v13, %v1620_v14 }
  0x46   :  { %1048 = vmatpush.bf16.msra.mxu2 %v1303_v28  ;;  %1017 = vmatmul.bf16.vlgmr.msrb.gmra.mxu3 %v2393_v49  ;;  %v1260_v28 = vld [vmem:[%s2845_s1 + $0xa8] sm:$0xf0] }
  0x47   :  { %1061 = vmatpush.bf16.msra.mxu3 %v1367_v38  ;;  %v1263_v34 = vor.u32 %v1772_v27, %v1260_v28  ;;  %v1754_v38 = vld [vmem:[%s2845_s1 + $0x14] sm:$0xf]  ;;  %v1860_v27 = vld [vmem:[%s2845_s1 + $0x364] sm:$0xf]  ;;  %v1612_v28 = vld [vmem:[%s2845_s1 + $0x368] sm:$0xf0] }
  0x48   :  { %1023 = vmatpush.bf16.msra.mxu0 %v1739_v40  ;;  %v1188_v40 = vld [vmem:[%s2845_s1 + $0x18] sm:$0xf0]  ;;  %v1615_v37 = vor.u32 %v1860_v27, %v1612_v28  ;;  %v1850_v27 = vld [vmem:[%s2845_s1 + $0x314] sm:$0xf] }
  0x49   :  { %1036 = vmatpush.bf16.msra.mxu1 %v1231_v44  ;;  %v1327_v44 = vor.u32 %v1788_v31, %v1324_v32  ;;  %v1191_v51 = vor.u32 %v1754_v38, %v1188_v40  ;;  %v1412_v31 = vld [vmem:[%s2845_s1 + $0x1d8] sm:$0xf0]  ;;  %v1826_v32 = vld [vmem:[%s2845_s1 + $0x254] sm:$0xf] }
  0x4a   :  { %1049 = vmatpush.bf16.msra.mxu2 %v1295_v45  ;;  %v1786_v45 = vld [vmem:[%s2845_s1 + $0x114] sm:$0xf] }
  0x4b   :  { %1062 = vmatpush.bf16.msra.mxu3 %v1359_v53  ;;  %v1881_v53 = vld [vmem:[%s2845_s1 + $0x404] sm:$0xf0]  ;;  %v1319_v59 = vor.u32 %v1786_v45, %v1316_v47  ;;  %v1824_v45 = vld [vmem:[%s2845_s1 + $0x244] sm:$0xf] }
  0x4c   :  { %1024 = vmatpush.bf16.msra.mxu0 %v1731_v54  ;;  %v1752_v54 = vld [vmem:[%s2845_s1 + $0x4] sm:$0xf]  ;;  %v1691_v0 = vor.u32 %v1881_v53, %v1690_v48  ;;  %v1532_v48 = vld [vmem:[%s2845_s1 + $0x2c8] sm:$0xf0] }
  0x4d   :  { %1037 = vmatpush.bf16.msra.mxu1 %v1223_v57  ;;  %v1244_v57 = vld [vmem:[%s2845_s1 + $0x88] sm:$0xf0]  ;;  %v1183_v3 = vor.u32 %v1752_v54, %v1180_v55  ;;  %v1840_v47 = vld [vmem:[%s2845_s1 + $0x2c4] sm:$0xf]  ;;  %v1806_v54 = vld [vmem:[%s2845_s1 + $0x1b4] sm:$0xf] }
  0x4e   :  { %1050 = vmatpush.bf16.msra.mxu2 %v1287_v58  ;;  %v1814_v58 = vld [vmem:[%s2845_s1 + $0x1f4] sm:$0xf]  ;;  %v1247_v4 = vor.u32 %v1768_v56, %v1244_v57  ;;  %v1856_v53 = vld [vmem:[%s2845_s1 + $0x344] sm:$0xf]  ;;  %v1535_v55 = vor.u32 %v1840_v47, %v1532_v48  ;;  %v1396_v56 = vld [vmem:[%s2845_s1 + $0x1b8] sm:$0xf0] }
  0x4f   :  { %1063 = vmatpush.bf16.msra.mxu3 %v1351_v1  ;;  %v1846_v1 = vld [vmem:[%s2845_s1 + $0x2f4] sm:$0xf]  ;;  %v1431_v9 = vor.u32 %v1814_v58, %v1428_v60  ;;  %v1460_v58 = vld [vmem:[%s2845_s1 + $0x238] sm:$0xf0]  ;;  %v1399_v62 = vor.u32 %v1806_v54, %v1396_v56  ;;  %v1564_v47 = vld [vmem:[%s2845_s1 + $0x308] sm:$0xf0] }
  0x50   :  { %1025 = vmatpush.bf16.msra.mxu0 %v1723_v2  ;;  %v1556_v2 = vld [vmem:[%s2845_s1 + $0x2f8] sm:$0xf0]  ;;  %v1822_v57 = vld [vmem:[%s2845_s1 + $0x234] sm:$0xf]  ;;  %v1892_v54 = vld [vmem:[%s2845_s1 + $0x464] sm:$0xf] }
  0x51   :  { %1038 = vmatpush.bf16.msra.mxu1 %v1215_v5  ;;  %v1784_v5 = vld [vmem:[%s2845_s1 + $0x104] sm:$0xf]  ;;  %v1559_v16 = vor.u32 %v1846_v1, %v1556_v2  ;;  %v1524_v60 = vld [vmem:[%s2845_s1 + $0x2b8] sm:$0xf0] }
  0x52   :  { %1051 = vmatpush.bf16.msra.mxu2 %v1279_v6  ;;  %v1308_v6 = vld [vmem:[%s2845_s1 + $0x108] sm:$0xf0]  ;;  %v1588_v1 = vld [vmem:[%s2845_s1 + $0x338] sm:$0xf0]  ;;  %v1804_v2 = vld [vmem:[%s2845_s1 + $0x1a4] sm:$0xf] }
  0x53   :  { %1064 = vmatpush.bf16.msra.mxu3 %v1343_v17  ;;  %v2563_v17 = vpack.c.b16 %v179_v63, %v179_v63  ;;  %v1463_v63 = vor.u32 %v1822_v57, %v1460_v58  ;;  %v1874_v58 = vld [vmem:[%s2845_s1 + $0x3d4] sm:$0xf] }
  0x54   :  { %1026 = vmatpush.bf16.msra.mxu0 %v1715_v18  ;;  %v1420_v18 = vld [vmem:[%s2845_s1 + $0x1e8] sm:$0xf0] }
  0x55   :  { %1039 = vmatpush.bf16.msra.mxu1 %v1207_v21  ;;  %v1311_v21 = vor.u32 %v1784_v5, %v1308_v6  ;;  %v1423_v25 = vor.u32 %v1812_v15, %v1420_v18  ;;  %v1820_v5 = vld [vmem:[%s2845_s1 + $0x224] sm:$0xf]  ;;  %v1452_v6 = vld [vmem:[%s2845_s1 + $0x228] sm:$0xf0] }
  0x56   :  { %1052 = vmatpush.bf16.msra.mxu2 %v1271_v22  ;;  %v1844_v22 = vld [vmem:[%s2845_s1 + $0x2e4] sm:$0xf]  ;;  %v1455_v15 = vor.u32 %v1820_v5, %v1452_v6  ;;  %v1580_v18 = vld [vmem:[%s2845_s1 + $0x328] sm:$0xf0]  ;;  %v1716_v5 = vld [vmem:[%s2845_s1 + $0x438] sm:$0xf0] }
  0x57   :  { %1065 = vmatpush.bf16.msra.mxu3 %v1335_v29  ;;  %v1810_v29 = vld [vmem:[%s2845_s1 + $0x1d4] sm:$0xf] }
  0x58   :  { %1027 = vmatpush.bf16.msra.mxu0 %v1707_v30  ;;  %v1551_v30 = vor.u32 %v1844_v22, %v1548_v23  ;;  %v1415_v38 = vor.u32 %v1810_v29, %v1412_v31  ;;  %v1818_v22 = vld [vmem:[%s2845_s1 + $0x214] sm:$0xf]  ;;  %v1444_v23 = vld [vmem:[%s2845_s1 + $0x218] sm:$0xf0]  ;;  %v1800_v31 = vld [vmem:[%s2845_s1 + $0x184] sm:$0xf] }
  0x59   :  { %1040 = vmatpush.bf16.msra.mxu1 %v1199_v33  ;;  %v1476_v33 = vld [vmem:[%s2845_s1 + $0x258] sm:$0xf0]  ;;  %v1447_v29 = vor.u32 %v1818_v22, %v1444_v23 }
  0x5a   :  { %1053 = vmatpush.bf16.msra.mxu2 %v1263_v34  ;;  %v1842_v34 = vld [vmem:[%s2845_s1 + $0x2d4] sm:$0xf]  ;;  %v1479_v40 = vor.u32 %v1826_v32, %v1476_v33  ;;  %v1372_v32 = vld [vmem:[%s2845_s1 + $0x188] sm:$0xf0]  ;;  %v1700_v22 = vld [vmem:[%s2845_s1 + $0x418] sm:$0xf0] }
  0x5b   :  { %1066 = vmatpush.bf16.msra.mxu3 %v1327_v44  ;;  %v1543_v44 = vor.u32 %v1842_v34, %v1540_v35  ;;  %v1816_v34 = vld [vmem:[%s2845_s1 + $0x204] sm:$0xf]  ;;  %v1436_v35 = vld [vmem:[%s2845_s1 + $0x208] sm:$0xf0] }
  0x5c   :  { %1028 = vmatpush.bf16.msra.mxu0 %v1699_v46  ;;  %v1468_v46 = vld [vmem:[%s2845_s1 + $0x248] sm:$0xf0] }
  0x5d   :  { %1041 = vmatpush.bf16.msra.mxu1 %v1191_v51 }
  0x5e   :  { %1054 = vmatpush.bf16.msra.mxu2 %v1255_v52  ;;  %v1471_v52 = vor.u32 %v1824_v45, %v1468_v46  ;;  %v1439_v45 = vor.u32 %v1816_v34, %v1436_v35  ;;  %v1848_v46 = vld [vmem:[%s2845_s1 + $0x304] sm:$0xf] }
  0x5f   :  { %1067 = vmatpush.bf16.msra.mxu3 %v1319_v59  ;;  %v1838_v59 = vld [vmem:[%s2845_s1 + $0x2b4] sm:$0xf] }
  0x60   :  { %1029 = vmatpush.bf16.msra.mxu0 %v1691_v0  ;;  %v1854_v0 = vld [vmem:[%s2845_s1 + $0x334] sm:$0xf] }
  0x61   :  { %1042 = vmatpush.bf16.msra.mxu1 %v1183_v3  ;;  %v1527_v3 = vor.u32 %v1838_v59, %v1524_v60  ;;  %v1591_v13 = vor.u32 %v1854_v0, %v1588_v1  ;;  %v1668_v59 = vld [vmem:[%s2845_s1 + $0x3d8] sm:$0xf0]  ;;  %v1890_v60 = vld [vmem:[%s2845_s1 + $0x454] sm:$0xf]  ;;  %v1660_v0 = vld [vmem:[%s2845_s1 + $0x3c8] sm:$0xf0] }
  0x62   :  { %1055 = vmatpush.bf16.msra.mxu2 %v1247_v4  ;;  %v1388_v4 = vld [vmem:[%s2845_s1 + $0x1a8] sm:$0xf0] }
  0x63   :  { %1030 = vmatmul.bf16.vlgmr.msra.gmra.mxu0 %v2563_v17  ;;  %1068 = vmatpush.bf16.msra.mxu3 %v1311_v21  ;;  %v1391_v14 = vor.u32 %v1804_v2, %v1388_v4  ;;  %v1380_v21 = vld [vmem:[%s2845_s1 + $0x198] sm:$0xf0]  ;;  %v1870_v2 = vld [vmem:[%s2845_s1 + $0x3b4] sm:$0xf] }
  0x64   :  { %1074 = vmatpush.bf16.msrb.mxu0 %v1431_v9  ;;  %1043 = vmatmul.bf16.vlgmr.msra.gmra.mxu1 %v2198_v11  ;;  %v1404_v11 = vld [vmem:[%s2845_s1 + $0x1c8] sm:$0xf0]  ;;  %v1836_v9 = vld [vmem:[%s2845_s1 + $0x2a4] sm:$0xf]  ;;  %v1383_v28 = vor.u32 %v1802_v19, %v1380_v21  ;;  %v1886_v4 = vld [vmem:[%s2845_s1 + $0x434] sm:$0xf] }
  0x65   :  { %1087 = vmatpush.bf16.msrb.mxu1 %v1495_v10  ;;  %1056 = vmatmul.bf16.vlgmr.msra.gmra.mxu2 %v2200_v12  ;;  %v1808_v12 = vld [vmem:[%s2845_s1 + $0x1c4] sm:$0xf]  ;;  %v1516_v10 = vld [vmem:[%s2845_s1 + $0x2a8] sm:$0xf0]  ;;  %v1866_v19 = vld [vmem:[%s2845_s1 + $0x394] sm:$0xf] }
  0x66   :  { %1100 = vmatpush.bf16.msrb.mxu2 %v1559_v16  ;;  %1069 = vmatmul.bf16.vlgmr.msra.gmra.mxu3 %v2191_v7  ;;  %v1407_v51 = vor.u32 %v1808_v12, %v1404_v11  ;;  %v1596_v7 = vld [vmem:[%s2845_s1 + $0x348] sm:$0xf0]  ;;  %v1852_v16 = vld [vmem:[%s2845_s1 + $0x324] sm:$0xf]  ;;  %v1519_v20 = vor.u32 %v1836_v9, %v1516_v10  ;;  %v1894_v12 = vld [vmem:[%s2845_s1 + $0x474] sm:$0xf]  ;;  %v1375_v11 = vor.u32 %v1800_v31, %v1372_v32 }
  0x67   :  { %1113 = vmatpush.bf16.msrb.mxu3 %v1623_v24  ;;  %v1599_v61 = vor.u32 %v1856_v53, %v1596_v7  ;;  %v1834_v24 = vld [vmem:[%s2845_s1 + $0x294] sm:$0xf]  ;;  %v1676_v53 = vld [vmem:[%s2845_s1 + $0x3e8] sm:$0xf0]  ;;  %v1567_v7 = vor.u32 %v1848_v46, %v1564_v47  ;;  %v1719_v9 = vor.u32 %v1886_v4, %v1716_v5  ;;  %v1868_v10 = vld [vmem:[%s2845_s1 + $0x3a4] sm:$0xf] }
  0x68   :  { %1075 = vmatpush.bf16.msrb.mxu0 %v1423_v25  ;;  %v1508_v25 = vld [vmem:[%s2845_s1 + $0x298] sm:$0xf0]  ;;  %v1882_v21 = vld [vmem:[%s2845_s1 + $0x414] sm:$0xf]  ;;  %v1152_v5 = vld [vmem:[%s2847_s2] sm:$0x3] }
  0x69   :  { %1088 = vmatpush.bf16.msrb.mxu1 %v1487_v26  ;;  %v1583_v26 = vor.u32 %v1852_v16, %v1580_v18  ;;  %v1511_v33 = vor.u32 %v1834_v24, %v1508_v25  ;;  %v1703_v24 = vor.u32 %v1882_v21, %v1700_v22  ;;  %v1864_v25 = vld [vmem:[%s2845_s1 + $0x384] sm:$0xf]  ;;  %v1155_v21 = vperm.slane %v1152_v5, 1 }
  0x6a   :  { %1101 = vmatpush.bf16.msrb.mxu2 %v1551_v30  ;;  %v1572_v30 = vld [vmem:[%s2845_s1 + $0x318] sm:$0xf0] }
  0x6b   :  { %1114 = vmatpush.bf16.msrb.mxu3 %v1615_v37  ;;  %v1832_v37 = vld [vmem:[%s2845_s1 + $0x284] sm:$0xf]  ;;  %v1575_v42 = vor.u32 %v1850_v27, %v1572_v30 }
  0x6c   :  { %1076 = vmatpush.bf16.msrb.mxu0 %v1415_v38  ;;  %v1500_v38 = vld [vmem:[%s2845_s1 + $0x288] sm:$0xf0]  ;;  %v1880_v27 = vld [vmem:[%s2845_s1 + $0x404] sm:$0xf] }
  0x6d   :  { %1089 = vmatpush.bf16.msrb.mxu1 %v1479_v40  ;;  %v1878_v40 = vld [vmem:[%s2845_s1 + $0x3f4] sm:$0xf]  ;;  %v1503_v48 = vor.u32 %v1832_v37, %v1500_v38 }
  0x6e   :  { %1102 = vmatpush.bf16.msrb.mxu2 %v1543_v44  ;;  %v1748_v44 = vld [vmem:[%s2845_s1 + $0x478] sm:$0xf0] }
  0x6f   :  { %1115 = vmatpush.bf16.msrb.mxu3 %v1607_v50  ;;  %v1687_v50 = vor.u32 %v1878_v40, %v1684_v41 }
  0x70   :  { %1077 = vmatpush.bf16.msrb.mxu0 %v1407_v51  ;;  %v1751_v51 = vor.u32 %v1894_v12, %v1748_v44 }
  0x71   :  { %1090 = vmatpush.bf16.msrb.mxu1 %v1471_v52  ;;  %v1876_v52 = vld [vmem:[%s2845_s1 + $0x3e4] sm:$0xf] }
  0x72   :  { %1103 = vmatpush.bf16.msrb.mxu2 %v1535_v55  ;;  %v1740_v55 = vld [vmem:[%s2845_s1 + $0x468] sm:$0xf0]  ;;  %v1679_v56 = vor.u32 %v1876_v52, %v1676_v53 }
  0x73   :  { %1116 = vmatpush.bf16.msrb.mxu3 %v1599_v61  ;;  %v1743_v57 = vor.u32 %v1892_v54, %v1740_v55  ;;  %v1732_v61 = vld [vmem:[%s2845_s1 + $0x458] sm:$0xf0] }
  0x74   :  { %1078 = vmatpush.bf16.msrb.mxu0 %v1399_v62  ;;  %v1671_v62 = vor.u32 %v1874_v58, %v1668_v59 }
  0x75   :  { %1091 = vmatpush.bf16.msrb.mxu1 %v1463_v63  ;;  %v1735_v63 = vor.u32 %v1890_v60, %v1732_v61 }
  0x76   :  { %1104 = vmatpush.bf16.msrb.mxu2 %v1527_v3  ;;  %v1652_v3 = vld [vmem:[%s2845_s1 + $0x3b8] sm:$0xf0] }
  0x77   :  { %1117 = vmatpush.bf16.msrb.mxu3 %v1591_v13  ;;  %v1655_v6 = vor.u32 %v1870_v2, %v1652_v3  ;;  %v1644_v13 = vld [vmem:[%s2845_s1 + $0x3a8] sm:$0xf0] }
  0x78   :  { %1079 = vmatpush.bf16.msrb.mxu0 %v1391_v14  ;;  %v1884_v14 = vld [vmem:[%s2845_s1 + $0x424] sm:$0xf]  ;;  %v1647_v16 = vor.u32 %v1868_v10, %v1644_v13  ;;  %v1154_v10 = vperm.slane %v1152_v5, 0  ;;  %v1160_v13 = vld [vmem:[%s2848_s3] sm:$0x3] }
  0x79   :  { %1092 = vmatpush.bf16.msrb.mxu1 %v1455_v15  ;;  %v1708_v15 = vld [vmem:[%s2845_s1 + $0x428] sm:$0xf0] }
  0x7a   :  { %1105 = vmatpush.bf16.msrb.mxu2 %v1519_v20  ;;  %v1711_v18 = vor.u32 %v1884_v14, %v1708_v15  ;;  %v1636_v20 = vld [vmem:[%s2845_s1 + $0x398] sm:$0xf0] }
  0x7b   :  { %1118 = vmatpush.bf16.msrb.mxu3 %v1583_v26  ;;  %v1639_v23 = vor.u32 %v1866_v19, %v1636_v20  ;;  %v1628_v26 = vld [vmem:[%s2845_s1 + $0x388] sm:$0xf0] }
  0x7c   :  { %1080 = vmatpush.bf16.msrb.mxu0 %v1383_v28  ;;  %v1692_v28 = vld [vmem:[%s2845_s1 + $0x408] sm:$0xf0] }
  0x7d   :  { %1093 = vmatpush.bf16.msrb.mxu1 %v1447_v29  ;;  %v1631_v29 = vor.u32 %v1864_v25, %v1628_v26  ;;  %v1695_v30 = vor.u32 %v1880_v27, %v1692_v28 }
  0x7e   :  { %1106 = vmatpush.bf16.msrb.mxu2 %v1511_v33 }
  0x7f   :  { %1119 = vmatpush.bf16.msrb.mxu3 %v1575_v42 }
  0x80   :  { %1081 = vmatpush.bf16.msrb.mxu0 %v1375_v11 }
  0x81   :  { %1094 = vmatpush.bf16.msrb.mxu1 %v1439_v45 }
  0x82   :  { %1107 = vmatpush.bf16.msrb.mxu2 %v1503_v48 }
  0x83   :  { %1120 = vmatpush.bf16.msrb.mxu3 %v1567_v7  ;;  %1082 = vmatmul.bf16.vlgmr.msrb.gmra.mxu0 %v2193_v8  ;;  %v1872_v8 = vld [vmem:[%s2845_s1 + $0x3c4] sm:$0xf] }
  0x84   :  { %1126 = vmatpush.bf16.msra.mxu0 %v1687_v50  ;;  %1095 = vmatmul.bf16.vlgmr.msrb.gmra.mxu1 %v2371_v36  ;;  %v1724_v36 = vld [vmem:[%s2845_s1 + $0x448] sm:$0xf0]  ;;  %v1663_v1 = vor.u32 %v1872_v8, %v1660_v0 }
  0x85   :  { %1139 = vmatpush.bf16.msra.mxu1 %v1751_v51  ;;  %1108 = vmatmul.bf16.vlgmr.msrb.gmra.mxu2 %v2381_v43  ;;  %v1888_v43 = vld [vmem:[%s2845_s1 + $0x444] sm:$0xf] }
  0x86   :  { %1121 = vmatmul.bf16.vlgmr.msrb.gmra.mxu3 %v2373_v39  ;;  %v1727_v39 = vor.u32 %v1888_v43, %v1724_v36 }
  0x88   :  { %1127 = vmatpush.bf16.msra.mxu0 %v1679_v56 }
  0x89   :  { %1140 = vmatpush.bf16.msra.mxu1 %v1743_v57 }
  0x8c   :  { %1128 = vmatpush.bf16.msra.mxu0 %v1671_v62 }
  0x8d   :  { %1141 = vmatpush.bf16.msra.mxu1 %v1735_v63 }
  0x90   :  { %1129 = vmatpush.bf16.msra.mxu0 %v1663_v1 }
  0x91   :  { %1142 = vmatpush.bf16.msra.mxu1 %v1727_v39 }
  0x94   :  { %1130 = vmatpush.bf16.msra.mxu0 %v1655_v6 }
  0x95   :  { %1143 = vmatpush.bf16.msra.mxu1 %v1719_v9 }
  0x98   :  { %1131 = vmatpush.bf16.msra.mxu0 %v1647_v16 }
  0x99   :  { %1144 = vmatpush.bf16.msra.mxu1 %v1711_v18  ;;  %v1162_v18 = vperm.slane %v1160_v13, 0 }
  0x9c   :  { %1132 = vmatpush.bf16.msra.mxu0 %v1639_v23  ;;  %v1163_v23 = vperm.slane %v1160_v13, 1 }
  0x9d   :  { %1145 = vmatpush.bf16.msra.mxu1 %v1703_v24 }
  0xa0   :  { %1133 = vmatpush.bf16.msra.mxu0 %v1631_v29  ;;  %v927_v31 = vpop.f32.mrf.mxu0 }
  0xa1   :  { %1146 = vmatpush.bf16.msra.mxu1 %v1695_v30  ;;  %v940_v32 = vpop.f32.mrf.mxu1 }
  0xa2   :  { %v941_v33 = vadd.f32 %v940_v32, %v927_v31 }
  0xa3   :  { %1134 = vmatmul.bf16.vlgmr.msra.gmra.mxu0 %v2393_v49 }
  0xa4   :  { %1147 = vmatmul.bf16.vlgmr.msra.gmra.mxu1 %v2563_v17 }
  0xa8   :  { %v953_v35 = vpop.f32.mrf.mxu2  ;;  %v929_v40 = vpop.f32.mrf.mxu0 }
  0xa9   :  { %v966_v34 = vpop.f32.mrf.mxu3  ;;  %v954_v37 = vadd.f32 %v953_v35, %v941_v33  ;;  %v942_v41 = vpop.f32.mrf.mxu1 }
  0xab   :  { %v967_v38 = vadd.f32 %v966_v34, %v954_v37 }
  0xb0   :  { %v955_v12 = vpop.f32.mrf.mxu2 }
  0xb1   :  { %v968_v42 = vpop.f32.mrf.mxu3 }
  0xc0   :  { %v979_v44 = vpop.f32.mrf.mxu0 }
  0xc1   :  { %v980_v11 = vadd.f32 %v979_v44, %v967_v38  ;;  %v992_v45 = vpop.f32.mrf.mxu1 }
  0xc3   :  { %v993_v46 = vadd.f32 %v992_v45, %v980_v11 }
  0xc8   :  { %v1005_v47 = vpop.f32.mrf.mxu2  ;;  %v981_v49 = vpop.f32.mrf.mxu0 }
  0xc9   :  { %v1006_v48 = vadd.f32 %v1005_v47, %v993_v46  ;;  %v1018_v50 = vpop.f32.mrf.mxu3  ;;  %v994_v17 = vpop.f32.mrf.mxu1 }
  0xcb   :  { %v1019_v51 = vadd.f32 %v1018_v50, %v1006_v48 }
  0xd0   :  { %v1007_v52 = vpop.f32.mrf.mxu2 }
  0xd1   :  { %v1020_v53 = vpop.f32.mrf.mxu3 }
  0xe0   :  { %v1031_v7 = vpop.f32.mrf.mxu0 }
  0xe1   :  { %v1044_v54 = vpop.f32.mrf.mxu1  ;;  %v1032_v9 = vadd.f32 %v1031_v7, %v1019_v51 }
  0xe3   :  { %v1158_v16 = vmul.f32 %v1154_v10, %v1032_v9 }
  0xe5   :  { %v1166_v24 = vadd.f32 %v1162_v18, %v1158_v16 }
  0xe7   :  { %v1168_v28 = vmax.f32 %v1166_v24, 0.0 }
  0xe8   :  { %v1057_v55 = vpop.f32.mrf.mxu2  ;;  %v1033_v56 = vpop.f32.mrf.mxu0 }
  0xe9   :  { %v1070_v57 = vpop.f32.mrf.mxu3  ;;  %v1046_v58 = vpop.f32.mrf.mxu1  ;;  %v1058_v8 = vadd.f32 %v1057_v55, %v1044_v54 }
  0xeb   :  { %v1071_v1 = vadd.f32 %v1070_v57, %v1058_v8 }
  0xf0   :  { %v1059_v59 = vpop.f32.mrf.mxu2 }
  0xf1   :  { %v1072_v60 = vpop.f32.mrf.mxu3 }
 0x100   :  { %v1083_v61 = vpop.f32.mrf.mxu0 }
 0x101   :  { %v1096_v62 = vpop.f32.mrf.mxu1  ;;  %v1084_v2 = vadd.f32 %v1083_v61, %v1071_v1 }
 0x103   :  { %v1097_v4 = vadd.f32 %v1096_v62, %v1084_v2 }
 0x108   :  { %v1109_v63 = vpop.f32.mrf.mxu2  ;;  %v1085_v0 = vpop.f32.mrf.mxu0 }
 0x109   :  { %v1122_v43 = vpop.f32.mrf.mxu3  ;;  %v1098_v36 = vpop.f32.mrf.mxu1  ;;  %v1110_v6 = vadd.f32 %v1109_v63, %v1097_v4 }
 0x10b   :  { %v1123_v14 = vadd.f32 %v1122_v43, %v1110_v6 }
 0x110   :  { %v1111_v39 = vpop.f32.mrf.mxu2 }
 0x111   :  { %v1124_v3 = vpop.f32.mrf.mxu3 }
 0x120   :  { %v1135_v15 = vpop.f32.mrf.mxu0 }
 0x121   :  { %v1136_v19 = vadd.f32 %v1135_v15, %v1123_v14  ;;  %v1148_v20 = vpop.f32.mrf.mxu1 }
 0x123   :  { %v1149_v22 = vadd.f32 %v1148_v20, %v1136_v19 }
 0x125   :  { %v1159_v25 = vmul.f32 %v1155_v21, %v1149_v22 }
 0x127   :  { %v1167_v26 = vadd.f32 %v1163_v23, %v1159_v25 }
 0x128   :  { %v1137_v27 = vpop.f32.mrf.mxu0 }
 0x129   :  { %v1169_v29 = vmax.f32 %v1167_v26, 0.0  ;;  %v1150_v30 = vpop.f32.mrf.mxu1 }
 0x12b   :  { %v1170_v31 = vpack.c.bf16 %v1169_v29, %v1168_v28 }
 0x12d   :  { %1171 = vst [vmem:[%s2849_s4] sm:$0xff] %v1170_v31 }

// kernel: cnn_planner_forward.30
= control target key start
LH: loop header
LB: loop body
LE: loop exit
PB: predicated region body
PF: predicated region fallthrough
CT: control target
= control target key end

     0   :  { %s363_s1 = inlined_call_operand.vmem [shape: bf16[256,128], index: 1, kind: input, shape index: {}]   ;;  %s364_s0 = inlined_call_operand.vmem [shape: bf16[8,256], index: 0, kind: input, shape index: {}]   ;;  %s365_s2 = inlined_call_operand.vmem [shape: f32[1,128], index: 2, kind: input, shape index: {}]   ;;  %s366_s3 = inlined_call_operand.vmem [shape: f32[1,128], index: 3, kind: input, shape index: {}]   ;;  %s367_s4 = inlined_call_operand.vmem [shape: bf16[8,128], index: 4, kind: output, shape index: {}]  }
   0x1   :  { %v267_v0 = vld [vmem:[%s363_s1 + $0x38] sm:$0xff]  ;;  %v266_v2 = vld [vmem:[%s363_s1 + $0x30] sm:$0xff]  ;;  %v265_v4 = vld [vmem:[%s363_s1 + $0x28] sm:$0xff] }
   0x2   :  { %v275_v1 = vld [vmem:[%s363_s1 + $0x78] sm:$0xff]  ;;  %153 = vmatpush.bf16.msra.mxu0 %v267_v0  ;;  %v274_v3 = vld [vmem:[%s363_s1 + $0x70] sm:$0xff]  ;;  %v273_v5 = vld [vmem:[%s363_s1 + $0x68] sm:$0xff] }
   0x3   :  { %166 = vmatpush.bf16.msra.mxu1 %v275_v1  ;;  %v264_v6 = vld [vmem:[%s363_s1 + $0x20] sm:$0xff]  ;;  %v263_v8 = vld [vmem:[%s363_s1 + $0x18] sm:$0xff]  ;;  %v262_v10 = vld [vmem:[%s363_s1 + $0x10] sm:$0xff] }
   0x4   :  { %v272_v7 = vld [vmem:[%s363_s1 + $0x60] sm:$0xff]  ;;  %v271_v9 = vld [vmem:[%s363_s1 + $0x58] sm:$0xff]  ;;  %v270_v11 = vld [vmem:[%s363_s1 + $0x50] sm:$0xff] }
   0x5   :  { %v261_v12 = vld [vmem:[%s363_s1 + $0x8] sm:$0xff]  ;;  %v17_v14 = vld [vmem:[%s364_s0] sm:$0xff] }
   0x6   :  { %154 = vmatpush.bf16.msra.mxu0 %v266_v2  ;;  %v269_v13 = vld [vmem:[%s363_s1 + $0x48] sm:$0xff]  ;;  %v51_v15 = vunpack.c.l.b16 %v17_v14  ;;  %v52_v16 = vunpack.c.h.b16 %v17_v14  ;;  %v260_v17 = vld [vmem:[%s363_s1] sm:$0xff] }
   0x7   :  { %167 = vmatpush.bf16.msra.mxu1 %v274_v3  ;;  %v268_v18 = vld [vmem:[%s363_s1 + $0x40] sm:$0xff] }
   0x8   :  { %v53_v19 = vpack.c.b16 %v51_v15, %v51_v15  ;;  %v54_v20 = vpack.c.b16 %v52_v16, %v52_v16  ;;  %v276_v21 = vld [vmem:[%s365_s2] ss:$0 sm:$0xff] }
   0x9   :  { %v277_v25 = vld [vmem:[%s366_s3] ss:$0 sm:$0xff] }
   0xa   :  { %155 = vmatpush.bf16.msra.mxu0 %v265_v4 }
   0xb   :  { %168 = vmatpush.bf16.msra.mxu1 %v273_v5 }
   0xe   :  { %156 = vmatpush.bf16.msra.mxu0 %v264_v6 }
   0xf   :  { %169 = vmatpush.bf16.msra.mxu1 %v272_v7 }
  0x12   :  { %157 = vmatpush.bf16.msra.mxu0 %v263_v8 }
  0x13   :  { %170 = vmatpush.bf16.msra.mxu1 %v271_v9 }
  0x16   :  { %158 = vmatpush.bf16.msra.mxu0 %v262_v10 }
  0x17   :  { %171 = vmatpush.bf16.msra.mxu1 %v270_v11 }
  0x1a   :  { %159 = vmatpush.bf16.msra.mxu0 %v261_v12 }
  0x1b   :  { %172 = vmatpush.bf16.msra.mxu1 %v269_v13 }
  0x1e   :  { %160 = vmatpush.bf16.msra.mxu0 %v260_v17 }
  0x1f   :  { %173 = vmatpush.bf16.msra.mxu1 %v268_v18 }
  0x21   :  { %161 = vmatmul.bf16.vlgmr.msra.gmra.mxu0 %v53_v19 }
  0x22   :  { %174 = vmatmul.bf16.vlgmr.msra.gmra.mxu1 %v54_v20 }
  0x9e   :  { %v162_v22 = vpop.f32.mrf.mxu0 }
  0x9f   :  { %v175_v23 = vpop.f32.mrf.mxu1 }
  0xa0   :  { %v176_v24 = vadd.f32 %v175_v23, %v162_v22 }
  0xa2   :  { %v183_v26 = vmul.f32 %v276_v21, %v176_v24 }
  0xa4   :  { %v188_v27 = vadd.f32 %v277_v25, %v183_v26 }
  0xa6   :  { %v189_v28 = vmax.f32 %v188_v27, 0.0  ;;  %v164_v29 = vpop.f32.mrf.mxu0 }
  0xa7   :  { %v177_v30 = vpop.f32.mrf.mxu1 }
  0xa8   :  { %v190_v31 = vpack.c.bf16 %v189_v28, %v189_v28 }
  0xaa   :  { %191 = vst [vmem:[%s367_s4] sm:$0xf] %v190_v31 }

// kernel: cnn_planner_forward.31
= control target key start
LH: loop header
LB: loop body
LE: loop exit
PB: predicated region body
PF: predicated region fallthrough
CT: control target
= control target key end

     0   :  { %s656_s1 = inlined_call_operand.vmem [shape: bf16[512,128], index: 1, kind: input, shape index: {}]   ;;  %s657_s0 = inlined_call_operand.vmem [shape: bf16[8,512], index: 0, kind: input, shape index: {}]   ;;  %s658_s2 = inlined_call_operand.vmem [shape: f32[1,128], index: 2, kind: input, shape index: {}]   ;;  %s659_s3 = inlined_call_operand.vmem [shape: f32[1,128], index: 3, kind: input, shape index: {}]   ;;  %s660_s4 = inlined_call_operand.vmem [shape: bf16[8,128], index: 4, kind: output, shape index: {}]  }
   0x1   :  { %v493_v0 = vld [vmem:[%s656_s1 + $0x38] sm:$0xff]  ;;  %v492_v4 = vld [vmem:[%s656_s1 + $0x30] sm:$0xff]  ;;  %v491_v8 = vld [vmem:[%s656_s1 + $0x28] sm:$0xff] }
   0x2   :  { %v501_v1 = vld [vmem:[%s656_s1 + $0x78] sm:$0xff]  ;;  %289 = vmatpush.bf16.msra.mxu0 %v493_v0  ;;  %v500_v5 = vld [vmem:[%s656_s1 + $0x70] sm:$0xff]  ;;  %v499_v9 = vld [vmem:[%s656_s1 + $0x68] sm:$0xff] }
   0x3   :  { %v509_v2 = vld [vmem:[%s656_s1 + $0xb8] sm:$0xff]  ;;  %302 = vmatpush.bf16.msra.mxu1 %v501_v1  ;;  %v508_v6 = vld [vmem:[%s656_s1 + $0xb0] sm:$0xff]  ;;  %v507_v10 = vld [vmem:[%s656_s1 + $0xa8] sm:$0xff] }
   0x4   :  { %v517_v3 = vld [vmem:[%s656_s1 + $0xf8] sm:$0xff]  ;;  %315 = vmatpush.bf16.msra.mxu2 %v509_v2  ;;  %v516_v7 = vld [vmem:[%s656_s1 + $0xf0] sm:$0xff]  ;;  %v515_v11 = vld [vmem:[%s656_s1 + $0xe8] sm:$0xff] }
   0x5   :  { %328 = vmatpush.bf16.msra.mxu3 %v517_v3  ;;  %v490_v12 = vld [vmem:[%s656_s1 + $0x20] sm:$0xff]  ;;  %v489_v16 = vld [vmem:[%s656_s1 + $0x18] sm:$0xff]  ;;  %v488_v20 = vld [vmem:[%s656_s1 + $0x10] sm:$0xff] }
   0x6   :  { %290 = vmatpush.bf16.msra.mxu0 %v492_v4  ;;  %v498_v13 = vld [vmem:[%s656_s1 + $0x60] sm:$0xff]  ;;  %v497_v17 = vld [vmem:[%s656_s1 + $0x58] sm:$0xff]  ;;  %v496_v21 = vld [vmem:[%s656_s1 + $0x50] sm:$0xff] }
   0x7   :  { %303 = vmatpush.bf16.msra.mxu1 %v500_v5  ;;  %v506_v14 = vld [vmem:[%s656_s1 + $0xa0] sm:$0xff]  ;;  %v505_v18 = vld [vmem:[%s656_s1 + $0x98] sm:$0xff]  ;;  %v504_v22 = vld [vmem:[%s656_s1 + $0x90] sm:$0xff] }
   0x8   :  { %316 = vmatpush.bf16.msra.mxu2 %v508_v6  ;;  %v514_v15 = vld [vmem:[%s656_s1 + $0xe0] sm:$0xff]  ;;  %v513_v19 = vld [vmem:[%s656_s1 + $0xd8] sm:$0xff]  ;;  %v512_v23 = vld [vmem:[%s656_s1 + $0xd0] sm:$0xff] }
   0x9   :  { %329 = vmatpush.bf16.msra.mxu3 %v516_v7  ;;  %v487_v24 = vld [vmem:[%s656_s1 + $0x8] sm:$0xff]  ;;  %v17_v26 = vld [vmem:[%s657_s0] sm:$0xff] }
   0xa   :  { %291 = vmatpush.bf16.msra.mxu0 %v491_v8  ;;  %v495_v25 = vld [vmem:[%s656_s1 + $0x48] sm:$0xff]  ;;  %v85_v30 = vunpack.c.l.b16 %v17_v26  ;;  %v86_v31 = vunpack.c.h.b16 %v17_v26  ;;  %v486_v32 = vld [vmem:[%s656_s1] sm:$0xff] }
   0xb   :  { %304 = vmatpush.bf16.msra.mxu1 %v499_v9  ;;  %v503_v27 = vld [vmem:[%s656_s1 + $0x88] sm:$0xff]  ;;  %v494_v33 = vld [vmem:[%s656_s1 + $0x40] sm:$0xff] }
   0xc   :  { %317 = vmatpush.bf16.msra.mxu2 %v507_v10  ;;  %v511_v28 = vld [vmem:[%s656_s1 + $0xc8] sm:$0xff]  ;;  %v502_v36 = vld [vmem:[%s656_s1 + $0x80] sm:$0xff]  ;;  %v89_v38 = vpack.c.b16 %v85_v30, %v85_v30  ;;  %v90_v39 = vpack.c.b16 %v86_v31, %v86_v31 }
   0xd   :  { %330 = vmatpush.bf16.msra.mxu3 %v515_v11  ;;  %v18_v29 = vld [vmem:[%s657_s0 + $0x8] sm:$0xff]  ;;  %v510_v37 = vld [vmem:[%s656_s1 + $0xc0] sm:$0xff] }
   0xe   :  { %292 = vmatpush.bf16.msra.mxu0 %v490_v12  ;;  %v87_v34 = vunpack.c.l.b16 %v18_v29  ;;  %v88_v35 = vunpack.c.h.b16 %v18_v29  ;;  %v518_v48 = vld [vmem:[%s658_s2] ss:$0 sm:$0xff] }
   0xf   :  { %305 = vmatpush.bf16.msra.mxu1 %v498_v13  ;;  %v519_v52 = vld [vmem:[%s659_s3] ss:$0 sm:$0xff] }
  0x10   :  { %318 = vmatpush.bf16.msra.mxu2 %v506_v14  ;;  %v91_v40 = vpack.c.b16 %v87_v34, %v87_v34  ;;  %v92_v41 = vpack.c.b16 %v88_v35, %v88_v35 }
  0x11   :  { %331 = vmatpush.bf16.msra.mxu3 %v514_v15 }
  0x12   :  { %293 = vmatpush.bf16.msra.mxu0 %v489_v16 }
  0x13   :  { %306 = vmatpush.bf16.msra.mxu1 %v497_v17 }
  0x14   :  { %319 = vmatpush.bf16.msra.mxu2 %v505_v18 }
  0x15   :  { %332 = vmatpush.bf16.msra.mxu3 %v513_v19 }
  0x16   :  { %294 = vmatpush.bf16.msra.mxu0 %v488_v20 }
  0x17   :  { %307 = vmatpush.bf16.msra.mxu1 %v496_v21 }
  0x18   :  { %320 = vmatpush.bf16.msra.mxu2 %v504_v22 }
  0x19   :  { %333 = vmatpush.bf16.msra.mxu3 %v512_v23 }
  0x1a   :  { %295 = vmatpush.bf16.msra.mxu0 %v487_v24 }
  0x1b   :  { %308 = vmatpush.bf16.msra.mxu1 %v495_v25 }
  0x1c   :  { %321 = vmatpush.bf16.msra.mxu2 %v503_v27 }
  0x1d   :  { %334 = vmatpush.bf16.msra.mxu3 %v511_v28 }
  0x1e   :  { %296 = vmatpush.bf16.msra.mxu0 %v486_v32 }
  0x1f   :  { %309 = vmatpush.bf16.msra.mxu1 %v494_v33 }
  0x20   :  { %322 = vmatpush.bf16.msra.mxu2 %v502_v36 }
  0x21   :  { %335 = vmatpush.bf16.msra.mxu3 %v510_v37  ;;  %297 = vmatmul.bf16.vlgmr.msra.gmra.mxu0 %v89_v38 }
  0x22   :  { %310 = vmatmul.bf16.vlgmr.msra.gmra.mxu1 %v90_v39 }
  0x23   :  { %323 = vmatmul.bf16.vlgmr.msra.gmra.mxu2 %v91_v40 }
  0x24   :  { %336 = vmatmul.bf16.vlgmr.msra.gmra.mxu3 %v92_v41 }
  0x9e   :  { %v298_v42 = vpop.f32.mrf.mxu0 }
  0x9f   :  { %v311_v43 = vpop.f32.mrf.mxu1 }
  0xa0   :  { %v312_v44 = vadd.f32 %v311_v43, %v298_v42 }
  0xa6   :  { %v324_v45 = vpop.f32.mrf.mxu2  ;;  %v300_v49 = vpop.f32.mrf.mxu0 }
  0xa7   :  { %v337_v46 = vpop.f32.mrf.mxu3  ;;  %v325_v47 = vadd.f32 %v324_v45, %v312_v44  ;;  %v313_v50 = vpop.f32.mrf.mxu1 }
  0xa9   :  { %v338_v51 = vadd.f32 %v337_v46, %v325_v47 }
  0xab   :  { %v345_v53 = vmul.f32 %v518_v48, %v338_v51 }
  0xad   :  { %v350_v54 = vadd.f32 %v519_v52, %v345_v53 }
  0xae   :  { %v326_v55 = vpop.f32.mrf.mxu2 }
  0xaf   :  { %v339_v56 = vpop.f32.mrf.mxu3  ;;  %v351_v57 = vmax.f32 %v350_v54, 0.0 }
  0xb1   :  { %v352_v58 = vpack.c.bf16 %v351_v57, %v351_v57 }
  0xb3   :  { %353 = vst [vmem:[%s660_s4] sm:$0xf] %v352_v58 }

// kernel: cnn_planner_forward.29
= control target key start
LH: loop header
LB: loop body
LE: loop exit
PB: predicated region body
PF: predicated region fallthrough
CT: control target
= control target key end

     0   :  { %s5619_s1 = inlined_call_operand.vmem [shape: bf16[2304,256], index: 1, kind: input, shape index: {}]   ;;  %s5620_s0 = inlined_call_operand.vmem [shape: bf16[8,2304], index: 0, kind: input, shape index: {}]   ;;  %s5621_s2 = inlined_call_operand.vmem [shape: f32[1,256], index: 2, kind: input, shape index: {}]   ;;  %s5622_s3 = inlined_call_operand.vmem [shape: f32[1,256], index: 3, kind: input, shape index: {}]   ;;  %s5623_s4 = inlined_call_operand.vmem [shape: bf16[8,256], index: 4, kind: output, shape index: {}]  }
   0x1   :  { %v2367_v0 = vld [vmem:[%s5619_s1 + $0x70] sm:$0xf]  ;;  %v3476_v1 = vld [vmem:[%s5619_s1 + $0x74] sm:$0xf0]  ;;  %v2359_v11 = vld [vmem:[%s5619_s1 + $0x60] sm:$0xf] }
   0x2   :  { %v2431_v2 = vld [vmem:[%s5619_s1 + $0xf0] sm:$0xf]  ;;  %v2368_v3 = vor.u32 %v3476_v1, %v2367_v0  ;;  %v3492_v4 = vld [vmem:[%s5619_s1 + $0xf4] sm:$0xf0]  ;;  %v3474_v13 = vld [vmem:[%s5619_s1 + $0x64] sm:$0xf0] }
   0x3   :  { %v2495_v5 = vld [vmem:[%s5619_s1 + $0x170] sm:$0xf]  ;;  %v3508_v6 = vld [vmem:[%s5619_s1 + $0x174] sm:$0xf0]  ;;  %v2432_v7 = vor.u32 %v3492_v4, %v2431_v2  ;;  %v2423_v14 = vld [vmem:[%s5619_s1 + $0xe0] sm:$0xf]  ;;  %v2360_v16 = vor.u32 %v3474_v13, %v2359_v11 }
   0x4   :  { %v2496_v8 = vor.u32 %v3508_v6, %v2495_v5  ;;  %v2559_v9 = vld [vmem:[%s5619_s1 + $0x1f0] sm:$0xf]  ;;  %v3524_v10 = vld [vmem:[%s5619_s1 + $0x1f4] sm:$0xf0]  ;;  %1817 = vmatpush.bf16.msra.mxu0 %v2368_v3  ;;  %v3490_v15 = vld [vmem:[%s5619_s1 + $0xe4] sm:$0xf0] }
   0x5   :  { %v2560_v12 = vor.u32 %v3524_v10, %v2559_v9  ;;  %1830 = vmatpush.bf16.msra.mxu1 %v2432_v7  ;;  %v2424_v17 = vor.u32 %v3490_v15, %v2423_v14  ;;  %v2487_v18 = vld [vmem:[%s5619_s1 + $0x160] sm:$0xf]  ;;  %v3506_v19 = vld [vmem:[%s5619_s1 + $0x164] sm:$0xf0]  ;;  %v2351_v23 = vld [vmem:[%s5619_s1 + $0x50] sm:$0xf] }
   0x6   :  { %1843 = vmatpush.bf16.msra.mxu2 %v2496_v8  ;;  %v2551_v20 = vld [vmem:[%s5619_s1 + $0x1e0] sm:$0xf]  ;;  %v2488_v21 = vor.u32 %v3506_v19, %v2487_v18  ;;  %v3522_v22 = vld [vmem:[%s5619_s1 + $0x1e4] sm:$0xf0]  ;;  %v3472_v24 = vld [vmem:[%s5619_s1 + $0x54] sm:$0xf0] }
   0x7   :  { %1856 = vmatpush.bf16.msra.mxu3 %v2560_v12  ;;  %v2552_v25 = vor.u32 %v3522_v22, %v2551_v20  ;;  %v2415_v26 = vld [vmem:[%s5619_s1 + $0xd0] sm:$0xf]  ;;  %v3488_v27 = vld [vmem:[%s5619_s1 + $0xd4] sm:$0xf0]  ;;  %v2352_v29 = vor.u32 %v3472_v24, %v2351_v23  ;;  %v2343_v35 = vld [vmem:[%s5619_s1 + $0x40] sm:$0xf] }
   0x8   :  { %v2479_v28 = vld [vmem:[%s5619_s1 + $0x150] sm:$0xf]  ;;  %1818 = vmatpush.bf16.msra.mxu0 %v2360_v16  ;;  %v3504_v30 = vld [vmem:[%s5619_s1 + $0x154] sm:$0xf0]  ;;  %v2416_v33 = vor.u32 %v3488_v27, %v2415_v26  ;;  %v3470_v36 = vld [vmem:[%s5619_s1 + $0x44] sm:$0xf0] }
   0x9   :  { %v2543_v31 = vld [vmem:[%s5619_s1 + $0x1d0] sm:$0xf]  ;;  %v3520_v32 = vld [vmem:[%s5619_s1 + $0x1d4] sm:$0xf0]  ;;  %1831 = vmatpush.bf16.msra.mxu1 %v2424_v17  ;;  %v2480_v34 = vor.u32 %v3504_v30, %v2479_v28  ;;  %v2407_v37 = vld [vmem:[%s5619_s1 + $0xc0] sm:$0xf]  ;;  %v2344_v44 = vor.u32 %v3470_v36, %v2343_v35 }
   0xa   :  { %1844 = vmatpush.bf16.msra.mxu2 %v2488_v21  ;;  %v2544_v38 = vor.u32 %v3520_v32, %v2543_v31  ;;  %v3486_v39 = vld [vmem:[%s5619_s1 + $0xc4] sm:$0xf0]  ;;  %v2471_v40 = vld [vmem:[%s5619_s1 + $0x140] sm:$0xf]  ;;  %v2335_v47 = vld [vmem:[%s5619_s1 + $0x30] sm:$0xf] }
   0xb   :  { %1857 = vmatpush.bf16.msra.mxu3 %v2552_v25  ;;  %v3502_v41 = vld [vmem:[%s5619_s1 + $0x144] sm:$0xf0]  ;;  %v2535_v42 = vld [vmem:[%s5619_s1 + $0x1c0] sm:$0xf]  ;;  %v2408_v45 = vor.u32 %v3486_v39, %v2407_v37  ;;  %v3468_v48 = vld [vmem:[%s5619_s1 + $0x34] sm:$0xf0] }
   0xc   :  { %v3518_v43 = vld [vmem:[%s5619_s1 + $0x1c4] sm:$0xf0]  ;;  %1819 = vmatpush.bf16.msra.mxu0 %v2352_v29  ;;  %v2472_v46 = vor.u32 %v3502_v41, %v2471_v40  ;;  %v2399_v49 = vld [vmem:[%s5619_s1 + $0xb0] sm:$0xf]  ;;  %v3484_v51 = vld [vmem:[%s5619_s1 + $0xb4] sm:$0xf0]  ;;  %v2336_v56 = vor.u32 %v3468_v48, %v2335_v47 }
   0xd   :  { %1832 = vmatpush.bf16.msra.mxu1 %v2416_v33  ;;  %v2536_v50 = vor.u32 %v3518_v43, %v2535_v42  ;;  %v2463_v52 = vld [vmem:[%s5619_s1 + $0x130] sm:$0xf]  ;;  %v3500_v53 = vld [vmem:[%s5619_s1 + $0x134] sm:$0xf0]  ;;  %v2400_v57 = vor.u32 %v3484_v51, %v2399_v49  ;;  %v2327_v59 = vld [vmem:[%s5619_s1 + $0x20] sm:$0xf] }
   0xe   :  { %1845 = vmatpush.bf16.msra.mxu2 %v2480_v34  ;;  %v2527_v54 = vld [vmem:[%s5619_s1 + $0x1b0] sm:$0xf]  ;;  %v3516_v55 = vld [vmem:[%s5619_s1 + $0x1b4] sm:$0xf0]  ;;  %v2464_v58 = vor.u32 %v3500_v53, %v2463_v52  ;;  %v3466_v60 = vld [vmem:[%s5619_s1 + $0x24] sm:$0xf0] }
   0xf   :  { %1858 = vmatpush.bf16.msra.mxu3 %v2544_v38  ;;  %v2391_v61 = vld [vmem:[%s5619_s1 + $0xa0] sm:$0xf]  ;;  %v2528_v62 = vor.u32 %v3516_v55, %v2527_v54  ;;  %v3482_v63 = vld [vmem:[%s5619_s1 + $0xa4] sm:$0xf0]  ;;  %v2328_v4 = vor.u32 %v3466_v60, %v2327_v59  ;;  %v2319_v7 = vld [vmem:[%s5619_s1 + $0x10] sm:$0xf] }
  0x10   :  { %1820 = vmatpush.bf16.msra.mxu0 %v2344_v44  ;;  %v2455_v0 = vld [vmem:[%s5619_s1 + $0x120] sm:$0xf]  ;;  %v3498_v1 = vld [vmem:[%s5619_s1 + $0x124] sm:$0xf0]  ;;  %v2392_v5 = vor.u32 %v3482_v63, %v2391_v61  ;;  %v3464_v8 = vld [vmem:[%s5619_s1 + $0x14] sm:$0xf0] }
  0x11   :  { %1833 = vmatpush.bf16.msra.mxu1 %v2408_v45  ;;  %v2519_v2 = vld [vmem:[%s5619_s1 + $0x1a0] sm:$0xf]  ;;  %v3514_v3 = vld [vmem:[%s5619_s1 + $0x1a4] sm:$0xf0]  ;;  %v2456_v6 = vor.u32 %v3498_v1, %v2455_v0  ;;  %v2383_v9 = vld [vmem:[%s5619_s1 + $0x90] sm:$0xf]  ;;  %v2320_v16 = vor.u32 %v3464_v8, %v2319_v7 }
  0x12   :  { %1846 = vmatpush.bf16.msra.mxu2 %v2472_v46  ;;  %v2520_v10 = vor.u32 %v3514_v3, %v2519_v2  ;;  %v3480_v11 = vld [vmem:[%s5619_s1 + $0x94] sm:$0xf0]  ;;  %v2447_v12 = vld [vmem:[%s5619_s1 + $0x110] sm:$0xf]  ;;  %v2311_v17 = vld [vmem:[%s5619_s1] sm:$0xf] }
  0x13   :  { %1859 = vmatpush.bf16.msra.mxu3 %v2536_v50  ;;  %v3496_v13 = vld [vmem:[%s5619_s1 + $0x114] sm:$0xf0]  ;;  %v2511_v14 = vld [vmem:[%s5619_s1 + $0x190] sm:$0xf]  ;;  %v3462_v18 = vld [vmem:[%s5619_s1 + $0x4] sm:$0xf0]  ;;  %v2384_v19 = vor.u32 %v3480_v11, %v2383_v9 }
  0x14   :  { %1821 = vmatpush.bf16.msra.mxu0 %v2336_v56  ;;  %v3512_v15 = vld [vmem:[%s5619_s1 + $0x194] sm:$0xf0]  ;;  %v2448_v20 = vor.u32 %v3496_v13, %v2447_v12  ;;  %v2375_v21 = vld [vmem:[%s5619_s1 + $0x80] sm:$0xf]  ;;  %v3478_v22 = vld [vmem:[%s5619_s1 + $0x84] sm:$0xf0]  ;;  %v2312_v31 = vor.u32 %v3462_v18, %v2311_v17 }
  0x15   :  { %1834 = vmatpush.bf16.msra.mxu1 %v2400_v57  ;;  %v2439_v23 = vld [vmem:[%s5619_s1 + $0x100] sm:$0xf]  ;;  %v2512_v24 = vor.u32 %v3512_v15, %v2511_v14  ;;  %v3494_v25 = vld [vmem:[%s5619_s1 + $0x104] sm:$0xf0]  ;;  %v2623_v28 = vld [vmem:[%s5619_s1 + $0x270] sm:$0xf]  ;;  %v2376_v35 = vor.u32 %v3478_v22, %v2375_v21 }
  0x16   :  { %1847 = vmatpush.bf16.msra.mxu2 %v2464_v58  ;;  %v2503_v26 = vld [vmem:[%s5619_s1 + $0x180] sm:$0xf]  ;;  %v3510_v27 = vld [vmem:[%s5619_s1 + $0x184] sm:$0xf0]  ;;  %v3540_v29 = vld [vmem:[%s5619_s1 + $0x274] sm:$0xf0]  ;;  %v2440_v36 = vor.u32 %v3494_v25, %v2439_v23 }
  0x17   :  { %1860 = vmatpush.bf16.msra.mxu3 %v2528_v62  ;;  %v2687_v30 = vld [vmem:[%s5619_s1 + $0x2f0] sm:$0xf]  ;;  %v3556_v32 = vld [vmem:[%s5619_s1 + $0x2f4] sm:$0xf0]  ;;  %v2504_v39 = vor.u32 %v3510_v27, %v2503_v26  ;;  %v2624_v40 = vor.u32 %v3540_v29, %v2623_v28  ;;  %v2615_v43 = vld [vmem:[%s5619_s1 + $0x260] sm:$0xf] }
  0x18   :  { %1822 = vmatpush.bf16.msra.mxu0 %v2328_v4  ;;  %v2751_v33 = vld [vmem:[%s5619_s1 + $0x370] sm:$0xf]  ;;  %v3572_v34 = vld [vmem:[%s5619_s1 + $0x374] sm:$0xf0]  ;;  %v2688_v41 = vor.u32 %v3556_v32, %v2687_v30  ;;  %v3538_v44 = vld [vmem:[%s5619_s1 + $0x264] sm:$0xf0] }
  0x19   :  { %1835 = vmatpush.bf16.msra.mxu1 %v2392_v5  ;;  %v2815_v37 = vld [vmem:[%s5619_s1 + $0x3f0] sm:$0xf]  ;;  %v3588_v38 = vld [vmem:[%s5619_s1 + $0x3f4] sm:$0xf0]  ;;  %v2752_v42 = vor.u32 %v3572_v34, %v2751_v33  ;;  %v2679_v45 = vld [vmem:[%s5619_s1 + $0x2e0] sm:$0xf]  ;;  %v2616_v52 = vor.u32 %v3538_v44, %v2615_v43 }
  0x1a   :  { %1848 = vmatpush.bf16.msra.mxu2 %v2456_v6  ;;  %v2816_v46 = vor.u32 %v3588_v38, %v2815_v37  ;;  %v3554_v47 = vld [vmem:[%s5619_s1 + $0x2e4] sm:$0xf0]  ;;  %v2743_v48 = vld [vmem:[%s5619_s1 + $0x360] sm:$0xf]  ;;  %v2607_v53 = vld [vmem:[%s5619_s1 + $0x250] sm:$0xf] }
  0x1b   :  { %1861 = vmatpush.bf16.msra.mxu3 %v2520_v10  ;;  %v3570_v49 = vld [vmem:[%s5619_s1 + $0x364] sm:$0xf0]  ;;  %v2807_v50 = vld [vmem:[%s5619_s1 + $0x3e0] sm:$0xf]  ;;  %v2680_v54 = vor.u32 %v3554_v47, %v2679_v45  ;;  %v3536_v56 = vld [vmem:[%s5619_s1 + $0x254] sm:$0xf0] }
  0x1c   :  { %1823 = vmatpush.bf16.msra.mxu0 %v2320_v16  ;;  %v3586_v51 = vld [vmem:[%s5619_s1 + $0x3e4] sm:$0xf0]  ;;  %v2744_v55 = vor.u32 %v3570_v49, %v2743_v48  ;;  %v2671_v57 = vld [vmem:[%s5619_s1 + $0x2d0] sm:$0xf]  ;;  %v3552_v60 = vld [vmem:[%s5619_s1 + $0x2d4] sm:$0xf0]  ;;  %v2608_v3 = vor.u32 %v3536_v56, %v2607_v53 }
  0x1d   :  { %1836 = vmatpush.bf16.msra.mxu1 %v2384_v19  ;;  %v18_v58 = vld [vmem:[%s5620_s0 + $0x8] sm:$0xff]  ;;  %v2808_v59 = vor.u32 %v3586_v51, %v2807_v50  ;;  %v2735_v61 = vld [vmem:[%s5619_s1 + $0x350] sm:$0xf]  ;;  %v3568_v62 = vld [vmem:[%s5619_s1 + $0x354] sm:$0xf0]  ;;  %v2672_v7 = vor.u32 %v3552_v60, %v2671_v57 }
  0x1e   :  { %1849 = vmatpush.bf16.msra.mxu2 %v2448_v20  ;;  %v325_v63 = vunpack.c.l.b16 %v18_v58  ;;  %v326_v0 = vunpack.c.h.b16 %v18_v58  ;;  %v2799_v1 = vld [vmem:[%s5619_s1 + $0x3d0] sm:$0xf]  ;;  %v3584_v2 = vld [vmem:[%s5619_s1 + $0x3d4] sm:$0xf0]  ;;  %v17_v5 = vld [vmem:[%s5620_s0] sm:$0xff]  ;;  %v2736_v8 = vor.u32 %v3568_v62, %v2735_v61 }
  0x1f   :  { %1862 = vmatpush.bf16.msra.mxu3 %v2512_v24  ;;  %v2599_v9 = vld [vmem:[%s5619_s1 + $0x240] sm:$0xf]  ;;  %v3534_v10 = vld [vmem:[%s5619_s1 + $0x244] sm:$0xf0]  ;;  %v323_v12 = vunpack.c.l.b16 %v17_v5  ;;  %v324_v13 = vunpack.c.h.b16 %v17_v5  ;;  %v2800_v14 = vor.u32 %v3584_v2, %v2799_v1  ;;  %v2591_v25 = vld [vmem:[%s5619_s1 + $0x230] sm:$0xf] }
  0x20   :  { %1824 = vmatpush.bf16.msra.mxu0 %v2312_v31  ;;  %v4041_v4 = vpack.c.b16 %v325_v63, %v325_v63  ;;  %v4046_v6 = vpack.c.b16 %v326_v0, %v326_v0  ;;  %v2663_v11 = vld [vmem:[%s5619_s1 + $0x2c0] sm:$0xf]  ;;  %v3550_v15 = vld [vmem:[%s5619_s1 + $0x2c4] sm:$0xf0]  ;;  %v2600_v22 = vor.u32 %v3534_v10, %v2599_v9  ;;  %v3532_v26 = vld [vmem:[%s5619_s1 + $0x234] sm:$0xf0] }
  0x21   :  { %1837 = vmatpush.bf16.msra.mxu1 %v2376_v35  ;;  %v2727_v16 = vld [vmem:[%s5619_s1 + $0x340] sm:$0xf]  ;;  %v3566_v17 = vld [vmem:[%s5619_s1 + $0x344] sm:$0xf0]  ;;  %v4073_v20 = vpack.c.b16 %v323_v12, %v323_v12  ;;  %v4076_v21 = vpack.c.b16 %v324_v13, %v324_v13  ;;  %v2664_v23 = vor.u32 %v3550_v15, %v2663_v11  ;;  %v2655_v27 = vld [vmem:[%s5619_s1 + $0x2b0] sm:$0xf]  ;;  %v2592_v34 = vor.u32 %v3532_v26, %v2591_v25 }
  0x22   :  { %1850 = vmatpush.bf16.msra.mxu2 %v2440_v36  ;;  %v2791_v18 = vld [vmem:[%s5619_s1 + $0x3c0] sm:$0xf]  ;;  %v3582_v19 = vld [vmem:[%s5619_s1 + $0x3c4] sm:$0xf0]  ;;  %v2728_v24 = vor.u32 %v3566_v17, %v2727_v16  ;;  %v3548_v29 = vld [vmem:[%s5619_s1 + $0x2b4] sm:$0xf0] }
  0x23   :  { %1863 = vmatpush.bf16.msra.mxu3 %v2504_v39  ;;  %v2792_v28 = vor.u32 %v3582_v19, %v2791_v18  ;;  %v2719_v30 = vld [vmem:[%s5619_s1 + $0x330] sm:$0xf]  ;;  %v3564_v31 = vld [vmem:[%s5619_s1 + $0x334] sm:$0xf0]  ;;  %1825 = vmatmul.bf16.vlgmr.msra.gmra.mxu0 %v4073_v20  ;;  %v2656_v35 = vor.u32 %v3548_v29, %v2655_v27  ;;  %v2583_v37 = vld [vmem:[%s5619_s1 + $0x220] sm:$0xf] }
  0x24   :  { %1869 = vmatpush.bf16.msrb.mxu0 %v2624_v40  ;;  %v2783_v32 = vld [vmem:[%s5619_s1 + $0x3b0] sm:$0xf]  ;;  %v3580_v33 = vld [vmem:[%s5619_s1 + $0x3b4] sm:$0xf0]  ;;  %1838 = vmatmul.bf16.vlgmr.msra.gmra.mxu1 %v4076_v21  ;;  %v2720_v36 = vor.u32 %v3564_v31, %v2719_v30  ;;  %v3530_v38 = vld [vmem:[%s5619_s1 + $0x224] sm:$0xf0] }
  0x25   :  { %1882 = vmatpush.bf16.msrb.mxu1 %v2688_v41  ;;  %1851 = vmatmul.bf16.vlgmr.msra.gmra.mxu2 %v4041_v4  ;;  %v2647_v39 = vld [vmem:[%s5619_s1 + $0x2a0] sm:$0xf]  ;;  %v2784_v40 = vor.u32 %v3580_v33, %v2783_v32  ;;  %v3546_v41 = vld [vmem:[%s5619_s1 + $0x2a4] sm:$0xf0]  ;;  %v2575_v49 = vld [vmem:[%s5619_s1 + $0x210] sm:$0xf] }
  0x26   :  { %1895 = vmatpush.bf16.msrb.mxu2 %v2752_v42  ;;  %1864 = vmatmul.bf16.vlgmr.msra.gmra.mxu3 %v4046_v6  ;;  %v2711_v42 = vld [vmem:[%s5619_s1 + $0x320] sm:$0xf]  ;;  %v3562_v43 = vld [vmem:[%s5619_s1 + $0x324] sm:$0xf0]  ;;  %v2648_v47 = vor.u32 %v3546_v41, %v2647_v39  ;;  %v3528_v50 = vld [vmem:[%s5619_s1 + $0x214] sm:$0xf0] }
  0x27   :  { %1908 = vmatpush.bf16.msrb.mxu3 %v2816_v46  ;;  %v2775_v44 = vld [vmem:[%s5619_s1 + $0x3a0] sm:$0xf]  ;;  %v3578_v45 = vld [vmem:[%s5619_s1 + $0x3a4] sm:$0xf0]  ;;  %v2584_v46 = vor.u32 %v3530_v38, %v2583_v37  ;;  %v2712_v48 = vor.u32 %v3562_v43, %v2711_v42  ;;  %v2639_v51 = vld [vmem:[%s5619_s1 + $0x290] sm:$0xf] }
  0x28   :  { %1870 = vmatpush.bf16.msrb.mxu0 %v2616_v52  ;;  %v2776_v52 = vor.u32 %v3578_v45, %v2775_v44  ;;  %v3544_v53 = vld [vmem:[%s5619_s1 + $0x294] sm:$0xf0]  ;;  %v2767_v56 = vld [vmem:[%s5619_s1 + $0x390] sm:$0xf]  ;;  %v2567_v58 = vld [vmem:[%s5619_s1 + $0x200] sm:$0xf] }
  0x29   :  { %1883 = vmatpush.bf16.msrb.mxu1 %v2680_v54  ;;  %v2703_v54 = vld [vmem:[%s5619_s1 + $0x310] sm:$0xf]  ;;  %v3576_v57 = vld [vmem:[%s5619_s1 + $0x394] sm:$0xf0]  ;;  %v3526_v60 = vld [vmem:[%s5619_s1 + $0x204] sm:$0xf0]  ;;  %v2640_v63 = vor.u32 %v3544_v53, %v2639_v51 }
  0x2a   :  { %1896 = vmatpush.bf16.msrb.mxu2 %v2744_v55  ;;  %v3560_v55 = vld [vmem:[%s5619_s1 + $0x314] sm:$0xf0]  ;;  %v2631_v61 = vld [vmem:[%s5619_s1 + $0x280] sm:$0xf]  ;;  %v3542_v62 = vld [vmem:[%s5619_s1 + $0x284] sm:$0xf0]  ;;  %v2768_v5 = vor.u32 %v3576_v57, %v2767_v56  ;;  %v2568_v13 = vor.u32 %v3526_v60, %v2567_v58 }
  0x2b   :  { %1909 = vmatpush.bf16.msrb.mxu3 %v2808_v59  ;;  %v2576_v59 = vor.u32 %v3528_v50, %v2575_v49  ;;  %v2704_v0 = vor.u32 %v3560_v55, %v2703_v54  ;;  %v2695_v1 = vld [vmem:[%s5619_s1 + $0x300] sm:$0xf]  ;;  %v3558_v2 = vld [vmem:[%s5619_s1 + $0x304] sm:$0xf0]  ;;  %v19_v9 = vld [vmem:[%s5620_s0 + $0x10] sm:$0xff]  ;;  %v2632_v18 = vor.u32 %v3542_v62, %v2631_v61 }
  0x2c   :  { %1871 = vmatpush.bf16.msrb.mxu0 %v2608_v3  ;;  %v20_v3 = vld [vmem:[%s5620_s0 + $0x18] sm:$0xff]  ;;  %v2879_v10 = vld [vmem:[%s5619_s1 + $0x470] sm:$0xf]  ;;  %v2696_v19 = vor.u32 %v3558_v2, %v2695_v1  ;;  %v2871_v31 = vld [vmem:[%s5619_s1 + $0x460] sm:$0xf] }
  0x2d   :  { %1884 = vmatpush.bf16.msrb.mxu1 %v2672_v7  ;;  %v2759_v7 = vld [vmem:[%s5619_s1 + $0x380] sm:$0xf]  ;;  %v3604_v11 = vld [vmem:[%s5619_s1 + $0x474] sm:$0xf0]  ;;  %v2943_v12 = vld [vmem:[%s5619_s1 + $0x4f0] sm:$0xf]  ;;  %v329_v17 = vunpack.c.l.b16 %v20_v3  ;;  %v330_v25 = vunpack.c.h.b16 %v20_v3 }
  0x2e   :  { %1897 = vmatpush.bf16.msrb.mxu2 %v2736_v8  ;;  %v3574_v8 = vld [vmem:[%s5619_s1 + $0x384] sm:$0xf0]  ;;  %v3007_v15 = vld [vmem:[%s5619_s1 + $0x570] sm:$0xf]  ;;  %v3636_v16 = vld [vmem:[%s5619_s1 + $0x574] sm:$0xf0]  ;;  %v2880_v27 = vor.u32 %v3604_v11, %v2879_v10 }
  0x2f   :  { %1910 = vmatpush.bf16.msrb.mxu3 %v2800_v14  ;;  %v3620_v14 = vld [vmem:[%s5619_s1 + $0x4f4] sm:$0xf0]  ;;  %v2760_v26 = vor.u32 %v3574_v8, %v2759_v7  ;;  %v3008_v30 = vor.u32 %v3636_v16, %v3007_v15  ;;  %v3602_v32 = vld [vmem:[%s5619_s1 + $0x464] sm:$0xf0]  ;;  %v2935_v33 = vld [vmem:[%s5619_s1 + $0x4e0] sm:$0xf]  ;;  %v4224_v38 = vpack.c.b16 %v329_v17, %v329_v17  ;;  %v4234_v42 = vpack.c.b16 %v330_v25, %v330_v25 }
  0x30   :  { %1872 = vmatpush.bf16.msrb.mxu0 %v2600_v22  ;;  %v3071_v22 = vld [vmem:[%s5619_s1 + $0x5f0] sm:$0xf]  ;;  %v2944_v29 = vor.u32 %v3620_v14, %v2943_v12  ;;  %v3634_v37 = vld [vmem:[%s5619_s1 + $0x564] sm:$0xf0]  ;;  %v3063_v39 = vld [vmem:[%s5619_s1 + $0x5e0] sm:$0xf]  ;;  %v2872_v43 = vor.u32 %v3602_v32, %v2871_v31 }
  0x31   :  { %1885 = vmatpush.bf16.msrb.mxu1 %v2664_v23  ;;  %v3652_v23 = vld [vmem:[%s5619_s1 + $0x5f4] sm:$0xf0]  ;;  %v2927_v49 = vld [vmem:[%s5619_s1 + $0x4d0] sm:$0xf]  ;;  %v3598_v60 = vld [vmem:[%s5619_s1 + $0x444] sm:$0xf0] }
  0x32   :  { %1898 = vmatpush.bf16.msrb.mxu2 %v2728_v24  ;;  %v327_v24 = vunpack.c.l.b16 %v19_v9  ;;  %v3616_v51 = vld [vmem:[%s5619_s1 + $0x4d4] sm:$0xf0]  ;;  %v3055_v54 = vld [vmem:[%s5619_s1 + $0x5d0] sm:$0xf]  ;;  %v2919_v61 = vld [vmem:[%s5619_s1 + $0x4c0] sm:$0xf] }
  0x33   :  { %1911 = vmatpush.bf16.msrb.mxu3 %v2792_v28  ;;  %v328_v28 = vunpack.c.h.b16 %v19_v9  ;;  %v3632_v53 = vld [vmem:[%s5619_s1 + $0x554] sm:$0xf0]  ;;  %v2928_v57 = vor.u32 %v3616_v51, %v2927_v49  ;;  %v3630_v1 = vld [vmem:[%s5619_s1 + $0x544] sm:$0xf0]  ;;  %v3047_v2 = vld [vmem:[%s5619_s1 + $0x5c0] sm:$0xf] }
  0x34   :  { %1873 = vmatpush.bf16.msrb.mxu0 %v2592_v34  ;;  %v3072_v34 = vor.u32 %v3652_v23, %v3071_v22  ;;  %v4232_v41 = vpack.c.b16 %v327_v24, %v327_v24  ;;  %v3648_v55 = vld [vmem:[%s5619_s1 + $0x5d4] sm:$0xf0]  ;;  %v3646_v3 = vld [vmem:[%s5619_s1 + $0x5c4] sm:$0xf0]  ;;  %v2847_v9 = vld [vmem:[%s5619_s1 + $0x430] sm:$0xf] }
  0x35   :  { %1886 = vmatpush.bf16.msrb.mxu1 %v2656_v35  ;;  %v3618_v35 = vld [vmem:[%s5619_s1 + $0x4e4] sm:$0xf0]  ;;  %v4236_v44 = vpack.c.b16 %v328_v28, %v328_v28  ;;  %v3056_v62 = vor.u32 %v3648_v55, %v3055_v54  ;;  %v3596_v10 = vld [vmem:[%s5619_s1 + $0x434] sm:$0xf0]  ;;  %v2911_v11 = vld [vmem:[%s5619_s1 + $0x4b0] sm:$0xf]  ;;  %v3048_v12 = vor.u32 %v3646_v3, %v3047_v2 }
  0x36   :  { %1899 = vmatpush.bf16.msrb.mxu2 %v2720_v36  ;;  %v2999_v36 = vld [vmem:[%s5619_s1 + $0x560] sm:$0xf]  ;;  %v2936_v45 = vor.u32 %v3618_v35, %v2935_v33  ;;  %v2975_v14 = vld [vmem:[%s5619_s1 + $0x530] sm:$0xf]  ;;  %v3628_v15 = vld [vmem:[%s5619_s1 + $0x534] sm:$0xf0] }
  0x37   :  { %1912 = vmatpush.bf16.msrb.mxu3 %v2784_v40  ;;  %v3650_v40 = vld [vmem:[%s5619_s1 + $0x5e4] sm:$0xf0]  ;;  %v3039_v16 = vld [vmem:[%s5619_s1 + $0x5b0] sm:$0xf]  ;;  %v3644_v17 = vld [vmem:[%s5619_s1 + $0x5b4] sm:$0xf0]  ;;  %v2976_v22 = vor.u32 %v3628_v15, %v2975_v14 }
  0x38   :  { %1874 = vmatpush.bf16.msrb.mxu0 %v2584_v46  ;;  %v3000_v46 = vor.u32 %v3634_v37, %v2999_v36  ;;  %v3064_v50 = vor.u32 %v3650_v40, %v3063_v39  ;;  %v2839_v23 = vld [vmem:[%s5619_s1 + $0x420] sm:$0xf]  ;;  %v3594_v24 = vld [vmem:[%s5619_s1 + $0x424] sm:$0xf0]  ;;  %v2831_v35 = vld [vmem:[%s5619_s1 + $0x410] sm:$0xf] }
  0x39   :  { %1887 = vmatpush.bf16.msrb.mxu1 %v2648_v47  ;;  %v2863_v47 = vld [vmem:[%s5619_s1 + $0x450] sm:$0xf]  ;;  %v2903_v25 = vld [vmem:[%s5619_s1 + $0x4a0] sm:$0xf]  ;;  %v3642_v31 = vld [vmem:[%s5619_s1 + $0x5a4] sm:$0xf0]  ;;  %v2840_v32 = vor.u32 %v3594_v24, %v2839_v23 }
  0x3a   :  { %1900 = vmatpush.bf16.msrb.mxu2 %v2712_v48  ;;  %v3600_v48 = vld [vmem:[%s5619_s1 + $0x454] sm:$0xf0]  ;;  %v2967_v28 = vld [vmem:[%s5619_s1 + $0x520] sm:$0xf]  ;;  %v2895_v37 = vld [vmem:[%s5619_s1 + $0x490] sm:$0xf] }
  0x3b   :  { %1913 = vmatpush.bf16.msrb.mxu3 %v2776_v52  ;;  %v2991_v52 = vld [vmem:[%s5619_s1 + $0x550] sm:$0xf]  ;;  %v2864_v56 = vor.u32 %v3600_v48, %v2863_v47  ;;  %v3592_v36 = vld [vmem:[%s5619_s1 + $0x414] sm:$0xf0]  ;;  %v2823_v48 = vld [vmem:[%s5619_s1 + $0x400] sm:$0xf] }
  0x3c   :  { %1875 = vmatpush.bf16.msrb.mxu0 %v2576_v59  ;;  %v2992_v58 = vor.u32 %v3632_v53, %v2991_v52  ;;  %v2855_v59 = vld [vmem:[%s5619_s1 + $0x440] sm:$0xf]  ;;  %v3608_v40 = vld [vmem:[%s5619_s1 + $0x494] sm:$0xf0]  ;;  %v2832_v49 = vor.u32 %v3592_v36, %v2831_v35  ;;  %v3606_v52 = vld [vmem:[%s5619_s1 + $0x484] sm:$0xf0] }
  0x3d   :  { %1888 = vmatpush.bf16.msrb.mxu1 %v2640_v63  ;;  %v3614_v63 = vld [vmem:[%s5619_s1 + $0x4c4] sm:$0xf0]  ;;  %v3640_v47 = vld [vmem:[%s5619_s1 + $0x594] sm:$0xf0]  ;;  %v2887_v51 = vld [vmem:[%s5619_s1 + $0x480] sm:$0xf]  ;;  %v2896_v53 = vor.u32 %v3608_v40, %v2895_v37 }
  0x3e   :  { %1901 = vmatpush.bf16.msrb.mxu2 %v2704_v0  ;;  %v2983_v0 = vld [vmem:[%s5619_s1 + $0x540] sm:$0xf]  ;;  %v2920_v7 = vor.u32 %v3614_v63, %v2919_v61  ;;  %v22_v61 = vld [vmem:[%s5620_s0 + $0x28] sm:$0xff]  ;;  %v3668_v63 = vld [vmem:[%s5619_s1 + $0x674] sm:$0xf0] }
  0x3f   :  { %1914 = vmatpush.bf16.msrb.mxu3 %v2768_v5  ;;  %v2856_v5 = vor.u32 %v3598_v60, %v2855_v59  ;;  %v2984_v8 = vor.u32 %v3630_v1, %v2983_v0  ;;  %v2951_v55 = vld [vmem:[%s5619_s1 + $0x500] sm:$0xf]  ;;  %v3638_v60 = vld [vmem:[%s5619_s1 + $0x584] sm:$0xf0]  ;;  %v3199_v0 = vld [vmem:[%s5619_s1 + $0x6f0] sm:$0xf] }
  0x40   :  { %1876 = vmatpush.bf16.msrb.mxu0 %v2568_v13  ;;  %v3612_v13 = vld [vmem:[%s5619_s1 + $0x4b4] sm:$0xf0]  ;;  %v3015_v59 = vld [vmem:[%s5619_s1 + $0x580] sm:$0xf]  ;;  %v3263_v3 = vld [vmem:[%s5619_s1 + $0x770] sm:$0xf] }
  0x41   :  { %1889 = vmatpush.bf16.msrb.mxu1 %v2632_v18  ;;  %v2848_v18 = vor.u32 %v3596_v10, %v2847_v9  ;;  %v3684_v2 = vld [vmem:[%s5619_s1 + $0x6f4] sm:$0xf0]  ;;  %v3327_v10 = vld [vmem:[%s5619_s1 + $0x7f0] sm:$0xf]  ;;  %v3016_v14 = vor.u32 %v3638_v60, %v3015_v59  ;;  %v3191_v23 = vld [vmem:[%s5619_s1 + $0x6e0] sm:$0xf] }
  0x42   :  { %1902 = vmatpush.bf16.msrb.mxu2 %v2696_v19  ;;  %v2912_v19 = vor.u32 %v3612_v13, %v2911_v11  ;;  %v3716_v11 = vld [vmem:[%s5619_s1 + $0x7f4] sm:$0xf0]  ;;  %v3119_v37 = vld [vmem:[%s5619_s1 + $0x650] sm:$0xf]  ;;  %v3694_v59 = vld [vmem:[%s5619_s1 + $0x744] sm:$0xf0] }
  0x43   :  { %1915 = vmatpush.bf16.msrb.mxu3 %v2760_v26  ;;  %1877 = vmatmul.bf16.vlgmr.msrb.gmra.mxu0 %v4232_v41  ;;  %v3040_v26 = vor.u32 %v3644_v17, %v3039_v16  ;;  %v334_v16 = vunpack.c.h.b16 %v22_v61  ;;  %v3200_v17 = vor.u32 %v3684_v2, %v3199_v0  ;;  %v3328_v24 = vor.u32 %v3716_v11, %v3327_v10  ;;  %v3183_v40 = vld [vmem:[%s5619_s1 + $0x6d0] sm:$0xf]  ;;  %v3303_v60 = vld [vmem:[%s5619_s1 + $0x7c0] sm:$0xf]  ;;  %v3660_v2 = vld [vmem:[%s5619_s1 + $0x634] sm:$0xf0] }
  0x44   :  { %1921 = vmatpush.bf16.msra.mxu0 %v2880_v27  ;;  %1890 = vmatmul.bf16.vlgmr.msrb.gmra.mxu1 %v4236_v44  ;;  %v3610_v27 = vld [vmem:[%s5619_s1 + $0x4a4] sm:$0xf0]  ;;  %v3295_v10 = vld [vmem:[%s5619_s1 + $0x7b0] sm:$0xf]  ;;  %v3708_v11 = vld [vmem:[%s5619_s1 + $0x7b4] sm:$0xf0] }
  0x45   :  { %1934 = vmatpush.bf16.msra.mxu1 %v2944_v29  ;;  %1903 = vmatmul.bf16.vlgmr.msrb.gmra.mxu2 %v4224_v38  ;;  %v3626_v29 = vld [vmem:[%s5619_s1 + $0x524] sm:$0xf0]  ;;  %v2904_v33 = vor.u32 %v3610_v27, %v2903_v25  ;;  %v3255_v27 = vld [vmem:[%s5619_s1 + $0x760] sm:$0xf] }
  0x46   :  { %1947 = vmatpush.bf16.msra.mxu2 %v3008_v30  ;;  %1916 = vmatmul.bf16.vlgmr.msrb.gmra.mxu3 %v4234_v42  ;;  %v3031_v30 = vld [vmem:[%s5619_s1 + $0x5a0] sm:$0xf] }
  0x47   :  { %1960 = vmatpush.bf16.msra.mxu3 %v3072_v34  ;;  %v2968_v34 = vor.u32 %v3626_v29, %v2967_v28  ;;  %v3032_v39 = vor.u32 %v3642_v31, %v3031_v30  ;;  %v3698_v28 = vld [vmem:[%s5619_s1 + $0x764] sm:$0xf0]  ;;  %v3319_v31 = vld [vmem:[%s5619_s1 + $0x7e0] sm:$0xf] }
  0x48   :  { %1922 = vmatpush.bf16.msra.mxu0 %v2872_v43  ;;  %v2959_v43 = vld [vmem:[%s5619_s1 + $0x510] sm:$0xf]  ;;  %v3256_v36 = vor.u32 %v3698_v28, %v3255_v27 }
  0x49   :  { %1935 = vmatpush.bf16.msra.mxu1 %v2936_v45  ;;  %v3624_v45 = vld [vmem:[%s5619_s1 + $0x514] sm:$0xf0] }
  0x4a   :  { %1948 = vmatpush.bf16.msra.mxu2 %v3000_v46  ;;  %v3023_v46 = vld [vmem:[%s5619_s1 + $0x590] sm:$0xf]  ;;  %v2960_v54 = vor.u32 %v3624_v45, %v2959_v43  ;;  %v3680_v45 = vld [vmem:[%s5619_s1 + $0x6d4] sm:$0xf0] }
  0x4b   :  { %1961 = vmatpush.bf16.msra.mxu3 %v3064_v50  ;;  %v3590_v50 = vld [vmem:[%s5619_s1 + $0x404] sm:$0xf0] }
  0x4c   :  { %1923 = vmatpush.bf16.msra.mxu0 %v2864_v56  ;;  %v3622_v56 = vld [vmem:[%s5619_s1 + $0x504] sm:$0xf0]  ;;  %v2824_v1 = vor.u32 %v3590_v50, %v2823_v48  ;;  %v3311_v48 = vld [vmem:[%s5619_s1 + $0x7d0] sm:$0xf] }
  0x4d   :  { %1936 = vmatpush.bf16.msra.mxu1 %v2928_v57  ;;  %v21_v57 = vld [vmem:[%s5620_s0 + $0x20] sm:$0xff]  ;;  %v2952_v9 = vor.u32 %v3622_v56, %v2951_v55 }
  0x4e   :  { %1949 = vmatpush.bf16.msra.mxu2 %v2992_v58  ;;  %v3024_v58 = vor.u32 %v3640_v47, %v3023_v46  ;;  %v332_v13 = vunpack.c.h.b16 %v21_v57  ;;  %v3247_v46 = vld [vmem:[%s5619_s1 + $0x750] sm:$0xf]  ;;  %v3696_v47 = vld [vmem:[%s5619_s1 + $0x754] sm:$0xf0]  ;;  %v3175_v55 = vld [vmem:[%s5619_s1 + $0x6c0] sm:$0xf] }
  0x4f   :  { %1962 = vmatpush.bf16.msra.mxu3 %v3056_v62  ;;  %v3135_v62 = vld [vmem:[%s5619_s1 + $0x670] sm:$0xf] }
  0x50   :  { %1924 = vmatpush.bf16.msra.mxu0 %v2856_v5  ;;  %v3700_v5 = vld [vmem:[%s5619_s1 + $0x774] sm:$0xf0]  ;;  %v3136_v15 = vor.u32 %v3668_v63, %v3135_v62  ;;  %v4438_v30 = vpack.c.b16 %v332_v13, %v332_v13 }
  0x51   :  { %1937 = vmatpush.bf16.msra.mxu1 %v2920_v7  ;;  %v331_v7 = vunpack.c.l.b16 %v21_v57  ;;  %v3678_v57 = vld [vmem:[%s5619_s1 + $0x6c4] sm:$0xf0] }
  0x52   :  { %1950 = vmatpush.bf16.msra.mxu2 %v2984_v8  ;;  %v2888_v8 = vor.u32 %v3606_v52, %v2887_v51  ;;  %v3184_v51 = vor.u32 %v3680_v45, %v3183_v40  ;;  %v3248_v52 = vor.u32 %v3696_v47, %v3247_v46  ;;  %v3176_v63 = vor.u32 %v3678_v57, %v3175_v55  ;;  %v3688_v40 = vld [vmem:[%s5619_s1 + $0x714] sm:$0xf0]  ;;  %v3079_v46 = vld [vmem:[%s5619_s1 + $0x600] sm:$0xf]  ;;  %v23_v55 = vld [vmem:[%s5620_s0 + $0x30] sm:$0xff] }
  0x53   :  { %1963 = vmatpush.bf16.msra.mxu3 %v3048_v12  ;;  %v333_v12 = vunpack.c.l.b16 %v22_v61  ;;  %v4425_v25 = vpack.c.b16 %v331_v7, %v331_v7  ;;  %v3710_v61 = vld [vmem:[%s5619_s1 + $0x7c4] sm:$0xf0]  ;;  %v3676_v7 = vld [vmem:[%s5619_s1 + $0x6b4] sm:$0xf0]  ;;  %v3271_v57 = vld [vmem:[%s5619_s1 + $0x780] sm:$0xf] }
  0x54   :  { %1925 = vmatpush.bf16.msra.mxu0 %v2848_v18  ;;  %v3264_v18 = vor.u32 %v3700_v5, %v3263_v3  ;;  %v3167_v3 = vld [vmem:[%s5619_s1 + $0x6b0] sm:$0xf]  ;;  %v3304_v5 = vor.u32 %v3710_v61, %v3303_v60  ;;  %v3704_v45 = vld [vmem:[%s5619_s1 + $0x794] sm:$0xf0] }
  0x55   :  { %1938 = vmatpush.bf16.msra.mxu1 %v2912_v19  ;;  %v3127_v19 = vld [vmem:[%s5619_s1 + $0x660] sm:$0xf]  ;;  %v4436_v29 = vpack.c.b16 %v333_v12, %v333_v12  ;;  %v3168_v13 = vor.u32 %v3676_v7, %v3167_v3  ;;  %v3391_v60 = vld [vmem:[%s5619_s1 + $0x870] sm:$0xf]  ;;  %v3732_v61 = vld [vmem:[%s5619_s1 + $0x874] sm:$0xf0]  ;;  %v335_v3 = vunpack.c.l.b16 %v23_v55 }
  0x56   :  { %1951 = vmatpush.bf16.msra.mxu2 %v2976_v22  ;;  %v3666_v22 = vld [vmem:[%s5619_s1 + $0x664] sm:$0xf0] }
  0x57   :  { %1964 = vmatpush.bf16.msra.mxu3 %v3040_v26  ;;  %v3682_v26 = vld [vmem:[%s5619_s1 + $0x6e4] sm:$0xf0] }
  0x58   :  { %1926 = vmatpush.bf16.msra.mxu0 %v2840_v32  ;;  %v3714_v32 = vld [vmem:[%s5619_s1 + $0x7e4] sm:$0xf0]  ;;  %v3192_v35 = vor.u32 %v3682_v26, %v3191_v23 }
  0x59   :  { %1939 = vmatpush.bf16.msra.mxu1 %v2904_v33  ;;  %v4446_v33 = vpack.c.b16 %v334_v16, %v334_v16  ;;  %v3320_v43 = vor.u32 %v3714_v32, %v3319_v31  ;;  %v3658_v16 = vld [vmem:[%s5619_s1 + $0x624] sm:$0xf0]  ;;  %v3087_v32 = vld [vmem:[%s5619_s1 + $0x610] sm:$0xf] }
  0x5a   :  { %1952 = vmatpush.bf16.msra.mxu2 %v2968_v34  ;;  %v3128_v34 = vor.u32 %v3666_v22, %v3127_v19  ;;  %v3674_v19 = vld [vmem:[%s5619_s1 + $0x6a4] sm:$0xf0]  ;;  %v3223_v22 = vld [vmem:[%s5619_s1 + $0x720] sm:$0xf] }
  0x5b   :  { %1965 = vmatpush.bf16.msra.mxu3 %v3032_v39  ;;  %v3664_v39 = vld [vmem:[%s5619_s1 + $0x654] sm:$0xf0]  ;;  %v3690_v23 = vld [vmem:[%s5619_s1 + $0x724] sm:$0xf0] }
  0x5c   :  { %1927 = vmatpush.bf16.msra.mxu0 %v2832_v49  ;;  %v3712_v49 = vld [vmem:[%s5619_s1 + $0x7d4] sm:$0xf0]  ;;  %v3120_v50 = vor.u32 %v3664_v39, %v3119_v37  ;;  %v3706_v26 = vld [vmem:[%s5619_s1 + $0x7a4] sm:$0xf0]  ;;  %v3224_v31 = vor.u32 %v3690_v23, %v3223_v22  ;;  %v3215_v39 = vld [vmem:[%s5619_s1 + $0x710] sm:$0xf]  ;;  %v4635_v23 = vpack.c.b16 %v335_v3, %v335_v3 }
  0x5d   :  { %1940 = vmatpush.bf16.msra.mxu1 %v2896_v53  ;;  %v3111_v53 = vld [vmem:[%s5619_s1 + $0x640] sm:$0xf]  ;;  %v3312_v56 = vor.u32 %v3712_v49, %v3311_v48  ;;  %v3672_v37 = vld [vmem:[%s5619_s1 + $0x694] sm:$0xf0]  ;;  %v3654_v48 = vld [vmem:[%s5619_s1 + $0x604] sm:$0xf0] }
  0x5e   :  { %1953 = vmatpush.bf16.msra.mxu2 %v2960_v54  ;;  %v3662_v54 = vld [vmem:[%s5619_s1 + $0x644] sm:$0xf0]  ;;  %v3143_v49 = vld [vmem:[%s5619_s1 + $0x680] sm:$0xf]  ;;  %v3359_v3 = vld [vmem:[%s5619_s1 + $0x830] sm:$0xf] }
  0x5f   :  { %1966 = vmatpush.bf16.msra.mxu3 %v3024_v58  ;;  %v3239_v58 = vld [vmem:[%s5619_s1 + $0x740] sm:$0xf]  ;;  %v3112_v62 = vor.u32 %v3662_v54, %v3111_v53  ;;  %v3686_v54 = vld [vmem:[%s5619_s1 + $0x704] sm:$0xf0] }
  0x60   :  { %1928 = vmatpush.bf16.msra.mxu0 %v2824_v1  ;;  %v3240_v0 = vor.u32 %v3694_v59, %v3239_v58  ;;  %v3103_v1 = vld [vmem:[%s5619_s1 + $0x630] sm:$0xf]  ;;  %v3207_v53 = vld [vmem:[%s5619_s1 + $0x700] sm:$0xf]  ;;  %v3702_v58 = vld [vmem:[%s5619_s1 + $0x784] sm:$0xf0] }
  0x61   :  { %1941 = vmatpush.bf16.msra.mxu1 %v2888_v8  ;;  %v3231_v8 = vld [vmem:[%s5619_s1 + $0x730] sm:$0xf]  ;;  %v3104_v12 = vor.u32 %v3660_v2, %v3103_v1  ;;  %v24_v59 = vld [vmem:[%s5620_s0 + $0x38] sm:$0xff]  ;;  %v3475_v1 = vld [vmem:[%s5619_s1 + $0x74] sm:$0xf]  ;;  %v3208_v7 = vor.u32 %v3686_v54, %v3207_v53 }
  0x62   :  { %1954 = vmatpush.bf16.msra.mxu2 %v2952_v9  ;;  %v3692_v9 = vld [vmem:[%s5619_s1 + $0x734] sm:$0xf0]  ;;  %v2369_v2 = vld [vmem:[%s5619_s1 + $0x78] sm:$0xf0] }
  0x63   :  { %1967 = vmatpush.bf16.msra.mxu3 %v3016_v14  ;;  %1929 = vmatmul.bf16.vlgmr.msra.gmra.mxu0 %v4425_v25  ;;  %v3232_v14 = vor.u32 %v3692_v9, %v3231_v8  ;;  %v3491_v8 = vld [vmem:[%s5619_s1 + $0xf4] sm:$0xf]  ;;  %v2433_v9 = vld [vmem:[%s5619_s1 + $0xf8] sm:$0xf0] }
  0x64   :  { %1973 = vmatpush.bf16.msrb.mxu0 %v3136_v15  ;;  %1942 = vmatmul.bf16.vlgmr.msra.gmra.mxu1 %v4438_v30  ;;  %v3095_v15 = vld [vmem:[%s5619_s1 + $0x620] sm:$0xf]  ;;  %v2436_v22 = vor.u32 %v3491_v8, %v2433_v9  ;;  %v3740_v9 = vld [vmem:[%s5619_s1 + $0x8b4] sm:$0xf0] }
  0x65   :  { %1986 = vmatpush.bf16.msrb.mxu1 %v3200_v17  ;;  %1955 = vmatmul.bf16.vlgmr.msra.gmra.mxu2 %v4436_v29  ;;  %v3159_v17 = vld [vmem:[%s5619_s1 + $0x6a0] sm:$0xf]  ;;  %v3096_v27 = vor.u32 %v3658_v16, %v3095_v15  ;;  %v2372_v16 = vor.u32 %v3475_v1, %v2369_v2 }
  0x66   :  { %1999 = vmatpush.bf16.msrb.mxu2 %v3264_v18  ;;  %1968 = vmatmul.bf16.vlgmr.msra.gmra.mxu3 %v4446_v33  ;;  %v3296_v18 = vor.u32 %v3708_v11, %v3295_v10  ;;  %v3160_v28 = vor.u32 %v3674_v19, %v3159_v17  ;;  %v337_v10 = vunpack.c.l.b16 %v24_v59  ;;  %v336_v11 = vunpack.c.h.b16 %v23_v55  ;;  %v3383_v17 = vld [vmem:[%s5619_s1 + $0x860] sm:$0xf] }
  0x67   :  { %2012 = vmatpush.bf16.msrb.mxu3 %v3328_v24  ;;  %v3287_v24 = vld [vmem:[%s5619_s1 + $0x7a0] sm:$0xf] }
  0x68   :  { %1974 = vmatpush.bf16.msrb.mxu0 %v3128_v34  ;;  %v3656_v34 = vld [vmem:[%s5619_s1 + $0x614] sm:$0xf0]  ;;  %v3447_v19 = vld [vmem:[%s5619_s1 + $0x8e0] sm:$0xf] }
  0x69   :  { %1987 = vmatpush.bf16.msrb.mxu1 %v3192_v35  ;;  %v3151_v35 = vld [vmem:[%s5619_s1 + $0x690] sm:$0xf]  ;;  %v3088_v47 = vor.u32 %v3656_v34, %v3087_v32  ;;  %v3489_v32 = vld [vmem:[%s5619_s1 + $0xe4] sm:$0xf]  ;;  %v2425_v34 = vld [vmem:[%s5619_s1 + $0xe8] sm:$0xf0] }
  0x6a   :  { %2000 = vmatpush.bf16.msrb.mxu2 %v3256_v36  ;;  %v3288_v36 = vor.u32 %v3706_v26, %v3287_v24  ;;  %v3746_v24 = vld [vmem:[%s5619_s1 + $0x8e4] sm:$0xf0]  ;;  %v3473_v26 = vld [vmem:[%s5619_s1 + $0x64] sm:$0xf]  ;;  %v3367_v55 = vld [vmem:[%s5619_s1 + $0x840] sm:$0xf] }
  0x6b   :  { %2013 = vmatpush.bf16.msrb.mxu3 %v3320_v43  ;;  %v3279_v43 = vld [vmem:[%s5619_s1 + $0x790] sm:$0xf] }
  0x6c   :  { %1975 = vmatpush.bf16.msrb.mxu0 %v3120_v50  ;;  %v3670_v50 = vld [vmem:[%s5619_s1 + $0x684] sm:$0xf0] }
  0x6d   :  { %1988 = vmatpush.bf16.msrb.mxu1 %v3184_v51  ;;  %v3152_v51 = vor.u32 %v3672_v37, %v3151_v35  ;;  %v3448_v37 = vor.u32 %v3746_v24, %v3447_v19  ;;  %v3415_v19 = vld [vmem:[%s5619_s1 + $0x8a0] sm:$0xf]  ;;  %v3738_v24 = vld [vmem:[%s5619_s1 + $0x8a4] sm:$0xf0] }
  0x6e   :  { %2001 = vmatpush.bf16.msrb.mxu2 %v3248_v52  ;;  %v3216_v52 = vor.u32 %v3688_v40, %v3215_v39  ;;  %v3375_v40 = vld [vmem:[%s5619_s1 + $0x850] sm:$0xf] }
  0x6f   :  { %2014 = vmatpush.bf16.msrb.mxu3 %v3312_v56  ;;  %v3280_v56 = vor.u32 %v3704_v45, %v3279_v43  ;;  %v3728_v43 = vld [vmem:[%s5619_s1 + $0x854] sm:$0xf0]  ;;  %v3439_v45 = vld [vmem:[%s5619_s1 + $0x8d0] sm:$0xf] }
  0x70   :  { %1976 = vmatpush.bf16.msrb.mxu0 %v3112_v62  ;;  %v3455_v62 = vld [vmem:[%s5619_s1 + $0x8f0] sm:$0xf] }
  0x71   :  { %1989 = vmatpush.bf16.msrb.mxu1 %v3176_v63  ;;  %v3080_v63 = vor.u32 %v3654_v48, %v3079_v46  ;;  %v2428_v46 = vor.u32 %v3489_v32, %v2425_v34  ;;  %v3471_v48 = vld [vmem:[%s5619_s1 + $0x54] sm:$0xf]  ;;  %v3481_v32 = vld [vmem:[%s5619_s1 + $0xa4] sm:$0xf]  ;;  %v2393_v34 = vld [vmem:[%s5619_s1 + $0xa8] sm:$0xf0] }
  0x72   :  { %2002 = vmatpush.bf16.msrb.mxu2 %v3240_v0  ;;  %v3748_v0 = vld [vmem:[%s5619_s1 + $0x8f4] sm:$0xf0] }
  0x73   :  { %2015 = vmatpush.bf16.msrb.mxu3 %v3304_v5  ;;  %v3144_v5 = vor.u32 %v3670_v50, %v3143_v49  ;;  %v3456_v15 = vor.u32 %v3748_v0, %v3455_v62  ;;  %v2353_v49 = vld [vmem:[%s5619_s1 + $0x58] sm:$0xf0]  ;;  %v3487_v50 = vld [vmem:[%s5619_s1 + $0xd4] sm:$0xf]  ;;  %v3485_v62 = vld [vmem:[%s5619_s1 + $0xc4] sm:$0xf] }
  0x74   :  { %1977 = vmatpush.bf16.msrb.mxu0 %v3104_v12  ;;  %v3272_v12 = vor.u32 %v3702_v58, %v3271_v57  ;;  %v2356_v54 = vor.u32 %v3471_v48, %v2353_v49  ;;  %v3431_v57 = vld [vmem:[%s5619_s1 + $0x8c0] sm:$0xf]  ;;  %v3463_v48 = vld [vmem:[%s5619_s1 + $0x14] sm:$0xf]  ;;  %v2321_v49 = vld [vmem:[%s5619_s1 + $0x18] sm:$0xf0] }
  0x75   :  { %1990 = vmatpush.bf16.msrb.mxu1 %v3168_v13  ;;  %v3392_v13 = vor.u32 %v3732_v61, %v3391_v60  ;;  %v3469_v60 = vld [vmem:[%s5619_s1 + $0x44] sm:$0xf]  ;;  %v2345_v61 = vld [vmem:[%s5619_s1 + $0x48] sm:$0xf0] }
  0x76   :  { %2003 = vmatpush.bf16.msrb.mxu2 %v3232_v14  ;;  %v338_v14 = vunpack.c.h.b16 %v24_v59  ;;  %v3742_v59 = vld [vmem:[%s5619_s1 + $0x8c4] sm:$0xf0]  ;;  %v2348_v2 = vor.u32 %v3469_v60, %v2345_v61  ;;  %v25_v60 = vld [vmem:[%s5620_s0 + $0x40] sm:$0xff] }
  0x77   :  { %2016 = vmatpush.bf16.msrb.mxu3 %v3296_v18  ;;  %v3730_v18 = vld [vmem:[%s5619_s1 + $0x864] sm:$0xf0]  ;;  %v3432_v1 = vor.u32 %v3742_v59, %v3431_v57  ;;  %v2324_v57 = vor.u32 %v3463_v48, %v2321_v49  ;;  %v3461_v59 = vld [vmem:[%s5619_s1 + $0x4] sm:$0xf]  ;;  %v3503_v48 = vld [vmem:[%s5619_s1 + $0x154] sm:$0xf] }
  0x78   :  { %1978 = vmatpush.bf16.msrb.mxu0 %v3096_v27  ;;  %v2361_v27 = vld [vmem:[%s5619_s1 + $0x68] sm:$0xf0]  ;;  %v4656_v35 = vpack.c.b16 %v338_v14, %v338_v14  ;;  %v2481_v49 = vld [vmem:[%s5619_s1 + $0x158] sm:$0xf0] }
  0x79   :  { %1991 = vmatpush.bf16.msrb.mxu1 %v3160_v28  ;;  %v4646_v28 = vpack.c.b16 %v337_v10, %v337_v10  ;;  %v2364_v39 = vor.u32 %v3473_v26, %v2361_v27  ;;  %v3467_v10 = vld [vmem:[%s5619_s1 + $0x34] sm:$0xf]  ;;  %v3465_v26 = vld [vmem:[%s5619_s1 + $0x24] sm:$0xf]  ;;  %v2329_v27 = vld [vmem:[%s5619_s1 + $0x28] sm:$0xf0] }
  0x7a   :  { %2004 = vmatpush.bf16.msrb.mxu2 %v3224_v31  ;;  %v4648_v31 = vpack.c.b16 %v336_v11, %v336_v11  ;;  %v2337_v11 = vld [vmem:[%s5619_s1 + $0x38] sm:$0xf0] }
  0x7b   :  { %2017 = vmatpush.bf16.msrb.mxu3 %v3288_v36  ;;  %v3384_v36 = vor.u32 %v3730_v18, %v3383_v17  ;;  %v3351_v17 = vld [vmem:[%s5619_s1 + $0x820] sm:$0xf]  ;;  %v3722_v18 = vld [vmem:[%s5619_s1 + $0x824] sm:$0xf0] }
  0x7c   :  { %1979 = vmatpush.bf16.msrb.mxu0 %v3088_v47  ;;  %v3744_v47 = vld [vmem:[%s5619_s1 + $0x8d4] sm:$0xf0] }
  0x7d   :  { %1992 = vmatpush.bf16.msrb.mxu1 %v3152_v51  ;;  %v2417_v51 = vld [vmem:[%s5619_s1 + $0xd8] sm:$0xf0]  ;;  %v3440_v53 = vor.u32 %v3744_v47, %v3439_v45  ;;  %v3407_v45 = vld [vmem:[%s5619_s1 + $0x890] sm:$0xf]  ;;  %v3736_v47 = vld [vmem:[%s5619_s1 + $0x894] sm:$0xf0] }
  0x7e   :  { %2005 = vmatpush.bf16.msrb.mxu2 %v3216_v52  ;;  %v3376_v52 = vor.u32 %v3728_v43, %v3375_v40  ;;  %v2420_v58 = vor.u32 %v3487_v50, %v2417_v51  ;;  %v3343_v40 = vld [vmem:[%s5619_s1 + $0x810] sm:$0xf]  ;;  %v3720_v43 = vld [vmem:[%s5619_s1 + $0x814] sm:$0xf0]  ;;  %v3479_v50 = vld [vmem:[%s5619_s1 + $0x94] sm:$0xf] }
  0x7f   :  { %2018 = vmatpush.bf16.msrb.mxu3 %v3280_v56  ;;  %v3726_v56 = vld [vmem:[%s5619_s1 + $0x844] sm:$0xf0]  ;;  %v2385_v51 = vld [vmem:[%s5619_s1 + $0x98] sm:$0xf0] }
  0x80   :  { %1980 = vmatpush.bf16.msrb.mxu0 %v3080_v63  ;;  %v2409_v63 = vld [vmem:[%s5619_s1 + $0xc8] sm:$0xf0]  ;;  %v3368_v0 = vor.u32 %v3726_v56, %v3367_v55  ;;  %v3399_v55 = vld [vmem:[%s5619_s1 + $0x880] sm:$0xf]  ;;  %v3408_v56 = vor.u32 %v3736_v47, %v3407_v45  ;;  %v2388_v61 = vor.u32 %v3479_v50, %v2385_v51  ;;  %v3519_v50 = vld [vmem:[%s5619_s1 + $0x1d4] sm:$0xf] }
  0x81   :  { %1993 = vmatpush.bf16.msrb.mxu1 %v3144_v5  ;;  %v3724_v5 = vld [vmem:[%s5619_s1 + $0x834] sm:$0xf0]  ;;  %v2412_v8 = vor.u32 %v3485_v62, %v2409_v63  ;;  %v2313_v62 = vld [vmem:[%s5619_s1 + $0x8] sm:$0xf0]  ;;  %v3477_v63 = vld [vmem:[%s5619_s1 + $0x84] sm:$0xf] }
  0x82   :  { %2006 = vmatpush.bf16.msrb.mxu2 %v3208_v7  ;;  %v3423_v7 = vld [vmem:[%s5619_s1 + $0x8b0] sm:$0xf]  ;;  %v3360_v14 = vor.u32 %v3724_v5, %v3359_v3  ;;  %v3523_v3 = vld [vmem:[%s5619_s1 + $0x1f4] sm:$0xf] }
  0x83   :  { %2019 = vmatpush.bf16.msrb.mxu3 %v3272_v12  ;;  %1981 = vmatmul.bf16.vlgmr.msrb.gmra.mxu0 %v4635_v23  ;;  %v3483_v12 = vld [vmem:[%s5619_s1 + $0xb4] sm:$0xf] }
  0x84   :  { %2025 = vmatpush.bf16.msra.mxu0 %v3392_v13  ;;  %1994 = vmatmul.bf16.vlgmr.msrb.gmra.mxu1 %v4648_v31  ;;  %v2401_v13 = vld [vmem:[%s5619_s1 + $0xb8] sm:$0xf0] }
  0x85   :  { %2038 = vmatpush.bf16.msra.mxu1 %v3456_v15  ;;  %2007 = vmatmul.bf16.vlgmr.msrb.gmra.mxu2 %v4646_v28  ;;  %v3424_v15 = vor.u32 %v3740_v9, %v3423_v7  ;;  %v2561_v7 = vld [vmem:[%s5619_s1 + $0x1f8] sm:$0xf0] }
  0x86   :  { %2051 = vmatpush.bf16.msra.mxu2 %v2372_v16  ;;  %2020 = vmatmul.bf16.vlgmr.msrb.gmra.mxu3 %v4656_v35  ;;  %v2340_v16 = vor.u32 %v3467_v10, %v2337_v11  ;;  %v2625_v9 = vld [vmem:[%s5619_s1 + $0x278] sm:$0xf0]  ;;  %v339_v10 = vunpack.c.l.b16 %v25_v60 }
  0x87   :  { %2064 = vmatpush.bf16.msra.mxu3 %v2436_v22  ;;  %v2404_v22 = vor.u32 %v3483_v12, %v2401_v13  ;;  %v2316_v12 = vor.u32 %v3461_v59, %v2313_v62  ;;  %v3555_v13 = vld [vmem:[%s5619_s1 + $0x2f4] sm:$0xf] }
  0x88   :  { %2026 = vmatpush.bf16.msra.mxu0 %v3384_v36  ;;  %v3352_v36 = vor.u32 %v3722_v18, %v3351_v17  ;;  %v2564_v18 = vor.u32 %v3523_v3, %v2561_v7 }
  0x89   :  { %2039 = vmatpush.bf16.msra.mxu1 %v3448_v37  ;;  %v3416_v37 = vor.u32 %v3738_v24, %v3415_v19  ;;  %v2489_v24 = vld [vmem:[%s5619_s1 + $0x168] sm:$0xf0] }
  0x8a   :  { %2052 = vmatpush.bf16.msra.mxu2 %v2364_v39  ;;  %v2332_v39 = vor.u32 %v3465_v26, %v2329_v27  ;;  %v3521_v26 = vld [vmem:[%s5619_s1 + $0x1e4] sm:$0xf] }
  0x8b   :  { %2065 = vmatpush.bf16.msra.mxu3 %v2428_v46  ;;  %v2396_v46 = vor.u32 %v3481_v32, %v2393_v34  ;;  %v4842_v32 = vpack.c.b16 %v339_v10, %v339_v10  ;;  %v2553_v34 = vld [vmem:[%s5619_s1 + $0x1e8] sm:$0xf0]  ;;  %v3515_v10 = vld [vmem:[%s5619_s1 + $0x1b4] sm:$0xf] }
  0x8c   :  { %2027 = vmatpush.bf16.msra.mxu0 %v3376_v52  ;;  %v3344_v52 = vor.u32 %v3720_v43, %v3343_v40  ;;  %v3553_v40 = vld [vmem:[%s5619_s1 + $0x2e4] sm:$0xf]  ;;  %v2681_v43 = vld [vmem:[%s5619_s1 + $0x2e8] sm:$0xf0] }
  0x8d   :  { %2040 = vmatpush.bf16.msra.mxu1 %v3440_v53  ;;  %v3335_v53 = vld [vmem:[%s5619_s1 + $0x800] sm:$0xf]  ;;  %v2684_v51 = vor.u32 %v3553_v40, %v2681_v43  ;;  %v3545_v40 = vld [vmem:[%s5619_s1 + $0x2a4] sm:$0xf]  ;;  %v2649_v43 = vld [vmem:[%s5619_s1 + $0x2a8] sm:$0xf0] }
  0x8e   :  { %2053 = vmatpush.bf16.msra.mxu2 %v2356_v54  ;;  %v3718_v54 = vld [vmem:[%s5619_s1 + $0x804] sm:$0xf0] }
  0x8f   :  { %2066 = vmatpush.bf16.msra.mxu3 %v2420_v58  ;;  %v3734_v58 = vld [vmem:[%s5619_s1 + $0x884] sm:$0xf0]  ;;  %v3336_v5 = vor.u32 %v3718_v54, %v3335_v53  ;;  %v3535_v53 = vld [vmem:[%s5619_s1 + $0x254] sm:$0xf]  ;;  %v2609_v54 = vld [vmem:[%s5619_s1 + $0x258] sm:$0xf0] }
  0x90   :  { %2028 = vmatpush.bf16.msra.mxu0 %v3368_v0  ;;  %v2377_v0 = vld [vmem:[%s5619_s1 + $0x88] sm:$0xf0]  ;;  %v3400_v11 = vor.u32 %v3734_v58, %v3399_v55  ;;  %v3551_v55 = vld [vmem:[%s5619_s1 + $0x2d4] sm:$0xf]  ;;  %v2612_v59 = vor.u32 %v3535_v53, %v2609_v54 }
  0x91   :  { %2041 = vmatpush.bf16.msra.mxu1 %v3432_v1  ;;  %v3507_v1 = vld [vmem:[%s5619_s1 + $0x174] sm:$0xf] }
  0x92   :  { %2054 = vmatpush.bf16.msra.mxu2 %v2348_v2  ;;  %v2497_v2 = vld [vmem:[%s5619_s1 + $0x178] sm:$0xf0] }
  0x93   :  { %2067 = vmatpush.bf16.msra.mxu3 %v2412_v8  ;;  %v3539_v8 = vld [vmem:[%s5619_s1 + $0x274] sm:$0xf]  ;;  %v2500_v17 = vor.u32 %v3507_v1, %v2497_v2  ;;  %v3549_v1 = vld [vmem:[%s5619_s1 + $0x2c4] sm:$0xf]  ;;  %v2665_v2 = vld [vmem:[%s5619_s1 + $0x2c8] sm:$0xf0] }
  0x94   :  { %2029 = vmatpush.bf16.msra.mxu0 %v3360_v14  ;;  %v2689_v14 = vld [vmem:[%s5619_s1 + $0x2f8] sm:$0xf0]  ;;  %v2628_v19 = vor.u32 %v3539_v8, %v2625_v9  ;;  %v3499_v8 = vld [vmem:[%s5619_s1 + $0x134] sm:$0xf] }
  0x95   :  { %2042 = vmatpush.bf16.msra.mxu1 %v3424_v15  ;;  %v340_v15 = vunpack.c.h.b16 %v25_v60  ;;  %v2692_v27 = vor.u32 %v3555_v13, %v2689_v14  ;;  %v3501_v60 = vld [vmem:[%s5619_s1 + $0x144] sm:$0xf]  ;;  %v2465_v9 = vld [vmem:[%s5619_s1 + $0x138] sm:$0xf0]  ;;  %v3531_v13 = vld [vmem:[%s5619_s1 + $0x234] sm:$0xf] }
  0x96   :  { %2055 = vmatpush.bf16.msra.mxu2 %v2340_v16  ;;  %v2380_v16 = vor.u32 %v3477_v63, %v2377_v0  ;;  %v3533_v63 = vld [vmem:[%s5619_s1 + $0x244] sm:$0xf]  ;;  %v2601_v0 = vld [vmem:[%s5619_s1 + $0x248] sm:$0xf0]  ;;  %v2593_v14 = vld [vmem:[%s5619_s1 + $0x238] sm:$0xf0] }
  0x97   :  { %2068 = vmatpush.bf16.msra.mxu3 %v2404_v22  ;;  %v3505_v22 = vld [vmem:[%s5619_s1 + $0x164] sm:$0xf]  ;;  %v2604_v7 = vor.u32 %v3533_v63, %v2601_v0  ;;  %v2441_v63 = vld [vmem:[%s5619_s1 + $0x108] sm:$0xf0] }
  0x98   :  { %2030 = vmatpush.bf16.msra.mxu0 %v3352_v36  ;;  %v3537_v36 = vld [vmem:[%s5619_s1 + $0x264] sm:$0xf]  ;;  %v2492_v45 = vor.u32 %v3505_v22, %v2489_v24  ;;  %v2457_v24 = vld [vmem:[%s5619_s1 + $0x128] sm:$0xf0] }
  0x99   :  { %2043 = vmatpush.bf16.msra.mxu1 %v3416_v37  ;;  %v2617_v37 = vld [vmem:[%s5619_s1 + $0x268] sm:$0xf0]  ;;  %v3497_v22 = vld [vmem:[%s5619_s1 + $0x124] sm:$0xf] }
  0x9a   :  { %2056 = vmatpush.bf16.msra.mxu2 %v2332_v39  ;;  %v4853_v39 = vpack.c.b16 %v340_v15, %v340_v15  ;;  %v2620_v47 = vor.u32 %v3537_v36, %v2617_v37  ;;  %v3547_v15 = vld [vmem:[%s5619_s1 + $0x2b4] sm:$0xf]  ;;  %v3529_v36 = vld [vmem:[%s5619_s1 + $0x224] sm:$0xf]  ;;  %v2585_v37 = vld [vmem:[%s5619_s1 + $0x228] sm:$0xf0] }
  0x9b   :  { %2069 = vmatpush.bf16.msra.mxu3 %v2396_v46  ;;  %v2556_v46 = vor.u32 %v3521_v26, %v2553_v34  ;;  %v3513_v26 = vld [vmem:[%s5619_s1 + $0x1a4] sm:$0xf]  ;;  %v2521_v34 = vld [vmem:[%s5619_s1 + $0x1a8] sm:$0xf0] }
  0x9c   :  { %2031 = vmatpush.bf16.msra.mxu0 %v3344_v52  ;;  %v2545_v52 = vld [vmem:[%s5619_s1 + $0x1d8] sm:$0xf0] }
  0x9d   :  { %2044 = vmatpush.bf16.msra.mxu1 %v3408_v56  ;;  %v2673_v56 = vld [vmem:[%s5619_s1 + $0x2d8] sm:$0xf0]  ;;  %v2548_v58 = vor.u32 %v3519_v50, %v2545_v52  ;;  %v3495_v50 = vld [vmem:[%s5619_s1 + $0x114] sm:$0xf] }
  0x9e   :  { %2057 = vmatpush.bf16.msra.mxu2 %v2324_v57  ;;  %v2484_v57 = vor.u32 %v3503_v48, %v2481_v49  ;;  %v2676_v62 = vor.u32 %v3551_v55, %v2673_v56  ;;  %v2524_v48 = vor.u32 %v3513_v26, %v2521_v34  ;;  %v2588_v49 = vor.u32 %v3529_v36, %v2585_v37  ;;  %v3511_v52 = vld [vmem:[%s5619_s1 + $0x194] sm:$0xf]  ;;  %v2513_v56 = vld [vmem:[%s5619_s1 + $0x198] sm:$0xf0] }
  0x9f   :  { %2070 = vmatpush.bf16.msra.mxu3 %v2388_v61  ;;  %v2473_v61 = vld [vmem:[%s5619_s1 + $0x148] sm:$0xf0]  ;;  %v2652_v55 = vor.u32 %v3545_v40, %v2649_v43  ;;  %v2516_v0 = vor.u32 %v3511_v52, %v2513_v56  ;;  %v2945_v34 = vld [vmem:[%s5619_s1 + $0x4f8] sm:$0xf0]  ;;  %v3601_v52 = vld [vmem:[%s5619_s1 + $0x464] sm:$0xf] }
  0xa0   :  { %2032 = vmatpush.bf16.msra.mxu0 %v3336_v5  ;;  %v2476_v3 = vor.u32 %v3501_v60, %v2473_v61  ;;  %v3543_v60 = vld [vmem:[%s5619_s1 + $0x294] sm:$0xf]  ;;  %v2641_v61 = vld [vmem:[%s5619_s1 + $0x298] sm:$0xf0] }
  0xa1   :  { %2045 = vmatpush.bf16.msra.mxu1 %v3400_v11  ;;  %v2668_v11 = vor.u32 %v3549_v1, %v2665_v2  ;;  %v3509_v2 = vld [vmem:[%s5619_s1 + $0x184] sm:$0xf] }
  0xa2   :  { %2058 = vmatpush.bf16.msra.mxu2 %v2316_v12  ;;  %v2529_v12 = vld [vmem:[%s5619_s1 + $0x1b8] sm:$0xf0] }
  0xa3   :  { %2071 = vmatpush.bf16.msra.mxu3 %v2380_v16  ;;  %2033 = vmatmul.bf16.vlgmr.msra.gmra.mxu0 %v4842_v32  ;;  %v2657_v16 = vld [vmem:[%s5619_s1 + $0x2b8] sm:$0xf0] }
  0xa4   :  { %2077 = vmatpush.bf16.msrb.mxu0 %v2500_v17  ;;  %2046 = vmatmul.bf16.vlgmr.msra.gmra.mxu1 %v4853_v39  ;;  %v2468_v17 = vor.u32 %v3499_v8, %v2465_v9  ;;  %v2644_v8 = vor.u32 %v3543_v60, %v2641_v61  ;;  %v2569_v9 = vld [vmem:[%s5619_s1 + $0x208] sm:$0xf0]  ;;  %v2737_v60 = vld [vmem:[%s5619_s1 + $0x358] sm:$0xf0]  ;;  %v3583_v61 = vld [vmem:[%s5619_s1 + $0x3d4] sm:$0xf] }
  0xa5   :  { %2090 = vmatpush.bf16.msrb.mxu1 %v2564_v18  ;;  %2059 = vmatmul.bf16.vlgmr.msra.gmra.mxu2 %v4073_v20  ;;  %v3517_v20 = vld [vmem:[%s5619_s1 + $0x1c4] sm:$0xf]  ;;  %v2532_v18 = vor.u32 %v3515_v10, %v2529_v12  ;;  %v3571_v12 = vld [vmem:[%s5619_s1 + $0x374] sm:$0xf] }
  0xa6   :  { %2103 = vmatpush.bf16.msrb.mxu2 %v2628_v19  ;;  %2072 = vmatmul.bf16.vlgmr.msra.gmra.mxu3 %v4076_v21  ;;  %v2537_v21 = vld [vmem:[%s5619_s1 + $0x1c8] sm:$0xf0]  ;;  %v2596_v19 = vor.u32 %v3531_v13, %v2593_v14  ;;  %v3541_v10 = vld [vmem:[%s5619_s1 + $0x284] sm:$0xf]  ;;  %v2753_v13 = vld [vmem:[%s5619_s1 + $0x378] sm:$0xf0] }
  0xa7   :  { %2116 = vmatpush.bf16.msrb.mxu3 %v2692_v27  ;;  %v2540_v5 = vor.u32 %v3517_v20, %v2537_v21  ;;  %v2660_v27 = vor.u32 %v3547_v15, %v2657_v16  ;;  %v3493_v21 = vld [vmem:[%s5619_s1 + $0x104] sm:$0xf]  ;;  %v3587_v14 = vld [vmem:[%s5619_s1 + $0x3f4] sm:$0xf]  ;;  %v2756_v40 = vor.u32 %v3571_v12, %v2753_v13  ;;  %v2921_v12 = vld [vmem:[%s5619_s1 + $0x4c8] sm:$0xf0] }
  0xa8   :  { %2078 = vmatpush.bf16.msrb.mxu0 %v2492_v45  ;;  %v1826_v45 = vpop.f32.mrf.mxu0  ;;  %v1852_v54 = vpop.f32.mrf.mxu2  ;;  %v2444_v16 = vor.u32 %v3493_v21, %v2441_v63  ;;  %v3599_v21 = vld [vmem:[%s5619_s1 + $0x454] sm:$0xf]  ;;  %v2865_v63 = vld [vmem:[%s5619_s1 + $0x458] sm:$0xf0] }
  0xa9   :  { %2091 = vmatpush.bf16.msrb.mxu1 %v2556_v46  ;;  %v2460_v46 = vor.u32 %v3497_v22, %v2457_v24 }
  0xaa   :  { %2104 = vmatpush.bf16.msrb.mxu2 %v2620_v47  ;;  %v1839_v47 = vpop.f32.mrf.mxu1 }
  0xab   :  { %2117 = vmatpush.bf16.msrb.mxu3 %v2684_v51  ;;  %v2449_v51 = vld [vmem:[%s5619_s1 + $0x118] sm:$0xf0]  ;;  %v1840_v53 = vadd.f32 %v1839_v47, %v1826_v45  ;;  %v3569_v47 = vld [vmem:[%s5619_s1 + $0x364] sm:$0xf] }
  0xac   :  { %2079 = vmatpush.bf16.msrb.mxu0 %v2484_v57  ;;  %v3527_v57 = vld [vmem:[%s5619_s1 + $0x214] sm:$0xf] }
  0xad   :  { %2092 = vmatpush.bf16.msrb.mxu1 %v2548_v58  ;;  %v2577_v58 = vld [vmem:[%s5619_s1 + $0x218] sm:$0xf0]  ;;  %v1853_v20 = vadd.f32 %v1852_v54, %v1840_v53  ;;  %v2873_v53 = vld [vmem:[%s5619_s1 + $0x468] sm:$0xf0]  ;;  %v3617_v54 = vld [vmem:[%s5619_s1 + $0x4e4] sm:$0xf] }
  0xae   :  { %2105 = vmatpush.bf16.msrb.mxu2 %v2612_v59  ;;  %v1865_v59 = vpop.f32.mrf.mxu3  ;;  %v2580_v1 = vor.u32 %v3527_v57, %v2577_v58  ;;  %v2876_v58 = vor.u32 %v3601_v52, %v2873_v53  ;;  %v2777_v52 = vld [vmem:[%s5619_s1 + $0x3a8] sm:$0xf0]  ;;  %v3593_v53 = vld [vmem:[%s5619_s1 + $0x424] sm:$0xf] }
  0xaf   :  { %2118 = vmatpush.bf16.msrb.mxu3 %v2676_v62  ;;  %v2452_v62 = vor.u32 %v3495_v50, %v2449_v51  ;;  %v2809_v51 = vld [vmem:[%s5619_s1 + $0x3e8] sm:$0xf0] }
  0xb0   :  { %2080 = vmatpush.bf16.msrb.mxu0 %v2476_v3  ;;  %v2505_v3 = vld [vmem:[%s5619_s1 + $0x188] sm:$0xf0]  ;;  %v1828_v15 = vpop.f32.mrf.mxu0  ;;  %v1854_v36 = vpop.f32.mrf.mxu2 }
  0xb1   :  { %2093 = vmatpush.bf16.msrb.mxu1 %v2540_v5  ;;  %v3525_v5 = vld [vmem:[%s5619_s1 + $0x204] sm:$0xf]  ;;  %v2508_v24 = vor.u32 %v3509_v2, %v2505_v3  ;;  %v2868_v3 = vor.u32 %v3599_v21, %v2865_v63  ;;  %v2849_v36 = vld [vmem:[%s5619_s1 + $0x438] sm:$0xf0]  ;;  %v3559_v21 = vld [vmem:[%s5619_s1 + $0x314] sm:$0xf] }
  0xb2   :  { %2106 = vmatpush.bf16.msrb.mxu2 %v2604_v7  ;;  %v5000_v7 = vadd.f32 %v1865_v59, %v1853_v20  ;;  %v1841_v22 = vpop.f32.mrf.mxu1  ;;  %v2572_v26 = vor.u32 %v3525_v5, %v2569_v9  ;;  %v3567_v59 = vld [vmem:[%s5619_s1 + $0x354] sm:$0xf]  ;;  %v3581_v5 = vld [vmem:[%s5619_s1 + $0x3c4] sm:$0xf]  ;;  %v2705_v63 = vld [vmem:[%s5619_s1 + $0x318] sm:$0xf0] }
  0xb3   :  { %2119 = vmatpush.bf16.msrb.mxu3 %v2668_v11  ;;  %v2633_v11 = vld [vmem:[%s5619_s1 + $0x288] sm:$0xf0]  ;;  %v3597_v9 = vld [vmem:[%s5619_s1 + $0x444] sm:$0xf] }
  0xb4   :  { %2081 = vmatpush.bf16.msrb.mxu0 %v2468_v17  ;;  %v2817_v17 = vld [vmem:[%s5619_s1 + $0x3f8] sm:$0xf0]  ;;  %v2636_v37 = vor.u32 %v3541_v10, %v2633_v11  ;;  %v2857_v10 = vld [vmem:[%s5619_s1 + $0x448] sm:$0xf0]  ;;  %v3613_v11 = vld [vmem:[%s5619_s1 + $0x4c4] sm:$0xf] }
  0xb5   :  { %2094 = vmatpush.bf16.msrb.mxu1 %v2532_v18  ;;  %v3603_v18 = vld [vmem:[%s5619_s1 + $0x474] sm:$0xf]  ;;  %v2820_v45 = vor.u32 %v3587_v14, %v2817_v17 }
  0xb6   :  { %2107 = vmatpush.bf16.msrb.mxu2 %v2596_v19  ;;  %v2881_v19 = vld [vmem:[%s5619_s1 + $0x478] sm:$0xf0]  ;;  %v1867_v43 = vpop.f32.mrf.mxu3  ;;  %v3563_v17 = vld [vmem:[%s5619_s1 + $0x334] sm:$0xf] }
  0xb7   :  { %2120 = vmatpush.bf16.msrb.mxu3 %v2660_v27  ;;  %v3619_v27 = vld [vmem:[%s5619_s1 + $0x4f4] sm:$0xf] }
  0xb8   :  { %2082 = vmatpush.bf16.msrb.mxu0 %v2460_v46  ;;  %v2884_v46 = vor.u32 %v3603_v18, %v2881_v19  ;;  %v2948_v50 = vor.u32 %v3619_v27, %v2945_v34  ;;  %v2721_v18 = vld [vmem:[%s5619_s1 + $0x338] sm:$0xf0]  ;;  %v3579_v19 = vld [vmem:[%s5619_s1 + $0x3b4] sm:$0xf] }
  0xb9   :  { %2095 = vmatpush.bf16.msrb.mxu1 %v2524_v48  ;;  %v2745_v48 = vld [vmem:[%s5619_s1 + $0x368] sm:$0xf0]  ;;  %v2785_v27 = vld [vmem:[%s5619_s1 + $0x3b8] sm:$0xf0]  ;;  %v3595_v34 = vld [vmem:[%s5619_s1 + $0x434] sm:$0xf]  ;;  %v2724_v43 = vor.u32 %v3563_v17, %v2721_v18 }
  0xba   :  { %2108 = vmatpush.bf16.msrb.mxu2 %v2588_v49  ;;  %v3585_v49 = vld [vmem:[%s5619_s1 + $0x3e4] sm:$0xf]  ;;  %v2748_v56 = vor.u32 %v3569_v47, %v2745_v48  ;;  %v2713_v48 = vld [vmem:[%s5619_s1 + $0x328] sm:$0xf0] }
  0xbb   :  { %2121 = vmatpush.bf16.msrb.mxu3 %v2652_v55  ;;  %v2937_v55 = vld [vmem:[%s5619_s1 + $0x4e8] sm:$0xf0]  ;;  %v2812_v57 = vor.u32 %v3585_v49, %v2809_v51  ;;  %v3561_v47 = vld [vmem:[%s5619_s1 + $0x324] sm:$0xf] }
  0xbc   :  { %2083 = vmatpush.bf16.msrb.mxu0 %v2452_v62  ;;  %v2940_v20 = vor.u32 %v3617_v54, %v2937_v55  ;;  %v2801_v62 = vld [vmem:[%s5619_s1 + $0x3d8] sm:$0xf0]  ;;  %v3577_v49 = vld [vmem:[%s5619_s1 + $0x3a4] sm:$0xf]  ;;  %v2841_v54 = vld [vmem:[%s5619_s1 + $0x428] sm:$0xf0] }
  0xbd   :  { %2096 = vmatpush.bf16.msrb.mxu1 %v2516_v0  ;;  %v2929_v0 = vld [vmem:[%s5619_s1 + $0x4d8] sm:$0xf0]  ;;  %v2804_v2 = vor.u32 %v3583_v61, %v2801_v62  ;;  %v2844_v62 = vor.u32 %v3593_v53, %v2841_v54  ;;  %v2825_v17 = vld [vmem:[%s5619_s1 + $0x408] sm:$0xf0]  ;;  %v3605_v18 = vld [vmem:[%s5619_s1 + $0x484] sm:$0xf] }
  0xbe   :  { %2109 = vmatpush.bf16.msrb.mxu2 %v2580_v1  ;;  %v2740_v1 = vor.u32 %v3567_v59, %v2737_v60  ;;  %v2716_v59 = vor.u32 %v3561_v47, %v2713_v48  ;;  %v3649_v53 = vld [vmem:[%s5619_s1 + $0x5e4] sm:$0xf] }
  0xbf   :  { %2122 = vmatpush.bf16.msrb.mxu3 %v2644_v8 }
  0xc0   :  { %2084 = vmatpush.bf16.msrb.mxu0 %v2444_v16  ;;  %v1878_v14 = vpop.f32.mrf.mxu0  ;;  %v2860_v16 = vor.u32 %v3597_v9, %v2857_v10  ;;  %v2697_v9 = vld [vmem:[%s5619_s1 + $0x308] sm:$0xf0] }
  0xc1   :  { %2097 = vmatpush.bf16.msrb.mxu1 %v2508_v24  ;;  %v1879_v22 = vadd.f32 %v1878_v14, %v5000_v7  ;;  %v1891_v24 = vpop.f32.mrf.mxu1  ;;  %v2913_v7 = vld [vmem:[%s5619_s1 + $0x4b8] sm:$0xf0]  ;;  %v3589_v14 = vld [vmem:[%s5619_s1 + $0x404] sm:$0xf] }
  0xc2   :  { %2110 = vmatpush.bf16.msrb.mxu2 %v2572_v26  ;;  %v2924_v26 = vor.u32 %v3613_v11, %v2921_v12  ;;  %v3573_v12 = vld [vmem:[%s5619_s1 + $0x384] sm:$0xf] }
  0xc3   :  { %2123 = vmatpush.bf16.msrb.mxu3 %v2636_v37  ;;  %2085 = vmatmul.bf16.vlgmr.msrb.gmra.mxu0 %v4041_v4  ;;  %v3565_v4 = vld [vmem:[%s5619_s1 + $0x344] sm:$0xf]  ;;  %v3611_v37 = vld [vmem:[%s5619_s1 + $0x4b4] sm:$0xf] }
  0xc4   :  { %2129 = vmatpush.bf16.msra.mxu0 %v2756_v40  ;;  %2098 = vmatmul.bf16.vlgmr.msrb.gmra.mxu1 %v4046_v6  ;;  %v2793_v6 = vld [vmem:[%s5619_s1 + $0x3c8] sm:$0xf0]  ;;  %v1892_v40 = vadd.f32 %v1891_v24, %v1879_v22  ;;  %v2916_v51 = vor.u32 %v3611_v37, %v2913_v7  ;;  %v3635_v24 = vld [vmem:[%s5619_s1 + $0x574] sm:$0xf]  ;;  %v3137_v7 = vld [vmem:[%s5619_s1 + $0x678] sm:$0xf0] }
  0xc5   :  { %2142 = vmatpush.bf16.msra.mxu1 %v2820_v45  ;;  %2111 = vmatmul.bf16.vlgmr.msrb.gmra.mxu2 %v4232_v41  ;;  %v3615_v41 = vld [vmem:[%s5619_s1 + $0x4d4] sm:$0xf]  ;;  %v2796_v15 = vor.u32 %v3581_v5, %v2793_v6  ;;  %v2788_v45 = vor.u32 %v3579_v19, %v2785_v27  ;;  %v2897_v5 = vld [vmem:[%s5619_s1 + $0x498] sm:$0xf0]  ;;  %v3557_v6 = vld [vmem:[%s5619_s1 + $0x304] sm:$0xf] }
  0xc6   :  { %2155 = vmatpush.bf16.msra.mxu2 %v2884_v46  ;;  %2124 = vmatmul.bf16.vlgmr.msrb.gmra.mxu3 %v4236_v44  ;;  %v2729_v44 = vld [vmem:[%s5619_s1 + $0x348] sm:$0xf0]  ;;  %v2932_v8 = vor.u32 %v3615_v41, %v2929_v0  ;;  %v2852_v46 = vor.u32 %v3595_v34, %v2849_v36  ;;  %v3575_v41 = vld [vmem:[%s5619_s1 + $0x394] sm:$0xf]  ;;  %v2700_v34 = vor.u32 %v3557_v6, %v2697_v9  ;;  %v3073_v36 = vld [vmem:[%s5619_s1 + $0x5f8] sm:$0xf0] }
  0xc7   :  { %2168 = vmatpush.bf16.msra.mxu3 %v2948_v50  ;;  %v2732_v13 = vor.u32 %v3565_v4, %v2729_v44  ;;  %v2833_v4 = vld [vmem:[%s5619_s1 + $0x418] sm:$0xf0]  ;;  %v3607_v44 = vld [vmem:[%s5619_s1 + $0x494] sm:$0xf]  ;;  %v2889_v19 = vld [vmem:[%s5619_s1 + $0x488] sm:$0xf0] }
  0xc8   :  { %2130 = vmatpush.bf16.msra.mxu0 %v2748_v56  ;;  %v1904_v50 = vpop.f32.mrf.mxu2  ;;  %v1880_v61 = vpop.f32.mrf.mxu0  ;;  %v3651_v27 = vld [vmem:[%s5619_s1 + $0x5f4] sm:$0xf]  ;;  %v2892_v47 = vor.u32 %v3605_v18, %v2889_v19  ;;  %v3645_v6 = vld [vmem:[%s5619_s1 + $0x5c4] sm:$0xf]  ;;  %v3049_v9 = vld [vmem:[%s5619_s1 + $0x5c8] sm:$0xf0] }
  0xc9   :  { %2143 = vmatpush.bf16.msra.mxu1 %v2812_v57  ;;  %v1905_v55 = vadd.f32 %v1904_v50, %v1892_v40  ;;  %v1917_v56 = vpop.f32.mrf.mxu3  ;;  %v3609_v57 = vld [vmem:[%s5619_s1 + $0x4a4] sm:$0xf]  ;;  %v1893_v0 = vpop.f32.mrf.mxu1  ;;  %v3667_v37 = vld [vmem:[%s5619_s1 + $0x674] sm:$0xf]  ;;  %v3052_v18 = vor.u32 %v3645_v6, %v3049_v9 }
  0xca   :  { %2156 = vmatpush.bf16.msra.mxu2 %v2876_v58  ;;  %v2905_v58 = vld [vmem:[%s5619_s1 + $0x4a8] sm:$0xf0]  ;;  %v3140_v50 = vor.u32 %v3667_v37, %v3137_v7  ;;  %v3105_v37 = vld [vmem:[%s5619_s1 + $0x638] sm:$0xf0]  ;;  %v3675_v7 = vld [vmem:[%s5619_s1 + $0x6b4] sm:$0xf] }
  0xcb   :  { %2169 = vmatpush.bf16.msra.mxu3 %v2940_v20  ;;  %v5160_v60 = vadd.f32 %v1917_v56, %v1905_v55  ;;  %v2780_v20 = vor.u32 %v3577_v49, %v2777_v52  ;;  %v3076_v49 = vor.u32 %v3651_v27, %v3073_v36  ;;  %v3001_v52 = vld [vmem:[%s5619_s1 + $0x568] sm:$0xf0]  ;;  %v3665_v56 = vld [vmem:[%s5619_s1 + $0x664] sm:$0xf]  ;;  %v3659_v36 = vld [vmem:[%s5619_s1 + $0x634] sm:$0xf] }
  0xcc   :  { %2131 = vmatpush.bf16.msra.mxu0 %v2740_v1  ;;  %v2908_v1 = vor.u32 %v3609_v57, %v2905_v58  ;;  %v3065_v55 = vld [vmem:[%s5619_s1 + $0x5e8] sm:$0xf0]  ;;  %v3681_v58 = vld [vmem:[%s5619_s1 + $0x6e4] sm:$0xf] }
  0xcd   :  { %2144 = vmatpush.bf16.msra.mxu1 %v2804_v2  ;;  %v2769_v2 = vld [vmem:[%s5619_s1 + $0x398] sm:$0xf0]  ;;  %v3129_v57 = vld [vmem:[%s5619_s1 + $0x668] sm:$0xf0]  ;;  %v3637_v9 = vld [vmem:[%s5619_s1 + $0x584] sm:$0xf] }
  0xce   :  { %2157 = vmatpush.bf16.msra.mxu2 %v2868_v3  ;;  %v3591_v3 = vld [vmem:[%s5619_s1 + $0x414] sm:$0xf]  ;;  %v2772_v10 = vor.u32 %v3575_v41, %v2769_v2 }
  0xcf   :  { %2170 = vmatpush.bf16.msra.mxu3 %v2932_v8  ;;  %v2708_v8 = vor.u32 %v3559_v21, %v2705_v63  ;;  %v2836_v11 = vor.u32 %v3591_v3, %v2833_v4  ;;  %v3631_v21 = vld [vmem:[%s5619_s1 + $0x554] sm:$0xf]  ;;  %v2993_v63 = vld [vmem:[%s5619_s1 + $0x558] sm:$0xf0] }
  0xd0   :  { %2132 = vmatpush.bf16.msra.mxu0 %v2732_v13  ;;  %v2761_v13 = vld [vmem:[%s5619_s1 + $0x388] sm:$0xf0]  ;;  %v3647_v41 = vld [vmem:[%s5619_s1 + $0x5d4] sm:$0xf]  ;;  %v3121_v3 = vld [vmem:[%s5619_s1 + $0x658] sm:$0xf0] }
  0xd1   :  { %2145 = vmatpush.bf16.msra.mxu1 %v2796_v15  ;;  %v1906_v15 = vpop.f32.mrf.mxu2  ;;  %v1919_v22 = vpop.f32.mrf.mxu3  ;;  %v2764_v40 = vor.u32 %v3573_v12, %v2761_v13  ;;  %v3663_v2 = vld [vmem:[%s5619_s1 + $0x654] sm:$0xf]  ;;  %v3185_v4 = vld [vmem:[%s5619_s1 + $0x6d8] sm:$0xf0]  ;;  %v3677_v13 = vld [vmem:[%s5619_s1 + $0x6c4] sm:$0xf] }
  0xd2   :  { %2158 = vmatpush.bf16.msra.mxu2 %v2860_v16  ;;  %v2900_v16 = vor.u32 %v3607_v44, %v2897_v5  ;;  %v2996_v44 = vor.u32 %v3631_v21, %v2993_v63  ;;  %v3627_v22 = vld [vmem:[%s5619_s1 + $0x534] sm:$0xf] }
  0xd3   :  { %2171 = vmatpush.bf16.msra.mxu3 %v2924_v26  ;;  %v3009_v26 = vld [vmem:[%s5619_s1 + $0x578] sm:$0xf0] }
  0xd4   :  { %2133 = vmatpush.bf16.msra.mxu0 %v2724_v43  ;;  %v2828_v43 = vor.u32 %v3589_v14, %v2825_v17  ;;  %v3012_v48 = vor.u32 %v3635_v24, %v3009_v26  ;;  %v3177_v14 = vld [vmem:[%s5619_s1 + $0x6c8] sm:$0xf0]  ;;  %v2977_v24 = vld [vmem:[%s5619_s1 + $0x538] sm:$0xf0]  ;;  %v3643_v26 = vld [vmem:[%s5619_s1 + $0x5b4] sm:$0xf] }
  0xd5   :  { %2146 = vmatpush.bf16.msra.mxu1 %v2788_v45  ;;  %v3683_v45 = vld [vmem:[%s5619_s1 + $0x6f4] sm:$0xf] }
  0xd6   :  { %2159 = vmatpush.bf16.msra.mxu2 %v2852_v46  ;;  %v3201_v46 = vld [vmem:[%s5619_s1 + $0x6f8] sm:$0xf0] }
  0xd7   :  { %2172 = vmatpush.bf16.msra.mxu3 %v2916_v51  ;;  %v3633_v51 = vld [vmem:[%s5619_s1 + $0x564] sm:$0xf]  ;;  %v3204_v54 = vor.u32 %v3683_v45, %v3201_v46  ;;  %v3108_v46 = vor.u32 %v3659_v36, %v3105_v37  ;;  %v3747_v37 = vld [vmem:[%s5619_s1 + $0x8f4] sm:$0xf] }
  0xd8   :  { %2134 = vmatpush.bf16.msra.mxu0 %v2716_v59  ;;  %v3193_v59 = vld [vmem:[%s5619_s1 + $0x6e8] sm:$0xf0]  ;;  %v3004_v61 = vor.u32 %v3633_v51, %v3001_v52 }
  0xd9   :  { %2147 = vmatpush.bf16.msra.mxu1 %v2780_v20  ;;  %v3068_v20 = vor.u32 %v3649_v53, %v3065_v55  ;;  %v3196_v0 = vor.u32 %v3681_v58, %v3193_v59  ;;  %v3033_v52 = vld [vmem:[%s5619_s1 + $0x5a8] sm:$0xf0]  ;;  %v3657_v53 = vld [vmem:[%s5619_s1 + $0x624] sm:$0xf] }
  0xda   :  { %2160 = vmatpush.bf16.msra.mxu2 %v2844_v62  ;;  %v3132_v62 = vor.u32 %v3665_v56, %v3129_v57  ;;  %v3673_v57 = vld [vmem:[%s5619_s1 + $0x6a4] sm:$0xf]  ;;  %v3161_v58 = vld [vmem:[%s5619_s1 + $0x6a8] sm:$0xf0] }
  0xdb   :  { %2173 = vmatpush.bf16.msra.mxu3 %v2908_v1  ;;  %v3057_v1 = vld [vmem:[%s5619_s1 + $0x5d8] sm:$0xf0] }
  0xdc   :  { %2135 = vmatpush.bf16.msra.mxu0 %v2708_v8  ;;  %v3060_v5 = vor.u32 %v3647_v41, %v3057_v1  ;;  %v3124_v8 = vor.u32 %v3663_v2, %v3121_v3  ;;  %v3623_v41 = vld [vmem:[%s5619_s1 + $0x514] sm:$0xf]  ;;  %v3164_v2 = vor.u32 %v3673_v57, %v3161_v58  ;;  %v3025_v3 = vld [vmem:[%s5619_s1 + $0x598] sm:$0xf0] }
  0xdd   :  { %2148 = vmatpush.bf16.msra.mxu1 %v2772_v10  ;;  %v3661_v10 = vld [vmem:[%s5619_s1 + $0x644] sm:$0xf]  ;;  %v3639_v1 = vld [vmem:[%s5619_s1 + $0x594] sm:$0xf] }
  0xde   :  { %2161 = vmatpush.bf16.msra.mxu2 %v2836_v11  ;;  %v3113_v11 = vld [vmem:[%s5619_s1 + $0x648] sm:$0xf0]  ;;  %v3028_v6 = vor.u32 %v3639_v1, %v3025_v3  ;;  %v3441_v1 = vld [vmem:[%s5619_s1 + $0x8d8] sm:$0xf0] }
  0xdf   :  { %2174 = vmatpush.bf16.msra.mxu3 %v2900_v16  ;;  %v3116_v19 = vor.u32 %v3661_v10, %v3113_v11  ;;  %v3017_v10 = vld [vmem:[%s5619_s1 + $0x588] sm:$0xf0]  ;;  %v3653_v11 = vld [vmem:[%s5619_s1 + $0x604] sm:$0xf] }
  0xe0   :  { %2136 = vmatpush.bf16.msra.mxu0 %v2700_v34  ;;  %v1930_v12 = vpop.f32.mrf.mxu0  ;;  %v3041_v34 = vld [vmem:[%s5619_s1 + $0x5b8] sm:$0xf0] }
  0xe1   :  { %2149 = vmatpush.bf16.msra.mxu1 %v2764_v40  ;;  %v1931_v15 = vadd.f32 %v1930_v12, %v5160_v60  ;;  %v1943_v17 = vpop.f32.mrf.mxu1  ;;  %v3180_v60 = vor.u32 %v3677_v13, %v3177_v14  ;;  %v3169_v40 = vld [vmem:[%s5619_s1 + $0x6b8] sm:$0xf0]  ;;  %v3044_v45 = vor.u32 %v3643_v26, %v3041_v34  ;;  %v3081_v13 = vld [vmem:[%s5619_s1 + $0x608] sm:$0xf0]  ;;  %v3669_v14 = vld [vmem:[%s5619_s1 + $0x684] sm:$0xf]  ;;  %v3020_v34 = vor.u32 %v3637_v9, %v3017_v10 }
  0xe2   :  { %2162 = vmatpush.bf16.msra.mxu2 %v2828_v43  ;;  %v2980_v43 = vor.u32 %v3627_v22, %v2977_v24  ;;  %v3329_v26 = vld [vmem:[%s5619_s1 + $0x7f8] sm:$0xf0]  ;;  %v3084_v36 = vor.u32 %v3653_v11, %v3081_v13  ;;  %v3691_v13 = vld [vmem:[%s5619_s1 + $0x734] sm:$0xf] }
  0xe3   :  { %2175 = vmatpush.bf16.msra.mxu3 %v2892_v47  ;;  %2137 = vmatmul.bf16.vlgmr.msra.gmra.mxu0 %v4224_v38  ;;  %v3679_v38 = vld [vmem:[%s5619_s1 + $0x6d4] sm:$0xf]  ;;  %v1944_v27 = vadd.f32 %v1943_v17, %v1931_v15  ;;  %v3625_v47 = vld [vmem:[%s5619_s1 + $0x524] sm:$0xf]  ;;  %v3145_v15 = vld [vmem:[%s5619_s1 + $0x688] sm:$0xf0] }
  0xe4   :  { %2181 = vmatpush.bf16.msrb.mxu0 %v3012_v48  ;;  %2150 = vmatmul.bf16.vlgmr.msra.gmra.mxu1 %v4234_v42  ;;  %v3629_v42 = vld [vmem:[%s5619_s1 + $0x544] sm:$0xf]  ;;  %v2969_v48 = vld [vmem:[%s5619_s1 + $0x528] sm:$0xf0]  ;;  %v3699_v17 = vld [vmem:[%s5619_s1 + $0x774] sm:$0xf] }
  0xe5   :  { %2194 = vmatpush.bf16.msrb.mxu1 %v3076_v49  ;;  %2163 = vmatmul.bf16.vlgmr.msra.gmra.mxu2 %v4425_v25  ;;  %v2985_v25 = vld [vmem:[%s5619_s1 + $0x548] sm:$0xf0]  ;;  %v3641_v49 = vld [vmem:[%s5619_s1 + $0x5a4] sm:$0xf] }
  0xe6   :  { %2207 = vmatpush.bf16.msrb.mxu2 %v3140_v50  ;;  %2176 = vmatmul.bf16.vlgmr.msra.gmra.mxu3 %v4438_v30  ;;  %v3188_v30 = vor.u32 %v3679_v38, %v3185_v4  ;;  %v2988_v16 = vor.u32 %v3629_v42, %v2985_v25  ;;  %v3172_v50 = vor.u32 %v3675_v7, %v3169_v40  ;;  %v3655_v38 = vld [vmem:[%s5619_s1 + $0x614] sm:$0xf]  ;;  %v3089_v4 = vld [vmem:[%s5619_s1 + $0x618] sm:$0xf0]  ;;  %v3621_v42 = vld [vmem:[%s5619_s1 + $0x504] sm:$0xf] }
  0xe7   :  { %2220 = vmatpush.bf16.msrb.mxu3 %v3204_v54  ;;  %v3097_v54 = vld [vmem:[%s5619_s1 + $0x628] sm:$0xf0]  ;;  %v3036_v21 = vor.u32 %v3641_v49, %v3033_v52  ;;  %v3457_v7 = vld [vmem:[%s5619_s1 + $0x8f8] sm:$0xf0]  ;;  %v3148_v40 = vor.u32 %v3669_v14, %v3145_v15  ;;  %v3713_v49 = vld [vmem:[%s5619_s1 + $0x7e4] sm:$0xf] }
  0xe8   :  { %2182 = vmatpush.bf16.msrb.mxu0 %v3004_v61  ;;  %v1956_v51 = vpop.f32.mrf.mxu2  ;;  %v1932_v59 = vpop.f32.mrf.mxu0  ;;  %v2972_v61 = vor.u32 %v3625_v47, %v2969_v48  ;;  %v3100_v63 = vor.u32 %v3657_v53, %v3097_v54  ;;  %v2953_v25 = vld [vmem:[%s5619_s1 + $0x508] sm:$0xf0]  ;;  %v3697_v47 = vld [vmem:[%s5619_s1 + $0x764] sm:$0xf]  ;;  %v3233_v14 = vld [vmem:[%s5619_s1 + $0x738] sm:$0xf0] }
  0xe9   :  { %2195 = vmatpush.bf16.msrb.mxu1 %v3068_v20  ;;  %v1957_v55 = vadd.f32 %v1956_v51, %v1944_v27  ;;  %v1969_v56 = vpop.f32.mrf.mxu3  ;;  %v1945_v20 = vpop.f32.mrf.mxu1  ;;  %v2956_v24 = vor.u32 %v3621_v42, %v2953_v25  ;;  %v3393_v27 = vld [vmem:[%s5619_s1 + $0x878] sm:$0xf0]  ;;  %v3257_v48 = vld [vmem:[%s5619_s1 + $0x768] sm:$0xf0]  ;;  %v3729_v52 = vld [vmem:[%s5619_s1 + $0x864] sm:$0xf] }
  0xea   :  { %2208 = vmatpush.bf16.msrb.mxu2 %v3132_v62  ;;  %v3321_v51 = vld [vmem:[%s5619_s1 + $0x7e8] sm:$0xf0]  ;;  %v3745_v54 = vld [vmem:[%s5619_s1 + $0x8e4] sm:$0xf]  ;;  %v3695_v59 = vld [vmem:[%s5619_s1 + $0x754] sm:$0xf] }
  0xeb   :  { %2221 = vmatpush.bf16.msrb.mxu3 %v3196_v0  ;;  %v5359_v62 = vadd.f32 %v1969_v56, %v1957_v55  ;;  %v2961_v0 = vld [vmem:[%s5619_s1 + $0x518] sm:$0xf0]  ;;  %v3385_v53 = vld [vmem:[%s5619_s1 + $0x868] sm:$0xf0]  ;;  %v3260_v56 = vor.u32 %v3697_v47, %v3257_v48  ;;  %v3324_v57 = vor.u32 %v3713_v49, %v3321_v51  ;;  %v3711_v20 = vld [vmem:[%s5619_s1 + $0x7d4] sm:$0xf] }
  0xec   :  { %2183 = vmatpush.bf16.msrb.mxu0 %v2996_v44  ;;  %v3671_v44 = vld [vmem:[%s5619_s1 + $0x694] sm:$0xf]  ;;  %v3449_v55 = vld [vmem:[%s5619_s1 + $0x8e8] sm:$0xf0]  ;;  %v3388_v58 = vor.u32 %v3729_v52, %v3385_v53  ;;  %v3741_v25 = vld [vmem:[%s5619_s1 + $0x8c4] sm:$0xf] }
  0xed   :  { %2196 = vmatpush.bf16.msrb.mxu1 %v3060_v5  ;;  %v3153_v5 = vld [vmem:[%s5619_s1 + $0x698] sm:$0xf0]  ;;  %v3707_v15 = vld [vmem:[%s5619_s1 + $0x7b4] sm:$0xf]  ;;  %v3737_v49 = vld [vmem:[%s5619_s1 + $0x8a4] sm:$0xf] }
  0xee   :  { %2209 = vmatpush.bf16.msrb.mxu2 %v3124_v8  ;;  %v2964_v8 = vor.u32 %v3623_v41, %v2961_v0  ;;  %v3156_v12 = vor.u32 %v3671_v44, %v3153_v5  ;;  %v3727_v41 = vld [vmem:[%s5619_s1 + $0x854] sm:$0xf]  ;;  %v3377_v0 = vld [vmem:[%s5619_s1 + $0x858] sm:$0xf0]  ;;  %v3305_v44 = vld [vmem:[%s5619_s1 + $0x7c8] sm:$0xf0] }
  0xef   :  { %2222 = vmatpush.bf16.msrb.mxu3 %v3188_v30  ;;  %v3092_v30 = vor.u32 %v3655_v38, %v3089_v4  ;;  %v3380_v38 = vor.u32 %v3727_v41, %v3377_v0  ;;  %v3709_v4 = vld [vmem:[%s5619_s1 + $0x7c4] sm:$0xf]  ;;  %v3735_v41 = vld [vmem:[%s5619_s1 + $0x894] sm:$0xf]  ;;  %v3409_v0 = vld [vmem:[%s5619_s1 + $0x898] sm:$0xf0] }
  0xf0   :  { %2184 = vmatpush.bf16.msrb.mxu0 %v2988_v16  ;;  %v1958_v16 = vpop.f32.mrf.mxu2  ;;  %v3725_v5 = vld [vmem:[%s5619_s1 + $0x844] sm:$0xf]  ;;  %v3308_v11 = vor.u32 %v3709_v4, %v3305_v44  ;;  %v3273_v4 = vld [vmem:[%s5619_s1 + $0x788] sm:$0xf0] }
  0xf1   :  { %2197 = vmatpush.bf16.msrb.mxu1 %v3052_v18  ;;  %v3265_v18 = vld [vmem:[%s5619_s1 + $0x778] sm:$0xf0]  ;;  %v1971_v22 = vpop.f32.mrf.mxu3  ;;  %v3337_v44 = vld [vmem:[%s5619_s1 + $0x808] sm:$0xf0] }
  0xf2   :  { %2210 = vmatpush.bf16.msrb.mxu2 %v3116_v19  ;;  %v3715_v19 = vld [vmem:[%s5619_s1 + $0x7f4] sm:$0xf] }
  0xf3   :  { %2223 = vmatpush.bf16.msrb.mxu3 %v3180_v60  ;;  %v3731_v60 = vld [vmem:[%s5619_s1 + $0x874] sm:$0xf] }
  0xf4   :  { %2185 = vmatpush.bf16.msrb.mxu0 %v2980_v43  ;;  %v3268_v43 = vor.u32 %v3699_v17, %v3265_v18  ;;  %v3297_v17 = vld [vmem:[%s5619_s1 + $0x7b8] sm:$0xf0]  ;;  %v3723_v18 = vld [vmem:[%s5619_s1 + $0x834] sm:$0xf] }
  0xf5   :  { %2198 = vmatpush.bf16.msrb.mxu1 %v3044_v45  ;;  %v3332_v45 = vor.u32 %v3715_v19, %v3329_v26  ;;  %v3361_v19 = vld [vmem:[%s5619_s1 + $0x838] sm:$0xf0]  ;;  %v3739_v22 = vld [vmem:[%s5619_s1 + $0x8b4] sm:$0xf]  ;;  %v3236_v26 = vor.u32 %v3691_v13, %v3233_v14 }
  0xf6   :  { %2211 = vmatpush.bf16.msrb.mxu2 %v3108_v46  ;;  %v3396_v46 = vor.u32 %v3731_v60, %v3393_v27  ;;  %v3300_v60 = vor.u32 %v3707_v15, %v3297_v17  ;;  %v3364_v27 = vor.u32 %v3723_v18, %v3361_v19 }
  0xf7   :  { %2224 = vmatpush.bf16.msrb.mxu3 %v3172_v50  ;;  %v3460_v50 = vor.u32 %v3747_v37, %v3457_v7  ;;  %v3705_v37 = vld [vmem:[%s5619_s1 + $0x7a4] sm:$0xf] }
  0xf8   :  { %2186 = vmatpush.bf16.msrb.mxu0 %v2972_v61  ;;  %v3249_v61 = vld [vmem:[%s5619_s1 + $0x758] sm:$0xf0] }
  0xf9   :  { %2199 = vmatpush.bf16.msrb.mxu1 %v3036_v21  ;;  %v3452_v21 = vor.u32 %v3745_v54, %v3449_v55 }
  0xfa   :  { %2212 = vmatpush.bf16.msrb.mxu2 %v3100_v63  ;;  %v3313_v63 = vld [vmem:[%s5619_s1 + $0x7d8] sm:$0xf0] }
  0xfb   :  { %2225 = vmatpush.bf16.msrb.mxu3 %v3164_v2  ;;  %v3252_v2 = vor.u32 %v3695_v59, %v3249_v61  ;;  %v3316_v3 = vor.u32 %v3711_v20, %v3313_v63  ;;  %v3703_v59 = vld [vmem:[%s5619_s1 + $0x794] sm:$0xf]  ;;  %v3281_v20 = vld [vmem:[%s5619_s1 + $0x798] sm:$0xf0] }
  0xfc   :  { %2187 = vmatpush.bf16.msrb.mxu0 %v2964_v8  ;;  %v3369_v8 = vld [vmem:[%s5619_s1 + $0x848] sm:$0xf0]  ;;  %v3345_v63 = vld [vmem:[%s5619_s1 + $0x818] sm:$0xf0] }
  0xfd   :  { %2200 = vmatpush.bf16.msrb.mxu1 %v3028_v6  ;;  %v3433_v6 = vld [vmem:[%s5619_s1 + $0x8c8] sm:$0xf0] }
  0xfe   :  { %2213 = vmatpush.bf16.msrb.mxu2 %v3092_v30 }
  0xff   :  { %2226 = vmatpush.bf16.msrb.mxu3 %v3156_v12  ;;  %v3372_v12 = vor.u32 %v3725_v5, %v3369_v8  ;;  %v3733_v8 = vld [vmem:[%s5619_s1 + $0x884] sm:$0xf] }
 0x100   :  { %2188 = vmatpush.bf16.msrb.mxu0 %v2956_v24  ;;  %v1982_v42 = vpop.f32.mrf.mxu0  ;;  %v3425_v24 = vld [vmem:[%s5619_s1 + $0x8b8] sm:$0xf0] }
 0x101   :  { %2201 = vmatpush.bf16.msrb.mxu1 %v3020_v34  ;;  %v1983_v30 = vadd.f32 %v1982_v42, %v5359_v62  ;;  %v1995_v10 = vpop.f32.mrf.mxu1  ;;  %v3436_v62 = vor.u32 %v3741_v25, %v3433_v6  ;;  %v3689_v34 = vld [vmem:[%s5619_s1 + $0x724] sm:$0xf]  ;;  %v3428_v7 = vor.u32 %v3739_v22, %v3425_v24  ;;  %v3401_v42 = vld [vmem:[%s5619_s1 + $0x888] sm:$0xf0] }
 0x102   :  { %2214 = vmatpush.bf16.msrb.mxu2 %v3084_v36  ;;  %v3225_v36 = vld [vmem:[%s5619_s1 + $0x728] sm:$0xf0] }
 0x103   :  { %2227 = vmatpush.bf16.msrb.mxu3 %v3148_v40  ;;  %2189 = vmatmul.bf16.vlgmr.msrb.gmra.mxu0 %v4436_v29  ;;  %v3743_v29 = vld [vmem:[%s5619_s1 + $0x8d4] sm:$0xf]  ;;  %v1996_v16 = vadd.f32 %v1995_v10, %v1983_v30  ;;  %v3228_v52 = vor.u32 %v3689_v34, %v3225_v36  ;;  %v3404_v10 = vor.u32 %v3733_v8, %v3401_v42 }
 0x104   :  { %2233 = vmatpush.bf16.msra.mxu0 %v3268_v43  ;;  %2202 = vmatmul.bf16.vlgmr.msrb.gmra.mxu1 %v4446_v33  ;;  %v3693_v33 = vld [vmem:[%s5619_s1 + $0x744] sm:$0xf]  ;;  %v3289_v43 = vld [vmem:[%s5619_s1 + $0x7a8] sm:$0xf0] }
 0x105   :  { %2246 = vmatpush.bf16.msra.mxu1 %v3332_v45  ;;  %2215 = vmatmul.bf16.vlgmr.msrb.gmra.mxu2 %v4635_v23  ;;  %v3241_v23 = vld [vmem:[%s5619_s1 + $0x748] sm:$0xf0]  ;;  %v3721_v45 = vld [vmem:[%s5619_s1 + $0x824] sm:$0xf]  ;;  %v3292_v55 = vor.u32 %v3705_v37, %v3289_v43 }
 0x106   :  { %2259 = vmatpush.bf16.msra.mxu2 %v3396_v46  ;;  %2228 = vmatmul.bf16.vlgmr.msrb.gmra.mxu3 %v4648_v31  ;;  %v3444_v31 = vor.u32 %v3743_v29, %v3441_v1  ;;  %v3244_v9 = vor.u32 %v3693_v33, %v3241_v23  ;;  %v3353_v46 = vld [vmem:[%s5619_s1 + $0x828] sm:$0xf0]  ;;  %v3284_v1 = vor.u32 %v3703_v59, %v3281_v20  ;;  %v3701_v33 = vld [vmem:[%s5619_s1 + $0x784] sm:$0xf] }
 0x107   :  { %2272 = vmatpush.bf16.msra.mxu3 %v3460_v50  ;;  %v3417_v50 = vld [vmem:[%s5619_s1 + $0x8a8] sm:$0xf0]  ;;  %v3412_v23 = vor.u32 %v3735_v41, %v3409_v0  ;;  %v3276_v30 = vor.u32 %v3701_v33, %v3273_v4 }
 0x108   :  { %2234 = vmatpush.bf16.msra.mxu0 %v3260_v56  ;;  %v2008_v40 = vpop.f32.mrf.mxu2  ;;  %v1984_v51 = vpop.f32.mrf.mxu0  ;;  %v3356_v56 = vor.u32 %v3721_v45, %v3353_v46  ;;  %v3420_v61 = vor.u32 %v3737_v49, %v3417_v50 }
 0x109   :  { %2247 = vmatpush.bf16.msra.mxu1 %v3324_v57  ;;  %v2009_v47 = vadd.f32 %v2008_v40, %v1996_v16  ;;  %v2021_v48 = vpop.f32.mrf.mxu3  ;;  %v1997_v53 = vpop.f32.mrf.mxu1  ;;  %v3687_v57 = vld [vmem:[%s5619_s1 + $0x714] sm:$0xf] }
 0x10a   :  { %2260 = vmatpush.bf16.msra.mxu2 %v3388_v58  ;;  %v3217_v58 = vld [vmem:[%s5619_s1 + $0x718] sm:$0xf0] }
 0x10b   :  { %2273 = vmatpush.bf16.msra.mxu3 %v3452_v21  ;;  %v2022_v54 = vadd.f32 %v2021_v48, %v2009_v47  ;;  %v3719_v21 = vld [vmem:[%s5619_s1 + $0x814] sm:$0xf]  ;;  %v3220_v29 = vor.u32 %v3687_v57, %v3217_v58 }
 0x10c   :  { %2235 = vmatpush.bf16.msra.mxu0 %v3252_v2  ;;  %v3348_v2 = vor.u32 %v3719_v21, %v3345_v63 }
 0x10d   :  { %2248 = vmatpush.bf16.msra.mxu1 %v3316_v3  ;;  %v3685_v3 = vld [vmem:[%s5619_s1 + $0x704] sm:$0xf] }
 0x10e   :  { %2261 = vmatpush.bf16.msra.mxu2 %v3380_v38  ;;  %v3209_v38 = vld [vmem:[%s5619_s1 + $0x708] sm:$0xf0] }
 0x10f   :  { %2274 = vmatpush.bf16.msra.mxu3 %v3444_v31  ;;  %v3717_v31 = vld [vmem:[%s5619_s1 + $0x804] sm:$0xf]  ;;  %v3212_v6 = vor.u32 %v3685_v3, %v3209_v38 }
 0x110   :  { %2236 = vmatpush.bf16.msra.mxu0 %v3244_v9  ;;  %v2010_v5 = vpop.f32.mrf.mxu2  ;;  %v3340_v9 = vor.u32 %v3717_v31, %v3337_v44 }
 0x111   :  { %2249 = vmatpush.bf16.msra.mxu1 %v3308_v11  ;;  %v2023_v25 = vpop.f32.mrf.mxu3 }
 0x112   :  { %2262 = vmatpush.bf16.msra.mxu2 %v3372_v12 }
 0x113   :  { %2275 = vmatpush.bf16.msra.mxu3 %v3436_v62 }
 0x114   :  { %2237 = vmatpush.bf16.msra.mxu0 %v3236_v26 }
 0x115   :  { %2250 = vmatpush.bf16.msra.mxu1 %v3300_v60 }
 0x116   :  { %2263 = vmatpush.bf16.msra.mxu2 %v3364_v27 }
 0x117   :  { %2276 = vmatpush.bf16.msra.mxu3 %v3428_v7 }
 0x118   :  { %2238 = vmatpush.bf16.msra.mxu0 %v3228_v52 }
 0x119   :  { %2251 = vmatpush.bf16.msra.mxu1 %v3292_v55 }
 0x11a   :  { %2264 = vmatpush.bf16.msra.mxu2 %v3356_v56 }
 0x11b   :  { %2277 = vmatpush.bf16.msra.mxu3 %v3420_v61 }
 0x11c   :  { %2239 = vmatpush.bf16.msra.mxu0 %v3220_v29 }
 0x11d   :  { %2252 = vmatpush.bf16.msra.mxu1 %v3284_v1 }
 0x11e   :  { %2265 = vmatpush.bf16.msra.mxu2 %v3348_v2  ;;  %v2285_v2 = vld [vmem:[%s5621_s2] sm:$0x3] }
 0x11f   :  { %2278 = vmatpush.bf16.msra.mxu3 %v3412_v23  ;;  %v2287_v33 = vperm.slane %v2285_v2, 0  ;;  %v2293_v23 = vld [vmem:[%s5622_s3] sm:$0x3]  ;;  %v2288_v25 = vperm.slane %v2285_v2, 1 }
 0x120   :  { %2240 = vmatpush.bf16.msra.mxu0 %v3212_v6  ;;  %v2034_v11 = vpop.f32.mrf.mxu0  ;;  %v2295_v5 = vperm.slane %v2293_v23, 0 }
 0x121   :  { %2253 = vmatpush.bf16.msra.mxu1 %v3276_v30  ;;  %v2035_v12 = vadd.f32 %v2034_v11, %v2022_v54  ;;  %v2047_v13 = vpop.f32.mrf.mxu1 }
 0x122   :  { %2266 = vmatpush.bf16.msra.mxu2 %v3340_v9 }
 0x123   :  { %2279 = vmatpush.bf16.msra.mxu3 %v3404_v10  ;;  %2241 = vmatmul.bf16.vlgmr.msra.gmra.mxu0 %v4646_v28  ;;  %v2048_v14 = vadd.f32 %v2047_v13, %v2035_v12  ;;  %v2296_v10 = vperm.slane %v2293_v23, 1 }
 0x124   :  { %2254 = vmatmul.bf16.vlgmr.msra.gmra.mxu1 %v4656_v35 }
 0x125   :  { %2267 = vmatmul.bf16.vlgmr.msra.gmra.mxu2 %v4842_v32  ;;  %v2291_v44 = vmul.f32 %v2287_v33, %v2048_v14 }
 0x126   :  { %2280 = vmatmul.bf16.vlgmr.msra.gmra.mxu3 %v4853_v39 }
 0x127   :  { %v2299_v11 = vadd.f32 %v2295_v5, %v2291_v44 }
 0x128   :  { %v2060_v15 = vpop.f32.mrf.mxu2  ;;  %v2036_v16 = vpop.f32.mrf.mxu0 }
 0x129   :  { %v2073_v62 = vpop.f32.mrf.mxu3  ;;  %v2049_v18 = vpop.f32.mrf.mxu1 }
 0x12a   :  { %v2074_v17 = vadd.f32 %v2073_v62, %v2060_v15  ;;  %v2301_v62 = vmax.f32 %v2299_v11, 0.0 }
 0x130   :  { %v2062_v19 = vpop.f32.mrf.mxu2 }
 0x131   :  { %v2075_v22 = vpop.f32.mrf.mxu3 }
 0x140   :  { %v2086_v24 = vpop.f32.mrf.mxu0 }
 0x141   :  { %v2087_v26 = vadd.f32 %v2086_v24, %v2074_v17  ;;  %v2099_v28 = vpop.f32.mrf.mxu1 }
 0x143   :  { %v2100_v60 = vadd.f32 %v2099_v28, %v2087_v26 }
 0x148   :  { %v2112_v35 = vpop.f32.mrf.mxu2  ;;  %v2088_v39 = vpop.f32.mrf.mxu0 }
 0x149   :  { %v2113_v27 = vadd.f32 %v2112_v35, %v2100_v60  ;;  %v2125_v32 = vpop.f32.mrf.mxu3  ;;  %v2101_v36 = vpop.f32.mrf.mxu1 }
 0x14b   :  { %v2126_v34 = vadd.f32 %v2125_v32, %v2113_v27 }
 0x150   :  { %v2114_v37 = vpop.f32.mrf.mxu2 }
 0x151   :  { %v2127_v7 = vpop.f32.mrf.mxu3 }
 0x160   :  { %v2138_v40 = vpop.f32.mrf.mxu0 }
 0x161   :  { %v2151_v43 = vpop.f32.mrf.mxu1  ;;  %v2139_v53 = vadd.f32 %v2138_v40, %v2126_v34 }
 0x163   :  { %v2152_v58 = vadd.f32 %v2151_v43, %v2139_v53 }
 0x168   :  { %v2164_v45 = vpop.f32.mrf.mxu2  ;;  %v2140_v47 = vpop.f32.mrf.mxu0 }
 0x169   :  { %v2177_v46 = vpop.f32.mrf.mxu3  ;;  %v2153_v48 = vpop.f32.mrf.mxu1  ;;  %v2165_v59 = vadd.f32 %v2164_v45, %v2152_v58 }
 0x16b   :  { %v2178_v21 = vadd.f32 %v2177_v46, %v2165_v59 }
 0x170   :  { %v2166_v49 = vpop.f32.mrf.mxu2 }
 0x171   :  { %v2179_v50 = vpop.f32.mrf.mxu3 }
 0x180   :  { %v2190_v51 = vpop.f32.mrf.mxu0 }
 0x181   :  { %v2203_v52 = vpop.f32.mrf.mxu1  ;;  %v2191_v63 = vadd.f32 %v2190_v51, %v2178_v21 }
 0x183   :  { %v2204_v41 = vadd.f32 %v2203_v52, %v2191_v63 }
 0x188   :  { %v2216_v54 = vpop.f32.mrf.mxu2  ;;  %v2192_v56 = vpop.f32.mrf.mxu0 }
 0x189   :  { %v2229_v55 = vpop.f32.mrf.mxu3  ;;  %v2205_v57 = vpop.f32.mrf.mxu1  ;;  %v2217_v0 = vadd.f32 %v2216_v54, %v2204_v41 }
 0x18b   :  { %v2230_v29 = vadd.f32 %v2229_v55, %v2217_v0 }
 0x190   :  { %v2218_v61 = vpop.f32.mrf.mxu2 }
 0x191   :  { %v2231_v20 = vpop.f32.mrf.mxu3 }
 0x1a0   :  { %v2242_v1 = vpop.f32.mrf.mxu0 }
 0x1a1   :  { %v2255_v3 = vpop.f32.mrf.mxu1  ;;  %v2243_v38 = vadd.f32 %v2242_v1, %v2230_v29 }
 0x1a3   :  { %v2256_v4 = vadd.f32 %v2255_v3, %v2243_v38 }
 0x1a8   :  { %v2268_v31 = vpop.f32.mrf.mxu2  ;;  %v2244_v6 = vpop.f32.mrf.mxu0 }
 0x1a9   :  { %v2269_v8 = vadd.f32 %v2268_v31, %v2256_v4  ;;  %v2281_v42 = vpop.f32.mrf.mxu3  ;;  %v2257_v30 = vpop.f32.mrf.mxu1 }
 0x1ab   :  { %v2282_v9 = vadd.f32 %v2281_v42, %v2269_v8 }
 0x1ad   :  { %v2292_v12 = vmul.f32 %v2288_v25, %v2282_v9 }
 0x1af   :  { %v2300_v13 = vadd.f32 %v2296_v10, %v2292_v12 }
 0x1b0   :  { %v2270_v15 = vpop.f32.mrf.mxu2 }
 0x1b1   :  { %v2302_v16 = vmax.f32 %v2300_v13, 0.0  ;;  %v2283_v17 = vpop.f32.mrf.mxu3 }
 0x1b3   :  { %v2303_v18 = vpack.c.bf16 %v2302_v16, %v2301_v62 }
 0x1b5   :  { %2304 = vst [vmem:[%s5623_s4] sm:$0xff] %v2303_v18 }

// kernel: cnn_planner_forward.33
= control target key start
LH: loop header
LB: loop body
LE: loop exit
PB: predicated region body
PF: predicated region fallthrough
CT: control target
= control target key end

     0   :  { %s1242_s1 = inlined_call_operand.vmem [shape: bf16[1024,128], index: 1, kind: input, shape index: {}]   ;;  %s1243_s0 = inlined_call_operand.vmem [shape: bf16[8,1024], index: 0, kind: input, shape index: {}]   ;;  %s1244_s2 = inlined_call_operand.vmem [shape: f32[1,128], index: 2, kind: input, shape index: {}]   ;;  %s1245_s3 = inlined_call_operand.vmem [shape: f32[1,128], index: 3, kind: input, shape index: {}]   ;;  %s1246_s4 = inlined_call_operand.vmem [shape: bf16[8,128], index: 4, kind: output, shape index: {}]  }
   0x1   :  { %v945_v0 = vld [vmem:[%s1242_s1 + $0x38] sm:$0xff]  ;;  %v944_v4 = vld [vmem:[%s1242_s1 + $0x30] sm:$0xff]  ;;  %v943_v8 = vld [vmem:[%s1242_s1 + $0x28] sm:$0xff] }
   0x2   :  { %v953_v1 = vld [vmem:[%s1242_s1 + $0x78] sm:$0xff]  ;;  %561 = vmatpush.bf16.msra.mxu0 %v945_v0  ;;  %v952_v5 = vld [vmem:[%s1242_s1 + $0x70] sm:$0xff]  ;;  %v951_v9 = vld [vmem:[%s1242_s1 + $0x68] sm:$0xff] }
   0x3   :  { %v961_v2 = vld [vmem:[%s1242_s1 + $0xb8] sm:$0xff]  ;;  %574 = vmatpush.bf16.msra.mxu1 %v953_v1  ;;  %v960_v6 = vld [vmem:[%s1242_s1 + $0xb0] sm:$0xff]  ;;  %v959_v10 = vld [vmem:[%s1242_s1 + $0xa8] sm:$0xff] }
   0x4   :  { %v969_v3 = vld [vmem:[%s1242_s1 + $0xf8] sm:$0xff]  ;;  %587 = vmatpush.bf16.msra.mxu2 %v961_v2  ;;  %v968_v7 = vld [vmem:[%s1242_s1 + $0xf0] sm:$0xff]  ;;  %v967_v11 = vld [vmem:[%s1242_s1 + $0xe8] sm:$0xff] }
   0x5   :  { %600 = vmatpush.bf16.msra.mxu3 %v969_v3  ;;  %v942_v12 = vld [vmem:[%s1242_s1 + $0x20] sm:$0xff]  ;;  %v941_v16 = vld [vmem:[%s1242_s1 + $0x18] sm:$0xff]  ;;  %v940_v20 = vld [vmem:[%s1242_s1 + $0x10] sm:$0xff] }
   0x6   :  { %562 = vmatpush.bf16.msra.mxu0 %v944_v4  ;;  %v950_v13 = vld [vmem:[%s1242_s1 + $0x60] sm:$0xff]  ;;  %v949_v17 = vld [vmem:[%s1242_s1 + $0x58] sm:$0xff]  ;;  %v948_v21 = vld [vmem:[%s1242_s1 + $0x50] sm:$0xff] }
   0x7   :  { %575 = vmatpush.bf16.msra.mxu1 %v952_v5  ;;  %v958_v14 = vld [vmem:[%s1242_s1 + $0xa0] sm:$0xff]  ;;  %v957_v18 = vld [vmem:[%s1242_s1 + $0x98] sm:$0xff]  ;;  %v956_v22 = vld [vmem:[%s1242_s1 + $0x90] sm:$0xff] }
   0x8   :  { %588 = vmatpush.bf16.msra.mxu2 %v960_v6  ;;  %v966_v15 = vld [vmem:[%s1242_s1 + $0xe0] sm:$0xff]  ;;  %v965_v19 = vld [vmem:[%s1242_s1 + $0xd8] sm:$0xff]  ;;  %v964_v23 = vld [vmem:[%s1242_s1 + $0xd0] sm:$0xff] }
   0x9   :  { %601 = vmatpush.bf16.msra.mxu3 %v968_v7  ;;  %v939_v24 = vld [vmem:[%s1242_s1 + $0x8] sm:$0xff]  ;;  %v17_v29 = vld [vmem:[%s1243_s0] sm:$0xff]  ;;  %v977_v38 = vld [vmem:[%s1242_s1 + $0x138] sm:$0xff] }
   0xa   :  { %563 = vmatpush.bf16.msra.mxu0 %v943_v8  ;;  %v947_v25 = vld [vmem:[%s1242_s1 + $0x48] sm:$0xff]  ;;  %v938_v30 = vld [vmem:[%s1242_s1] sm:$0xff]  ;;  %v153_v33 = vunpack.c.l.b16 %v17_v29  ;;  %v154_v37 = vunpack.c.h.b16 %v17_v29  ;;  %v985_v39 = vld [vmem:[%s1242_s1 + $0x178] sm:$0xff] }
   0xb   :  { %576 = vmatpush.bf16.msra.mxu1 %v951_v9  ;;  %v955_v26 = vld [vmem:[%s1242_s1 + $0x88] sm:$0xff]  ;;  %v946_v31 = vld [vmem:[%s1242_s1 + $0x40] sm:$0xff]  ;;  %v993_v40 = vld [vmem:[%s1242_s1 + $0x1b8] sm:$0xff] }
   0xc   :  { %589 = vmatpush.bf16.msra.mxu2 %v959_v10  ;;  %v963_v27 = vld [vmem:[%s1242_s1 + $0xc8] sm:$0xff]  ;;  %v954_v34 = vld [vmem:[%s1242_s1 + $0x80] sm:$0xff]  ;;  %v1001_v41 = vld [vmem:[%s1242_s1 + $0x1f8] sm:$0xff]  ;;  %v161_v43 = vpack.c.b16 %v153_v33, %v153_v33  ;;  %v162_v45 = vpack.c.b16 %v154_v37, %v154_v37 }
   0xd   :  { %602 = vmatpush.bf16.msra.mxu3 %v967_v11  ;;  %v18_v28 = vld [vmem:[%s1243_s0 + $0x8] sm:$0xff]  ;;  %v962_v35 = vld [vmem:[%s1242_s1 + $0xc0] sm:$0xff]  ;;  %v976_v46 = vld [vmem:[%s1242_s1 + $0x130] sm:$0xff] }
   0xe   :  { %564 = vmatpush.bf16.msra.mxu0 %v942_v12  ;;  %v155_v32 = vunpack.c.l.b16 %v18_v28  ;;  %v156_v36 = vunpack.c.h.b16 %v18_v28  ;;  %v984_v47 = vld [vmem:[%s1242_s1 + $0x170] sm:$0xff]  ;;  %v975_v50 = vld [vmem:[%s1242_s1 + $0x128] sm:$0xff]  ;;  %v974_v54 = vld [vmem:[%s1242_s1 + $0x120] sm:$0xff] }
   0xf   :  { %577 = vmatpush.bf16.msra.mxu1 %v950_v13  ;;  %v992_v48 = vld [vmem:[%s1242_s1 + $0x1b0] sm:$0xff]  ;;  %v983_v51 = vld [vmem:[%s1242_s1 + $0x168] sm:$0xff]  ;;  %v982_v55 = vld [vmem:[%s1242_s1 + $0x160] sm:$0xff] }
  0x10   :  { %590 = vmatpush.bf16.msra.mxu2 %v958_v14  ;;  %v163_v42 = vpack.c.b16 %v155_v32, %v155_v32  ;;  %v164_v44 = vpack.c.b16 %v156_v36, %v156_v36  ;;  %v1000_v49 = vld [vmem:[%s1242_s1 + $0x1f0] sm:$0xff]  ;;  %v991_v52 = vld [vmem:[%s1242_s1 + $0x1a8] sm:$0xff]  ;;  %v990_v56 = vld [vmem:[%s1242_s1 + $0x1a0] sm:$0xff] }
  0x11   :  { %603 = vmatpush.bf16.msra.mxu3 %v966_v15  ;;  %v999_v53 = vld [vmem:[%s1242_s1 + $0x1e8] sm:$0xff]  ;;  %v998_v57 = vld [vmem:[%s1242_s1 + $0x1e0] sm:$0xff]  ;;  %v973_v58 = vld [vmem:[%s1242_s1 + $0x118] sm:$0xff] }
  0x12   :  { %565 = vmatpush.bf16.msra.mxu0 %v941_v16  ;;  %v981_v59 = vld [vmem:[%s1242_s1 + $0x158] sm:$0xff]  ;;  %v972_v62 = vld [vmem:[%s1242_s1 + $0x110] sm:$0xff]  ;;  %v971_v2 = vld [vmem:[%s1242_s1 + $0x108] sm:$0xff] }
  0x13   :  { %578 = vmatpush.bf16.msra.mxu1 %v949_v17  ;;  %v989_v60 = vld [vmem:[%s1242_s1 + $0x198] sm:$0xff]  ;;  %v980_v63 = vld [vmem:[%s1242_s1 + $0x150] sm:$0xff]  ;;  %v979_v3 = vld [vmem:[%s1242_s1 + $0x148] sm:$0xff] }
  0x14   :  { %591 = vmatpush.bf16.msra.mxu2 %v957_v18  ;;  %v997_v61 = vld [vmem:[%s1242_s1 + $0x1d8] sm:$0xff]  ;;  %v988_v0 = vld [vmem:[%s1242_s1 + $0x190] sm:$0xff]  ;;  %v987_v5 = vld [vmem:[%s1242_s1 + $0x188] sm:$0xff] }
  0x15   :  { %604 = vmatpush.bf16.msra.mxu3 %v965_v19  ;;  %v996_v1 = vld [vmem:[%s1242_s1 + $0x1d0] sm:$0xff]  ;;  %v995_v6 = vld [vmem:[%s1242_s1 + $0x1c8] sm:$0xff]  ;;  %v20_v7 = vld [vmem:[%s1243_s0 + $0x18] sm:$0xff] }
  0x16   :  { %566 = vmatpush.bf16.msra.mxu0 %v940_v20  ;;  %v19_v4 = vld [vmem:[%s1243_s0 + $0x10] sm:$0xff]  ;;  %v970_v10 = vld [vmem:[%s1242_s1 + $0x100] sm:$0xff]  ;;  %v159_v12 = vunpack.c.l.b16 %v20_v7  ;;  %v160_v13 = vunpack.c.h.b16 %v20_v7 }
  0x17   :  { %579 = vmatpush.bf16.msra.mxu1 %v948_v21  ;;  %v157_v8 = vunpack.c.l.b16 %v19_v4  ;;  %v158_v9 = vunpack.c.h.b16 %v19_v4  ;;  %v978_v11 = vld [vmem:[%s1242_s1 + $0x140] sm:$0xff] }
  0x18   :  { %592 = vmatpush.bf16.msra.mxu2 %v956_v22  ;;  %v986_v14 = vld [vmem:[%s1242_s1 + $0x180] sm:$0xff]  ;;  %v167_v18 = vpack.c.b16 %v159_v12, %v159_v12  ;;  %v168_v19 = vpack.c.b16 %v160_v13, %v160_v13 }
  0x19   :  { %605 = vmatpush.bf16.msra.mxu3 %v964_v23  ;;  %v994_v15 = vld [vmem:[%s1242_s1 + $0x1c0] sm:$0xff]  ;;  %v165_v16 = vpack.c.b16 %v157_v8, %v157_v8  ;;  %v166_v17 = vpack.c.b16 %v158_v9, %v158_v9 }
  0x1a   :  { %567 = vmatpush.bf16.msra.mxu0 %v939_v24 }
  0x1b   :  { %580 = vmatpush.bf16.msra.mxu1 %v947_v25 }
  0x1c   :  { %593 = vmatpush.bf16.msra.mxu2 %v955_v26 }
  0x1d   :  { %606 = vmatpush.bf16.msra.mxu3 %v963_v27 }
  0x1e   :  { %568 = vmatpush.bf16.msra.mxu0 %v938_v30 }
  0x1f   :  { %581 = vmatpush.bf16.msra.mxu1 %v946_v31 }
  0x20   :  { %594 = vmatpush.bf16.msra.mxu2 %v954_v34 }
  0x21   :  { %607 = vmatpush.bf16.msra.mxu3 %v962_v35  ;;  %569 = vmatmul.bf16.vlgmr.msra.gmra.mxu0 %v161_v43 }
  0x22   :  { %613 = vmatpush.bf16.msrb.mxu0 %v977_v38  ;;  %582 = vmatmul.bf16.vlgmr.msra.gmra.mxu1 %v162_v45  ;;  %v1002_v38 = vld [vmem:[%s1244_s2] ss:$0 sm:$0xff] }
  0x23   :  { %626 = vmatpush.bf16.msrb.mxu1 %v985_v39  ;;  %595 = vmatmul.bf16.vlgmr.msra.gmra.mxu2 %v163_v42  ;;  %v1003_v42 = vld [vmem:[%s1245_s3] ss:$0 sm:$0xff] }
  0x24   :  { %639 = vmatpush.bf16.msrb.mxu2 %v993_v40  ;;  %608 = vmatmul.bf16.vlgmr.msra.gmra.mxu3 %v164_v44 }
  0x25   :  { %652 = vmatpush.bf16.msrb.mxu3 %v1001_v41 }
  0x26   :  { %614 = vmatpush.bf16.msrb.mxu0 %v976_v46 }
  0x27   :  { %627 = vmatpush.bf16.msrb.mxu1 %v984_v47 }
  0x28   :  { %640 = vmatpush.bf16.msrb.mxu2 %v992_v48 }
  0x29   :  { %653 = vmatpush.bf16.msrb.mxu3 %v1000_v49 }
  0x2a   :  { %615 = vmatpush.bf16.msrb.mxu0 %v975_v50 }
  0x2b   :  { %628 = vmatpush.bf16.msrb.mxu1 %v983_v51 }
  0x2c   :  { %641 = vmatpush.bf16.msrb.mxu2 %v991_v52 }
  0x2d   :  { %654 = vmatpush.bf16.msrb.mxu3 %v999_v53 }
  0x2e   :  { %616 = vmatpush.bf16.msrb.mxu0 %v974_v54 }
  0x2f   :  { %629 = vmatpush.bf16.msrb.mxu1 %v982_v55 }
  0x30   :  { %642 = vmatpush.bf16.msrb.mxu2 %v990_v56 }
  0x31   :  { %655 = vmatpush.bf16.msrb.mxu3 %v998_v57 }
  0x32   :  { %617 = vmatpush.bf16.msrb.mxu0 %v973_v58 }
  0x33   :  { %630 = vmatpush.bf16.msrb.mxu1 %v981_v59 }
  0x34   :  { %643 = vmatpush.bf16.msrb.mxu2 %v989_v60 }
  0x35   :  { %656 = vmatpush.bf16.msrb.mxu3 %v997_v61 }
  0x36   :  { %618 = vmatpush.bf16.msrb.mxu0 %v972_v62 }
  0x37   :  { %631 = vmatpush.bf16.msrb.mxu1 %v980_v63 }
  0x38   :  { %644 = vmatpush.bf16.msrb.mxu2 %v988_v0 }
  0x39   :  { %657 = vmatpush.bf16.msrb.mxu3 %v996_v1 }
  0x3a   :  { %619 = vmatpush.bf16.msrb.mxu0 %v971_v2 }
  0x3b   :  { %632 = vmatpush.bf16.msrb.mxu1 %v979_v3 }
  0x3c   :  { %645 = vmatpush.bf16.msrb.mxu2 %v987_v5 }
  0x3d   :  { %658 = vmatpush.bf16.msrb.mxu3 %v995_v6 }
  0x3e   :  { %620 = vmatpush.bf16.msrb.mxu0 %v970_v10 }
  0x3f   :  { %633 = vmatpush.bf16.msrb.mxu1 %v978_v11 }
  0x40   :  { %646 = vmatpush.bf16.msrb.mxu2 %v986_v14 }
  0x41   :  { %659 = vmatpush.bf16.msrb.mxu3 %v994_v15  ;;  %621 = vmatmul.bf16.vlgmr.msrb.gmra.mxu0 %v165_v16 }
  0x42   :  { %634 = vmatmul.bf16.vlgmr.msrb.gmra.mxu1 %v166_v17 }
  0x43   :  { %647 = vmatmul.bf16.vlgmr.msrb.gmra.mxu2 %v167_v18 }
  0x44   :  { %660 = vmatmul.bf16.vlgmr.msrb.gmra.mxu3 %v168_v19 }
  0x9e   :  { %v570_v20 = vpop.f32.mrf.mxu0 }
  0x9f   :  { %v583_v21 = vpop.f32.mrf.mxu1 }
  0xa0   :  { %v584_v28 = vadd.f32 %v583_v21, %v570_v20 }
  0xa6   :  { %v596_v22 = vpop.f32.mrf.mxu2  ;;  %v572_v24 = vpop.f32.mrf.mxu0 }
  0xa7   :  { %v609_v23 = vpop.f32.mrf.mxu3  ;;  %v585_v25 = vpop.f32.mrf.mxu1  ;;  %v597_v29 = vadd.f32 %v596_v22, %v584_v28 }
  0xa9   :  { %v610_v30 = vadd.f32 %v609_v23, %v597_v29 }
  0xae   :  { %v598_v26 = vpop.f32.mrf.mxu2 }
  0xaf   :  { %v611_v27 = vpop.f32.mrf.mxu3 }
  0xbe   :  { %v622_v31 = vpop.f32.mrf.mxu0 }
  0xbf   :  { %v635_v32 = vpop.f32.mrf.mxu1  ;;  %v623_v33 = vadd.f32 %v622_v31, %v610_v30 }
  0xc1   :  { %v636_v34 = vadd.f32 %v635_v32, %v623_v33 }
  0xc6   :  { %v648_v35 = vpop.f32.mrf.mxu2  ;;  %v624_v39 = vpop.f32.mrf.mxu0 }
  0xc7   :  { %v661_v36 = vpop.f32.mrf.mxu3  ;;  %v649_v37 = vadd.f32 %v648_v35, %v636_v34  ;;  %v637_v40 = vpop.f32.mrf.mxu1 }
  0xc9   :  { %v662_v41 = vadd.f32 %v661_v36, %v649_v37 }
  0xcb   :  { %v669_v43 = vmul.f32 %v1002_v38, %v662_v41 }
  0xcd   :  { %v674_v44 = vadd.f32 %v1003_v42, %v669_v43 }
  0xce   :  { %v650_v45 = vpop.f32.mrf.mxu2 }
  0xcf   :  { %v663_v46 = vpop.f32.mrf.mxu3  ;;  %v675_v47 = vmax.f32 %v674_v44, 0.0 }
  0xd1   :  { %v676_v48 = vpack.c.bf16 %v675_v47, %v675_v47 }
  0xd3   :  { %677 = vst [vmem:[%s1246_s4] sm:$0xf] %v676_v48 }

// kernel: cnn_planner_forward.36
= control target key start
LH: loop header
LB: loop body
LE: loop exit
PB: predicated region body
PF: predicated region fallthrough
CT: control target
= control target key end

     0   :  { %vm201_vm0 = vcmask 519168   ;;  %s397_s1 = inlined_call_operand.vmem [shape: bf16[256,64], index: 1, kind: input, shape index: {}]   ;;  %s398_s0 = inlined_call_operand.vmem [shape: bf16[16,256], index: 0, kind: input, shape index: {}]   ;;  %s399_s2 = inlined_call_operand.vmem [shape: f32[1,64], index: 2, kind: input, shape index: {}]   ;;  %s400_s3 = inlined_call_operand.vmem [shape: f32[1,64], index: 3, kind: input, shape index: {}]   ;;  %s401_s4 = inlined_call_operand.vmem [shape: bf16[16,64], index: 4, kind: output, shape index: {}]  }
   0x1   :  { %v289_v0 = vld [vmem:[%s397_s1 + $0x38] sm:$0xff]  ;;  %v288_v2 = vld [vmem:[%s397_s1 + $0x30] sm:$0xff]  ;;  %v287_v4 = vld [vmem:[%s397_s1 + $0x28] sm:$0xff] }
   0x2   :  { %v297_v1 = vld [vmem:[%s397_s1 + $0x78] sm:$0xff]  ;;  %157 = vmatpush.bf16.msra.mxu0 %v289_v0  ;;  %v296_v3 = vld [vmem:[%s397_s1 + $0x70] sm:$0xff]  ;;  %v295_v5 = vld [vmem:[%s397_s1 + $0x68] sm:$0xff] }
   0x3   :  { %171 = vmatpush.bf16.msra.mxu1 %v297_v1  ;;  %v286_v6 = vld [vmem:[%s397_s1 + $0x20] sm:$0xff]  ;;  %v285_v8 = vld [vmem:[%s397_s1 + $0x18] sm:$0xff]  ;;  %v284_v10 = vld [vmem:[%s397_s1 + $0x10] sm:$0xff] }
   0x4   :  { %v294_v7 = vld [vmem:[%s397_s1 + $0x60] sm:$0xff]  ;;  %v293_v9 = vld [vmem:[%s397_s1 + $0x58] sm:$0xff]  ;;  %v292_v11 = vld [vmem:[%s397_s1 + $0x50] sm:$0xff] }
   0x5   :  { %v283_v12 = vld [vmem:[%s397_s1 + $0x8] sm:$0xff]  ;;  %v282_v14 = vld [vmem:[%s397_s1] sm:$0xff] }
   0x6   :  { %158 = vmatpush.bf16.msra.mxu0 %v288_v2  ;;  %v291_v13 = vld [vmem:[%s397_s1 + $0x48] sm:$0xff]  ;;  %v290_v15 = vld [vmem:[%s397_s1 + $0x40] sm:$0xff] }
   0x7   :  { %172 = vmatpush.bf16.msra.mxu1 %v296_v3  ;;  %v210_v16 = vld [vmem:[%s398_s0] sm:$0xf]  ;;  %v281_v17 = vld [vmem:[%s398_s0 + $0x4] sm:$0xf0]  ;;  %v280_v18 = vld [vmem:[%s398_s0 + $0x4] sm:$0xf] }
   0x8   :  { %v212_v19 = vld [vmem:[%s398_s0 + $0x8] sm:$0xf0]  ;;  %v211_v20 = vor.u32 %v281_v17, %v210_v16  ;;  %v298_v22 = vld [vmem:[%s399_s2] ss:$0 sm:$0xff] }
   0x9   :  { %v215_v21 = vor.u32 %v280_v18, %v212_v19  ;;  %v299_v26 = vld [vmem:[%s400_s3] ss:$0 sm:$0xff] }
   0xa   :  { %159 = vmatpush.bf16.msra.mxu0 %v287_v4 }
   0xb   :  { %173 = vmatpush.bf16.msra.mxu1 %v295_v5 }
   0xe   :  { %160 = vmatpush.bf16.msra.mxu0 %v286_v6 }
   0xf   :  { %174 = vmatpush.bf16.msra.mxu1 %v294_v7 }
  0x12   :  { %161 = vmatpush.bf16.msra.mxu0 %v285_v8 }
  0x13   :  { %175 = vmatpush.bf16.msra.mxu1 %v293_v9 }
  0x16   :  { %162 = vmatpush.bf16.msra.mxu0 %v284_v10 }
  0x17   :  { %176 = vmatpush.bf16.msra.mxu1 %v292_v11 }
  0x1a   :  { %163 = vmatpush.bf16.msra.mxu0 %v283_v12 }
  0x1b   :  { %177 = vmatpush.bf16.msra.mxu1 %v291_v13 }
  0x1e   :  { %164 = vmatpush.bf16.msra.mxu0 %v282_v14 }
  0x1f   :  { %178 = vmatpush.bf16.msra.mxu1 %v290_v15 }
  0x21   :  { %165 = vmatmul.bf16.vlgmr.msra.gmra.mxu0 %v211_v20 }
  0x22   :  { %179 = vmatmul.bf16.vlgmr.msra.gmra.mxu1 %v215_v21 }
  0x9e   :  { %v166_v23 = vpop.f32.mrf.mxu0 }
  0x9f   :  { %v180_v24 = vpop.f32.mrf.mxu1 }
  0xa0   :  { %v181_v25 = vadd.f32 %v180_v24, %v166_v23 }
  0xa2   :  { %v189_v27 = vmul.f32 %v298_v22, %v181_v25 }
  0xa4   :  { %v195_v28 = vadd.f32 %v299_v26, %v189_v27 }
  0xa6   :  { %v197_v29 = vmax.f32 %v195_v28, 0.0  ;;  %v168_v30 = vpop.f32.mrf.mxu0 }
  0xa7   :  { %v182_v31 = vpop.f32.mrf.mxu1 }
  0xa8   :  { %v199_v32 = vpack.c.bf16 %v197_v29, %v197_v29  ;;  %v183_v33 = vadd.f32 %v182_v31, %v168_v30 }
  0xaa   :  { %202 = vst.msk [vmem:[%s401_s4] sm:$0xf] %vm201_vm0, %v199_v32  ;;  %v190_v34 = vmul.f32 %v298_v22, %v183_v33 }
  0xac   :  { %v196_v35 = vadd.f32 %v299_v26, %v190_v34 }
  0xae   :  { %v198_v36 = vmax.f32 %v196_v35, 0.0 }
  0xb0   :  { %v200_v37 = vpack.c.bf16 %v198_v36, %v198_v36 }
  0xb2   :  { %203 = vst.msk [vmem:[%s401_s4 + $0x4] sm:$0xf] %vm201_vm0, %v200_v37 }

// kernel: cnn_planner_forward.34
= control target key start
LH: loop header
LB: loop body
LE: loop exit
PB: predicated region body
PF: predicated region fallthrough
CT: control target
= control target key end

     0   :  { %s1617_s1 = inlined_call_operand.vmem [shape: bf16[1152,128], index: 1, kind: input, shape index: {}]   ;;  %s1618_s0 = inlined_call_operand.vmem [shape: bf16[24,1152], index: 0, kind: input, shape index: {}]   ;;  %s1619_s2 = inlined_call_operand.vmem [shape: f32[1,128], index: 2, kind: input, shape index: {}]   ;;  %s1620_s3 = inlined_call_operand.vmem [shape: f32[1,128], index: 3, kind: input, shape index: {}]   ;;  %s1621_s4 = inlined_call_operand.vmem [shape: bf16[24,128], index: 4, kind: output, shape index: {}]  }
   0x1   :  { %v1215_v0 = vld [vmem:[%s1617_s1 + $0x38] sm:$0xff]  ;;  %v1214_v4 = vld [vmem:[%s1617_s1 + $0x30] sm:$0xff]  ;;  %v1213_v8 = vld [vmem:[%s1617_s1 + $0x28] sm:$0xff] }
   0x2   :  { %v1223_v1 = vld [vmem:[%s1617_s1 + $0x78] sm:$0xff]  ;;  %686 = vmatpush.bf16.msra.mxu0 %v1215_v0  ;;  %v1222_v5 = vld [vmem:[%s1617_s1 + $0x70] sm:$0xff]  ;;  %v1221_v9 = vld [vmem:[%s1617_s1 + $0x68] sm:$0xff] }
   0x3   :  { %v1231_v2 = vld [vmem:[%s1617_s1 + $0xb8] sm:$0xff]  ;;  %704 = vmatpush.bf16.msra.mxu1 %v1223_v1  ;;  %v1230_v6 = vld [vmem:[%s1617_s1 + $0xb0] sm:$0xff]  ;;  %v1229_v10 = vld [vmem:[%s1617_s1 + $0xa8] sm:$0xff] }
   0x4   :  { %v1239_v3 = vld [vmem:[%s1617_s1 + $0xf8] sm:$0xff]  ;;  %722 = vmatpush.bf16.msra.mxu2 %v1231_v2  ;;  %v1238_v7 = vld [vmem:[%s1617_s1 + $0xf0] sm:$0xff]  ;;  %v1237_v11 = vld [vmem:[%s1617_s1 + $0xe8] sm:$0xff] }
   0x5   :  { %740 = vmatpush.bf16.msra.mxu3 %v1239_v3  ;;  %v1212_v12 = vld [vmem:[%s1617_s1 + $0x20] sm:$0xff]  ;;  %v1211_v16 = vld [vmem:[%s1617_s1 + $0x18] sm:$0xff]  ;;  %v1210_v20 = vld [vmem:[%s1617_s1 + $0x10] sm:$0xff] }
   0x6   :  { %687 = vmatpush.bf16.msra.mxu0 %v1214_v4  ;;  %v1220_v13 = vld [vmem:[%s1617_s1 + $0x60] sm:$0xff]  ;;  %v1219_v17 = vld [vmem:[%s1617_s1 + $0x58] sm:$0xff]  ;;  %v1218_v21 = vld [vmem:[%s1617_s1 + $0x50] sm:$0xff] }
   0x7   :  { %705 = vmatpush.bf16.msra.mxu1 %v1222_v5  ;;  %v1228_v14 = vld [vmem:[%s1617_s1 + $0xa0] sm:$0xff]  ;;  %v1227_v18 = vld [vmem:[%s1617_s1 + $0x98] sm:$0xff]  ;;  %v1226_v22 = vld [vmem:[%s1617_s1 + $0x90] sm:$0xff] }
   0x8   :  { %723 = vmatpush.bf16.msra.mxu2 %v1230_v6  ;;  %v1236_v15 = vld [vmem:[%s1617_s1 + $0xe0] sm:$0xff]  ;;  %v1235_v19 = vld [vmem:[%s1617_s1 + $0xd8] sm:$0xff]  ;;  %v1234_v23 = vld [vmem:[%s1617_s1 + $0xd0] sm:$0xff] }
   0x9   :  { %741 = vmatpush.bf16.msra.mxu3 %v1238_v7  ;;  %v1209_v24 = vld [vmem:[%s1617_s1 + $0x8] sm:$0xff]  ;;  %v1208_v28 = vld [vmem:[%s1617_s1] sm:$0xff]  ;;  %v887_v39 = vld [vmem:[%s1618_s0 + $0x2c] sm:$0xf0] }
   0xa   :  { %688 = vmatpush.bf16.msra.mxu0 %v1213_v8  ;;  %v1217_v25 = vld [vmem:[%s1617_s1 + $0x48] sm:$0xff]  ;;  %v1216_v29 = vld [vmem:[%s1617_s1 + $0x40] sm:$0xff]  ;;  %v1247_v40 = vld [vmem:[%s1617_s1 + $0x138] sm:$0xff] }
   0xb   :  { %706 = vmatpush.bf16.msra.mxu1 %v1221_v9  ;;  %v1225_v26 = vld [vmem:[%s1617_s1 + $0x88] sm:$0xff]  ;;  %v1224_v30 = vld [vmem:[%s1617_s1 + $0x80] sm:$0xff]  ;;  %v1255_v41 = vld [vmem:[%s1617_s1 + $0x178] sm:$0xff] }
   0xc   :  { %724 = vmatpush.bf16.msra.mxu2 %v1229_v10  ;;  %v1233_v27 = vld [vmem:[%s1617_s1 + $0xc8] sm:$0xff]  ;;  %v1232_v31 = vld [vmem:[%s1617_s1 + $0xc0] sm:$0xff]  ;;  %v1263_v46 = vld [vmem:[%s1617_s1 + $0x1b8] sm:$0xff] }
   0xd   :  { %742 = vmatpush.bf16.msra.mxu3 %v1237_v11  ;;  %v877_v32 = vld [vmem:[%s1618_s0] sm:$0xf]  ;;  %v1203_v33 = vld [vmem:[%s1618_s0 + $0x20] sm:$0xf0]  ;;  %v879_v35 = vld [vmem:[%s1618_s0 + $0x24] sm:$0xf0] }
   0xe   :  { %689 = vmatpush.bf16.msra.mxu0 %v1212_v12  ;;  %v1199_v34 = vld [vmem:[%s1618_s0 + $0x4] sm:$0xf]  ;;  %v885_v36 = vld [vmem:[%s1618_s0 + $0x8] sm:$0xf]  ;;  %v1204_v37 = vld [vmem:[%s1618_s0 + $0x28] sm:$0xf0]  ;;  %v878_v42 = vor.u32 %v1203_v33, %v877_v32 }
   0xf   :  { %707 = vmatpush.bf16.msra.mxu1 %v1220_v13  ;;  %v1200_v38 = vld [vmem:[%s1618_s0 + $0xc] sm:$0xf]  ;;  %v882_v43 = vor.u32 %v1199_v34, %v879_v35  ;;  %v886_v44 = vor.u32 %v1204_v37, %v885_v36  ;;  %v1271_v47 = vld [vmem:[%s1617_s1 + $0x1f8] sm:$0xff]  ;;  %v1246_v48 = vld [vmem:[%s1617_s1 + $0x130] sm:$0xff] }
  0x10   :  { %725 = vmatpush.bf16.msra.mxu2 %v1228_v14  ;;  %v890_v45 = vor.u32 %v1200_v38, %v887_v39  ;;  %v1254_v49 = vld [vmem:[%s1617_s1 + $0x170] sm:$0xff]  ;;  %v1245_v52 = vld [vmem:[%s1617_s1 + $0x128] sm:$0xff]  ;;  %v1244_v58 = vld [vmem:[%s1617_s1 + $0x120] sm:$0xff] }
  0x11   :  { %743 = vmatpush.bf16.msra.mxu3 %v1236_v15  ;;  %v1262_v50 = vld [vmem:[%s1617_s1 + $0x1b0] sm:$0xff]  ;;  %v1253_v53 = vld [vmem:[%s1617_s1 + $0x168] sm:$0xff]  ;;  %v1252_v59 = vld [vmem:[%s1617_s1 + $0x160] sm:$0xff] }
  0x12   :  { %690 = vmatpush.bf16.msra.mxu0 %v1211_v16  ;;  %v1270_v51 = vld [vmem:[%s1617_s1 + $0x1f0] sm:$0xff]  ;;  %v27_v54 = vld [vmem:[%s1618_s0 + $0x48] sm:$0xff]  ;;  %v1260_v0 = vld [vmem:[%s1617_s1 + $0x1a0] sm:$0xff] }
  0x13   :  { %708 = vmatpush.bf16.msra.mxu1 %v1219_v17  ;;  %v1261_v55 = vld [vmem:[%s1617_s1 + $0x1a8] sm:$0xff]  ;;  %v28_v57 = vld [vmem:[%s1618_s0 + $0x50] sm:$0xff]  ;;  %v209_v60 = vunpack.c.l.b16 %v27_v54  ;;  %v210_v61 = vunpack.c.h.b16 %v27_v54  ;;  %v1268_v1 = vld [vmem:[%s1617_s1 + $0x1e0] sm:$0xff] }
  0x14   :  { %726 = vmatpush.bf16.msra.mxu2 %v1227_v18  ;;  %v1269_v56 = vld [vmem:[%s1617_s1 + $0x1e8] sm:$0xff]  ;;  %v211_v62 = vunpack.c.l.b16 %v28_v57  ;;  %v212_v63 = vunpack.c.h.b16 %v28_v57  ;;  %v1243_v2 = vld [vmem:[%s1617_s1 + $0x118] sm:$0xff]  ;;  %v1242_v10 = vld [vmem:[%s1617_s1 + $0x110] sm:$0xff] }
  0x15   :  { %744 = vmatpush.bf16.msra.mxu3 %v1235_v19  ;;  %v1251_v3 = vld [vmem:[%s1617_s1 + $0x158] sm:$0xff]  ;;  %v227_v4 = vpack.c.b16 %v209_v60, %v209_v60  ;;  %v228_v5 = vpack.c.b16 %v210_v61, %v210_v61  ;;  %v1250_v11 = vld [vmem:[%s1617_s1 + $0x150] sm:$0xff]  ;;  %v1241_v14 = vld [vmem:[%s1617_s1 + $0x108] sm:$0xff] }
  0x16   :  { %691 = vmatpush.bf16.msra.mxu0 %v1210_v20  ;;  %v229_v6 = vpack.c.b16 %v211_v62, %v211_v62  ;;  %v230_v7 = vpack.c.b16 %v212_v63, %v212_v63  ;;  %v1259_v8 = vld [vmem:[%s1617_s1 + $0x198] sm:$0xff]  ;;  %v1258_v12 = vld [vmem:[%s1617_s1 + $0x190] sm:$0xff]  ;;  %v1249_v15 = vld [vmem:[%s1617_s1 + $0x148] sm:$0xff] }
  0x17   :  { %709 = vmatpush.bf16.msra.mxu1 %v1218_v21  ;;  %v1267_v9 = vld [vmem:[%s1617_s1 + $0x1d8] sm:$0xff]  ;;  %v1266_v13 = vld [vmem:[%s1617_s1 + $0x1d0] sm:$0xff]  ;;  %v1257_v16 = vld [vmem:[%s1617_s1 + $0x188] sm:$0xff] }
  0x18   :  { %727 = vmatpush.bf16.msra.mxu2 %v1226_v22  ;;  %v1265_v17 = vld [vmem:[%s1617_s1 + $0x1c8] sm:$0xff]  ;;  %v1240_v18 = vld [vmem:[%s1617_s1 + $0x100] sm:$0xff]  ;;  %v893_v22 = vld [vmem:[%s1618_s0 + $0x10] sm:$0xf] }
  0x19   :  { %745 = vmatpush.bf16.msra.mxu3 %v1234_v23  ;;  %v1248_v19 = vld [vmem:[%s1617_s1 + $0x140] sm:$0xff]  ;;  %v1205_v23 = vld [vmem:[%s1618_s0 + $0x30] sm:$0xf0]  ;;  %v1277_v36 = vld [vmem:[%s1617_s1 + $0x228] sm:$0xff] }
  0x1a   :  { %692 = vmatpush.bf16.msra.mxu0 %v1209_v24  ;;  %v1256_v20 = vld [vmem:[%s1617_s1 + $0x180] sm:$0xff]  ;;  %v1279_v24 = vld [vmem:[%s1617_s1 + $0x238] sm:$0xff]  ;;  %v1278_v35 = vld [vmem:[%s1617_s1 + $0x230] sm:$0xff] }
  0x1b   :  { %710 = vmatpush.bf16.msra.mxu1 %v1217_v25  ;;  %v1264_v21 = vld [vmem:[%s1617_s1 + $0x1c0] sm:$0xff]  ;;  %v1201_v25 = vld [vmem:[%s1618_s0 + $0x14] sm:$0xf]  ;;  %v29_v37 = vld [vmem:[%s1618_s0 + $0x58] sm:$0xff] }
  0x1c   :  { %728 = vmatpush.bf16.msra.mxu2 %v1225_v26  ;;  %v895_v26 = vld [vmem:[%s1618_s0 + $0x34] sm:$0xf0]  ;;  %v1276_v38 = vld [vmem:[%s1617_s1 + $0x220] sm:$0xff] }
  0x1d   :  { %746 = vmatpush.bf16.msra.mxu3 %v1233_v27  ;;  %v901_v27 = vld [vmem:[%s1618_s0 + $0x18] sm:$0xf]  ;;  %v898_v32 = vor.u32 %v1201_v25, %v895_v26  ;;  %v30_v39 = vld [vmem:[%s1618_s0 + $0x60] sm:$0xff] }
  0x1e   :  { %693 = vmatpush.bf16.msra.mxu0 %v1208_v28  ;;  %v1206_v28 = vld [vmem:[%s1618_s0 + $0x38] sm:$0xf0]  ;;  %v909_v54 = vld [vmem:[%s1618_s0 + $0x20] sm:$0xf] }
  0x1f   :  { %711 = vmatpush.bf16.msra.mxu1 %v1216_v29  ;;  %v1202_v29 = vld [vmem:[%s1618_s0 + $0x1c] sm:$0xf]  ;;  %v902_v33 = vor.u32 %v1206_v28, %v901_v27 }
  0x20   :  { %729 = vmatpush.bf16.msra.mxu2 %v1224_v30  ;;  %v903_v30 = vld [vmem:[%s1618_s0 + $0x3c] sm:$0xf0] }
  0x21   :  { %747 = vmatpush.bf16.msra.mxu3 %v1232_v31  ;;  %694 = vmatmul.bf16.vlgmr.msra.gmra.mxu0 %v878_v42  ;;  %v894_v31 = vor.u32 %v1205_v23, %v893_v22  ;;  %v906_v34 = vor.u32 %v1202_v29, %v903_v30  ;;  %v215_v42 = vunpack.c.l.b16 %v30_v39 }
  0x22   :  { %758 = vmatpush.bf16.msrb.mxu0 %v1247_v40  ;;  %712 = vmatmul.bf16.vlgmr.msra.gmra.mxu1 %v882_v43  ;;  %v213_v40 = vunpack.c.l.b16 %v29_v37  ;;  %v216_v43 = vunpack.c.h.b16 %v30_v39 }
  0x23   :  { %776 = vmatpush.bf16.msrb.mxu1 %v1255_v41  ;;  %730 = vmatmul.bf16.vlgmr.msra.gmra.mxu2 %v886_v44  ;;  %v214_v41 = vunpack.c.h.b16 %v29_v37  ;;  %v1275_v44 = vld [vmem:[%s1617_s1 + $0x218] sm:$0xff] }
  0x24   :  { %748 = vmatmul.bf16.vlgmr.msra.gmra.mxu3 %v890_v45  ;;  %794 = vmatpush.bf16.msrb.mxu2 %v1263_v46  ;;  %v231_v45 = vpack.c.b16 %v213_v40, %v213_v40 }
  0x25   :  { %812 = vmatpush.bf16.msrb.mxu3 %v1271_v47  ;;  %v232_v46 = vpack.c.b16 %v214_v41, %v214_v41  ;;  %v233_v47 = vpack.c.b16 %v215_v42, %v215_v42  ;;  %v1293_v41 = vld [vmem:[%s1619_s2] ss:$0 sm:$0xff] }
  0x26   :  { %759 = vmatpush.bf16.msrb.mxu0 %v1246_v48  ;;  %v234_v48 = vpack.c.b16 %v216_v43, %v216_v43 }
  0x27   :  { %777 = vmatpush.bf16.msrb.mxu1 %v1254_v49  ;;  %v1274_v49 = vld [vmem:[%s1617_s1 + $0x210] sm:$0xff] }
  0x28   :  { %795 = vmatpush.bf16.msrb.mxu2 %v1262_v50  ;;  %v1273_v50 = vld [vmem:[%s1617_s1 + $0x208] sm:$0xff] }
  0x29   :  { %813 = vmatpush.bf16.msrb.mxu3 %v1270_v51  ;;  %v31_v51 = vld [vmem:[%s1618_s0 + $0x68] sm:$0xf] }
  0x2a   :  { %760 = vmatpush.bf16.msrb.mxu0 %v1245_v52  ;;  %v1272_v52 = vld [vmem:[%s1617_s1 + $0x200] sm:$0xff] }
  0x2b   :  { %778 = vmatpush.bf16.msrb.mxu1 %v1253_v53  ;;  %v217_v53 = vunpack.c.l.b16 %v31_v51 }
  0x2c   :  { %796 = vmatpush.bf16.msrb.mxu2 %v1261_v55  ;;  %v1207_v55 = vld [vmem:[%s1618_s0 + $0x40] sm:$0xf0] }
  0x2d   :  { %814 = vmatpush.bf16.msrb.mxu3 %v1269_v56  ;;  %v910_v56 = vor.u32 %v1207_v55, %v909_v54  ;;  %v235_v57 = vpack.c.b16 %v217_v53, %v217_v53 }
  0x2e   :  { %761 = vmatpush.bf16.msrb.mxu0 %v1244_v58 }
  0x2f   :  { %779 = vmatpush.bf16.msrb.mxu1 %v1252_v59 }
  0x30   :  { %797 = vmatpush.bf16.msrb.mxu2 %v1260_v0 }
  0x31   :  { %815 = vmatpush.bf16.msrb.mxu3 %v1268_v1  ;;  %699 = vmatmul.bf16.gmra.mxu0 %v227_v4 }
  0x32   :  { %762 = vmatpush.bf16.msrb.mxu0 %v1243_v2  ;;  %717 = vmatmul.bf16.gmra.mxu1 %v228_v5 }
  0x33   :  { %780 = vmatpush.bf16.msrb.mxu1 %v1251_v3  ;;  %735 = vmatmul.bf16.gmra.mxu2 %v229_v6 }
  0x34   :  { %753 = vmatmul.bf16.gmra.mxu3 %v230_v7  ;;  %798 = vmatpush.bf16.msrb.mxu2 %v1259_v8 }
  0x35   :  { %816 = vmatpush.bf16.msrb.mxu3 %v1267_v9 }
  0x36   :  { %763 = vmatpush.bf16.msrb.mxu0 %v1242_v10 }
  0x37   :  { %781 = vmatpush.bf16.msrb.mxu1 %v1250_v11 }
  0x38   :  { %799 = vmatpush.bf16.msrb.mxu2 %v1258_v12 }
  0x39   :  { %817 = vmatpush.bf16.msrb.mxu3 %v1266_v13 }
  0x3a   :  { %764 = vmatpush.bf16.msrb.mxu0 %v1241_v14 }
  0x3b   :  { %782 = vmatpush.bf16.msrb.mxu1 %v1249_v15 }
  0x3c   :  { %800 = vmatpush.bf16.msrb.mxu2 %v1257_v16 }
  0x3d   :  { %818 = vmatpush.bf16.msrb.mxu3 %v1265_v17 }
  0x3e   :  { %765 = vmatpush.bf16.msrb.mxu0 %v1240_v18 }
  0x3f   :  { %783 = vmatpush.bf16.msrb.mxu1 %v1248_v19 }
  0x40   :  { %801 = vmatpush.bf16.msrb.mxu2 %v1256_v20 }
  0x41   :  { %819 = vmatpush.bf16.msrb.mxu3 %v1264_v21  ;;  %766 = vmatmul.bf16.vlgmr.msrb.gmra.mxu0 %v894_v31 }
  0x42   :  { %830 = vmatpush.bf16.msra.mxu0 %v1279_v24  ;;  %784 = vmatmul.bf16.vlgmr.msrb.gmra.mxu1 %v898_v32 }
  0x43   :  { %1285 = vmatpush.bf16.msra.mxu1 %v1279_v24  ;;  %802 = vmatmul.bf16.vlgmr.msrb.gmra.mxu2 %v902_v33 }
  0x44   :  { %820 = vmatmul.bf16.vlgmr.msrb.gmra.mxu3 %v906_v34 }
  0x46   :  { %831 = vmatpush.bf16.msra.mxu0 %v1278_v35 }
  0x47   :  { %1286 = vmatpush.bf16.msra.mxu1 %v1278_v35 }
  0x4a   :  { %832 = vmatpush.bf16.msra.mxu0 %v1277_v36 }
  0x4b   :  { %1287 = vmatpush.bf16.msra.mxu1 %v1277_v36 }
  0x4e   :  { %833 = vmatpush.bf16.msra.mxu0 %v1276_v38 }
  0x4f   :  { %1288 = vmatpush.bf16.msra.mxu1 %v1276_v38 }
  0x51   :  { %771 = vmatmul.bf16.gmra.mxu0 %v231_v45 }
  0x52   :  { %834 = vmatpush.bf16.msra.mxu0 %v1275_v44  ;;  %789 = vmatmul.bf16.gmra.mxu1 %v232_v46 }
  0x53   :  { %1289 = vmatpush.bf16.msra.mxu1 %v1275_v44  ;;  %807 = vmatmul.bf16.gmra.mxu2 %v233_v47 }
  0x54   :  { %825 = vmatmul.bf16.gmra.mxu3 %v234_v48  ;;  %v1294_v48 = vld [vmem:[%s1620_s3] ss:$0 sm:$0xff] }
  0x56   :  { %835 = vmatpush.bf16.msra.mxu0 %v1274_v49 }
  0x57   :  { %1290 = vmatpush.bf16.msra.mxu1 %v1274_v49 }
  0x5a   :  { %836 = vmatpush.bf16.msra.mxu0 %v1273_v50 }
  0x5b   :  { %1291 = vmatpush.bf16.msra.mxu1 %v1273_v50 }
  0x5e   :  { %837 = vmatpush.bf16.msra.mxu0 %v1272_v52 }
  0x5f   :  { %1292 = vmatpush.bf16.msra.mxu1 %v1272_v52 }
  0x61   :  { %838 = vmatmul.bf16.vlgmr.msra.gmra.mxu0 %v910_v56 }
  0x62   :  { %843 = vmatmul.bf16.vlgmr.msra.gmra.mxu1 %v235_v57 }
  0x9e   :  { %v695_v58 = vpop.f32.mrf.mxu0 }
  0x9f   :  { %v713_v59 = vpop.f32.mrf.mxu1 }
  0xa0   :  { %v714_v17 = vadd.f32 %v713_v59, %v695_v58 }
  0xa6   :  { %v731_v60 = vpop.f32.mrf.mxu2  ;;  %v697_v62 = vpop.f32.mrf.mxu0 }
  0xa7   :  { %v749_v61 = vpop.f32.mrf.mxu3  ;;  %v715_v63 = vpop.f32.mrf.mxu1  ;;  %v732_v23 = vadd.f32 %v731_v60, %v714_v17 }
  0xa8   :  { %v716_v25 = vadd.f32 %v715_v63, %v697_v62 }
  0xa9   :  { %v750_v26 = vadd.f32 %v749_v61, %v732_v23 }
  0xae   :  { %v733_v0 = vpop.f32.mrf.mxu2  ;;  %v700_v2 = vpop.f32.mrf.mxu0 }
  0xaf   :  { %v751_v1 = vpop.f32.mrf.mxu3  ;;  %v718_v3 = vpop.f32.mrf.mxu1  ;;  %v734_v28 = vadd.f32 %v733_v0, %v716_v25 }
  0xb0   :  { %v719_v16 = vadd.f32 %v718_v3, %v700_v2 }
  0xb1   :  { %v752_v35 = vadd.f32 %v751_v1, %v734_v28 }
  0xb6   :  { %v736_v4 = vpop.f32.mrf.mxu2  ;;  %v702_v6 = vpop.f32.mrf.mxu0 }
  0xb7   :  { %v754_v5 = vpop.f32.mrf.mxu3  ;;  %v720_v7 = vpop.f32.mrf.mxu1  ;;  %v737_v18 = vadd.f32 %v736_v4, %v719_v16 }
  0xb9   :  { %v755_v24 = vadd.f32 %v754_v5, %v737_v18 }
  0xbe   :  { %v738_v8 = vpop.f32.mrf.mxu2  ;;  %v767_v10 = vpop.f32.mrf.mxu0 }
  0xbf   :  { %v756_v9 = vpop.f32.mrf.mxu3  ;;  %v785_v11 = vpop.f32.mrf.mxu1  ;;  %v768_v29 = vadd.f32 %v767_v10, %v750_v26 }
  0xc1   :  { %v786_v36 = vadd.f32 %v785_v11, %v768_v29 }
  0xc6   :  { %v803_v12 = vpop.f32.mrf.mxu2  ;;  %v769_v14 = vpop.f32.mrf.mxu0 }
  0xc7   :  { %v821_v13 = vpop.f32.mrf.mxu3  ;;  %v787_v15 = vpop.f32.mrf.mxu1  ;;  %v804_v38 = vadd.f32 %v803_v12, %v786_v36  ;;  %v770_v39 = vadd.f32 %v769_v14, %v752_v35 }
  0xc9   :  { %v788_v46 = vadd.f32 %v787_v15, %v770_v39  ;;  %v822_v47 = vadd.f32 %v821_v13, %v804_v38 }
  0xce   :  { %v805_v19 = vpop.f32.mrf.mxu2  ;;  %v772_v21 = vpop.f32.mrf.mxu0 }
  0xcf   :  { %v823_v20 = vpop.f32.mrf.mxu3  ;;  %v790_v22 = vpop.f32.mrf.mxu1  ;;  %v773_v27 = vadd.f32 %v772_v21, %v755_v24  ;;  %v806_v50 = vadd.f32 %v805_v19, %v788_v46 }
  0xd1   :  { %v791_v34 = vadd.f32 %v790_v22, %v773_v27  ;;  %v824_v54 = vadd.f32 %v823_v20, %v806_v50 }
  0xd6   :  { %v808_v30 = vpop.f32.mrf.mxu2  ;;  %v774_v32 = vpop.f32.mrf.mxu0 }
  0xd7   :  { %v826_v31 = vpop.f32.mrf.mxu3  ;;  %v792_v33 = vpop.f32.mrf.mxu1  ;;  %v809_v37 = vadd.f32 %v808_v30, %v791_v34 }
  0xd9   :  { %v827_v40 = vadd.f32 %v826_v31, %v809_v37 }
  0xde   :  { %v810_v42 = vpop.f32.mrf.mxu2  ;;  %v839_v44 = vpop.f32.mrf.mxu0 }
  0xdf   :  { %v828_v43 = vpop.f32.mrf.mxu3  ;;  %v844_v45 = vpop.f32.mrf.mxu1  ;;  %v840_v51 = vadd.f32 %v839_v44, %v822_v47 }
  0xe0   :  { %v845_v49 = vadd.f32 %v844_v45, %v827_v40 }
  0xe1   :  { %v852_v55 = vmul.f32 %v1293_v41, %v840_v51 }
  0xe2   :  { %v854_v52 = vmul.f32 %v1293_v41, %v845_v49 }
  0xe3   :  { %v859_v61 = vadd.f32 %v1294_v48, %v852_v55 }
  0xe4   :  { %v861_v53 = vadd.f32 %v1294_v48, %v854_v52 }
  0xe5   :  { %v862_v0 = vmax.f32 %v859_v61, 0.0 }
  0xe6   :  { %v864_v56 = vmax.f32 %v861_v53, 0.0  ;;  %v841_v57 = vpop.f32.mrf.mxu0 }
  0xe7   :  { %v846_v58 = vpop.f32.mrf.mxu1  ;;  %v842_v60 = vadd.f32 %v841_v57, %v824_v54 }
  0xe8   :  { %v867_v59 = vpack.c.bf16 %v864_v56, %v864_v56 }
  0xe9   :  { %v853_v62 = vmul.f32 %v1293_v41, %v842_v60 }
  0xea   :  { %870 = vst [vmem:[%s1621_s4 + $0x8] sm:$0xf] %v867_v59 }
  0xeb   :  { %v860_v63 = vadd.f32 %v1294_v48, %v853_v62 }
  0xed   :  { %v863_v1 = vmax.f32 %v860_v63, 0.0 }
  0xef   :  { %v1283_v2 = vpack.c.bf16 %v863_v1, %v862_v0 }
  0xf1   :  { %1284 = vst [vmem:[%s1621_s4] sm:$0xff] %v1283_v2  }

// kernel: cnn_planner_forward.35
= control target key start
LH: loop header
LB: loop body
LE: loop exit
PB: predicated region body
PF: predicated region fallthrough
CT: control target
= control target key end

     0   :  { %vm132_vm0 = vcmask 519168   ;;  %s265_s1 = inlined_call_operand.vmem [shape: bf16[128,64], index: 1, kind: input, shape index: {}]   ;;  %s266_s2 = inlined_call_operand.vmem [shape: f32[1,64], index: 2, kind: input, shape index: {}]   ;;  %s267_s3 = inlined_call_operand.vmem [shape: f32[1,64], index: 3, kind: input, shape index: {}]   ;;  %s268_s0 = inlined_call_operand.vmem [shape: bf16[24,128], index: 0, kind: input, shape index: {}]   ;;  %s269_s4 = inlined_call_operand.vmem [shape: bf16[24,64], index: 4, kind: output, shape index: {}]  }
   0x1   :  { %v184_v0 = vld [vmem:[%s265_s1 + $0x38] sm:$0xff]  ;;  %v183_v1 = vld [vmem:[%s265_s1 + $0x30] sm:$0xff]  ;;  %v182_v2 = vld [vmem:[%s265_s1 + $0x28] sm:$0xff] }
   0x2   :  { %94 = vmatpush.bf16.msra.mxu0 %v184_v0  ;;  %185 = vmatpush.bf16.msra.mxu1 %v184_v0  ;;  %v181_v3 = vld [vmem:[%s265_s1 + $0x20] sm:$0xff]  ;;  %v180_v4 = vld [vmem:[%s265_s1 + $0x18] sm:$0xff]  ;;  %v179_v5 = vld [vmem:[%s265_s1 + $0x10] sm:$0xff] }
   0x3   :  { %v178_v6 = vld [vmem:[%s265_s1 + $0x8] sm:$0xff]  ;;  %v177_v9 = vld [vmem:[%s265_s1] sm:$0xff] }
   0x4   :  { %v19_v7 = vld [vmem:[%s268_s0 + $0x8] sm:$0xf]  ;;  %v176_v10 = vld [vmem:[%s268_s0] sm:$0xff] }
   0x5   :  { %v41_v8 = vunpack.c.l.b16 %v19_v7  ;;  %v193_v12 = vld [vmem:[%s266_s2] ss:$0 sm:$0xff] }
   0x6   :  { %95 = vmatpush.bf16.msra.mxu0 %v183_v1  ;;  %186 = vmatpush.bf16.msra.mxu1 %v183_v1  ;;  %v194_v13 = vld [vmem:[%s267_s3] ss:$0 sm:$0xff] }
   0x7   :  { %v43_v11 = vpack.c.b16 %v41_v8, %v41_v8 }
   0xa   :  { %96 = vmatpush.bf16.msra.mxu0 %v182_v2  ;;  %187 = vmatpush.bf16.msra.mxu1 %v182_v2 }
   0xe   :  { %97 = vmatpush.bf16.msra.mxu0 %v181_v3  ;;  %188 = vmatpush.bf16.msra.mxu1 %v181_v3 }
  0x12   :  { %98 = vmatpush.bf16.msra.mxu0 %v180_v4  ;;  %189 = vmatpush.bf16.msra.mxu1 %v180_v4 }
  0x16   :  { %99 = vmatpush.bf16.msra.mxu0 %v179_v5  ;;  %190 = vmatpush.bf16.msra.mxu1 %v179_v5 }
  0x1a   :  { %100 = vmatpush.bf16.msra.mxu0 %v178_v6  ;;  %191 = vmatpush.bf16.msra.mxu1 %v178_v6 }
  0x1e   :  { %101 = vmatpush.bf16.msra.mxu0 %v177_v9  ;;  %192 = vmatpush.bf16.msra.mxu1 %v177_v9 }
  0x21   :  { %102 = vmatmul.bf16.vlgmr.msra.gmra.mxu0 %v176_v10  ;;  %107 = vmatmul.bf16.vlgmr.msra.gmra.mxu1 %v43_v11 }
  0x9e   :  { %v103_v14 = vpop.f32.mrf.mxu0  ;;  %v108_v15 = vpop.f32.mrf.mxu1 }
  0x9f   :  { %v116_v16 = vmul.f32 %v193_v12, %v103_v14  ;;  %v118_v17 = vmul.f32 %v193_v12, %v108_v15 }
  0xa1   :  { %v123_v18 = vadd.f32 %v194_v13, %v116_v16  ;;  %v125_v19 = vadd.f32 %v194_v13, %v118_v17 }
  0xa3   :  { %v126_v20 = vmax.f32 %v123_v18, 0.0  ;;  %v128_v21 = vmax.f32 %v125_v19, 0.0 }
  0xa5   :  { %v129_v22 = vpack.c.bf16 %v126_v20, %v126_v20  ;;  %v131_v23 = vpack.c.bf16 %v128_v21, %v128_v21 }
  0xa6   :  { %v105_v24 = vpop.f32.mrf.mxu0  ;;  %v110_v25 = vpop.f32.mrf.mxu1 }
  0xa7   :  { %133 = vst.msk [vmem:[%s269_s4] sm:$0xf] %vm132_vm0, %v129_v22  ;;  %v117_v26 = vmul.f32 %v193_v12, %v105_v24 }
  0xa8   :  { %135 = vst.msk [vmem:[%s269_s4 + $0x8] sm:$0xf] %vm132_vm0, %v131_v23 }
  0xa9   :  { %v124_v27 = vadd.f32 %v194_v13, %v117_v26 }
  0xab   :  { %v127_v28 = vmax.f32 %v124_v27, 0.0 }
  0xad   :  { %v130_v29 = vpack.c.bf16 %v127_v28, %v127_v28 }
  0xaf   :  { %134 = vst.msk [vmem:[%s269_s4 + $0x4] sm:$0xf] %vm132_vm0, %v130_v29 }

// kernel: cnn_planner_forward.38
= control target key start
LH: loop header
LB: loop body
LE: loop exit
PB: predicated region body
PF: predicated region fallthrough
CT: control target
= control target key end

     0   :  { %vm353_vm0 = vcmask 519168   ;;  %s657_s1 = inlined_call_operand.vmem [shape: bf16[512,64], index: 1, kind: input, shape index: {}]   ;;  %s658_s0 = inlined_call_operand.vmem [shape: bf16[8,512], index: 0, kind: input, shape index: {}]   ;;  %s659_s2 = inlined_call_operand.vmem [shape: f32[1,64], index: 2, kind: input, shape index: {}]   ;;  %s660_s3 = inlined_call_operand.vmem [shape: f32[1,64], index: 3, kind: input, shape index: {}]   ;;  %s661_s4 = inlined_call_operand.vmem [shape: bf16[8,64], index: 4, kind: output, shape index: {}]  }
   0x1   :  { %v494_v0 = vld [vmem:[%s657_s1 + $0x38] sm:$0xff]  ;;  %v493_v4 = vld [vmem:[%s657_s1 + $0x30] sm:$0xff]  ;;  %v492_v8 = vld [vmem:[%s657_s1 + $0x28] sm:$0xff] }
   0x2   :  { %v502_v1 = vld [vmem:[%s657_s1 + $0x78] sm:$0xff]  ;;  %289 = vmatpush.bf16.msra.mxu0 %v494_v0  ;;  %v501_v5 = vld [vmem:[%s657_s1 + $0x70] sm:$0xff]  ;;  %v500_v9 = vld [vmem:[%s657_s1 + $0x68] sm:$0xff] }
   0x3   :  { %v510_v2 = vld [vmem:[%s657_s1 + $0xb8] sm:$0xff]  ;;  %302 = vmatpush.bf16.msra.mxu1 %v502_v1  ;;  %v509_v6 = vld [vmem:[%s657_s1 + $0xb0] sm:$0xff]  ;;  %v508_v10 = vld [vmem:[%s657_s1 + $0xa8] sm:$0xff] }
   0x4   :  { %v518_v3 = vld [vmem:[%s657_s1 + $0xf8] sm:$0xff]  ;;  %315 = vmatpush.bf16.msra.mxu2 %v510_v2  ;;  %v517_v7 = vld [vmem:[%s657_s1 + $0xf0] sm:$0xff]  ;;  %v516_v11 = vld [vmem:[%s657_s1 + $0xe8] sm:$0xff] }
   0x5   :  { %328 = vmatpush.bf16.msra.mxu3 %v518_v3  ;;  %v491_v12 = vld [vmem:[%s657_s1 + $0x20] sm:$0xff]  ;;  %v490_v16 = vld [vmem:[%s657_s1 + $0x18] sm:$0xff]  ;;  %v489_v20 = vld [vmem:[%s657_s1 + $0x10] sm:$0xff] }
   0x6   :  { %290 = vmatpush.bf16.msra.mxu0 %v493_v4  ;;  %v499_v13 = vld [vmem:[%s657_s1 + $0x60] sm:$0xff]  ;;  %v498_v17 = vld [vmem:[%s657_s1 + $0x58] sm:$0xff]  ;;  %v497_v21 = vld [vmem:[%s657_s1 + $0x50] sm:$0xff] }
   0x7   :  { %303 = vmatpush.bf16.msra.mxu1 %v501_v5  ;;  %v507_v14 = vld [vmem:[%s657_s1 + $0xa0] sm:$0xff]  ;;  %v506_v18 = vld [vmem:[%s657_s1 + $0x98] sm:$0xff]  ;;  %v505_v22 = vld [vmem:[%s657_s1 + $0x90] sm:$0xff] }
   0x8   :  { %316 = vmatpush.bf16.msra.mxu2 %v509_v6  ;;  %v515_v15 = vld [vmem:[%s657_s1 + $0xe0] sm:$0xff]  ;;  %v514_v19 = vld [vmem:[%s657_s1 + $0xd8] sm:$0xff]  ;;  %v513_v23 = vld [vmem:[%s657_s1 + $0xd0] sm:$0xff] }
   0x9   :  { %329 = vmatpush.bf16.msra.mxu3 %v517_v7  ;;  %v488_v24 = vld [vmem:[%s657_s1 + $0x8] sm:$0xff]  ;;  %v17_v26 = vld [vmem:[%s658_s0] sm:$0xff] }
   0xa   :  { %291 = vmatpush.bf16.msra.mxu0 %v492_v8  ;;  %v496_v25 = vld [vmem:[%s657_s1 + $0x48] sm:$0xff]  ;;  %v85_v30 = vunpack.c.l.b16 %v17_v26  ;;  %v86_v31 = vunpack.c.h.b16 %v17_v26  ;;  %v487_v32 = vld [vmem:[%s657_s1] sm:$0xff] }
   0xb   :  { %304 = vmatpush.bf16.msra.mxu1 %v500_v9  ;;  %v504_v27 = vld [vmem:[%s657_s1 + $0x88] sm:$0xff]  ;;  %v495_v33 = vld [vmem:[%s657_s1 + $0x40] sm:$0xff] }
   0xc   :  { %317 = vmatpush.bf16.msra.mxu2 %v508_v10  ;;  %v512_v28 = vld [vmem:[%s657_s1 + $0xc8] sm:$0xff]  ;;  %v503_v36 = vld [vmem:[%s657_s1 + $0x80] sm:$0xff]  ;;  %v89_v38 = vpack.c.b16 %v85_v30, %v85_v30  ;;  %v90_v39 = vpack.c.b16 %v86_v31, %v86_v31 }
   0xd   :  { %330 = vmatpush.bf16.msra.mxu3 %v516_v11  ;;  %v18_v29 = vld [vmem:[%s658_s0 + $0x8] sm:$0xff]  ;;  %v511_v37 = vld [vmem:[%s657_s1 + $0xc0] sm:$0xff] }
   0xe   :  { %292 = vmatpush.bf16.msra.mxu0 %v491_v12  ;;  %v87_v34 = vunpack.c.l.b16 %v18_v29  ;;  %v88_v35 = vunpack.c.h.b16 %v18_v29  ;;  %v519_v48 = vld [vmem:[%s659_s2] ss:$0 sm:$0xff] }
   0xf   :  { %305 = vmatpush.bf16.msra.mxu1 %v499_v13  ;;  %v520_v52 = vld [vmem:[%s660_s3] ss:$0 sm:$0xff] }
  0x10   :  { %318 = vmatpush.bf16.msra.mxu2 %v507_v14  ;;  %v91_v40 = vpack.c.b16 %v87_v34, %v87_v34  ;;  %v92_v41 = vpack.c.b16 %v88_v35, %v88_v35 }
  0x11   :  { %331 = vmatpush.bf16.msra.mxu3 %v515_v15 }
  0x12   :  { %293 = vmatpush.bf16.msra.mxu0 %v490_v16 }
  0x13   :  { %306 = vmatpush.bf16.msra.mxu1 %v498_v17 }
  0x14   :  { %319 = vmatpush.bf16.msra.mxu2 %v506_v18 }
  0x15   :  { %332 = vmatpush.bf16.msra.mxu3 %v514_v19 }
  0x16   :  { %294 = vmatpush.bf16.msra.mxu0 %v489_v20 }
  0x17   :  { %307 = vmatpush.bf16.msra.mxu1 %v497_v21 }
  0x18   :  { %320 = vmatpush.bf16.msra.mxu2 %v505_v22 }
  0x19   :  { %333 = vmatpush.bf16.msra.mxu3 %v513_v23 }
  0x1a   :  { %295 = vmatpush.bf16.msra.mxu0 %v488_v24 }
  0x1b   :  { %308 = vmatpush.bf16.msra.mxu1 %v496_v25 }
  0x1c   :  { %321 = vmatpush.bf16.msra.mxu2 %v504_v27 }
  0x1d   :  { %334 = vmatpush.bf16.msra.mxu3 %v512_v28 }
  0x1e   :  { %296 = vmatpush.bf16.msra.mxu0 %v487_v32 }
  0x1f   :  { %309 = vmatpush.bf16.msra.mxu1 %v495_v33 }
  0x20   :  { %322 = vmatpush.bf16.msra.mxu2 %v503_v36 }
  0x21   :  { %335 = vmatpush.bf16.msra.mxu3 %v511_v37  ;;  %297 = vmatmul.bf16.vlgmr.msra.gmra.mxu0 %v89_v38 }
  0x22   :  { %310 = vmatmul.bf16.vlgmr.msra.gmra.mxu1 %v90_v39 }
  0x23   :  { %323 = vmatmul.bf16.vlgmr.msra.gmra.mxu2 %v91_v40 }
  0x24   :  { %336 = vmatmul.bf16.vlgmr.msra.gmra.mxu3 %v92_v41 }
  0x9e   :  { %v298_v42 = vpop.f32.mrf.mxu0 }
  0x9f   :  { %v311_v43 = vpop.f32.mrf.mxu1 }
  0xa0   :  { %v312_v44 = vadd.f32 %v311_v43, %v298_v42 }
  0xa6   :  { %v324_v45 = vpop.f32.mrf.mxu2  ;;  %v300_v49 = vpop.f32.mrf.mxu0 }
  0xa7   :  { %v337_v46 = vpop.f32.mrf.mxu3  ;;  %v325_v47 = vadd.f32 %v324_v45, %v312_v44  ;;  %v313_v50 = vpop.f32.mrf.mxu1 }
  0xa9   :  { %v338_v51 = vadd.f32 %v337_v46, %v325_v47 }
  0xab   :  { %v345_v53 = vmul.f32 %v519_v48, %v338_v51 }
  0xad   :  { %v350_v54 = vadd.f32 %v520_v52, %v345_v53 }
  0xae   :  { %v326_v55 = vpop.f32.mrf.mxu2 }
  0xaf   :  { %v339_v56 = vpop.f32.mrf.mxu3  ;;  %v351_v57 = vmax.f32 %v350_v54, 0.0 }
  0xb1   :  { %v352_v58 = vpack.c.bf16 %v351_v57, %v351_v57 }
  0xb3   :  { %354 = vst.msk [vmem:[%s661_s4] sm:$0xf] %vm353_vm0, %v352_v58 }

// kernel: cnn_planner_forward.39
= control target key start
LH: loop header
LB: loop body
LE: loop exit
PB: predicated region body
PF: predicated region fallthrough
CT: control target
= control target key end

     0   :  { %vm419_vm0 = vcmask 523264   ;;  %vm608_vm1 = vcmask 519168   ;;  %s1195_s1 = inlined_call_operand.vmem [shape: bf16[576,64], index: 1, kind: input, shape index: {}]   ;;  %s1196_s0 = inlined_call_operand.vmem [shape: bf16[56,576], index: 0, kind: input, shape index: {}]   ;;  %s1197_s2 = inlined_call_operand.vmem [shape: f32[1,64], index: 2, kind: input, shape index: {}]   ;;  %s1198_s3 = inlined_call_operand.vmem [shape: f32[1,64], index: 3, kind: input, shape index: {}]   ;;  %s1199_s4 = inlined_call_operand.vmem [shape: bf16[56,64], index: 4, kind: output, shape index: {}]  }
   0x1   :  { %v850_v0 = vld [vmem:[%s1195_s1 + $0x38] sm:$0xff]  ;;  %v849_v1 = vld [vmem:[%s1195_s1 + $0x30] sm:$0xff]  ;;  %v848_v4 = vld [vmem:[%s1195_s1 + $0x28] sm:$0xff] }
   0x2   :  { %879 = vmatpush.bf16.msra.mxu1 %v850_v0  ;;  %880 = vmatpush.bf16.msra.mxu2 %v850_v0  ;;  %v874_v2 = vld [vmem:[%s1195_s1 + $0xf8] sm:$0xff]  ;;  %v873_v3 = vld [vmem:[%s1195_s1 + $0xf0] sm:$0xff]  ;;  %v872_v5 = vld [vmem:[%s1195_s1 + $0xe8] sm:$0xff] }
   0x3   :  { %432 = vmatpush.bf16.msra.mxu0 %v850_v0  ;;  %516 = vmatpush.bf16.msra.mxu3 %v874_v2  ;;  %v847_v6 = vld [vmem:[%s1195_s1 + $0x20] sm:$0xff]  ;;  %v846_v8 = vld [vmem:[%s1195_s1 + $0x18] sm:$0xff]  ;;  %v845_v10 = vld [vmem:[%s1195_s1 + $0x10] sm:$0xff] }
   0x4   :  { %v871_v7 = vld [vmem:[%s1195_s1 + $0xe0] sm:$0xff]  ;;  %v870_v9 = vld [vmem:[%s1195_s1 + $0xd8] sm:$0xff]  ;;  %v869_v11 = vld [vmem:[%s1195_s1 + $0xd0] sm:$0xff] }
   0x5   :  { %v844_v12 = vld [vmem:[%s1195_s1 + $0x8] sm:$0xff]  ;;  %v964_v13 = vld [vmem:[%s1196_s0 + $0x78] sm:$0xff]  ;;  %v843_v16 = vld [vmem:[%s1195_s1] sm:$0xff] }
   0x6   :  { %881 = vmatpush.bf16.msra.mxu1 %v849_v1  ;;  %882 = vmatpush.bf16.msra.mxu2 %v849_v1  ;;  %v868_v14 = vld [vmem:[%s1195_s1 + $0xc8] sm:$0xff]  ;;  %v162_v15 = vunpack.c.l.b16 %v964_v13  ;;  %v835_v18 = vld [vmem:[%s1196_s0 + $0x38] sm:$0xf0]  ;;  %v622_v21 = vld [vmem:[%s1196_s0] sm:$0xf] }
   0x7   :  { %433 = vmatpush.bf16.msra.mxu0 %v849_v1  ;;  %517 = vmatpush.bf16.msra.mxu3 %v873_v3  ;;  %v642_v17 = vld [vmem:[%s1196_s0 + $0x28] sm:$0xf]  ;;  %v866_v19 = vld [vmem:[%s1195_s1 + $0xb8] sm:$0xff]  ;;  %v867_v22 = vld [vmem:[%s1195_s1 + $0xc0] sm:$0xff] }
   0x8   :  { %v858_v20 = vld [vmem:[%s1195_s1 + $0x78] sm:$0xff]  ;;  %v643_v23 = vor.u32 %v835_v18, %v642_v17  ;;  %v182_v24 = vpack.c.b16 %v162_v15, %v162_v15  ;;  %v830_v25 = vld [vmem:[%s1196_s0 + $0x10] sm:$0xf0]  ;;  %v829_v26 = vld [vmem:[%s1196_s0 + $0xc] sm:$0xf] }
   0x9   :  { %v632_v27 = vld [vmem:[%s1196_s0 + $0x1c] sm:$0xf0]  ;;  %v878_v28 = vld [vmem:[%s1195_s1 + $0x118] sm:$0xff]  ;;  %v865_v29 = vld [vmem:[%s1195_s1 + $0xb0] sm:$0xff]  ;;  %v623_v31 = vor.u32 %v830_v25, %v622_v21 }
   0xa   :  { %883 = vmatpush.bf16.msra.mxu1 %v848_v4  ;;  %884 = vmatpush.bf16.msra.mxu2 %v848_v4  ;;  %v857_v30 = vld [vmem:[%s1195_s1 + $0x70] sm:$0xff]  ;;  %v635_v32 = vor.u32 %v829_v26, %v632_v27  ;;  %v864_v34 = vld [vmem:[%s1195_s1 + $0xa8] sm:$0xff]  ;;  %v863_v37 = vld [vmem:[%s1195_s1 + $0xa0] sm:$0xff] }
   0xb   :  { %434 = vmatpush.bf16.msra.mxu0 %v848_v4  ;;  %518 = vmatpush.bf16.msra.mxu3 %v872_v5  ;;  %v877_v33 = vld [vmem:[%s1195_s1 + $0x110] sm:$0xff]  ;;  %v856_v35 = vld [vmem:[%s1195_s1 + $0x68] sm:$0xff]  ;;  %v855_v38 = vld [vmem:[%s1195_s1 + $0x60] sm:$0xff] }
   0xc   :  { %v876_v36 = vld [vmem:[%s1195_s1 + $0x108] sm:$0xff]  ;;  %v662_v39 = vld [vmem:[%s1196_s0 + $0x50] sm:$0xf]  ;;  %v840_v40 = vld [vmem:[%s1196_s0 + $0x60] sm:$0xf0] }
   0xd   :  { %v875_v41 = vld [vmem:[%s1195_s1 + $0x100] sm:$0xff]  ;;  %v862_v42 = vld [vmem:[%s1195_s1 + $0x98] sm:$0xff]  ;;  %v638_v44 = vld [vmem:[%s1196_s0 + $0x10] sm:$0xf]  ;;  %v663_v45 = vor.u32 %v840_v40, %v662_v39 }
   0xe   :  { %885 = vmatpush.bf16.msra.mxu1 %v847_v6  ;;  %886 = vmatpush.bf16.msra.mxu2 %v847_v6  ;;  %v854_v43 = vld [vmem:[%s1195_s1 + $0x58] sm:$0xff]  ;;  %v832_v46 = vld [vmem:[%s1196_s0 + $0x20] sm:$0xf0]  ;;  %v834_v47 = vld [vmem:[%s1196_s0 + $0x34] sm:$0xf] }
   0xf   :  { %435 = vmatpush.bf16.msra.mxu0 %v847_v6  ;;  %519 = vmatpush.bf16.msra.mxu3 %v871_v7  ;;  %v652_v48 = vld [vmem:[%s1196_s0 + $0x44] sm:$0xf0]  ;;  %v861_v49 = vld [vmem:[%s1195_s1 + $0x90] sm:$0xff]  ;;  %v639_v51 = vor.u32 %v832_v46, %v638_v44  ;;  %v859_v55 = vld [vmem:[%s1195_s1 + $0x80] sm:$0xff] }
  0x10   :  { %v853_v50 = vld [vmem:[%s1195_s1 + $0x50] sm:$0xff]  ;;  %v655_v52 = vor.u32 %v834_v47, %v652_v48  ;;  %v860_v53 = vld [vmem:[%s1195_s1 + $0x88] sm:$0xff]  ;;  %v851_v56 = vld [vmem:[%s1195_s1 + $0x40] sm:$0xff] }
  0x11   :  { %v852_v54 = vld [vmem:[%s1195_s1 + $0x48] sm:$0xff]  ;;  %v831_v58 = vld [vmem:[%s1196_s0 + $0x18] sm:$0xf0]  ;;  %v828_v60 = vld [vmem:[%s1196_s0 + $0x4] sm:$0xf] }
  0x12   :  { %887 = vmatpush.bf16.msra.mxu1 %v846_v8  ;;  %888 = vmatpush.bf16.msra.mxu2 %v846_v8  ;;  %v630_v57 = vld [vmem:[%s1196_s0 + $0x8] sm:$0xf]  ;;  %v624_v61 = vld [vmem:[%s1196_s0 + $0x14] sm:$0xf0]  ;;  %v837_v0 = vld [vmem:[%s1196_s0 + $0x48] sm:$0xf0] }
  0x13   :  { %436 = vmatpush.bf16.msra.mxu0 %v846_v8  ;;  %520 = vmatpush.bf16.msra.mxu3 %v870_v9  ;;  %v631_v59 = vor.u32 %v831_v58, %v630_v57  ;;  %v658_v62 = vld [vmem:[%s1196_s0 + $0x38] sm:$0xf]  ;;  %v627_v63 = vor.u32 %v828_v60, %v624_v61  ;;  %v839_v1 = vld [vmem:[%s1196_s0 + $0x5c] sm:$0xf]  ;;  %v672_v2 = vld [vmem:[%s1196_s0 + $0x6c] sm:$0xf0] }
  0x14   :  { %v659_v3 = vor.u32 %v837_v0, %v658_v62  ;;  %v675_v4 = vor.u32 %v839_v1, %v672_v2  ;;  %v650_v5 = vld [vmem:[%s1196_s0 + $0x30] sm:$0xf]  ;;  %v836_v6 = vld [vmem:[%s1196_s0 + $0x40] sm:$0xf0]  ;;  %v833_v9 = vld [vmem:[%s1196_s0 + $0x2c] sm:$0xf] }
  0x15   :  { %v37_v7 = vld [vmem:[%s1196_s0 + $0x80] sm:$0xff]  ;;  %v651_v8 = vor.u32 %v836_v6, %v650_v5  ;;  %v842_v15 = vld [vmem:[%s1196_s0 + $0x70] sm:$0xf0]  ;;  %v670_v18 = vld [vmem:[%s1196_s0 + $0x58] sm:$0xf] }
  0x16   :  { %889 = vmatpush.bf16.msra.mxu1 %v845_v10  ;;  %890 = vmatpush.bf16.msra.mxu2 %v845_v10  ;;  %v164_v27 = vunpack.c.l.b16 %v37_v7 }
  0x17   :  { %437 = vmatpush.bf16.msra.mxu0 %v845_v10  ;;  %521 = vmatpush.bf16.msra.mxu3 %v869_v11  ;;  %v644_v10 = vld [vmem:[%s1196_s0 + $0x3c] sm:$0xf0]  ;;  %v165_v11 = vunpack.c.h.b16 %v37_v7 }
  0x19   :  { %v185_v17 = vpack.c.b16 %v165_v11, %v165_v11 }
  0x1a   :  { %891 = vmatpush.bf16.msra.mxu1 %v844_v12  ;;  %892 = vmatpush.bf16.msra.mxu2 %v844_v12 }
  0x1b   :  { %438 = vmatpush.bf16.msra.mxu0 %v844_v12  ;;  %522 = vmatpush.bf16.msra.mxu3 %v868_v14  ;;  %v647_v12 = vor.u32 %v833_v9, %v644_v10  ;;  %v678_v14 = vld [vmem:[%s1196_s0 + $0x60] sm:$0xf] }
  0x1e   :  { %893 = vmatpush.bf16.msra.mxu1 %v843_v16  ;;  %894 = vmatpush.bf16.msra.mxu2 %v843_v16 }
  0x1f   :  { %439 = vmatpush.bf16.msra.mxu0 %v843_v16  ;;  %523 = vmatpush.bf16.msra.mxu3 %v867_v22  ;;  %v679_v16 = vor.u32 %v842_v15, %v678_v14  ;;  %v838_v22 = vld [vmem:[%s1196_s0 + $0x54] sm:$0xf] }
  0x21   :  { %445 = vmatmul.bf16.vlgmr.msra.gmra.mxu1 %v643_v23  ;;  %455 = vmatmul.bf16.vlgmr.msra.gmra.mxu2 %v182_v24  ;;  %v664_v23 = vld [vmem:[%s1196_s0 + $0x64] sm:$0xf0] }
  0x22   :  { %488 = vmatpush.bf16.msrb.mxu2 %v866_v19  ;;  %460 = vmatpush.bf16.msrb.mxu1 %v858_v20  ;;  %v841_v19 = vld [vmem:[%s1196_s0 + $0x68] sm:$0xf0]  ;;  %v38_v20 = vld [vmem:[%s1196_s0 + $0x88] sm:$0xf]  ;;  %v667_v25 = vor.u32 %v838_v22, %v664_v23 }
  0x23   :  { %548 = vmatpush.bf16.msrb.mxu0 %v878_v28  ;;  %524 = vmatmul.bf16.vlgmr.msra.gmra.mxu3 %v635_v32  ;;  %v671_v21 = vor.u32 %v841_v19, %v670_v18  ;;  %v166_v24 = vunpack.c.l.b16 %v38_v20  ;;  %v163_v28 = vunpack.c.h.b16 %v964_v13 }
  0x24   :  { %440 = vmatmul.bf16.vlgmr.msra.gmra.mxu0 %v623_v31 }
  0x25   :  { %v186_v26 = vpack.c.b16 %v166_v24, %v166_v24 }
  0x26   :  { %489 = vmatpush.bf16.msrb.mxu2 %v865_v29  ;;  %461 = vmatpush.bf16.msrb.mxu1 %v857_v30  ;;  %v184_v29 = vpack.c.b16 %v164_v27, %v164_v27  ;;  %v183_v30 = vpack.c.b16 %v163_v28, %v163_v28 }
  0x27   :  { %549 = vmatpush.bf16.msrb.mxu0 %v877_v33 }
  0x2a   :  { %490 = vmatpush.bf16.msrb.mxu2 %v864_v34  ;;  %462 = vmatpush.bf16.msrb.mxu1 %v856_v35 }
  0x2b   :  { %550 = vmatpush.bf16.msrb.mxu0 %v876_v36 }
  0x2e   :  { %491 = vmatpush.bf16.msrb.mxu2 %v863_v37  ;;  %463 = vmatpush.bf16.msrb.mxu1 %v855_v38 }
  0x2f   :  { %551 = vmatpush.bf16.msrb.mxu0 %v875_v41 }
  0x31   :  { %450 = vmatmul.bf16.gmra.mxu1 %v663_v45 }
  0x32   :  { %492 = vmatpush.bf16.msrb.mxu2 %v862_v42  ;;  %464 = vmatpush.bf16.msrb.mxu1 %v854_v43 }
  0x33   :  { %529 = vmatmul.bf16.gmra.mxu3 %v655_v52  ;;  %v1149_v52 = vld [vmem:[%s1198_s3] ss:$0 sm:$0xff] }
  0x34   :  { %824 = vmatmul.msk.bf16.vlgmr.msrb.gmra.mxu0 %vm419_vm0, %v639_v51 }
  0x36   :  { %493 = vmatpush.bf16.msrb.mxu2 %v861_v49  ;;  %465 = vmatpush.bf16.msrb.mxu1 %v853_v50  ;;  %v1144_v50 = vld [vmem:[%s1197_s2] ss:$0 sm:$0xff] }
  0x3a   :  { %494 = vmatpush.bf16.msrb.mxu2 %v860_v53  ;;  %466 = vmatpush.bf16.msrb.mxu1 %v852_v54 }
  0x3e   :  { %495 = vmatpush.bf16.msrb.mxu2 %v859_v55  ;;  %467 = vmatpush.bf16.msrb.mxu1 %v851_v56 }
  0x41   :  { %496 = vmatmul.bf16.vlgmr.msrb.gmra.mxu2 %v631_v59  ;;  %468 = vmatmul.bf16.vlgmr.msrb.gmra.mxu1 %v627_v63 }
  0x43   :  { %534 = vmatmul.bf16.gmra.mxu3 %v675_v4 }
  0x44   :  { %825 = vmatmul.msk.bf16.gmra.mxu0 %vm419_vm0, %v659_v3 }
  0x51   :  { %501 = vmatmul.bf16.gmra.mxu2 %v651_v8  ;;  %473 = vmatmul.bf16.gmra.mxu1 %v647_v12 }
  0x53   :  { %539 = vmatmul.bf16.gmra.mxu3 %v185_v17 }
  0x54   :  { %826 = vmatmul.msk.bf16.gmra.mxu0 %vm419_vm0, %v679_v16 }
  0x61   :  { %506 = vmatmul.bf16.gmra.mxu2 %v671_v21  ;;  %478 = vmatmul.bf16.gmra.mxu1 %v667_v25 }
  0x64   :  { %827 = vmatmul.msk.bf16.gmra.mxu0 %vm419_vm0, %v186_v26 }
  0x71   :  { %511 = vmatmul.bf16.gmra.mxu2 %v184_v29  ;;  %483 = vmatmul.bf16.gmra.mxu1 %v183_v30 }
  0x9e   :  { %v446_v31 = vpop.f32.mrf.mxu1 }
  0xa1   :  { %v441_v32 = vpop.f32.mrf.mxu0 }
  0xa4   :  { %v1137_v33 = vpop.f32.mrf.mxu2 }
  0xa6   :  { %v448_v34 = vpop.f32.mrf.mxu1  ;;  %v525_v35 = vpop.f32.mrf.mxu3 }
  0xa9   :  { %v443_v36 = vpop.f32.mrf.mxu0 }
  0xac   :  { %v458_v37 = vpop.f32.mrf.mxu2 }
  0xae   :  { %v451_v38 = vpop.f32.mrf.mxu1  ;;  %v527_v39 = vpop.f32.mrf.mxu3 }
  0xb1   :  { %v553_v40 = vpop.f32.mrf.mxu0 }
  0xb6   :  { %v1139_v41 = vpop.f32.mrf.mxu1  ;;  %v530_v42 = vpop.f32.mrf.mxu3 }
  0xb9   :  { %v555_v43 = vpop.f32.mrf.mxu0 }
  0xbe   :  { %v469_v13 = vpop.f32.mrf.mxu1  ;;  %v532_v45 = vpop.f32.mrf.mxu3 }
  0xbf   :  { %v470_v44 = vadd.f32 %v469_v13, %v441_v32 }
  0xc1   :  { %v558_v47 = vpop.f32.mrf.mxu0 }
  0xc4   :  { %v497_v46 = vpop.f32.mrf.mxu2 }
  0xc5   :  { %v498_v48 = vadd.f32 %v497_v46, %v470_v44 }
  0xc6   :  { %v471_v53 = vpop.f32.mrf.mxu1  ;;  %v535_v55 = vpop.f32.mrf.mxu3 }
  0xc7   :  { %v526_v49 = vadd.f32 %v525_v35, %v498_v48  ;;  %v472_v54 = vadd.f32 %v471_v53, %v443_v36 }
  0xc9   :  { %v554_v51 = vadd.f32 %v553_v40, %v526_v49  ;;  %v560_v58 = vpop.f32.mrf.mxu0 }
  0xcb   :  { %v576_v56 = vmul.f32 %v1144_v50, %v554_v51 }
  0xcc   :  { %v499_v57 = vpop.f32.mrf.mxu2 }
  0xcd   :  { %v587_v59 = vadd.f32 %v1149_v52, %v576_v56  ;;  %v500_v60 = vadd.f32 %v499_v57, %v472_v54 }
  0xce   :  { %v474_v1 = vpop.f32.mrf.mxu1  ;;  %v537_v3 = vpop.f32.mrf.mxu3 }
  0xcf   :  { %v594_v61 = vmax.f32 %v587_v59, 0.0  ;;  %v528_v62 = vadd.f32 %v527_v39, %v500_v60  ;;  %v475_v2 = vadd.f32 %v474_v1, %v446_v31 }
  0xd1   :  { %v601_v63 = vpack.c.bf16 %v594_v61, %v594_v61  ;;  %v556_v0 = vadd.f32 %v555_v43, %v528_v62  ;;  %v563_v6 = vpop.f32.mrf.mxu0 }
  0xd3   :  { %609 = vst.msk [vmem:[%s1199_s4] sm:$0xf] %vm608_vm1, %v601_v63  ;;  %v577_v4 = vmul.f32 %v1144_v50, %v556_v0 }
  0xd4   :  { %v502_v5 = vpop.f32.mrf.mxu2 }
  0xd5   :  { %v588_v7 = vadd.f32 %v1149_v52, %v577_v4  ;;  %v503_v8 = vadd.f32 %v502_v5, %v475_v2 }
  0xd6   :  { %v476_v14 = vpop.f32.mrf.mxu1  ;;  %v540_v16 = vpop.f32.mrf.mxu3 }
  0xd7   :  { %v595_v9 = vmax.f32 %v588_v7, 0.0  ;;  %v531_v10 = vadd.f32 %v530_v42, %v503_v8  ;;  %v477_v15 = vadd.f32 %v476_v14, %v448_v34 }
  0xd9   :  { %v602_v11 = vpack.c.bf16 %v595_v9, %v595_v9  ;;  %v559_v12 = vadd.f32 %v558_v47, %v531_v10  ;;  %v565_v19 = vpop.f32.mrf.mxu0 }
  0xdb   :  { %610 = vst.msk [vmem:[%s1199_s4 + $0x4] sm:$0xf] %vm608_vm1, %v602_v11  ;;  %v578_v17 = vmul.f32 %v1144_v50, %v559_v12 }
  0xdc   :  { %v504_v18 = vpop.f32.mrf.mxu2 }
  0xdd   :  { %v589_v20 = vadd.f32 %v1149_v52, %v578_v17  ;;  %v505_v21 = vadd.f32 %v504_v18, %v477_v15 }
  0xde   :  { %v479_v26 = vpop.f32.mrf.mxu1  ;;  %v542_v28 = vpop.f32.mrf.mxu3 }
  0xdf   :  { %v596_v22 = vmax.f32 %v589_v20, 0.0  ;;  %v533_v23 = vadd.f32 %v532_v45, %v505_v21  ;;  %v480_v27 = vadd.f32 %v479_v26, %v451_v38 }
  0xe1   :  { %v603_v24 = vpack.c.bf16 %v596_v22, %v596_v22  ;;  %v561_v25 = vadd.f32 %v560_v58, %v533_v23  ;;  %v568_v31 = vpop.f32.mrf.mxu0 }
  0xe3   :  { %611 = vst.msk [vmem:[%s1199_s4 + $0x8] sm:$0xf] %vm608_vm1, %v603_v24  ;;  %v579_v29 = vmul.f32 %v1144_v50, %v561_v25 }
  0xe4   :  { %v507_v30 = vpop.f32.mrf.mxu2 }
  0xe5   :  { %v590_v32 = vadd.f32 %v1149_v52, %v579_v29  ;;  %v508_v34 = vadd.f32 %v507_v30, %v480_v27 }
  0xe6   :  { %v481_v40 = vpop.f32.mrf.mxu1 }
  0xe7   :  { %v597_v35 = vmax.f32 %v590_v32, 0.0  ;;  %v536_v36 = vadd.f32 %v535_v55, %v508_v34  ;;  %v482_v38 = vadd.f32 %v481_v40, %v1139_v41 }
  0xe9   :  { %v604_v37 = vpack.c.bf16 %v597_v35, %v597_v35  ;;  %v564_v39 = vadd.f32 %v563_v6, %v536_v36  ;;  %v570_v13 = vpop.f32.mrf.mxu0 }
  0xeb   :  { %612 = vst.msk [vmem:[%s1199_s4 + $0xc] sm:$0xf] %vm608_vm1, %v604_v37  ;;  %v580_v42 = vmul.f32 %v1144_v50, %v564_v39 }
  0xec   :  { %v509_v43 = vpop.f32.mrf.mxu2 }
  0xed   :  { %v591_v44 = vadd.f32 %v1149_v52, %v580_v42  ;;  %v510_v45 = vadd.f32 %v509_v43, %v482_v38 }
  0xee   :  { %v484_v51 = vpop.f32.mrf.mxu1 }
  0xef   :  { %v598_v46 = vmax.f32 %v591_v44, 0.0  ;;  %v538_v47 = vadd.f32 %v537_v3, %v510_v45  ;;  %v485_v53 = vadd.f32 %v484_v51, %v1137_v33 }
  0xf1   :  { %v605_v48 = vpack.c.bf16 %v598_v46, %v598_v46  ;;  %v566_v49 = vadd.f32 %v565_v19, %v538_v47 }
  0xf3   :  { %613 = vst.msk [vmem:[%s1199_s4 + $0x10] sm:$0xf] %vm608_vm1, %v605_v48  ;;  %v581_v41 = vmul.f32 %v1144_v50, %v566_v49 }
  0xf4   :  { %v512_v54 = vpop.f32.mrf.mxu2 }
  0xf5   :  { %v592_v55 = vadd.f32 %v1149_v52, %v581_v41  ;;  %v513_v56 = vadd.f32 %v512_v54, %v485_v53 }
  0xf6   :  { %v486_v61 = vpop.f32.mrf.mxu1 }
  0xf7   :  { %v599_v57 = vmax.f32 %v592_v55, 0.0  ;;  %v541_v58 = vadd.f32 %v540_v16, %v513_v56 }
  0xf9   :  { %v606_v59 = vpack.c.bf16 %v599_v57, %v599_v57  ;;  %v569_v60 = vadd.f32 %v568_v31, %v541_v58 }
  0xfb   :  { %614 = vst.msk [vmem:[%s1199_s4 + $0x14] sm:$0xf] %vm608_vm1, %v606_v59  ;;  %v582_v33 = vmul.f32 %v1144_v50, %v569_v60 }
  0xfc   :  { %v514_v62 = vpop.f32.mrf.mxu2 }
  0xfd   :  { %v593_v63 = vadd.f32 %v1149_v52, %v582_v33 }
  0xff   :  { %v600_v0 = vmax.f32 %v593_v63, 0.0 }
 0x101   :  { %v607_v1 = vpack.c.bf16 %v600_v0, %v600_v0 }
 0x103   :  { %615 = vst.msk [vmem:[%s1199_s4 + $0x18] sm:$0xf] %vm608_vm1, %v607_v1 }

// kernel: cnn_planner_forward.41
= control target key start
LH: loop header
LB: loop body
LE: loop exit
PB: predicated region body
PF: predicated region fallthrough
CT: control target
= control target key end

     0   :  { %vm153_vm0 = vcmask 257024   ;;  %s315_s1 = inlined_call_operand.vmem [shape: bf16[128,32], index: 1, kind: input, shape index: {}]   ;;  %s316_s2 = inlined_call_operand.vmem [shape: f32[1,32], index: 2, kind: input, shape index: {}]   ;;  %s317_s3 = inlined_call_operand.vmem [shape: f32[1,32], index: 3, kind: input, shape index: {}]   ;;  %s318_s0 = inlined_call_operand.vmem [shape: bf16[40,128], index: 0, kind: input, shape index: {}]   ;;  %s319_s4 = inlined_call_operand.vmem [shape: bf16[40,32], index: 4, kind: output, shape index: {}]  }
   0x1   :  { %v212_v0 = vld [vmem:[%s315_s1 + $0x38] sm:$0xff]  ;;  %v211_v1 = vld [vmem:[%s315_s1 + $0x30] sm:$0xff]  ;;  %v210_v2 = vld [vmem:[%s315_s1 + $0x28] sm:$0xff] }
   0x2   :  { %102 = vmatpush.bf16.msra.mxu0 %v212_v0  ;;  %213 = vmatpush.bf16.msra.mxu1 %v212_v0  ;;  %v209_v3 = vld [vmem:[%s315_s1 + $0x20] sm:$0xff]  ;;  %v208_v4 = vld [vmem:[%s315_s1 + $0x18] sm:$0xff]  ;;  %v207_v5 = vld [vmem:[%s315_s1 + $0x10] sm:$0xff] }
   0x3   :  { %214 = vmatpush.bf16.msra.mxu2 %v212_v0  ;;  %v206_v6 = vld [vmem:[%s315_s1 + $0x8] sm:$0xff]  ;;  %v21_v7 = vld [vmem:[%s318_s0 + $0x10] sm:$0xf]  ;;  %v205_v8 = vld [vmem:[%s315_s1] sm:$0xff] }
   0x4   :  { %v47_v9 = vunpack.c.l.b16 %v21_v7  ;;  %v203_v10 = vld [vmem:[%s318_s0] sm:$0xff]  ;;  %v204_v11 = vld [vmem:[%s318_s0 + $0x8] sm:$0xff] }
   0x5   :  { %v229_v13 = vld [vmem:[%s316_s2] ss:$0 sm:$0xff] }
   0x6   :  { %103 = vmatpush.bf16.msra.mxu0 %v211_v1  ;;  %215 = vmatpush.bf16.msra.mxu1 %v211_v1  ;;  %v50_v12 = vpack.c.b16 %v47_v9, %v47_v9  ;;  %v230_v14 = vld [vmem:[%s317_s3] ss:$0 sm:$0xff] }
   0x7   :  { %216 = vmatpush.bf16.msra.mxu2 %v211_v1 }
   0xa   :  { %104 = vmatpush.bf16.msra.mxu0 %v210_v2  ;;  %217 = vmatpush.bf16.msra.mxu1 %v210_v2 }
   0xb   :  { %218 = vmatpush.bf16.msra.mxu2 %v210_v2 }
   0xe   :  { %105 = vmatpush.bf16.msra.mxu0 %v209_v3  ;;  %219 = vmatpush.bf16.msra.mxu1 %v209_v3 }
   0xf   :  { %220 = vmatpush.bf16.msra.mxu2 %v209_v3 }
  0x12   :  { %106 = vmatpush.bf16.msra.mxu0 %v208_v4  ;;  %221 = vmatpush.bf16.msra.mxu1 %v208_v4 }
  0x13   :  { %222 = vmatpush.bf16.msra.mxu2 %v208_v4 }
  0x16   :  { %107 = vmatpush.bf16.msra.mxu0 %v207_v5  ;;  %223 = vmatpush.bf16.msra.mxu1 %v207_v5 }
  0x17   :  { %224 = vmatpush.bf16.msra.mxu2 %v207_v5 }
  0x1a   :  { %108 = vmatpush.bf16.msra.mxu0 %v206_v6  ;;  %225 = vmatpush.bf16.msra.mxu1 %v206_v6 }
  0x1b   :  { %226 = vmatpush.bf16.msra.mxu2 %v206_v6 }
  0x1e   :  { %109 = vmatpush.bf16.msra.mxu0 %v205_v8  ;;  %227 = vmatpush.bf16.msra.mxu1 %v205_v8 }
  0x1f   :  { %228 = vmatpush.bf16.msra.mxu2 %v205_v8 }
  0x21   :  { %110 = vmatmul.bf16.vlgmr.msra.gmra.mxu0 %v203_v10  ;;  %115 = vmatmul.bf16.vlgmr.msra.gmra.mxu1 %v204_v11 }
  0x22   :  { %120 = vmatmul.bf16.vlgmr.msra.gmra.mxu2 %v50_v12 }
  0x9e   :  { %v111_v15 = vpop.f32.mrf.mxu0  ;;  %v116_v16 = vpop.f32.mrf.mxu1 }
  0x9f   :  { %v129_v17 = vmul.f32 %v229_v13, %v111_v15  ;;  %v131_v18 = vmul.f32 %v229_v13, %v116_v16 }
  0xa1   :  { %v138_v19 = vadd.f32 %v230_v14, %v129_v17  ;;  %v140_v20 = vadd.f32 %v230_v14, %v131_v18 }
  0xa3   :  { %v143_v21 = vmax.f32 %v138_v19, 0.0  ;;  %v145_v22 = vmax.f32 %v140_v20, 0.0 }
  0xa5   :  { %v148_v23 = vpack.c.bf16 %v143_v21, %v143_v21  ;;  %v150_v24 = vpack.c.bf16 %v145_v22, %v145_v22  ;;  %v121_v25 = vpop.f32.mrf.mxu2 }
  0xa6   :  { %v133_v26 = vmul.f32 %v229_v13, %v121_v25  ;;  %v113_v27 = vpop.f32.mrf.mxu0  ;;  %v118_v28 = vpop.f32.mrf.mxu1 }
  0xa7   :  { %154 = vst.msk [vmem:[%s319_s4] sm:$0xf] %vm153_vm0, %v148_v23  ;;  %v130_v29 = vmul.f32 %v229_v13, %v113_v27  ;;  %v132_v30 = vmul.f32 %v229_v13, %v118_v28 }
  0xa8   :  { %156 = vst.msk [vmem:[%s319_s4 + $0x8] sm:$0xf] %vm153_vm0, %v150_v24  ;;  %v142_v31 = vadd.f32 %v230_v14, %v133_v26 }
  0xa9   :  { %v139_v32 = vadd.f32 %v230_v14, %v130_v29  ;;  %v141_v33 = vadd.f32 %v230_v14, %v132_v30 }
  0xaa   :  { %v147_v34 = vmax.f32 %v142_v31, 0.0 }
  0xab   :  { %v144_v35 = vmax.f32 %v139_v32, 0.0  ;;  %v146_v36 = vmax.f32 %v141_v33, 0.0 }
  0xac   :  { %v152_v37 = vpack.c.bf16 %v147_v34, %v147_v34 }
  0xad   :  { %v149_v38 = vpack.c.bf16 %v144_v35, %v144_v35  ;;  %v151_v39 = vpack.c.bf16 %v146_v36, %v146_v36  ;;  %v123_v40 = vpop.f32.mrf.mxu2 }
  0xae   :  { %158 = vst.msk [vmem:[%s319_s4 + $0x10] sm:$0xf] %vm153_vm0, %v152_v37 }
  0xaf   :  { %155 = vst.msk [vmem:[%s319_s4 + $0x4] sm:$0xf] %vm153_vm0, %v149_v38 }
  0xb0   :  { %157 = vst.msk [vmem:[%s319_s4 + $0xc] sm:$0xf] %vm153_vm0, %v151_v39 }

// kernel: cnn_planner_forward.40
= control target key start
LH: loop header
LB: loop body
LE: loop exit
PB: predicated region body
PF: predicated region fallthrough
CT: control target
= control target key end

     0   :  { %vm75_vm0 = vcmask 523264   ;;  %vm152_vm1 = vcmask 257024   ;;  %s300_s1 = inlined_call_operand.vmem [shape: bf16[64,32], index: 1, kind: input, shape index: {}]   ;;  %s301_s2 = inlined_call_operand.vmem [shape: f32[1,32], index: 2, kind: input, shape index: {}]   ;;  %s302_s3 = inlined_call_operand.vmem [shape: f32[1,32], index: 3, kind: input, shape index: {}]   ;;  %s303_s0 = inlined_call_operand.vmem [shape: bf16[56,64], index: 0, kind: input, shape index: {}]   ;;  %s304_s4 = inlined_call_operand.vmem [shape: bf16[56,32], index: 4, kind: output, shape index: {}]  }
   0x1   :  { %v202_v0 = vld [vmem:[%s300_s1 + $0x18] sm:$0xff]  ;;  %v201_v1 = vld [vmem:[%s300_s1 + $0x10] sm:$0xff]  ;;  %v200_v2 = vld [vmem:[%s300_s1 + $0x8] sm:$0xff] }
   0x2   :  { %92 = vmatpush.bf16.msra.mxu0 %v202_v0  ;;  %203 = vmatpush.bf16.msra.mxu1 %v202_v0  ;;  %v24_v3 = vld [vmem:[%s303_s0 + $0x18] sm:$0xf]  ;;  %v199_v4 = vld [vmem:[%s300_s1] sm:$0xff]  ;;  %v197_v7 = vld [vmem:[%s303_s0 + $0x8] sm:$0xff] }
   0x3   :  { %204 = vmatpush.bf16.msra.mxu2 %v202_v0  ;;  %205 = vmatpush.bf16.msra.mxu3 %v202_v0  ;;  %v46_v5 = vunpack.c.l.b16 %v24_v3  ;;  %v196_v6 = vld [vmem:[%s303_s0] sm:$0xff]  ;;  %v198_v8 = vld [vmem:[%s303_s0 + $0x10] sm:$0xff] }
   0x4   :  { %v215_v10 = vld [vmem:[%s301_s2] ss:$0 sm:$0xff] }
   0x5   :  { %v50_v9 = vpack.c.b16 %v46_v5, %v46_v5  ;;  %v216_v11 = vld [vmem:[%s302_s3] ss:$0 sm:$0xff] }
   0x6   :  { %93 = vmatpush.bf16.msra.mxu0 %v201_v1  ;;  %206 = vmatpush.bf16.msra.mxu1 %v201_v1 }
   0x7   :  { %207 = vmatpush.bf16.msra.mxu2 %v201_v1  ;;  %208 = vmatpush.bf16.msra.mxu3 %v201_v1 }
   0xa   :  { %94 = vmatpush.bf16.msra.mxu0 %v200_v2  ;;  %209 = vmatpush.bf16.msra.mxu1 %v200_v2 }
   0xb   :  { %210 = vmatpush.bf16.msra.mxu2 %v200_v2  ;;  %211 = vmatpush.bf16.msra.mxu3 %v200_v2 }
   0xe   :  { %95 = vmatpush.bf16.msra.mxu0 %v199_v4  ;;  %212 = vmatpush.bf16.msra.mxu1 %v199_v4 }
   0xf   :  { %213 = vmatpush.bf16.msra.mxu2 %v199_v4  ;;  %214 = vmatpush.bf16.msra.mxu3 %v199_v4 }
  0x11   :  { %192 = vmatmul.msk.bf16.vlgmr.msra.gmra.mxu0 %vm75_vm0, %v196_v6  ;;  %193 = vmatmul.msk.bf16.vlgmr.msra.gmra.mxu1 %vm75_vm0, %v197_v7 }
  0x12   :  { %194 = vmatmul.msk.bf16.vlgmr.msra.gmra.mxu2 %vm75_vm0, %v198_v8  ;;  %195 = vmatmul.msk.bf16.vlgmr.msra.gmra.mxu3 %vm75_vm0, %v50_v9 }
  0x8e   :  { %v97_v12 = vpop.f32.mrf.mxu0  ;;  %v102_v13 = vpop.f32.mrf.mxu1 }
  0x8f   :  { %v120_v14 = vmul.f32 %v215_v10, %v97_v12  ;;  %v122_v15 = vmul.f32 %v215_v10, %v102_v13 }
  0x91   :  { %v131_v16 = vadd.f32 %v216_v11, %v120_v14  ;;  %v133_v17 = vadd.f32 %v216_v11, %v122_v15 }
  0x93   :  { %v138_v18 = vmax.f32 %v131_v16, 0.0  ;;  %v140_v19 = vmax.f32 %v133_v17, 0.0 }
  0x95   :  { %v145_v20 = vpack.c.bf16 %v138_v18, %v138_v18  ;;  %v147_v21 = vpack.c.bf16 %v140_v19, %v140_v19  ;;  %v107_v22 = vpop.f32.mrf.mxu2  ;;  %v112_v23 = vpop.f32.mrf.mxu3 }
  0x96   :  { %v124_v24 = vmul.f32 %v215_v10, %v107_v22  ;;  %v126_v25 = vmul.f32 %v215_v10, %v112_v23  ;;  %v99_v26 = vpop.f32.mrf.mxu0  ;;  %v104_v27 = vpop.f32.mrf.mxu1 }
  0x97   :  { %153 = vst.msk [vmem:[%s304_s4] sm:$0xf] %vm152_vm1, %v145_v20  ;;  %v121_v28 = vmul.f32 %v215_v10, %v99_v26  ;;  %v123_v29 = vmul.f32 %v215_v10, %v104_v27 }
  0x98   :  { %155 = vst.msk [vmem:[%s304_s4 + $0x8] sm:$0xf] %vm152_vm1, %v147_v21  ;;  %v135_v30 = vadd.f32 %v216_v11, %v124_v24  ;;  %v137_v31 = vadd.f32 %v216_v11, %v126_v25 }
  0x99   :  { %v132_v32 = vadd.f32 %v216_v11, %v121_v28  ;;  %v134_v33 = vadd.f32 %v216_v11, %v123_v29 }
  0x9a   :  { %v142_v34 = vmax.f32 %v135_v30, 0.0  ;;  %v144_v35 = vmax.f32 %v137_v31, 0.0 }
  0x9b   :  { %v139_v36 = vmax.f32 %v132_v32, 0.0  ;;  %v141_v37 = vmax.f32 %v134_v33, 0.0 }
  0x9c   :  { %v149_v38 = vpack.c.bf16 %v142_v34, %v142_v34  ;;  %v151_v39 = vpack.c.bf16 %v144_v35, %v144_v35 }
  0x9d   :  { %v146_v40 = vpack.c.bf16 %v139_v36, %v139_v36  ;;  %v148_v41 = vpack.c.bf16 %v141_v37, %v141_v37  ;;  %v109_v42 = vpop.f32.mrf.mxu2  ;;  %v114_v43 = vpop.f32.mrf.mxu3 }
  0x9e   :  { %157 = vst.msk [vmem:[%s304_s4 + $0x10] sm:$0xf] %vm152_vm1, %v149_v38  ;;  %v125_v44 = vmul.f32 %v215_v10, %v109_v42 }
  0x9f   :  { %159 = vst.msk [vmem:[%s304_s4 + $0x18] sm:$0xf] %vm152_vm1, %v151_v39 }
  0xa0   :  { %154 = vst.msk [vmem:[%s304_s4 + $0x4] sm:$0xf] %vm152_vm1, %v146_v40  ;;  %v136_v45 = vadd.f32 %v216_v11, %v125_v44 }
  0xa1   :  { %156 = vst.msk [vmem:[%s304_s4 + $0xc] sm:$0xf] %vm152_vm1, %v148_v41 }
  0xa2   :  { %v143_v46 = vmax.f32 %v136_v45, 0.0 }
  0xa4   :  { %v150_v47 = vpack.c.bf16 %v143_v46, %v143_v46 }
  0xa6   :  { %158 = vst.msk [vmem:[%s304_s4 + $0x14] sm:$0xf] %vm152_vm1, %v150_v47 }

// kernel: cnn_planner_forward.43
= control target key start
LH: loop header
LB: loop body
LE: loop exit
PB: predicated region body
PF: predicated region fallthrough
CT: control target
= control target key end

     0   :  { %vm231_vm0 = vcmask 257024   ;;  %s477_s1 = inlined_call_operand.vmem [shape: bf16[256,32], index: 1, kind: input, shape index: {}]   ;;  %s478_s0 = inlined_call_operand.vmem [shape: bf16[32,256], index: 0, kind: input, shape index: {}]   ;;  %s479_s2 = inlined_call_operand.vmem [shape: f32[1,32], index: 2, kind: input, shape index: {}]   ;;  %s480_s3 = inlined_call_operand.vmem [shape: f32[1,32], index: 3, kind: input, shape index: {}]   ;;  %s481_s4 = inlined_call_operand.vmem [shape: bf16[32,32], index: 4, kind: output, shape index: {}]  }
   0x1   :  { %v331_v0 = vld [vmem:[%s477_s1 + $0x38] sm:$0xff]  ;;  %v330_v2 = vld [vmem:[%s477_s1 + $0x30] sm:$0xff]  ;;  %v329_v4 = vld [vmem:[%s477_s1 + $0x28] sm:$0xff] }
   0x2   :  { %v339_v1 = vld [vmem:[%s477_s1 + $0x78] sm:$0xff]  ;;  %169 = vmatpush.bf16.msra.mxu0 %v331_v0  ;;  %340 = vmatpush.bf16.msra.mxu2 %v331_v0  ;;  %v338_v3 = vld [vmem:[%s477_s1 + $0x70] sm:$0xff]  ;;  %v337_v5 = vld [vmem:[%s477_s1 + $0x68] sm:$0xff] }
   0x3   :  { %188 = vmatpush.bf16.msra.mxu1 %v339_v1  ;;  %348 = vmatpush.bf16.msra.mxu3 %v339_v1  ;;  %v328_v6 = vld [vmem:[%s477_s1 + $0x20] sm:$0xff]  ;;  %v327_v8 = vld [vmem:[%s477_s1 + $0x18] sm:$0xff]  ;;  %v326_v10 = vld [vmem:[%s477_s1 + $0x10] sm:$0xff] }
   0x4   :  { %v336_v7 = vld [vmem:[%s477_s1 + $0x60] sm:$0xff]  ;;  %v335_v9 = vld [vmem:[%s477_s1 + $0x58] sm:$0xff]  ;;  %v334_v11 = vld [vmem:[%s477_s1 + $0x50] sm:$0xff] }
   0x5   :  { %v325_v12 = vld [vmem:[%s477_s1 + $0x8] sm:$0xff]  ;;  %v324_v14 = vld [vmem:[%s477_s1] sm:$0xff]  ;;  %v250_v18 = vld [vmem:[%s478_s0 + $0x10] sm:$0xf] }
   0x6   :  { %170 = vmatpush.bf16.msra.mxu0 %v330_v2  ;;  %341 = vmatpush.bf16.msra.mxu2 %v330_v2  ;;  %v333_v13 = vld [vmem:[%s477_s1 + $0x48] sm:$0xff]  ;;  %v332_v15 = vld [vmem:[%s477_s1 + $0x40] sm:$0xff]  ;;  %v323_v19 = vld [vmem:[%s478_s0 + $0x14] sm:$0xf0] }
   0x7   :  { %189 = vmatpush.bf16.msra.mxu1 %v338_v3  ;;  %349 = vmatpush.bf16.msra.mxu3 %v338_v3  ;;  %v242_v16 = vld [vmem:[%s478_s0] sm:$0xf]  ;;  %v321_v17 = vld [vmem:[%s478_s0 + $0x4] sm:$0xf0]  ;;  %v320_v20 = vld [vmem:[%s478_s0 + $0x4] sm:$0xf]  ;;  %v251_v25 = vor.u32 %v323_v19, %v250_v18 }
   0x8   :  { %v244_v21 = vld [vmem:[%s478_s0 + $0x8] sm:$0xf0]  ;;  %v322_v22 = vld [vmem:[%s478_s0 + $0x14] sm:$0xf]  ;;  %v252_v23 = vld [vmem:[%s478_s0 + $0x18] sm:$0xf0]  ;;  %v243_v24 = vor.u32 %v321_v17, %v242_v16 }
   0x9   :  { %v247_v26 = vor.u32 %v320_v20, %v244_v21  ;;  %v255_v27 = vor.u32 %v322_v22, %v252_v23  ;;  %v356_v29 = vld [vmem:[%s479_s2] ss:$0 sm:$0xff] }
   0xa   :  { %171 = vmatpush.bf16.msra.mxu0 %v329_v4  ;;  %342 = vmatpush.bf16.msra.mxu2 %v329_v4  ;;  %v357_v32 = vld [vmem:[%s480_s3] ss:$0 sm:$0xff] }
   0xb   :  { %190 = vmatpush.bf16.msra.mxu1 %v337_v5  ;;  %350 = vmatpush.bf16.msra.mxu3 %v337_v5 }
   0xe   :  { %172 = vmatpush.bf16.msra.mxu0 %v328_v6  ;;  %343 = vmatpush.bf16.msra.mxu2 %v328_v6 }
   0xf   :  { %191 = vmatpush.bf16.msra.mxu1 %v336_v7  ;;  %351 = vmatpush.bf16.msra.mxu3 %v336_v7 }
  0x12   :  { %173 = vmatpush.bf16.msra.mxu0 %v327_v8  ;;  %344 = vmatpush.bf16.msra.mxu2 %v327_v8 }
  0x13   :  { %192 = vmatpush.bf16.msra.mxu1 %v335_v9  ;;  %352 = vmatpush.bf16.msra.mxu3 %v335_v9 }
  0x16   :  { %174 = vmatpush.bf16.msra.mxu0 %v326_v10  ;;  %345 = vmatpush.bf16.msra.mxu2 %v326_v10 }
  0x17   :  { %193 = vmatpush.bf16.msra.mxu1 %v334_v11  ;;  %353 = vmatpush.bf16.msra.mxu3 %v334_v11 }
  0x1a   :  { %175 = vmatpush.bf16.msra.mxu0 %v325_v12  ;;  %346 = vmatpush.bf16.msra.mxu2 %v325_v12 }
  0x1b   :  { %194 = vmatpush.bf16.msra.mxu1 %v333_v13  ;;  %354 = vmatpush.bf16.msra.mxu3 %v333_v13 }
  0x1e   :  { %176 = vmatpush.bf16.msra.mxu0 %v324_v14  ;;  %347 = vmatpush.bf16.msra.mxu2 %v324_v14 }
  0x1f   :  { %195 = vmatpush.bf16.msra.mxu1 %v332_v15  ;;  %355 = vmatpush.bf16.msra.mxu3 %v332_v15 }
  0x21   :  { %177 = vmatmul.bf16.vlgmr.msra.gmra.mxu0 %v243_v24  ;;  %182 = vmatmul.bf16.vlgmr.msra.gmra.mxu2 %v251_v25 }
  0x22   :  { %196 = vmatmul.bf16.vlgmr.msra.gmra.mxu1 %v247_v26  ;;  %201 = vmatmul.bf16.vlgmr.msra.gmra.mxu3 %v255_v27 }
  0x9e   :  { %v178_v28 = vpop.f32.mrf.mxu0 }
  0x9f   :  { %v197_v30 = vpop.f32.mrf.mxu1 }
  0xa0   :  { %v198_v31 = vadd.f32 %v197_v30, %v178_v28 }
  0xa2   :  { %v211_v33 = vmul.f32 %v356_v29, %v198_v31 }
  0xa4   :  { %v219_v34 = vadd.f32 %v357_v32, %v211_v33  ;;  %v183_v35 = vpop.f32.mrf.mxu2 }
  0xa5   :  { %v202_v36 = vpop.f32.mrf.mxu3 }
  0xa6   :  { %v223_v37 = vmax.f32 %v219_v34, 0.0  ;;  %v203_v38 = vadd.f32 %v202_v36, %v183_v35  ;;  %v180_v39 = vpop.f32.mrf.mxu0 }
  0xa7   :  { %v199_v40 = vpop.f32.mrf.mxu1 }
  0xa8   :  { %v227_v41 = vpack.c.bf16 %v223_v37, %v223_v37  ;;  %v213_v42 = vmul.f32 %v356_v29, %v203_v38  ;;  %v200_v43 = vadd.f32 %v199_v40, %v180_v39 }
  0xaa   :  { %232 = vst.msk [vmem:[%s481_s4] sm:$0xf] %vm231_vm0, %v227_v41  ;;  %v221_v44 = vadd.f32 %v357_v32, %v213_v42  ;;  %v212_v45 = vmul.f32 %v356_v29, %v200_v43 }
  0xac   :  { %v225_v46 = vmax.f32 %v221_v44, 0.0  ;;  %v220_v47 = vadd.f32 %v357_v32, %v212_v45  ;;  %v185_v48 = vpop.f32.mrf.mxu2 }
  0xad   :  { %v204_v49 = vpop.f32.mrf.mxu3 }
  0xae   :  { %v229_v50 = vpack.c.bf16 %v225_v46, %v225_v46  ;;  %v224_v51 = vmax.f32 %v220_v47, 0.0  ;;  %v205_v52 = vadd.f32 %v204_v49, %v185_v48 }
  0xb0   :  { %234 = vst.msk [vmem:[%s481_s4 + $0x8] sm:$0xf] %vm231_vm0, %v229_v50  ;;  %v228_v53 = vpack.c.bf16 %v224_v51, %v224_v51  ;;  %v214_v54 = vmul.f32 %v356_v29, %v205_v52 }
  0xb2   :  { %233 = vst.msk [vmem:[%s481_s4 + $0x4] sm:$0xf] %vm231_vm0, %v228_v53  ;;  %v222_v55 = vadd.f32 %v357_v32, %v214_v54 }
  0xb4   :  { %v226_v56 = vmax.f32 %v222_v55, 0.0 }
  0xb6   :  { %v230_v57 = vpack.c.bf16 %v226_v56, %v226_v56 }
  0xb8   :  { %235 = vst.msk [vmem:[%s481_s4 + $0xc] sm:$0xf] %vm231_vm0, %v230_v57 }

// kernel: cnn_planner_forward.44
= control target key start
LH: loop header
LB: loop body
LE: loop exit
PB: predicated region body
PF: predicated region fallthrough
CT: control target
= control target key end

     0   :  { %vm364_vm0 = vcmask 261120   ;;  %vm679_vm1 = vcmask 257024   ;;  %s1431_s1 = inlined_call_operand.vmem [shape: bf16[288,32], index: 1, kind: input, shape index: {}]   ;;  %s1432_s0 = inlined_call_operand.vmem [shape: bf16[168,288], index: 0, kind: input, shape index: {}]   ;;  %s1433_s2 = inlined_call_operand.vmem [shape: f32[1,32], index: 2, kind: input, shape index: {}]   ;;  %s1434_s3 = inlined_call_operand.vmem [shape: f32[1,32], index: 3, kind: input, shape index: {}]   ;;  %s1435_s4 = inlined_call_operand.vmem [shape: bf16[168,32], index: 4, kind: output, shape index: {}]  }
   0x1   :  { %v945_v0 = vld [vmem:[%s1431_s1 + $0x38] sm:$0xff]  ;;  %v1012_v2 = vld [vmem:[%s1431_s1 + $0x88] sm:$0xff]  ;;  %v944_v3 = vld [vmem:[%s1431_s1 + $0x30] sm:$0xff] }
   0x2   :  { %v1007_v1 = vld [vmem:[%s1431_s1 + $0x78] sm:$0xff]  ;;  %398 = vmatpush.bf16.msra.mxu0 %v945_v0  ;;  %956 = vmatpush.bf16.msra.mxu3 %v945_v0  ;;  %v1020_v4 = vld [vmem:[%s1431_s1 + $0x70] sm:$0xff]  ;;  %v1027_v5 = vld [vmem:[%s1431_s1 + $0x80] sm:$0xff] }
   0x3   :  { %461 = vmatpush.bf16.msra.mxu1 %v1007_v1  ;;  %530 = vmatpush.bf16.msra.mxu2 %v1012_v2  ;;  %v715_v6 = vld [vmem:[%s1432_s0 + $0x8] sm:$0xf]  ;;  %v910_v7 = vld [vmem:[%s1432_s0 + $0x10] sm:$0xf0]  ;;  %v942_v11 = vld [vmem:[%s1431_s1 + $0x20] sm:$0xff] }
   0x4   :  { %v716_v8 = vor.u32 %v910_v7, %v715_v6  ;;  %v943_v9 = vld [vmem:[%s1431_s1 + $0x28] sm:$0xff]  ;;  %v950_v12 = vld [vmem:[%s1431_s1 + $0x60] sm:$0xff]  ;;  %v941_v13 = vld [vmem:[%s1431_s1 + $0x18] sm:$0xff] }
   0x5   :  { %v951_v10 = vld [vmem:[%s1431_s1 + $0x68] sm:$0xff]  ;;  %v949_v14 = vld [vmem:[%s1431_s1 + $0x58] sm:$0xff]  ;;  %v940_v15 = vld [vmem:[%s1431_s1 + $0x10] sm:$0xff] }
   0x6   :  { %399 = vmatpush.bf16.msra.mxu0 %v944_v3  ;;  %957 = vmatpush.bf16.msra.mxu3 %v944_v3  ;;  %v948_v16 = vld [vmem:[%s1431_s1 + $0x50] sm:$0xff]  ;;  %v727_v17 = vld [vmem:[%s1432_s0 + $0x20] sm:$0xf]  ;;  %v913_v18 = vld [vmem:[%s1432_s0 + $0x28] sm:$0xf0] }
   0x7   :  { %462 = vmatpush.bf16.msra.mxu1 %v1020_v4  ;;  %531 = vmatpush.bf16.msra.mxu2 %v1027_v5  ;;  %v728_v19 = vor.u32 %v913_v18, %v727_v17  ;;  %v939_v20 = vld [vmem:[%s1431_s1 + $0x8] sm:$0xff]  ;;  %v938_v22 = vld [vmem:[%s1431_s1] sm:$0xff]  ;;  %v709_v29 = vld [vmem:[%s1432_s0 + $0xc] sm:$0xf0] }
   0x8   :  { %v947_v21 = vld [vmem:[%s1431_s1 + $0x48] sm:$0xff]  ;;  %v946_v23 = vld [vmem:[%s1431_s1 + $0x40] sm:$0xff]  ;;  %v739_v33 = vld [vmem:[%s1432_s0 + $0x38] sm:$0xf] }
   0x9   :  { %v707_v24 = vld [vmem:[%s1432_s0] sm:$0xf]  ;;  %v909_v25 = vld [vmem:[%s1432_s0 + $0x8] sm:$0xf0]  ;;  %v908_v28 = vld [vmem:[%s1432_s0 + $0x4] sm:$0xf] }
   0xa   :  { %897 = vmatmul.msk.bf16.vlgmr.msra.gmra.mxu2 %vm364_vm0, %v716_v8  ;;  %400 = vmatpush.bf16.msra.mxu0 %v943_v9  ;;  %v803_v26 = vld [vmem:[%s1432_s0 + $0xc0] sm:$0xf]  ;;  %v933_v27 = vld [vmem:[%s1432_s0 + $0xc8] sm:$0xf0]  ;;  %v708_v30 = vor.u32 %v909_v25, %v707_v24  ;;  %v712_v32 = vor.u32 %v908_v28, %v709_v29  ;;  %v916_v34 = vld [vmem:[%s1432_s0 + $0x40] sm:$0xf0] }
   0xb   :  { %958 = vmatpush.bf16.msra.mxu3 %v943_v9  ;;  %463 = vmatpush.bf16.msra.mxu1 %v951_v10  ;;  %v804_v31 = vor.u32 %v933_v27, %v803_v26  ;;  %v740_v35 = vor.u32 %v916_v34, %v739_v33  ;;  %v719_v36 = vld [vmem:[%s1432_s0 + $0x18] sm:$0xf]  ;;  %v912_v37 = vld [vmem:[%s1432_s0 + $0x20] sm:$0xf0]  ;;  %v911_v40 = vld [vmem:[%s1432_s0 + $0x1c] sm:$0xf] }
   0xc   :  { %v815_v38 = vld [vmem:[%s1432_s0 + $0xd8] sm:$0xf]  ;;  %v936_v39 = vld [vmem:[%s1432_s0 + $0xe0] sm:$0xf0]  ;;  %v721_v41 = vld [vmem:[%s1432_s0 + $0x24] sm:$0xf0]  ;;  %v720_v42 = vor.u32 %v912_v37, %v719_v36 }
   0xd   :  { %v816_v43 = vor.u32 %v936_v39, %v815_v38  ;;  %v724_v44 = vor.u32 %v911_v40, %v721_v41  ;;  %v751_v45 = vld [vmem:[%s1432_s0 + $0x50] sm:$0xf]  ;;  %v919_v46 = vld [vmem:[%s1432_s0 + $0x58] sm:$0xf0]  ;;  %v914_v52 = vld [vmem:[%s1432_s0 + $0x34] sm:$0xf] }
   0xe   :  { %401 = vmatpush.bf16.msra.mxu0 %v942_v11  ;;  %v752_v47 = vor.u32 %v919_v46, %v751_v45  ;;  %v58_v48 = vld [vmem:[%s1432_s0 + $0xf0] sm:$0xff]  ;;  %v915_v50 = vld [vmem:[%s1432_s0 + $0x38] sm:$0xf0]  ;;  %v733_v53 = vld [vmem:[%s1432_s0 + $0x3c] sm:$0xf0] }
   0xf   :  { %959 = vmatpush.bf16.msra.mxu3 %v942_v11  ;;  %464 = vmatpush.bf16.msra.mxu1 %v950_v12  ;;  %v731_v49 = vld [vmem:[%s1432_s0 + $0x30] sm:$0xf]  ;;  %v198_v51 = vunpack.c.l.b16 %v58_v48  ;;  %v736_v56 = vor.u32 %v914_v52, %v733_v53  ;;  %v763_v57 = vld [vmem:[%s1432_s0 + $0x68] sm:$0xf]  ;;  %v922_v58 = vld [vmem:[%s1432_s0 + $0x70] sm:$0xf0] }
  0x10   :  { %v732_v54 = vor.u32 %v915_v50, %v731_v49  ;;  %v764_v59 = vor.u32 %v922_v58, %v763_v57  ;;  %v743_v60 = vld [vmem:[%s1432_s0 + $0x48] sm:$0xf]  ;;  %v918_v61 = vld [vmem:[%s1432_s0 + $0x50] sm:$0xf0]  ;;  %v917_v62 = vld [vmem:[%s1432_s0 + $0x4c] sm:$0xf] }
  0x11   :  { %v231_v55 = vpack.c.b16 %v198_v51, %v198_v51  ;;  %v745_v63 = vld [vmem:[%s1432_s0 + $0x54] sm:$0xf0]  ;;  %v932_v0 = vld [vmem:[%s1432_s0 + $0xc4] sm:$0xf]  ;;  %v925_v6 = vld [vmem:[%s1432_s0 + $0x88] sm:$0xf0] }
  0x12   :  { %402 = vmatpush.bf16.msra.mxu0 %v941_v13  ;;  %v748_v3 = vor.u32 %v917_v62, %v745_v63  ;;  %v755_v8 = vld [vmem:[%s1432_s0 + $0x60] sm:$0xf]  ;;  %v921_v9 = vld [vmem:[%s1432_s0 + $0x68] sm:$0xf0]  ;;  %v757_v11 = vld [vmem:[%s1432_s0 + $0x6c] sm:$0xf0] }
  0x13   :  { %960 = vmatpush.bf16.msra.mxu3 %v941_v13  ;;  %465 = vmatpush.bf16.msra.mxu1 %v949_v14  ;;  %v817_v13 = vld [vmem:[%s1432_s0 + $0xe4] sm:$0xf0]  ;;  %v787_v17 = vld [vmem:[%s1432_s0 + $0x98] sm:$0xf]  ;;  %v928_v18 = vld [vmem:[%s1432_s0 + $0xa0] sm:$0xf0] }
  0x14   :  { %v769_v24 = vld [vmem:[%s1432_s0 + $0x84] sm:$0xf0]  ;;  %v799_v28 = vld [vmem:[%s1432_s0 + $0xb0] sm:$0xf]  ;;  %v931_v29 = vld [vmem:[%s1432_s0 + $0xb8] sm:$0xf0] }
  0x15   :  { %v927_v33 = vld [vmem:[%s1432_s0 + $0x98] sm:$0xf0]  ;;  %v781_v36 = vld [vmem:[%s1432_s0 + $0x9c] sm:$0xf0]  ;;  %v811_v40 = vld [vmem:[%s1432_s0 + $0xc8] sm:$0xf] }
  0x16   :  { %403 = vmatpush.bf16.msra.mxu0 %v940_v15  ;;  %v934_v41 = vld [vmem:[%s1432_s0 + $0xd0] sm:$0xf0]  ;;  %v929_v45 = vld [vmem:[%s1432_s0 + $0xac] sm:$0xf]  ;;  %v793_v46 = vld [vmem:[%s1432_s0 + $0xb4] sm:$0xf0] }
  0x17   :  { %961 = vmatpush.bf16.msra.mxu3 %v940_v15  ;;  %466 = vmatpush.bf16.msra.mxu1 %v948_v16  ;;  %v796_v49 = vor.u32 %v929_v45, %v793_v46  ;;  %v823_v50 = vld [vmem:[%s1432_s0 + $0xe0] sm:$0xf]  ;;  %v937_v51 = vld [vmem:[%s1432_s0 + $0xe8] sm:$0xf0] }
  0x18   :  { %v824_v53 = vor.u32 %v937_v51, %v823_v50  ;;  %v1271_v58 = vld [vmem:[%s1433_s2] ss:$0 sm:$0xff] }
  0x1a   :  { %898 = vmatmul.msk.bf16.gmra.mxu2 %vm364_vm0, %v728_v19  ;;  %404 = vmatpush.bf16.msra.mxu0 %v939_v20  ;;  %v788_v19 = vor.u32 %v928_v18, %v787_v17 }
  0x1b   :  { %962 = vmatpush.bf16.msra.mxu3 %v939_v20  ;;  %467 = vmatpush.bf16.msra.mxu1 %v947_v21  ;;  %v767_v20 = vld [vmem:[%s1432_s0 + $0x78] sm:$0xf] }
  0x1e   :  { %405 = vmatpush.bf16.msra.mxu0 %v938_v22 }
  0x1f   :  { %963 = vmatpush.bf16.msra.mxu3 %v938_v22  ;;  %468 = vmatpush.bf16.msra.mxu1 %v946_v23  ;;  %v199_v22 = vunpack.c.h.b16 %v58_v48 }
  0x21   :  { %406 = vmatmul.bf16.vlgmr.msra.gmra.mxu0 %v708_v30  ;;  %v232_v27 = vpack.c.b16 %v199_v22, %v199_v22  ;;  %v800_v30 = vor.u32 %v931_v29, %v799_v28 }
  0x22   :  { %446 = vmatmul.bf16.vlgmr.msra.gmra.mxu3 %v804_v31  ;;  %469 = vmatmul.bf16.vlgmr.msra.gmra.mxu1 %v712_v32  ;;  %v59_v31 = vld [vmem:[%s1432_s0 + $0xf8] sm:$0xf]  ;;  %v779_v32 = vld [vmem:[%s1432_s0 + $0x90] sm:$0xf] }
  0x23   :  { %964 = vmatpush.bf16.msrb.mxu3 %v1007_v1  ;;  %v805_v1 = vld [vmem:[%s1432_s0 + $0xcc] sm:$0xf0]  ;;  %v200_v34 = vunpack.c.l.b16 %v59_v31  ;;  %v780_v37 = vor.u32 %v927_v33, %v779_v32 }
  0x25   :  { %v233_v39 = vpack.c.b16 %v200_v34, %v200_v34 }
  0x27   :  { %965 = vmatpush.bf16.msrb.mxu3 %v1020_v4  ;;  %v808_v4 = vor.u32 %v932_v0, %v805_v1 }
  0x2a   :  { %899 = vmatmul.msk.bf16.gmra.mxu2 %vm364_vm0, %v740_v35  ;;  %v926_v35 = vld [vmem:[%s1432_s0 + $0x94] sm:$0xf] }
  0x2b   :  { %966 = vmatpush.bf16.msrb.mxu3 %v951_v10  ;;  %v920_v10 = vld [vmem:[%s1432_s0 + $0x64] sm:$0xf]  ;;  %v784_v38 = vor.u32 %v926_v35, %v781_v36 }
  0x2c   :  { %v760_v15 = vor.u32 %v920_v10, %v757_v11 }
  0x2f   :  { %967 = vmatpush.bf16.msrb.mxu3 %v950_v12  ;;  %v935_v12 = vld [vmem:[%s1432_s0 + $0xdc] sm:$0xf] }
  0x31   :  { %411 = vmatmul.bf16.gmra.mxu0 %v720_v42  ;;  %v812_v42 = vor.u32 %v934_v41, %v811_v40 }
  0x32   :  { %451 = vmatmul.bf16.gmra.mxu3 %v816_v43  ;;  %474 = vmatmul.bf16.gmra.mxu1 %v724_v44  ;;  %v791_v43 = vld [vmem:[%s1432_s0 + $0xa8] sm:$0xf]  ;;  %v930_v44 = vld [vmem:[%s1432_s0 + $0xb0] sm:$0xf0] }
  0x33   :  { %968 = vmatpush.bf16.msrb.mxu3 %v949_v14  ;;  %v756_v14 = vor.u32 %v921_v9, %v755_v8  ;;  %v792_v48 = vor.u32 %v930_v44, %v791_v43 }
  0x37   :  { %969 = vmatpush.bf16.msrb.mxu3 %v948_v16  ;;  %v820_v16 = vor.u32 %v935_v12, %v817_v13 }
  0x3a   :  { %900 = vmatmul.msk.bf16.gmra.mxu2 %vm364_vm0, %v752_v47 }
  0x3b   :  { %970 = vmatpush.bf16.msrb.mxu3 %v947_v21  ;;  %v924_v21 = vld [vmem:[%s1432_s0 + $0x80] sm:$0xf0] }
  0x3c   :  { %v768_v25 = vor.u32 %v924_v21, %v767_v20 }
  0x3f   :  { %971 = vmatpush.bf16.msrb.mxu3 %v946_v23  ;;  %v923_v23 = vld [vmem:[%s1432_s0 + $0x7c] sm:$0xf] }
  0x40   :  { %v772_v26 = vor.u32 %v923_v23, %v769_v24 }
  0x41   :  { %416 = vmatmul.bf16.gmra.mxu0 %v732_v54 }
  0x42   :  { %456 = vmatmul.bf16.gmra.mxu3 %v231_v55  ;;  %479 = vmatmul.bf16.gmra.mxu1 %v736_v56 }
  0x43   :  { %972 = vmatpush.bf16.msra.mxu3 %v1012_v2  ;;  %v744_v2 = vor.u32 %v918_v61, %v743_v60  ;;  %v1276_v60 = vld [vmem:[%s1434_s3] ss:$0 sm:$0xff] }
  0x47   :  { %973 = vmatpush.bf16.msra.mxu3 %v1027_v5  ;;  %v775_v5 = vld [vmem:[%s1432_s0 + $0x80] sm:$0xf] }
  0x48   :  { %v776_v7 = vor.u32 %v925_v6, %v775_v5 }
  0x4a   :  { %901 = vmatmul.msk.bf16.gmra.mxu2 %vm364_vm0, %v764_v59 }
  0x51   :  { %421 = vmatmul.bf16.gmra.mxu0 %v744_v2 }
  0x52   :  { %484 = vmatmul.bf16.gmra.mxu1 %v748_v3  ;;  %509 = vmatmul.bf16.vlgmr.msrb.gmra.mxu3 %v808_v4 }
  0x5a   :  { %902 = vmatmul.msk.bf16.gmra.mxu2 %vm364_vm0, %v776_v7 }
  0x61   :  { %426 = vmatmul.bf16.gmra.mxu0 %v756_v14 }
  0x62   :  { %489 = vmatmul.bf16.gmra.mxu1 %v760_v15  ;;  %514 = vmatmul.bf16.gmra.mxu3 %v820_v16 }
  0x6a   :  { %903 = vmatmul.msk.bf16.gmra.mxu2 %vm364_vm0, %v788_v19 }
  0x71   :  { %431 = vmatmul.bf16.gmra.mxu0 %v768_v25 }
  0x72   :  { %494 = vmatmul.bf16.gmra.mxu1 %v772_v26  ;;  %519 = vmatmul.bf16.gmra.mxu3 %v232_v27 }
  0x7a   :  { %904 = vmatmul.msk.bf16.gmra.mxu2 %vm364_vm0, %v800_v30 }
  0x81   :  { %436 = vmatmul.bf16.gmra.mxu0 %v780_v37 }
  0x82   :  { %499 = vmatmul.bf16.gmra.mxu1 %v784_v38  ;;  %907 = vmatmul.msk.bf16.vlgmr.msra.gmra.mxu3 %vm364_vm0, %v233_v39 }
  0x8a   :  { %905 = vmatmul.msk.bf16.gmra.mxu2 %vm364_vm0, %v812_v42 }
  0x8d   :  { %v533_v47 = vpop.f32.mrf.mxu2 }
  0x91   :  { %441 = vmatmul.bf16.gmra.mxu0 %v792_v48 }
  0x92   :  { %504 = vmatmul.bf16.gmra.mxu1 %v796_v49 }
  0x95   :  { %v535_v52 = vpop.f32.mrf.mxu2 }
  0x9a   :  { %906 = vmatmul.msk.bf16.gmra.mxu2 %vm364_vm0, %v824_v53 }
  0x9d   :  { %v538_v54 = vpop.f32.mrf.mxu2 }
  0x9e   :  { %v407_v55 = vpop.f32.mrf.mxu0 }
  0x9f   :  { %v470_v56 = vpop.f32.mrf.mxu1 }
  0xa0   :  { %v471_v57 = vadd.f32 %v470_v56, %v407_v55 }
  0xa2   :  { %v534_v59 = vadd.f32 %v533_v47, %v471_v57 }
  0xa4   :  { %v591_v61 = vmul.f32 %v1271_v58, %v534_v59 }
  0xa5   :  { %v1279_v62 = vpop.f32.mrf.mxu3  ;;  %v540_v63 = vpop.f32.mrf.mxu2 }
  0xa6   :  { %v616_v0 = vadd.f32 %v1276_v60, %v591_v61  ;;  %v409_v1 = vpop.f32.mrf.mxu0 }
  0xa7   :  { %v472_v2 = vpop.f32.mrf.mxu1 }
  0xa8   :  { %v637_v3 = vmax.f32 %v616_v0, 0.0  ;;  %v473_v4 = vadd.f32 %v472_v2, %v409_v1 }
  0xaa   :  { %v658_v5 = vpack.c.bf16 %v637_v3, %v637_v3  ;;  %v536_v6 = vadd.f32 %v535_v52, %v473_v4 }
  0xac   :  { %680 = vst.msk [vmem:[%s1435_s4] sm:$0xf] %vm679_vm1, %v658_v5  ;;  %v592_v7 = vmul.f32 %v1271_v58, %v536_v6 }
  0xad   :  { %v1287_v8 = vpop.f32.mrf.mxu3  ;;  %v543_v9 = vpop.f32.mrf.mxu2 }
  0xae   :  { %v617_v10 = vadd.f32 %v1276_v60, %v592_v7  ;;  %v412_v11 = vpop.f32.mrf.mxu0 }
  0xaf   :  { %v475_v12 = vpop.f32.mrf.mxu1 }
  0xb0   :  { %v638_v13 = vmax.f32 %v617_v10, 0.0  ;;  %v476_v14 = vadd.f32 %v475_v12, %v412_v11 }
  0xb2   :  { %v659_v15 = vpack.c.bf16 %v638_v13, %v638_v13  ;;  %v539_v16 = vadd.f32 %v538_v54, %v476_v14 }
  0xb4   :  { %681 = vst.msk [vmem:[%s1435_s4 + $0x4] sm:$0xf] %vm679_vm1, %v659_v15  ;;  %v593_v17 = vmul.f32 %v1271_v58, %v539_v16 }
  0xb5   :  { %v1295_v18 = vpop.f32.mrf.mxu3  ;;  %v545_v19 = vpop.f32.mrf.mxu2 }
  0xb6   :  { %v618_v20 = vadd.f32 %v1276_v60, %v593_v17  ;;  %v414_v21 = vpop.f32.mrf.mxu0 }
  0xb7   :  { %v477_v22 = vpop.f32.mrf.mxu1 }
  0xb8   :  { %v639_v23 = vmax.f32 %v618_v20, 0.0  ;;  %v478_v24 = vadd.f32 %v477_v22, %v414_v21 }
  0xba   :  { %v660_v25 = vpack.c.bf16 %v639_v23, %v639_v23  ;;  %v541_v26 = vadd.f32 %v540_v63, %v478_v24 }
  0xbc   :  { %682 = vst.msk [vmem:[%s1435_s4 + $0x8] sm:$0xf] %vm679_vm1, %v660_v25  ;;  %v594_v27 = vmul.f32 %v1271_v58, %v541_v26 }
  0xbd   :  { %v1303_v28 = vpop.f32.mrf.mxu3  ;;  %v548_v29 = vpop.f32.mrf.mxu2 }
  0xbe   :  { %v619_v30 = vadd.f32 %v1276_v60, %v594_v27  ;;  %v417_v31 = vpop.f32.mrf.mxu0 }
  0xbf   :  { %v480_v32 = vpop.f32.mrf.mxu1 }
  0xc0   :  { %v640_v33 = vmax.f32 %v619_v30, 0.0  ;;  %v481_v34 = vadd.f32 %v480_v32, %v417_v31 }
  0xc2   :  { %v661_v35 = vpack.c.bf16 %v640_v33, %v640_v33  ;;  %v544_v36 = vadd.f32 %v543_v9, %v481_v34 }
  0xc4   :  { %683 = vst.msk [vmem:[%s1435_s4 + $0xc] sm:$0xf] %vm679_vm1, %v661_v35  ;;  %v595_v37 = vmul.f32 %v1271_v58, %v544_v36 }
  0xc5   :  { %v1311_v38 = vpop.f32.mrf.mxu3  ;;  %v550_v39 = vpop.f32.mrf.mxu2 }
  0xc6   :  { %v620_v40 = vadd.f32 %v1276_v60, %v595_v37  ;;  %v419_v41 = vpop.f32.mrf.mxu0 }
  0xc7   :  { %v482_v42 = vpop.f32.mrf.mxu1 }
  0xc8   :  { %v641_v43 = vmax.f32 %v620_v40, 0.0  ;;  %v483_v44 = vadd.f32 %v482_v42, %v419_v41 }
  0xca   :  { %v662_v45 = vpack.c.bf16 %v641_v43, %v641_v43  ;;  %v546_v46 = vadd.f32 %v545_v19, %v483_v44 }
  0xcc   :  { %684 = vst.msk [vmem:[%s1435_s4 + $0x10] sm:$0xf] %vm679_vm1, %v662_v45  ;;  %v596_v47 = vmul.f32 %v1271_v58, %v546_v46 }
  0xcd   :  { %v459_v48 = vpop.f32.mrf.mxu3  ;;  %v553_v49 = vpop.f32.mrf.mxu2 }
  0xce   :  { %v621_v50 = vadd.f32 %v1276_v60, %v596_v47  ;;  %v422_v51 = vpop.f32.mrf.mxu0 }
  0xcf   :  { %v485_v52 = vpop.f32.mrf.mxu1 }
  0xd0   :  { %v642_v53 = vmax.f32 %v621_v50, 0.0  ;;  %v486_v54 = vadd.f32 %v485_v52, %v422_v51 }
  0xd2   :  { %v663_v55 = vpack.c.bf16 %v642_v53, %v642_v53  ;;  %v549_v56 = vadd.f32 %v548_v29, %v486_v54 }
  0xd4   :  { %685 = vst.msk [vmem:[%s1435_s4 + $0x14] sm:$0xf] %vm679_vm1, %v663_v55  ;;  %v597_v57 = vmul.f32 %v1271_v58, %v549_v56 }
  0xd5   :  { %v1325_v59 = vpop.f32.mrf.mxu3  ;;  %v555_v61 = vpop.f32.mrf.mxu2 }
  0xd6   :  { %v622_v63 = vadd.f32 %v1276_v60, %v597_v57  ;;  %v424_v0 = vpop.f32.mrf.mxu0 }
  0xd7   :  { %v487_v1 = vpop.f32.mrf.mxu1 }
  0xd8   :  { %v643_v2 = vmax.f32 %v622_v63, 0.0  ;;  %v488_v3 = vadd.f32 %v487_v1, %v424_v0 }
  0xda   :  { %v664_v4 = vpack.c.bf16 %v643_v2, %v643_v2  ;;  %v551_v5 = vadd.f32 %v550_v39, %v488_v3 }
  0xdc   :  { %686 = vst.msk [vmem:[%s1435_s4 + $0x18] sm:$0xf] %vm679_vm1, %v664_v4  ;;  %v598_v6 = vmul.f32 %v1271_v58, %v551_v5 }
  0xdd   :  { %v1333_v7 = vpop.f32.mrf.mxu3  ;;  %v558_v9 = vpop.f32.mrf.mxu2 }
  0xde   :  { %v623_v10 = vadd.f32 %v1276_v60, %v598_v6  ;;  %v427_v11 = vpop.f32.mrf.mxu0 }
  0xdf   :  { %v490_v12 = vpop.f32.mrf.mxu1 }
  0xe0   :  { %v644_v13 = vmax.f32 %v623_v10, 0.0  ;;  %v491_v14 = vadd.f32 %v490_v12, %v427_v11 }
  0xe2   :  { %v665_v15 = vpack.c.bf16 %v644_v13, %v644_v13  ;;  %v554_v16 = vadd.f32 %v553_v49, %v491_v14 }
  0xe4   :  { %687 = vst.msk [vmem:[%s1435_s4 + $0x1c] sm:$0xf] %vm679_vm1, %v665_v15  ;;  %v599_v17 = vmul.f32 %v1271_v58, %v554_v16  ;;  %v511_v15 = vadd.f32 %v1325_v59, %v1279_v62 }
  0xe5   :  { %v1341_v19 = vpop.f32.mrf.mxu3  ;;  %v560_v20 = vpop.f32.mrf.mxu2 }
  0xe6   :  { %v624_v21 = vadd.f32 %v1276_v60, %v599_v17  ;;  %v429_v22 = vpop.f32.mrf.mxu0 }
  0xe7   :  { %v492_v23 = vpop.f32.mrf.mxu1 }
  0xe8   :  { %v645_v24 = vmax.f32 %v624_v21, 0.0  ;;  %v493_v25 = vadd.f32 %v492_v23, %v429_v22 }
  0xea   :  { %v666_v26 = vpack.c.bf16 %v645_v24, %v645_v24  ;;  %v556_v27 = vadd.f32 %v555_v61, %v493_v25 }
  0xec   :  { %688 = vst.msk [vmem:[%s1435_s4 + $0x20] sm:$0xf] %vm679_vm1, %v666_v26  ;;  %v600_v29 = vmul.f32 %v1271_v58, %v556_v27 }
  0xed   :  { %v1349_v30 = vpop.f32.mrf.mxu3  ;;  %v563_v31 = vpop.f32.mrf.mxu2 }
  0xee   :  { %v625_v32 = vadd.f32 %v1276_v60, %v600_v29  ;;  %v432_v33 = vpop.f32.mrf.mxu0 }
  0xef   :  { %v495_v34 = vpop.f32.mrf.mxu1 }
  0xf0   :  { %v646_v35 = vmax.f32 %v625_v32, 0.0  ;;  %v496_v36 = vadd.f32 %v495_v34, %v432_v33  ;;  %v513_v33 = vadd.f32 %v1333_v7, %v1287_v8 }
  0xf2   :  { %v667_v37 = vpack.c.bf16 %v646_v35, %v646_v35  ;;  %v559_v39 = vadd.f32 %v558_v9, %v496_v36 }
  0xf4   :  { %689 = vst.msk [vmem:[%s1435_s4 + $0x24] sm:$0xf] %vm679_vm1, %v667_v37  ;;  %v601_v40 = vmul.f32 %v1271_v58, %v559_v39 }
  0xf5   :  { %v520_v41 = vpop.f32.mrf.mxu3  ;;  %v565_v42 = vpop.f32.mrf.mxu2 }
  0xf6   :  { %v626_v43 = vadd.f32 %v1276_v60, %v601_v40  ;;  %v434_v44 = vpop.f32.mrf.mxu0  ;;  %v521_v0 = vadd.f32 %v520_v41, %v1311_v38 }
  0xf7   :  { %v497_v45 = vpop.f32.mrf.mxu1 }
  0xf8   :  { %v647_v46 = vmax.f32 %v626_v43, 0.0  ;;  %v498_v47 = vadd.f32 %v497_v45, %v434_v44 }
  0xfa   :  { %v668_v48 = vpack.c.bf16 %v647_v46, %v647_v46  ;;  %v561_v49 = vadd.f32 %v560_v20, %v498_v47  ;;  %v516_v47 = vadd.f32 %v1341_v19, %v1295_v18 }
  0xfc   :  { %690 = vst.msk [vmem:[%s1435_s4 + $0x28] sm:$0xf] %vm679_vm1, %v668_v48  ;;  %v602_v50 = vmul.f32 %v1271_v58, %v561_v49 }
  0xfd   :  { %v522_v51 = vpop.f32.mrf.mxu3  ;;  %v568_v52 = vpop.f32.mrf.mxu2 }
  0xfe   :  { %v627_v53 = vadd.f32 %v1276_v60, %v602_v50  ;;  %v437_v54 = vpop.f32.mrf.mxu0 }
  0xff   :  { %v500_v55 = vpop.f32.mrf.mxu1 }
 0x100   :  { %v648_v56 = vmax.f32 %v627_v53, 0.0  ;;  %v501_v57 = vadd.f32 %v500_v55, %v437_v54 }
 0x102   :  { %v669_v61 = vpack.c.bf16 %v648_v56, %v648_v56  ;;  %v564_v63 = vadd.f32 %v563_v31, %v501_v57  ;;  %v518_v56 = vadd.f32 %v1349_v30, %v1303_v28 }
 0x104   :  { %691 = vst.msk [vmem:[%s1435_s4 + $0x2c] sm:$0xf] %vm679_vm1, %v669_v61  ;;  %v603_v1 = vmul.f32 %v1271_v58, %v564_v63 }
 0x105   :  { %v570_v2 = vpop.f32.mrf.mxu2  ;;  %v583_v3 = vpop.f32.mrf.mxu3 }
 0x106   :  { %v628_v4 = vadd.f32 %v1276_v60, %v603_v1  ;;  %v584_v5 = vadd.f32 %v583_v3, %v521_v0  ;;  %v439_v6 = vpop.f32.mrf.mxu0 }
 0x107   :  { %v502_v9 = vpop.f32.mrf.mxu1 }
 0x108   :  { %v649_v10 = vmax.f32 %v628_v4, 0.0  ;;  %v611_v11 = vmul.f32 %v1271_v58, %v584_v5  ;;  %v503_v12 = vadd.f32 %v502_v9, %v439_v6 }
 0x10a   :  { %v670_v13 = vpack.c.bf16 %v649_v10, %v649_v10  ;;  %v636_v38 = vadd.f32 %v1276_v60, %v611_v11  ;;  %v566_v14 = vadd.f32 %v565_v42, %v503_v12 }
 0x10c   :  { %692 = vst.msk [vmem:[%s1435_s4 + $0x30] sm:$0xf] %vm679_vm1, %v670_v13  ;;  %v657_v16 = vmax.f32 %v636_v38, 0.0  ;;  %v604_v17 = vmul.f32 %v1271_v58, %v566_v14 }
 0x10d   :  { %v573_v20 = vpop.f32.mrf.mxu2  ;;  %v585_v21 = vpop.f32.mrf.mxu3 }
 0x10e   :  { %v678_v22 = vpack.c.bf16 %v657_v16, %v657_v16  ;;  %v629_v23 = vadd.f32 %v1276_v60, %v604_v17  ;;  %v574_v24 = vadd.f32 %v573_v20, %v511_v15  ;;  %v442_v25 = vpop.f32.mrf.mxu0 }
 0x10f   :  { %v505_v26 = vpop.f32.mrf.mxu1 }
 0x110   :  { %700 = vst.msk [vmem:[%s1435_s4 + $0x50] sm:$0xf] %vm679_vm1, %v678_v22  ;;  %v650_v62 = vmax.f32 %v629_v23, 0.0  ;;  %v607_v59 = vmul.f32 %v1271_v58, %v574_v24  ;;  %v506_v27 = vadd.f32 %v505_v26, %v442_v25 }
 0x112   :  { %v671_v29 = vpack.c.bf16 %v650_v62, %v650_v62  ;;  %v632_v31 = vadd.f32 %v1276_v60, %v607_v59  ;;  %v569_v32 = vadd.f32 %v568_v52, %v506_v27 }
 0x114   :  { %693 = vst.msk [vmem:[%s1435_s4 + $0x34] sm:$0xf] %vm679_vm1, %v671_v29  ;;  %v653_v34 = vmax.f32 %v632_v31, 0.0  ;;  %v605_v35 = vmul.f32 %v1271_v58, %v569_v32 }
 0x115   :  { %v575_v36 = vpop.f32.mrf.mxu2 }
 0x116   :  { %v674_v37 = vpack.c.bf16 %v653_v34, %v653_v34  ;;  %v630_v39 = vadd.f32 %v1276_v60, %v605_v35  ;;  %v576_v40 = vadd.f32 %v575_v36, %v513_v33  ;;  %v444_v41 = vpop.f32.mrf.mxu0 }
 0x117   :  { %v507_v42 = vpop.f32.mrf.mxu1 }
 0x118   :  { %696 = vst.msk [vmem:[%s1435_s4 + $0x40] sm:$0xf] %vm679_vm1, %v674_v37  ;;  %v651_v8 = vmax.f32 %v630_v39, 0.0  ;;  %v608_v7 = vmul.f32 %v1271_v58, %v576_v40  ;;  %v508_v43 = vadd.f32 %v507_v42, %v444_v41 }
 0x11a   :  { %v672_v44 = vpack.c.bf16 %v651_v8, %v651_v8  ;;  %v633_v45 = vadd.f32 %v1276_v60, %v608_v7  ;;  %v571_v46 = vadd.f32 %v570_v2, %v508_v43 }
 0x11c   :  { %694 = vst.msk [vmem:[%s1435_s4 + $0x38] sm:$0xf] %vm679_vm1, %v672_v44  ;;  %v654_v48 = vmax.f32 %v633_v45, 0.0  ;;  %v606_v49 = vmul.f32 %v1271_v58, %v571_v46 }
 0x11d   :  { %v578_v50 = vpop.f32.mrf.mxu2 }
 0x11e   :  { %v675_v51 = vpack.c.bf16 %v654_v48, %v654_v48  ;;  %v631_v52 = vadd.f32 %v1276_v60, %v606_v49  ;;  %v579_v53 = vadd.f32 %v578_v50, %v516_v47 }
 0x120   :  { %697 = vst.msk [vmem:[%s1435_s4 + $0x44] sm:$0xf] %vm679_vm1, %v675_v51  ;;  %v652_v54 = vmax.f32 %v631_v52, 0.0  ;;  %v609_v18 = vmul.f32 %v1271_v58, %v579_v53 }
 0x122   :  { %v673_v19 = vpack.c.bf16 %v652_v54, %v652_v54  ;;  %v634_v55 = vadd.f32 %v1276_v60, %v609_v18 }
 0x124   :  { %695 = vst.msk [vmem:[%s1435_s4 + $0x3c] sm:$0xf] %vm679_vm1, %v673_v19  ;;  %v655_v57 = vmax.f32 %v634_v55, 0.0 }
 0x125   :  { %v580_v61 = vpop.f32.mrf.mxu2 }
 0x126   :  { %v676_v63 = vpack.c.bf16 %v655_v57, %v655_v57  ;;  %v581_v0 = vadd.f32 %v580_v61, %v518_v56 }
 0x128   :  { %698 = vst.msk [vmem:[%s1435_s4 + $0x48] sm:$0xf] %vm679_vm1, %v676_v63  ;;  %v610_v1 = vmul.f32 %v1271_v58, %v581_v0 }
 0x12a   :  { %v635_v2 = vadd.f32 %v1276_v60, %v610_v1 }
 0x12c   :  { %v656_v3 = vmax.f32 %v635_v2, 0.0 }
 0x12e   :  { %v677_v28 = vpack.c.bf16 %v656_v3, %v656_v3 }
 0x130   :  { %699 = vst.msk [vmem:[%s1435_s4 + $0x4c] sm:$0xf] %vm679_vm1, %v677_v28 }

// kernel: cnn_planner_forward.45
= control target key start
LH: loop header
LB: loop body
LE: loop exit
PB: predicated region body
PF: predicated region fallthrough
CT: control target
= control target key end

     0   :  { %s366_s12 = smov 0   ;;  %s413_s0 = inlined_call_operand.vmem [shape: bf16[2,81,32], index: 0, kind: input, shape index: {}]   ;;  %s414_s1 = inlined_call_operand.vmem [shape: f32[32,6], index: 1, kind: input, shape index: {}]   ;;  %s415_s2 = inlined_call_operand.vmem [shape: f32[1,6], index: 2, kind: input, shape index: {}]   ;;  %s416_s3 = inlined_call_operand.vmem [shape: f32[2,1,6], index: 3, kind: output, shape index: {}]  }
   0x1 LB: > { %s296_s13 = sadd.s32 4294967295, %s344_s12   ;;  %p300_p0 = scmp.ge.s32.totalorder %s344_s12, 1  ;;  %s344_s12 = sphi %s366_s12, %s13_s12  }
   0x2   : > { %p137_p1 = scmp.lt.s32.totalorder %s344_s12, 3 }
   0x4   : > { %p138_p2 = pnand %p300_p0, %p137_p1 }
   0x5   : > { %p159_p3 = scmp.lt.s32.totalorder (!%p138_p2), %s296_s13, 1 }
   0x6   : > { %141 = sbr.rel (%p138_p2) target bundleno = 182 (0xb6), region = 32 }
   0xb   : > { %v222_v0 = vld [vmem:[%s414_s1 + $0x18] sm:$0xff]  ;;  %v221_v1 = vld [vmem:[%s414_s1 + $0x10] sm:$0xff]  ;;  %v220_v2 = vld [vmem:[%s414_s1 + $0x8] sm:$0xff]  ;;  %s418_s13 = smov (!%p159_p3, %s296_s13), 1  ;;  %vm189_vm0 = vcmask 261120   ;;  %vm209_vm1 = vcmask 253952  }
   0xc   : > { %239 = vmatpush.msra.mxu0 %v222_v0  ;;  %v219_v3 = vld [vmem:[%s414_s1] sm:$0xff]  ;;  %s329_s22 = smul.u32 44, %s418_s13  ;;  %s166_s30 = scalar_lea.vmem %s416_s3, %s418_s13  ;;  %vm247_vm2 = vcmask 40960  }
   0xd   : > { %v223_v49 = vld [vmem:[%s415_s2] sm:$0x1] }
   0xe   : > { %240 = vmatpush.msra.mxu0 %v221_v1  ;;  %s163_s25 = scalar_lea.vmem %s413_s0, %s329_s22 }
   0xf   : > { %v306_v4 = vld [vmem:[%s163_s25] sm:$0xff]   ;;  %v325_v5 = vld [vmem:[%s163_s25 + $0x8] sm:$0xff]   ;;  %v326_v9 = vld [vmem:[%s163_s25 + $0x10] sm:$0xff]  }
  0x10   : > { %241 = vmatpush.msra.mxu0 %v220_v2  ;;  %v307_v6 = vunpack.c.l.bf16 %v306_v4  ;;  %v308_v7 = vunpack.c.h.bf16 %v306_v4  ;;  %v311_v8 = vunpack.c.l.bf16 %v325_v5  ;;  %v312_v10 = vunpack.c.h.bf16 %v325_v5  ;;  %v327_v15 = vld [vmem:[%s163_s25 + $0x18] sm:$0xff]   ;;  %v328_v22 = vld [vmem:[%s163_s25 + $0x20] sm:$0xff]   ;;  %v177_v29 = vld [vmem:[%s163_s25 + $0x28] sm:$0x1] }
  0x11   : > { %v315_v12 = vunpack.c.l.bf16 %v326_v9  ;;  %v316_v17 = vunpack.c.h.bf16 %v326_v9  ;;  %v319_v20 = vunpack.c.l.bf16 %v327_v15  ;;  %v320_v24 = vunpack.c.h.bf16 %v327_v15 }
  0x12   : > { %242 = vmatpush.msra.mxu0 %v219_v3  ;;  %v190_v11 = vsel %vm189_vm0, %v307_v6, 0.0  ;;  %v191_v13 = vsel %vm189_vm0, %v308_v7, 0.0  ;;  %v193_v14 = vsel %vm189_vm0, %v311_v8, 0.0  ;;  %v195_v18 = vsel %vm189_vm0, %v312_v10, 0.0 }
  0x13   : > { %v192_v16 = vadd.f32 %v191_v13, %v190_v11  ;;  %v197_v21 = vsel %vm189_vm0, %v315_v12, 0.0  ;;  %v199_v25 = vsel %vm189_vm0, %v316_v17, 0.0  ;;  %v323_v27 = vunpack.c.l.bf16 %v328_v22 }
  0x14   : > { %v201_v28 = vsel %vm189_vm0, %v319_v20, 0.0  ;;  %v324_v31 = vunpack.c.h.bf16 %v328_v22  ;;  %v203_v32 = vsel %vm189_vm0, %v320_v24, 0.0  ;;  %v188_v34 = vunpack.c.l.bf16 %v177_v29 }
  0x15   : > { %v194_v19 = vadd.f32 %v193_v14, %v192_v16  ;;  %v205_v35 = vsel %vm189_vm0, %v323_v27, 0.0 }
  0x16   : > { %v207_v37 = vsel %vm189_vm0, %v324_v31, 0.0  ;;  %v210_v39 = vsel %vm209_vm1, %v188_v34, 0.0 }
  0x17   : > { %v196_v23 = vadd.f32 %v195_v18, %v194_v19 }
  0x19   : > { %v198_v26 = vadd.f32 %v197_v21, %v196_v23 }
  0x1b   : > { %v200_v30 = vadd.f32 %v199_v25, %v198_v26 }
  0x1d   : > { %v202_v33 = vadd.f32 %v201_v28, %v200_v30 }
  0x1f   : > { %v204_v36 = vadd.f32 %v203_v32, %v202_v33 }
  0x21   : > { %v206_v38 = vadd.f32 %v205_v35, %v204_v36 }
  0x23   : > { %v208_v40 = vadd.f32 %v207_v37, %v206_v38 }
  0x25   : > { %v211_v41 = vadd.f32 %v210_v39, %v208_v40 }
  0x27   : > { %v212_v42 = vrot.slane %v211_v41, 4 }
  0x29   : > { %v213_v43 = vadd.f32 %v212_v42, %v211_v41 }
  0x2b   : > { %v214_v44 = vrot.slane %v213_v43, 2 }
  0x2d   : > { %v215_v45 = vadd.f32 %v214_v44, %v213_v43 }
  0x2f   : > { %v216_v46 = vrot.slane %v215_v45, 1 }
  0x31   : > { %v217_v47 = vadd.f32 %v216_v46, %v215_v45 }
  0x33   : > { %v218_v48 = vmul.f32 0.012345679, %v217_v47 }
  0x35   : > { %302 = vmatmul.msk.f32.vlgmr.msra.gmra.mxu0 %vm189_vm0, %v218_v48 }
  0xb2   : > { %v244_v50 = vpop.f32.mrf.mxu0 }
  0xb3   : > { %v245_v51 = vadd.f32 %v244_v50, %v223_v49 }
  0xb5   : > { %248 = vst.msk [vmem:[%s166_s30] sm:$0x1] %vm247_vm2, %v245_v51 }
  0xb6 PF: > { %s13_s12 = sadd.s32 1, %s344_s12  }
  0xb7   : > { %p10_p4 = scmp.ge.s32.totalorder %s13_s12, 4  }
  0xb9   :  { %12 = sbr.rel (!%p10_p4) target bundleno = 1 (0x1), region = 62 }

</bundles_post_ra>
